<compile_context>
chip_gen: v5e
topology: v5e:2x2
jax: 0.10.0
libtpu: 0.0.40
codegen_flags: <defaults>
</compile_context>

<pallas_src>
import jax
import jax.numpy as jnp
from jax.experimental import pallas as pl
from jax.experimental.pallas import tpu as pltpu

# Hyperparameters faithful to the PyTorch module:
# nn.Transformer(d_model=64, nhead=4, num_encoder_layers=2,
#                num_decoder_layers=6 (default), dim_feedforward=2048 (default))
D_MODEL = 64
NHEAD = 4
HEAD_DIM = D_MODEL // NHEAD
NUM_ENCODER_LAYERS = 2
NUM_DECODER_LAYERS = 6
NUM_LAYERS = NUM_ENCODER_LAYERS + NUM_DECODER_LAYERS
DIM_FEEDFORWARD = 2048
LN_EPS = 1e-5

# Weight matrices streamed to the kernel in bf16 (weight DMA is the bottleneck).
_BF16_KEYS = ("enc_wqkv", "enc_wo", "enc_w1", "enc_w2",
              "dec_s_wqkv", "dec_s_wo", "dec_c_wq", "dec_c_wkv", "dec_c_wo",
              "dec_w1", "dec_w2")


# --------------------------- in-kernel helpers ------------------------------

def _ln(x, g, b):
    mu = jnp.mean(x, axis=-1, keepdims=True)
    var = jnp.mean(jnp.square(x - mu), axis=-1, keepdims=True)
    return (x - mu) * jax.lax.rsqrt(var + LN_EPS) * g + b


def _add_ln(x, res, g, b):
    return _ln(x + res, g, b)


def _ffn(x, w1, b1, w2, b2):
    # bf16 weights are promoted to f32 inside the dot (f32 math / accumulate).
    h = jnp.dot(x, w1, preferred_element_type=jnp.float32) + b1
    h = jnp.maximum(h, 0.0)                                      # ReLU
    return jnp.dot(h, w2, preferred_element_type=jnp.float32) + b2


def _mha(q, k, v, wo, mask):
    """Multi-head softmax attention with the batch folded into the matmul rows.

    q: (Mq, D) f32, k/v: (Mk, D) f32 (rows grouped by batch), wo: (D, D) bf16,
    mask: (Mq, Mk) additive block-diagonal mask (0 within a batch, -1e30 across
    batches).  The output projection is accumulated per head from row-slices of
    wo, so there are no lane concatenates.  Returns (Mq, D) f32 (no bias)."""
    scale = HEAD_DIM ** -0.5
    out = jnp.zeros((q.shape[0], D_MODEL), jnp.float32)
    for h in range(NHEAD):                       # 4 static iterations
        lo, hi = h * HEAD_DIM, (h + 1) * HEAD_DIM
        s = jax.lax.dot_general(q[:, lo:hi] * scale, k[:, lo:hi],
                                (((1,), (1,)), ((), ())),
                                preferred_element_type=jnp.float32)   # (Mq, Mk)
        s = s + mask
        s = s - jnp.max(s, axis=-1, keepdims=True)
        p = jnp.exp(s)
        p = p / jnp.sum(p, axis=-1, keepdims=True)
        oh = jnp.dot(p, v[:, lo:hi], preferred_element_type=jnp.float32)  # (Mq, Hd)
        out = out + jnp.dot(oh, wo[lo:hi, :], preferred_element_type=jnp.float32)
    return out


# ------------------------------- fused kernel --------------------------------

def _transformer_kernel(
        src_ref, tgt_ref, in_w_ref, in_b_ref,
        enc_mask_ref, dec_mask_ref, cross_mask_ref,
        e_wqkv_ref, e_bqkv_ref, e_wo_ref, e_bo_ref,
        e_ln1g_ref, e_ln1b_ref, e_ln2g_ref, e_ln2b_ref,
        e_w1_ref, e_b1_ref, e_w2_ref, e_b2_ref,
        e_fng_ref, e_fnb_ref,
        d_wqkv_ref, d_bqkv_ref, d_wo_ref, d_bo_ref,
        d_cwq_ref, d_cbq_ref, d_cwkv_ref, d_cbkv_ref,
        d_cwo_ref, d_cbo_ref,
        d_ln1g_ref, d_ln1b_ref, d_ln2g_ref, d_ln2b_ref,
        d_ln3g_ref, d_ln3b_ref,
        d_w1_ref, d_b1_ref, d_w2_ref, d_b2_ref,
        d_fng_ref, d_fnb_ref,
        out_ref, enc_x, dec_x):
    l = pl.program_id(0)
    D = D_MODEL

    # ----------------------------- encoder steps -----------------------------
    @pl.when(l < NUM_ENCODER_LAYERS)
    def _encoder_layer():
        @pl.when(l == 0)
        def _():
            # Input embedding Linear(1 -> D) folded into the first step.
            enc_x[...] = src_ref[...] * in_w_ref[...] + in_b_ref[...]

        x = enc_x[...]
        # Self-attention: fused QKV matmul, masked batched attention, out-proj.
        qkv = (jnp.dot(x, e_wqkv_ref[...], preferred_element_type=jnp.float32)
               + e_bqkv_ref[...])
        sa = _mha(qkv[:, :D], qkv[:, D:2 * D], qkv[:, 2 * D:],
                  e_wo_ref[...], enc_mask_ref[...]) + e_bo_ref[...]
        x1 = _add_ln(x, sa, e_ln1g_ref[...], e_ln1b_ref[...])
        # Feed-forward + residual + LayerNorm.
        ff = _ffn(x1, e_w1_ref[...], e_b1_ref[...], e_w2_ref[...], e_b2_ref[...])
        x2 = _add_ln(x1, ff, e_ln2g_ref[...], e_ln2b_ref[...])
        enc_x[...] = x2

        # Final encoder LayerNorm folded into the last encoder step; enc_x then
        # holds the encoder memory, which stays in VMEM for all decoder steps.
        @pl.when(l == NUM_ENCODER_LAYERS - 1)
        def _():
            enc_x[...] = _ln(x2, e_fng_ref[...], e_fnb_ref[...])

    # ----------------------------- decoder steps -----------------------------
    @pl.when(l >= NUM_ENCODER_LAYERS)
    def _decoder_layer():
        @pl.when(l == NUM_ENCODER_LAYERS)
        def _():
            dec_x[...] = tgt_ref[...] * in_w_ref[...] + in_b_ref[...]

        y = dec_x[...]
        # Self-attention (fused QKV) + residual + LayerNorm.
        qkv = (jnp.dot(y, d_wqkv_ref[...], preferred_element_type=jnp.float32)
               + d_bqkv_ref[...])
        sa = _mha(qkv[:, :D], qkv[:, D:2 * D], qkv[:, 2 * D:],
                  d_wo_ref[...], dec_mask_ref[...]) + d_bo_ref[...]
        y1 = _add_ln(y, sa, d_ln1g_ref[...], d_ln1b_ref[...])

        # Cross-attention against the VMEM-resident encoder memory.
        mem = enc_x[...]
        qc = (jnp.dot(y1, d_cwq_ref[...], preferred_element_type=jnp.float32)
              + d_cbq_ref[...])
        kv = (jnp.dot(mem, d_cwkv_ref[...], preferred_element_type=jnp.float32)
              + d_cbkv_ref[...])
        ca = _mha(qc, kv[:, :D], kv[:, D:],
                  d_cwo_ref[...], cross_mask_ref[...]) + d_cbo_ref[...]
        y2 = _add_ln(y1, ca, d_ln2g_ref[...], d_ln2b_ref[...])

        # Feed-forward + residual + LayerNorm.
        ff = _ffn(y2, d_w1_ref[...], d_b1_ref[...], d_w2_ref[...], d_b2_ref[...])
        y3 = _add_ln(y2, ff, d_ln3g_ref[...], d_ln3b_ref[...])
        dec_x[...] = y3

        # Final decoder LayerNorm on the last step.  (B*T, D) emitted lane-dense;
        # the 64 -> 1 output head runs in the wrapper.
        @pl.when(l == NUM_LAYERS - 1)
        def _():
            out_ref[...] = _ln(y3, d_fng_ref[...], d_fnb_ref[...])


# ------------------------------ pallas_call wrapper ---------------------------

def _const_spec(shape):
    n = len(shape)
    return pl.BlockSpec(shape, lambda l, _n=n: (0,) * _n)


def _enc_spec(shape):
    # Stacked encoder parameter: layer axis selected by the grid step, clamped to
    # the last encoder layer during decoder steps (so it is never re-fetched).
    n = len(shape)
    return pl.BlockSpec(
        (None,) + shape,
        lambda l, _n=n: (jnp.minimum(l, NUM_ENCODER_LAYERS - 1),) + (0,) * _n)


def _dec_spec(shape):
    # Stacked decoder parameter: clamped to layer 0 during the encoder steps so
    # the decoder's first-layer weights are prefetched while the encoder runs.
    n = len(shape)
    return pl.BlockSpec(
        (None,) + shape,
        lambda l, _n=n: (jnp.maximum(l - NUM_ENCODER_LAYERS, 0),) + (0,) * _n)


def _block_diag_mask(batch, lq, lk):
    """(batch*lq, batch*lk) additive mask: 0 within a batch block, -1e30 across."""
    bq = jnp.repeat(jnp.arange(batch, dtype=jnp.int32), lq)
    bk = jnp.repeat(jnp.arange(batch, dtype=jnp.int32), lk)
    return jnp.where(bq[:, None] == bk[None, :], 0.0, -1e30).astype(jnp.float32)


def transformer_stacks(src_bm, tgt_bm, params, *, batch, src_len, tgt_len):
    """src_bm: (B*S, 1), tgt_bm: (B*T, 1) batch-major rows ->
    final-LayerNorm'd decoder activations (B*T, D)."""
    Ms, Mt = batch * src_len, batch * tgt_len
    D, F = D_MODEL, DIM_FEEDFORWARD

    # bf16 weight feed (the kernel is weight-DMA bound); kernel math stays f32.
    q = {k: (v.astype(jnp.bfloat16) if k in _BF16_KEYS else v)
         for k, v in params.items()}

    enc_mask = _block_diag_mask(batch, src_len, src_len)     # (Ms, Ms)
    dec_mask = _block_diag_mask(batch, tgt_len, tgt_len)     # (Mt, Mt)
    cross_mask = _block_diag_mask(batch, tgt_len, src_len)   # (Mt, Ms)

    return pl.pallas_call(
        _transformer_kernel,
        grid=(NUM_LAYERS,),
        out_shape=jax.ShapeDtypeStruct((Mt, D), jnp.float32),
        in_specs=[
            _const_spec((Ms, 1)), _const_spec((Mt, 1)),          # src, tgt
            _const_spec((1, D)), _const_spec((1, D)),            # in_w, in_b
            _const_spec((Ms, Ms)), _const_spec((Mt, Mt)),        # attention batch masks
            _const_spec((Mt, Ms)),
            # encoder (stacked over NUM_ENCODER_LAYERS)
            _enc_spec((D, 3 * D)), _enc_spec((1, 3 * D)),        # fused QKV
            _enc_spec((D, D)), _enc_spec((1, D)),                # out-proj
            _enc_spec((1, D)), _enc_spec((1, D)),                # ln1 g/b
            _enc_spec((1, D)), _enc_spec((1, D)),                # ln2 g/b
            _enc_spec((D, F)), _enc_spec((1, F)),                # ffn w1/b1
            _enc_spec((F, D)), _enc_spec((1, D)),                # ffn w2/b2
            _const_spec((1, D)), _const_spec((1, D)),            # final encoder norm
            # decoder (stacked over NUM_DECODER_LAYERS)
            _dec_spec((D, 3 * D)), _dec_spec((1, 3 * D)),        # self fused QKV
            _dec_spec((D, D)), _dec_spec((1, D)),                # self out-proj
            _dec_spec((D, D)), _dec_spec((1, D)),                # cross q
            _dec_spec((D, 2 * D)), _dec_spec((1, 2 * D)),        # cross fused KV
            _dec_spec((D, D)), _dec_spec((1, D)),                # cross out-proj
            _dec_spec((1, D)), _dec_spec((1, D)),                # ln1 g/b
            _dec_spec((1, D)), _dec_spec((1, D)),                # ln2 g/b
            _dec_spec((1, D)), _dec_spec((1, D)),                # ln3 g/b
            _dec_spec((D, F)), _dec_spec((1, F)),                # ffn w1/b1
            _dec_spec((F, D)), _dec_spec((1, D)),                # ffn w2/b2
            _const_spec((1, D)), _const_spec((1, D)),            # final decoder norm
        ],
        out_specs=pl.BlockSpec((Mt, D), lambda l: (0, 0)),
        scratch_shapes=[pltpu.VMEM((Ms, D), jnp.float32),        # encoder act / memory
                        pltpu.VMEM((Mt, D), jnp.float32)],       # decoder activation
        compiler_params=pltpu.CompilerParams(
            # Layer loop is sequential & bandwidth-bound: keep it "arbitrary"
            # (do NOT shard across TensorCores).  Default VMEM budget is ample
            # (~3 MiB double-buffered bf16 weights).
            dimension_semantics=("arbitrary",)),
    )(src_bm, tgt_bm, q["in_w"], q["in_b"],
      enc_mask, dec_mask, cross_mask,
      q["enc_wqkv"], q["enc_bqkv"], q["enc_wo"], q["enc_bo"],
      q["enc_ln1_g"], q["enc_ln1_b"], q["enc_ln2_g"], q["enc_ln2_b"],
      q["enc_w1"], q["enc_b1"], q["enc_w2"], q["enc_b2"],
      q["enc_norm_g"], q["enc_norm_b"],
      q["dec_s_wqkv"], q["dec_s_bqkv"], q["dec_s_wo"], q["dec_s_bo"],
      q["dec_c_wq"], q["dec_c_bq"], q["dec_c_wkv"], q["dec_c_bkv"],
      q["dec_c_wo"], q["dec_c_bo"],
      q["dec_ln1_g"], q["dec_ln1_b"], q["dec_ln2_g"], q["dec_ln2_b"],
      q["dec_ln3_g"], q["dec_ln3_b"],
      q["dec_w1"], q["dec_b1"], q["dec_w2"], q["dec_b2"],
      q["dec_norm_g"], q["dec_norm_b"])


def stock_price_transformer(params, src, tgt):
    """src: (S, B, 1), tgt: (T, B, 1)  ->  (T, B, 1)  (batch_first=False layout)."""
    S, B, _ = src.shape
    T = tgt.shape[0]
    # Batch-major row layout for the kernel (rows grouped by batch).
    src_bm = src.transpose(1, 0, 2).reshape(B * S, 1)
    tgt_bm = tgt.transpose(1, 0, 2).reshape(B * T, 1)
    y = transformer_stacks(src_bm, tgt_bm, params,
                           batch=B, src_len=S, tgt_len=T)        # (B*T, D)
    # Output head Linear(D -> 1) in the wrapper (kernel output stays lane-dense).
    out = y @ params["out_w"].T + params["out_b"]                # (B*T, 1)
    return out.reshape(B, T, 1).transpose(1, 0, 2)               # (T, B, 1)


# ------------------------- deterministic parameters --------------------------

def init_params(key):
    state = [key]

    def nk():
        state[0], sub = jax.random.split(state[0])
        return sub

    def w(shape, scale=0.05):
        return jax.random.normal(nk(), shape, jnp.float32) * scale

    def b(shape, scale=0.02):
        return jax.random.normal(nk(), shape, jnp.float32) * scale

    def g(shape):
        return 1.0 + jax.random.normal(nk(), shape, jnp.float32) * 0.05

    D, F = D_MODEL, DIM_FEEDFORWARD
    Le, Ld = NUM_ENCODER_LAYERS, NUM_DECODER_LAYERS
    return dict(
        in_w=w((1, D)), in_b=b((1, D)),
        out_w=w((1, D)), out_b=b((1, 1)),
        enc_norm_g=g((1, D)), enc_norm_b=b((1, D)),
        dec_norm_g=g((1, D)), dec_norm_b=b((1, D)),
        # encoder (stacked over layers)
        enc_wqkv=w((Le, D, 3 * D)), enc_bqkv=b((Le, 1, 3 * D)),
        enc_wo=w((Le, D, D)), enc_bo=b((Le, 1, D)),
        enc_ln1_g=g((Le, 1, D)), enc_ln1_b=b((Le, 1, D)),
        enc_ln2_g=g((Le, 1, D)), enc_ln2_b=b((Le, 1, D)),
        enc_w1=w((Le, D, F)), enc_b1=b((Le, 1, F)),
        enc_w2=w((Le, F, D)), enc_b2=b((Le, 1, D)),
        # decoder (stacked over layers)
        dec_s_wqkv=w((Ld, D, 3 * D)), dec_s_bqkv=b((Ld, 1, 3 * D)),
        dec_s_wo=w((Ld, D, D)), dec_s_bo=b((Ld, 1, D)),
        dec_c_wq=w((Ld, D, D)), dec_c_bq=b((Ld, 1, D)),
        dec_c_wkv=w((Ld, D, 2 * D)), dec_c_bkv=b((Ld, 1, 2 * D)),
        dec_c_wo=w((Ld, D, D)), dec_c_bo=b((Ld, 1, D)),
        dec_ln1_g=g((Ld, 1, D)), dec_ln1_b=b((Ld, 1, D)),
        dec_ln2_g=g((Ld, 1, D)), dec_ln2_b=b((Ld, 1, D)),
        dec_ln3_g=g((Ld, 1, D)), dec_ln3_b=b((Ld, 1, D)),
        dec_w1=w((Ld, D, F)), dec_b1=b((Ld, 1, F)),
        dec_w2=w((Ld, F, D)), dec_b2=b((Ld, 1, D)),
    )


# --------------------------- pure-JAX reference -------------------------------

def _reference_forward(params, src, tgt):
    # Same bf16 weight rounding as the kernel feed, math in f32.
    p = {k: (v.astype(jnp.bfloat16).astype(jnp.float32) if k in _BF16_KEYS else v)
         for k, v in params.items()}
    D = D_MODEL
    S, B, _ = src.shape
    T = tgt.shape[0]

    def ln(x, gg, bb):
        mu = jnp.mean(x, axis=-1, keepdims=True)
        var = jnp.mean(jnp.square(x - mu), axis=-1, keepdims=True)
        return (x - mu) / jnp.sqrt(var + LN_EPS) * gg + bb

    def attention(q, k, v, batch, lq, lk):
        scale = HEAD_DIM ** -0.5
        q4 = q.reshape(batch, lq, NHEAD, HEAD_DIM).transpose(0, 2, 1, 3)
        k4 = k.reshape(batch, lk, NHEAD, HEAD_DIM).transpose(0, 2, 1, 3)
        v4 = v.reshape(batch, lk, NHEAD, HEAD_DIM).transpose(0, 2, 1, 3)
        s = jnp.einsum("bhqd,bhkd->bhqk", q4 * scale, k4)
        pr = jax.nn.softmax(s, axis=-1)
        o = jnp.einsum("bhqk,bhkd->bhqd", pr, v4)
        return o.transpose(0, 2, 1, 3).reshape(batch * lq, D)

    src_bm = src.transpose(1, 0, 2).reshape(B * S, 1)
    tgt_bm = tgt.transpose(1, 0, 2).reshape(B * T, 1)

    x = src_bm * p["in_w"] + p["in_b"]
    for l in range(NUM_ENCODER_LAYERS):
        qkv = x @ p["enc_wqkv"][l] + p["enc_bqkv"][l]
        a = attention(qkv[:, :D], qkv[:, D:2 * D], qkv[:, 2 * D:], B, S, S)
        sa = a @ p["enc_wo"][l] + p["enc_bo"][l]
        x = ln(x + sa, p["enc_ln1_g"][l], p["enc_ln1_b"][l])
        h = jnp.maximum(x @ p["enc_w1"][l] + p["enc_b1"][l], 0.0)
        ff = h @ p["enc_w2"][l] + p["enc_b2"][l]
        x = ln(x + ff, p["enc_ln2_g"][l], p["enc_ln2_b"][l])
    mem = ln(x, p["enc_norm_g"], p["enc_norm_b"])

    y = tgt_bm * p["in_w"] + p["in_b"]
    for l in range(NUM_DECODER_LAYERS):
        qkv = y @ p["dec_s_wqkv"][l] + p["dec_s_bqkv"][l]
        a = attention(qkv[:, :D], qkv[:, D:2 * D], qkv[:, 2 * D:], B, T, T)
        sa = a @ p["dec_s_wo"][l] + p["dec_s_bo"][l]
        y = ln(y + sa, p["dec_ln1_g"][l], p["dec_ln1_b"][l])
        qc = y @ p["dec_c_wq"][l] + p["dec_c_bq"][l]
        kv = mem @ p["dec_c_wkv"][l] + p["dec_c_bkv"][l]
        a = attention(qc, kv[:, :D], kv[:, D:], B, T, S)
        ca = a @ p["dec_c_wo"][l] + p["dec_c_bo"][l]
        y = ln(y + ca, p["dec_ln2_g"][l], p["dec_ln2_b"][l])
        h = jnp.maximum(y @ p["dec_w1"][l] + p["dec_b1"][l], 0.0)
        ff = h @ p["dec_w2"][l] + p["dec_b2"][l]
        y = ln(y + ff, p["dec_ln3_g"][l], p["dec_ln3_b"][l])
    y = ln(y, p["dec_norm_g"], p["dec_norm_b"])
    out = y @ p["out_w"].T + p["out_b"]
    return out.reshape(B, T, 1).transpose(1, 0, 2)


if __name__ == "__main__":
    key = jax.random.PRNGKey(0)
    k_src, k_tgt, k_par = jax.random.split(key, 3)

    S, T, B = 8, 8, 2                      # (seq_len, batch, 1) inputs
    src = jax.random.normal(k_src, (S, B, 1), jnp.float32)
    tgt = jax.random.normal(k_tgt, (T, B, 1), jnp.float32)
    params = init_params(k_par)

    fwd = jax.jit(stock_price_transformer)
    out = fwd(params, src, tgt)
    jax.block_until_ready(out)

    ref = _reference_forward(params, src, tgt)

    assert out.shape == (T, B, 1), out.shape
    assert bool(jnp.all(jnp.isfinite(out)))
    max_err = float(jnp.max(jnp.abs(out - ref)))
    assert bool(jnp.allclose(out, ref, atol=2e-3, rtol=2e-3)), max_err
    print("KERNEL_OK")
</pallas_src>

<mosaic_0001>
module attributes {stable_mosaic.version = 11 : i64} {
  func.func @_transformer_kernel(%arg0: i32, %arg1: memref<16x1xf32, #tpu.memory_space<vmem>>, %arg2: memref<16x1xf32, #tpu.memory_space<vmem>>, %arg3: memref<1x64xf32, #tpu.memory_space<vmem>>, %arg4: memref<1x64xf32, #tpu.memory_space<vmem>>, %arg5: memref<16x16xf32, #tpu.memory_space<vmem>>, %arg6: memref<16x16xf32, #tpu.memory_space<vmem>>, %arg7: memref<16x16xf32, #tpu.memory_space<vmem>>, %arg8: memref<1x64x192xbf16, #tpu.memory_space<vmem>>, %arg9: memref<1x1x192xf32, #tpu.memory_space<vmem>>, %arg10: memref<1x64x64xbf16, #tpu.memory_space<vmem>>, %arg11: memref<1x1x64xf32, #tpu.memory_space<vmem>>, %arg12: memref<1x1x64xf32, #tpu.memory_space<vmem>>, %arg13: memref<1x1x64xf32, #tpu.memory_space<vmem>>, %arg14: memref<1x1x64xf32, #tpu.memory_space<vmem>>, %arg15: memref<1x1x64xf32, #tpu.memory_space<vmem>>, %arg16: memref<1x64x2048xbf16, #tpu.memory_space<vmem>>, %arg17: memref<1x1x2048xf32, #tpu.memory_space<vmem>>, %arg18: memref<1x2048x64xbf16, #tpu.memory_space<vmem>>, %arg19: memref<1x1x64xf32, #tpu.memory_space<vmem>>, %arg20: memref<1x64xf32, #tpu.memory_space<vmem>>, %arg21: memref<1x64xf32, #tpu.memory_space<vmem>>, %arg22: memref<1x64x192xbf16, #tpu.memory_space<vmem>>, %arg23: memref<1x1x192xf32, #tpu.memory_space<vmem>>, %arg24: memref<1x64x64xbf16, #tpu.memory_space<vmem>>, %arg25: memref<1x1x64xf32, #tpu.memory_space<vmem>>, %arg26: memref<1x64x64xbf16, #tpu.memory_space<vmem>>, %arg27: memref<1x1x64xf32, #tpu.memory_space<vmem>>, %arg28: memref<1x64x128xbf16, #tpu.memory_space<vmem>>, %arg29: memref<1x1x128xf32, #tpu.memory_space<vmem>>, %arg30: memref<1x64x64xbf16, #tpu.memory_space<vmem>>, %arg31: memref<1x1x64xf32, #tpu.memory_space<vmem>>, %arg32: memref<1x1x64xf32, #tpu.memory_space<vmem>>, %arg33: memref<1x1x64xf32, #tpu.memory_space<vmem>>, %arg34: memref<1x1x64xf32, #tpu.memory_space<vmem>>, %arg35: memref<1x1x64xf32, #tpu.memory_space<vmem>>, %arg36: memref<1x1x64xf32, #tpu.memory_space<vmem>>, %arg37: memref<1x1x64xf32, #tpu.memory_space<vmem>>, %arg38: memref<1x64x2048xbf16, #tpu.memory_space<vmem>>, %arg39: memref<1x1x2048xf32, #tpu.memory_space<vmem>>, %arg40: memref<1x2048x64xbf16, #tpu.memory_space<vmem>>, %arg41: memref<1x1x64xf32, #tpu.memory_space<vmem>>, %arg42: memref<1x64xf32, #tpu.memory_space<vmem>>, %arg43: memref<1x64xf32, #tpu.memory_space<vmem>>, %arg44: memref<16x64xf32, #tpu.memory_space<vmem>>, %arg45: memref<16x64xf32, #tpu.memory_space<vmem>>, %arg46: memref<16x64xf32, #tpu.memory_space<vmem>>) attributes {dimension_semantics = [#tpu.dimension_semantics<arbitrary>], iteration_bounds = array<i64: 8>, scalar_prefetch = 0 : i64, scratch_operands = 2 : i64, tpu.core_type = #tpu.core_type<tc>, window_params = [{pipeline_mode = #tpu.pipeline_mode<synchronous>, transform_indices = @transform_0, window_bounds = array<i64: 16, 1>}, {pipeline_mode = #tpu.pipeline_mode<synchronous>, transform_indices = @transform_1, window_bounds = array<i64: 16, 1>}, {pipeline_mode = #tpu.pipeline_mode<synchronous>, transform_indices = @transform_2, window_bounds = array<i64: 1, 64>}, {pipeline_mode = #tpu.pipeline_mode<synchronous>, transform_indices = @transform_3, window_bounds = array<i64: 1, 64>}, {pipeline_mode = #tpu.pipeline_mode<synchronous>, transform_indices = @transform_4, window_bounds = array<i64: 16, 16>}, {pipeline_mode = #tpu.pipeline_mode<synchronous>, transform_indices = @transform_5, window_bounds = array<i64: 16, 16>}, {pipeline_mode = #tpu.pipeline_mode<synchronous>, transform_indices = @transform_6, window_bounds = array<i64: 16, 16>}, {transform_indices = @transform_7, window_bounds = array<i64: 1, 64, 192>}, {transform_indices = @transform_8, window_bounds = array<i64: 1, 1, 192>}, {transform_indices = @transform_9, window_bounds = array<i64: 1, 64, 64>}, {transform_indices = @transform_10, window_bounds = array<i64: 1, 1, 64>}, {transform_indices = @transform_11, window_bounds = array<i64: 1, 1, 64>}, {transform_indices = @transform_12, window_bounds = array<i64: 1, 1, 64>}, {transform_indices = @transform_13, window_bounds = array<i64: 1, 1, 64>}, {transform_indices = @transform_14, window_bounds = array<i64: 1, 1, 64>}, {transform_indices = @transform_15, window_bounds = array<i64: 1, 64, 2048>}, {transform_indices = @transform_16, window_bounds = array<i64: 1, 1, 2048>}, {transform_indices = @transform_17, window_bounds = array<i64: 1, 2048, 64>}, {transform_indices = @transform_18, window_bounds = array<i64: 1, 1, 64>}, {pipeline_mode = #tpu.pipeline_mode<synchronous>, transform_indices = @transform_19, window_bounds = array<i64: 1, 64>}, {pipeline_mode = #tpu.pipeline_mode<synchronous>, transform_indices = @transform_20, window_bounds = array<i64: 1, 64>}, {transform_indices = @transform_21, window_bounds = array<i64: 1, 64, 192>}, {transform_indices = @transform_22, window_bounds = array<i64: 1, 1, 192>}, {transform_indices = @transform_23, window_bounds = array<i64: 1, 64, 64>}, {transform_indices = @transform_24, window_bounds = array<i64: 1, 1, 64>}, {transform_indices = @transform_25, window_bounds = array<i64: 1, 64, 64>}, {transform_indices = @transform_26, window_bounds = array<i64: 1, 1, 64>}, {transform_indices = @transform_27, window_bounds = array<i64: 1, 64, 128>}, {transform_indices = @transform_28, window_bounds = array<i64: 1, 1, 128>}, {transform_indices = @transform_29, window_bounds = array<i64: 1, 64, 64>}, {transform_indices = @transform_30, window_bounds = array<i64: 1, 1, 64>}, {transform_indices = @transform_31, window_bounds = array<i64: 1, 1, 64>}, {transform_indices = @transform_32, window_bounds = array<i64: 1, 1, 64>}, {transform_indices = @transform_33, window_bounds = array<i64: 1, 1, 64>}, {transform_indices = @transform_34, window_bounds = array<i64: 1, 1, 64>}, {transform_indices = @transform_35, window_bounds = array<i64: 1, 1, 64>}, {transform_indices = @transform_36, window_bounds = array<i64: 1, 1, 64>}, {transform_indices = @transform_37, window_bounds = array<i64: 1, 64, 2048>}, {transform_indices = @transform_38, window_bounds = array<i64: 1, 1, 2048>}, {transform_indices = @transform_39, window_bounds = array<i64: 1, 2048, 64>}, {transform_indices = @transform_40, window_bounds = array<i64: 1, 1, 64>}, {pipeline_mode = #tpu.pipeline_mode<synchronous>, transform_indices = @transform_41, window_bounds = array<i64: 1, 64>}, {pipeline_mode = #tpu.pipeline_mode<synchronous>, transform_indices = @transform_42, window_bounds = array<i64: 1, 64>}, {pipeline_mode = #tpu.pipeline_mode<synchronous>, transform_indices = @transform_43, window_bounds = array<i64: 16, 64>}]} {
    %c2_i32 = arith.constant 2 : i32
    %0 = arith.cmpi slt, %arg0, %c2_i32 : i32
    %1 = arith.extui %0 : i1 to i32
    %c0_i32 = arith.constant 0 : i32
    %2 = arith.cmpi ne, %1, %c0_i32 : i32
    scf.if %2 {
      %c0_i32_2 = arith.constant 0 : i32
      %6 = arith.cmpi eq, %arg0, %c0_i32_2 : i32
      %7 = arith.extui %6 : i1 to i32
      %c0_i32_3 = arith.constant 0 : i32
      %8 = arith.cmpi ne, %7, %c0_i32_3 : i32
      scf.if %8 {
        %c0_84 = arith.constant 0 : index
        %c0_85 = arith.constant 0 : index
        %182 = vector.load %arg1[%c0_84, %c0_85] : memref<16x1xf32, #tpu.memory_space<vmem>>, vector<16x1xf32>
        %c0_86 = arith.constant 0 : index
        %c0_87 = arith.constant 0 : index
        %183 = vector.load %arg3[%c0_86, %c0_87] : memref<1x64xf32, #tpu.memory_space<vmem>>, vector<1x64xf32>
        %184 = vector.broadcast %182 : vector<16x1xf32> to vector<16x64xf32>
        %185 = vector.broadcast %183 : vector<1x64xf32> to vector<16x64xf32>
        %186 = arith.mulf %184, %185 : vector<16x64xf32>
        %c0_88 = arith.constant 0 : index
        %c0_89 = arith.constant 0 : index
        %187 = vector.load %arg4[%c0_88, %c0_89] : memref<1x64xf32, #tpu.memory_space<vmem>>, vector<1x64xf32>
        %188 = vector.broadcast %187 : vector<1x64xf32> to vector<16x64xf32>
        %189 = arith.addf %186, %188 : vector<16x64xf32>
        %c0_90 = arith.constant 0 : index
        %c0_91 = arith.constant 0 : index
        %190 = vector.load %arg45[%c0_90, %c0_91] : memref<16x64xf32, #tpu.memory_space<vmem>>, vector<16x64xf32>
        tpu.vector_store %arg45[%c0_90, %c0_91], %189 {strides = array<i32>} : memref<16x64xf32, #tpu.memory_space<vmem>>, vector<16x64xf32>,
      } else {
      }
      %c0 = arith.constant 0 : index
      %c0_4 = arith.constant 0 : index
      %9 = vector.load %arg45[%c0, %c0_4] : memref<16x64xf32, #tpu.memory_space<vmem>>, vector<16x64xf32>
      %c0_5 = arith.constant 0 : index
      %c0_6 = arith.constant 0 : index
      %c0_7 = arith.constant 0 : index
      %10 = vector.load %arg8[%c0_5, %c0_6, %c0_7] : memref<1x64x192xbf16, #tpu.memory_space<vmem>>, vector<1x64x192xbf16>
      %11 = vector.shape_cast %10 : vector<1x64x192xbf16> to vector<64x192xbf16>
      %cst = arith.constant dense<0.000000e+00> : vector<16x192xf32>
      %12 = tpu.matmul %9, %11, %cst {dimension_numbers = #tpu.dot_dimension_numbers<[1], [0], [0], [1], [0, 0, 1, 1], [], []>} : vector<16x64xf32>, vector<64x192xbf16>, vector<16x192xf32> -> vector<16x192xf32>
      %c0_8 = arith.constant 0 : index
      %c0_9 = arith.constant 0 : index
      %c0_10 = arith.constant 0 : index
      %13 = vector.load %arg9[%c0_8, %c0_9, %c0_10] : memref<1x1x192xf32, #tpu.memory_space<vmem>>, vector<1x1x192xf32>
      %14 = vector.shape_cast %13 : vector<1x1x192xf32> to vector<1x192xf32>
      %15 = vector.broadcast %14 : vector<1x192xf32> to vector<16x192xf32>
      %16 = arith.addf %12, %15 : vector<16x192xf32>
      %17 = vector.extract_strided_slice %16 {offsets = [0, 0], sizes = [16, 64], strides = [1, 1]} : vector<16x192xf32> to vector<16x64xf32>
      %18 = vector.extract_strided_slice %16 {offsets = [0, 64], sizes = [16, 64], strides = [1, 1]} : vector<16x192xf32> to vector<16x64xf32>
      %19 = vector.extract_strided_slice %16 {offsets = [0, 128], sizes = [16, 64], strides = [1, 1]} : vector<16x192xf32> to vector<16x64xf32>
      %c0_11 = arith.constant 0 : index
      %c0_12 = arith.constant 0 : index
      %c0_13 = arith.constant 0 : index
      %20 = vector.load %arg10[%c0_11, %c0_12, %c0_13] : memref<1x64x64xbf16, #tpu.memory_space<vmem>>, vector<1x64x64xbf16>
      %21 = vector.shape_cast %20 : vector<1x64x64xbf16> to vector<64x64xbf16>
      %c0_14 = arith.constant 0 : index
      %c0_15 = arith.constant 0 : index
      %22 = vector.load %arg5[%c0_14, %c0_15] : memref<16x16xf32, #tpu.memory_space<vmem>>, vector<16x16xf32>
      %cst_16 = arith.constant 0.000000e+00 : f32
      %23 = vector.broadcast %cst_16 : f32 to vector<16x64xf32>
      %24 = vector.extract_strided_slice %17 {offsets = [0, 0], sizes = [16, 16], strides = [1, 1]} : vector<16x64xf32> to vector<16x16xf32>
      %cst_17 = arith.constant 2.500000e-01 : f32
      %25 = vector.broadcast %cst_17 : f32 to vector<16x16xf32>
      %26 = arith.mulf %24, %25 : vector<16x16xf32>
      %27 = vector.extract_strided_slice %18 {offsets = [0, 0], sizes = [16, 16], strides = [1, 1]} : vector<16x64xf32> to vector<16x16xf32>
      %cst_18 = arith.constant dense<0.000000e+00> : vector<16x16xf32>
      %28 = tpu.matmul %26, %27, %cst_18 {dimension_numbers = #tpu.dot_dimension_numbers<[1], [1], [0], [0], [0, 0, 1, 0], [], []>} : vector<16x16xf32>, vector<16x16xf32>, vector<16x16xf32> -> vector<16x16xf32>
      %29 = arith.addf %28, %22 : vector<16x16xf32>
      %cst_19 = arith.constant dense<0xFF800000> : vector<16xf32>
      %30 = vector.multi_reduction <maximumf>, %29, %cst_19 [1] : vector<16x16xf32> to vector<16xf32>
      %31 = vector.shape_cast %30 : vector<16xf32> to vector<16x1xf32>
      %32 = vector.broadcast %31 : vector<16x1xf32> to vector<16x16xf32>
      %33 = arith.subf %29, %32 : vector<16x16xf32>
      %34 = math.exp %33 : vector<16x16xf32>
      %cst_20 = arith.constant dense<0.000000e+00> : vector<16xf32>
      %35 = vector.multi_reduction <add>, %34, %cst_20 [1] : vector<16x16xf32> to vector<16xf32>
      %36 = vector.shape_cast %35 : vector<16xf32> to vector<16x1xf32>
      %37 = vector.broadcast %36 : vector<16x1xf32> to vector<16x16xf32>
      %38 = arith.divf %34, %37 : vector<16x16xf32>
      %39 = vector.extract_strided_slice %19 {offsets = [0, 0], sizes = [16, 16], strides = [1, 1]} : vector<16x64xf32> to vector<16x16xf32>
      %cst_21 = arith.constant dense<0.000000e+00> : vector<16x16xf32>
      %40 = tpu.matmul %38, %39, %cst_21 {dimension_numbers = #tpu.dot_dimension_numbers<[1], [0], [0], [1], [0, 0, 1, 1], [], []>} : vector<16x16xf32>, vector<16x16xf32>, vector<16x16xf32> -> vector<16x16xf32>
      %41 = vector.extract_strided_slice %21 {offsets = [0, 0], sizes = [16, 64], strides = [1, 1]} : vector<64x64xbf16> to vector<16x64xbf16>
      %cst_22 = arith.constant dense<0.000000e+00> : vector<16x64xf32>
      %42 = tpu.matmul %40, %41, %cst_22 {dimension_numbers = #tpu.dot_dimension_numbers<[1], [0], [0], [1], [0, 0, 1, 1], [], []>} : vector<16x16xf32>, vector<16x64xbf16>, vector<16x64xf32> -> vector<16x64xf32>
      %43 = arith.addf %23, %42 : vector<16x64xf32>
      %44 = vector.extract_strided_slice %17 {offsets = [0, 16], sizes = [16, 16], strides = [1, 1]} : vector<16x64xf32> to vector<16x16xf32>
      %cst_23 = arith.constant 2.500000e-01 : f32
      %45 = vector.broadcast %cst_23 : f32 to vector<16x16xf32>
      %46 = arith.mulf %44, %45 : vector<16x16xf32>
      %47 = vector.extract_strided_slice %18 {offsets = [0, 16], sizes = [16, 16], strides = [1, 1]} : vector<16x64xf32> to vector<16x16xf32>
      %cst_24 = arith.constant dense<0.000000e+00> : vector<16x16xf32>
      %48 = tpu.matmul %46, %47, %cst_24 {dimension_numbers = #tpu.dot_dimension_numbers<[1], [1], [0], [0], [0, 0, 1, 0], [], []>} : vector<16x16xf32>, vector<16x16xf32>, vector<16x16xf32> -> vector<16x16xf32>
      %49 = arith.addf %48, %22 : vector<16x16xf32>
      %cst_25 = arith.constant dense<0xFF800000> : vector<16xf32>
      %50 = vector.multi_reduction <maximumf>, %49, %cst_25 [1] : vector<16x16xf32> to vector<16xf32>
      %51 = vector.shape_cast %50 : vector<16xf32> to vector<16x1xf32>
      %52 = vector.broadcast %51 : vector<16x1xf32> to vector<16x16xf32>
      %53 = arith.subf %49, %52 : vector<16x16xf32>
      %54 = math.exp %53 : vector<16x16xf32>
      %cst_26 = arith.constant dense<0.000000e+00> : vector<16xf32>
      %55 = vector.multi_reduction <add>, %54, %cst_26 [1] : vector<16x16xf32> to vector<16xf32>
      %56 = vector.shape_cast %55 : vector<16xf32> to vector<16x1xf32>
      %57 = vector.broadcast %56 : vector<16x1xf32> to vector<16x16xf32>
      %58 = arith.divf %54, %57 : vector<16x16xf32>
      %59 = vector.extract_strided_slice %19 {offsets = [0, 16], sizes = [16, 16], strides = [1, 1]} : vector<16x64xf32> to vector<16x16xf32>
      %cst_27 = arith.constant dense<0.000000e+00> : vector<16x16xf32>
      %60 = tpu.matmul %58, %59, %cst_27 {dimension_numbers = #tpu.dot_dimension_numbers<[1], [0], [0], [1], [0, 0, 1, 1], [], []>} : vector<16x16xf32>, vector<16x16xf32>, vector<16x16xf32> -> vector<16x16xf32>
      %61 = vector.extract_strided_slice %21 {offsets = [16, 0], sizes = [16, 64], strides = [1, 1]} : vector<64x64xbf16> to vector<16x64xbf16>
      %cst_28 = arith.constant dense<0.000000e+00> : vector<16x64xf32>
      %62 = tpu.matmul %60, %61, %cst_28 {dimension_numbers = #tpu.dot_dimension_numbers<[1], [0], [0], [1], [0, 0, 1, 1], [], []>} : vector<16x16xf32>, vector<16x64xbf16>, vector<16x64xf32> -> vector<16x64xf32>
      %63 = arith.addf %43, %62 : vector<16x64xf32>
      %64 = vector.extract_strided_slice %17 {offsets = [0, 32], sizes = [16, 16], strides = [1, 1]} : vector<16x64xf32> to vector<16x16xf32>
      %cst_29 = arith.constant 2.500000e-01 : f32
      %65 = vector.broadcast %cst_29 : f32 to vector<16x16xf32>
      %66 = arith.mulf %64, %65 : vector<16x16xf32>
      %67 = vector.extract_strided_slice %18 {offsets = [0, 32], sizes = [16, 16], strides = [1, 1]} : vector<16x64xf32> to vector<16x16xf32>
      %cst_30 = arith.constant dense<0.000000e+00> : vector<16x16xf32>
      %68 = tpu.matmul %66, %67, %cst_30 {dimension_numbers = #tpu.dot_dimension_numbers<[1], [1], [0], [0], [0, 0, 1, 0], [], []>} : vector<16x16xf32>, vector<16x16xf32>, vector<16x16xf32> -> vector<16x16xf32>
      %69 = arith.addf %68, %22 : vector<16x16xf32>
      %cst_31 = arith.constant dense<0xFF800000> : vector<16xf32>
      %70 = vector.multi_reduction <maximumf>, %69, %cst_31 [1] : vector<16x16xf32> to vector<16xf32>
      %71 = vector.shape_cast %70 : vector<16xf32> to vector<16x1xf32>
      %72 = vector.broadcast %71 : vector<16x1xf32> to vector<16x16xf32>
      %73 = arith.subf %69, %72 : vector<16x16xf32>
      %74 = math.exp %73 : vector<16x16xf32>
      %cst_32 = arith.constant dense<0.000000e+00> : vector<16xf32>
      %75 = vector.multi_reduction <add>, %74, %cst_32 [1] : vector<16x16xf32> to vector<16xf32>
      %76 = vector.shape_cast %75 : vector<16xf32> to vector<16x1xf32>
      %77 = vector.broadcast %76 : vector<16x1xf32> to vector<16x16xf32>
      %78 = arith.divf %74, %77 : vector<16x16xf32>
      %79 = vector.extract_strided_slice %19 {offsets = [0, 32], sizes = [16, 16], strides = [1, 1]} : vector<16x64xf32> to vector<16x16xf32>
      %cst_33 = arith.constant dense<0.000000e+00> : vector<16x16xf32>
      %80 = tpu.matmul %78, %79, %cst_33 {dimension_numbers = #tpu.dot_dimension_numbers<[1], [0], [0], [1], [0, 0, 1, 1], [], []>} : vector<16x16xf32>, vector<16x16xf32>, vector<16x16xf32> -> vector<16x16xf32>
      %81 = vector.extract_strided_slice %21 {offsets = [32, 0], sizes = [16, 64], strides = [1, 1]} : vector<64x64xbf16> to vector<16x64xbf16>
      %cst_34 = arith.constant dense<0.000000e+00> : vector<16x64xf32>
      %82 = tpu.matmul %80, %81, %cst_34 {dimension_numbers = #tpu.dot_dimension_numbers<[1], [0], [0], [1], [0, 0, 1, 1], [], []>} : vector<16x16xf32>, vector<16x64xbf16>, vector<16x64xf32> -> vector<16x64xf32>
      %83 = arith.addf %63, %82 : vector<16x64xf32>
      %84 = vector.extract_strided_slice %17 {offsets = [0, 48], sizes = [16, 16], strides = [1, 1]} : vector<16x64xf32> to vector<16x16xf32>
      %cst_35 = arith.constant 2.500000e-01 : f32
      %85 = vector.broadcast %cst_35 : f32 to vector<16x16xf32>
      %86 = arith.mulf %84, %85 : vector<16x16xf32>
      %87 = vector.extract_strided_slice %18 {offsets = [0, 48], sizes = [16, 16], strides = [1, 1]} : vector<16x64xf32> to vector<16x16xf32>
      %cst_36 = arith.constant dense<0.000000e+00> : vector<16x16xf32>
      %88 = tpu.matmul %86, %87, %cst_36 {dimension_numbers = #tpu.dot_dimension_numbers<[1], [1], [0], [0], [0, 0, 1, 0], [], []>} : vector<16x16xf32>, vector<16x16xf32>, vector<16x16xf32> -> vector<16x16xf32>
      %89 = arith.addf %88, %22 : vector<16x16xf32>
      %cst_37 = arith.constant dense<0xFF800000> : vector<16xf32>
      %90 = vector.multi_reduction <maximumf>, %89, %cst_37 [1] : vector<16x16xf32> to vector<16xf32>
      %91 = vector.shape_cast %90 : vector<16xf32> to vector<16x1xf32>
      %92 = vector.broadcast %91 : vector<16x1xf32> to vector<16x16xf32>
      %93 = arith.subf %89, %92 : vector<16x16xf32>
      %94 = math.exp %93 : vector<16x16xf32>
      %cst_38 = arith.constant dense<0.000000e+00> : vector<16xf32>
      %95 = vector.multi_reduction <add>, %94, %cst_38 [1] : vector<16x16xf32> to vector<16xf32>
      %96 = vector.shape_cast %95 : vector<16xf32> to vector<16x1xf32>
      %97 = vector.broadcast %96 : vector<16x1xf32> to vector<16x16xf32>
      %98 = arith.divf %94, %97 : vector<16x16xf32>
      %99 = vector.extract_strided_slice %19 {offsets = [0, 48], sizes = [16, 16], strides = [1, 1]} : vector<16x64xf32> to vector<16x16xf32>
      %cst_39 = arith.constant dense<0.000000e+00> : vector<16x16xf32>
      %100 = tpu.matmul %98, %99, %cst_39 {dimension_numbers = #tpu.dot_dimension_numbers<[1], [0], [0], [1], [0, 0, 1, 1], [], []>} : vector<16x16xf32>, vector<16x16xf32>, vector<16x16xf32> -> vector<16x16xf32>
      %101 = vector.extract_strided_slice %21 {offsets = [48, 0], sizes = [16, 64], strides = [1, 1]} : vector<64x64xbf16> to vector<16x64xbf16>
      %cst_40 = arith.constant dense<0.000000e+00> : vector<16x64xf32>
      %102 = tpu.matmul %100, %101, %cst_40 {dimension_numbers = #tpu.dot_dimension_numbers<[1], [0], [0], [1], [0, 0, 1, 1], [], []>} : vector<16x16xf32>, vector<16x64xbf16>, vector<16x64xf32> -> vector<16x64xf32>
      %103 = arith.addf %83, %102 : vector<16x64xf32>
      %c0_41 = arith.constant 0 : index
      %c0_42 = arith.constant 0 : index
      %c0_43 = arith.constant 0 : index
      %104 = vector.load %arg11[%c0_41, %c0_42, %c0_43] : memref<1x1x64xf32, #tpu.memory_space<vmem>>, vector<1x1x64xf32>
      %105 = vector.shape_cast %104 : vector<1x1x64xf32> to vector<1x64xf32>
      %106 = vector.broadcast %105 : vector<1x64xf32> to vector<16x64xf32>
      %107 = arith.addf %103, %106 : vector<16x64xf32>
      %c0_44 = arith.constant 0 : index
      %c0_45 = arith.constant 0 : index
      %c0_46 = arith.constant 0 : index
      %108 = vector.load %arg12[%c0_44, %c0_45, %c0_46] : memref<1x1x64xf32, #tpu.memory_space<vmem>>, vector<1x1x64xf32>
      %109 = vector.shape_cast %108 : vector<1x1x64xf32> to vector<1x64xf32>
      %c0_47 = arith.constant 0 : index
      %c0_48 = arith.constant 0 : index
      %c0_49 = arith.constant 0 : index
      %110 = vector.load %arg13[%c0_47, %c0_48, %c0_49] : memref<1x1x64xf32, #tpu.memory_space<vmem>>, vector<1x1x64xf32>
      %111 = vector.shape_cast %110 : vector<1x1x64xf32> to vector<1x64xf32>
      %112 = arith.addf %9, %107 : vector<16x64xf32>
      %cst_50 = arith.constant dense<0.000000e+00> : vector<16xf32>
      %113 = vector.multi_reduction <add>, %112, %cst_50 [1] : vector<16x64xf32> to vector<16xf32>
      %114 = vector.shape_cast %113 : vector<16xf32> to vector<16x1xf32>
      %cst_51 = arith.constant 6.400000e+01 : f32
      %115 = vector.broadcast %cst_51 : f32 to vector<16x1xf32>
      %116 = arith.divf %114, %115 : vector<16x1xf32>
      %117 = vector.broadcast %116 : vector<16x1xf32> to vector<16x64xf32>
      %118 = arith.subf %112, %117 : vector<16x64xf32>
      %119 = arith.mulf %118, %118 : vector<16x64xf32>
      %cst_52 = arith.constant dense<0.000000e+00> : vector<16xf32>
      %120 = vector.multi_reduction <add>, %119, %cst_52 [1] : vector<16x64xf32> to vector<16xf32>
      %121 = vector.shape_cast %120 : vector<16xf32> to vector<16x1xf32>
      %cst_53 = arith.constant 6.400000e+01 : f32
      %122 = vector.broadcast %cst_53 : f32 to vector<16x1xf32>
      %123 = arith.divf %121, %122 : vector<16x1xf32>
      %124 = vector.broadcast %116 : vector<16x1xf32> to vector<16x64xf32>
      %125 = arith.subf %112, %124 : vector<16x64xf32>
      %cst_54 = arith.constant 9.99999974E-6 : f32
      %126 = vector.broadcast %cst_54 : f32 to vector<16x1xf32>
      %127 = arith.addf %123, %126 : vector<16x1xf32>
      %128 = math.rsqrt %127 : vector<16x1xf32>
      %129 = vector.broadcast %128 : vector<16x1xf32> to vector<16x64xf32>
      %130 = arith.mulf %125, %129 : vector<16x64xf32>
      %131 = vector.broadcast %109 : vector<1x64xf32> to vector<16x64xf32>
      %132 = arith.mulf %130, %131 : vector<16x64xf32>
      %133 = vector.broadcast %111 : vector<1x64xf32> to vector<16x64xf32>
      %134 = arith.addf %132, %133 : vector<16x64xf32>
      %c0_55 = arith.constant 0 : index
      %c0_56 = arith.constant 0 : index
      %c0_57 = arith.constant 0 : index
      %135 = vector.load %arg16[%c0_55, %c0_56, %c0_57] : memref<1x64x2048xbf16, #tpu.memory_space<vmem>>, vector<1x64x2048xbf16>
      %136 = vector.shape_cast %135 : vector<1x64x2048xbf16> to vector<64x2048xbf16>
      %c0_58 = arith.constant 0 : index
      %c0_59 = arith.constant 0 : index
      %c0_60 = arith.constant 0 : index
      %137 = vector.load %arg17[%c0_58, %c0_59, %c0_60] : memref<1x1x2048xf32, #tpu.memory_space<vmem>>, vector<1x1x2048xf32>
      %138 = vector.shape_cast %137 : vector<1x1x2048xf32> to vector<1x2048xf32>
      %c0_61 = arith.constant 0 : index
      %c0_62 = arith.constant 0 : index
      %c0_63 = arith.constant 0 : index
      %139 = vector.load %arg18[%c0_61, %c0_62, %c0_63] : memref<1x2048x64xbf16, #tpu.memory_space<vmem>>, vector<1x2048x64xbf16>
      %140 = vector.shape_cast %139 : vector<1x2048x64xbf16> to vector<2048x64xbf16>
      %c0_64 = arith.constant 0 : index
      %c0_65 = arith.constant 0 : index
      %c0_66 = arith.constant 0 : index
      %141 = vector.load %arg19[%c0_64, %c0_65, %c0_66] : memref<1x1x64xf32, #tpu.memory_space<vmem>>, vector<1x1x64xf32>
      %142 = vector.shape_cast %141 : vector<1x1x64xf32> to vector<1x64xf32>
      %cst_67 = arith.constant dense<0.000000e+00> : vector<16x2048xf32>
      %143 = tpu.matmul %134, %136, %cst_67 {dimension_numbers = #tpu.dot_dimension_numbers<[1], [0], [0], [1], [0, 0, 1, 1], [], []>} : vector<16x64xf32>, vector<64x2048xbf16>, vector<16x2048xf32> -> vector<16x2048xf32>
      %144 = vector.broadcast %138 : vector<1x2048xf32> to vector<16x2048xf32>
      %145 = arith.addf %143, %144 : vector<16x2048xf32>
      %cst_68 = arith.constant 0.000000e+00 : f32
      %146 = vector.broadcast %cst_68 : f32 to vector<16x2048xf32>
      %147 = arith.maximumf %145, %146 : vector<16x2048xf32>
      %cst_69 = arith.constant dense<0.000000e+00> : vector<16x64xf32>
      %148 = tpu.matmul %147, %140, %cst_69 {dimension_numbers = #tpu.dot_dimension_numbers<[1], [0], [0], [1], [0, 0, 1, 1], [], []>} : vector<16x2048xf32>, vector<2048x64xbf16>, vector<16x64xf32> -> vector<16x64xf32>
      %149 = vector.broadcast %142 : vector<1x64xf32> to vector<16x64xf32>
      %150 = arith.addf %148, %149 : vector<16x64xf32>
      %c0_70 = arith.constant 0 : index
      %c0_71 = arith.constant 0 : index
      %c0_72 = arith.constant 0 : index
      %151 = vector.load %arg14[%c0_70, %c0_71, %c0_72] : memref<1x1x64xf32, #tpu.memory_space<vmem>>, vector<1x1x64xf32>
      %152 = vector.shape_cast %151 : vector<1x1x64xf32> to vector<1x64xf32>
      %c0_73 = arith.constant 0 : index
      %c0_74 = arith.constant 0 : index
      %c0_75 = arith.constant 0 : index
      %153 = vector.load %arg15[%c0_73, %c0_74, %c0_75] : memref<1x1x64xf32, #tpu.memory_space<vmem>>, vector<1x1x64xf32>
      %154 = vector.shape_cast %153 : vector<1x1x64xf32> to vector<1x64xf32>
      %155 = arith.addf %134, %150 : vector<16x64xf32>
      %cst_76 = arith.constant dense<0.000000e+00> : vector<16xf32>
      %156 = vector.multi_reduction <add>, %155, %cst_76 [1] : vector<16x64xf32> to vector<16xf32>
      %157 = vector.shape_cast %156 : vector<16xf32> to vector<16x1xf32>
      %cst_77 = arith.constant 6.400000e+01 : f32
      %158 = vector.broadcast %cst_77 : f32 to vector<16x1xf32>
      %159 = arith.divf %157, %158 : vector<16x1xf32>
      %160 = vector.broadcast %159 : vector<16x1xf32> to vector<16x64xf32>
      %161 = arith.subf %155, %160 : vector<16x64xf32>
      %162 = arith.mulf %161, %161 : vector<16x64xf32>
      %cst_78 = arith.constant dense<0.000000e+00> : vector<16xf32>
      %163 = vector.multi_reduction <add>, %162, %cst_78 [1] : vector<16x64xf32> to vector<16xf32>
      %164 = vector.shape_cast %163 : vector<16xf32> to vector<16x1xf32>
      %cst_79 = arith.constant 6.400000e+01 : f32
      %165 = vector.broadcast %cst_79 : f32 to vector<16x1xf32>
      %166 = arith.divf %164, %165 : vector<16x1xf32>
      %167 = vector.broadcast %159 : vector<16x1xf32> to vector<16x64xf32>
      %168 = arith.subf %155, %167 : vector<16x64xf32>
      %cst_80 = arith.constant 9.99999974E-6 : f32
      %169 = vector.broadcast %cst_80 : f32 to vector<16x1xf32>
      %170 = arith.addf %166, %169 : vector<16x1xf32>
      %171 = math.rsqrt %170 : vector<16x1xf32>
      %172 = vector.broadcast %171 : vector<16x1xf32> to vector<16x64xf32>
      %173 = arith.mulf %168, %172 : vector<16x64xf32>
      %174 = vector.broadcast %152 : vector<1x64xf32> to vector<16x64xf32>
      %175 = arith.mulf %173, %174 : vector<16x64xf32>
      %176 = vector.broadcast %154 : vector<1x64xf32> to vector<16x64xf32>
      %177 = arith.addf %175, %176 : vector<16x64xf32>
      %c0_81 = arith.constant 0 : index
      %c0_82 = arith.constant 0 : index
      %178 = vector.load %arg45[%c0_81, %c0_82] : memref<16x64xf32, #tpu.memory_space<vmem>>, vector<16x64xf32>
      tpu.vector_store %arg45[%c0_81, %c0_82], %177 {strides = array<i32>} : memref<16x64xf32, #tpu.memory_space<vmem>>, vector<16x64xf32>,
      %c1_i32 = arith.constant 1 : i32
      %179 = arith.cmpi eq, %arg0, %c1_i32 : i32
      %180 = arith.extui %179 : i1 to i32
      %c0_i32_83 = arith.constant 0 : i32
      %181 = arith.cmpi ne, %180, %c0_i32_83 : i32
      scf.if %181 {
        %c0_84 = arith.constant 0 : index
        %c0_85 = arith.constant 0 : index
        %182 = vector.load %arg20[%c0_84, %c0_85] : memref<1x64xf32, #tpu.memory_space<vmem>>, vector<1x64xf32>
        %c0_86 = arith.constant 0 : index
        %c0_87 = arith.constant 0 : index
        %183 = vector.load %arg21[%c0_86, %c0_87] : memref<1x64xf32, #tpu.memory_space<vmem>>, vector<1x64xf32>
        %cst_88 = arith.constant dense<0.000000e+00> : vector<16xf32>
        %184 = vector.multi_reduction <add>, %177, %cst_88 [1] : vector<16x64xf32> to vector<16xf32>
        %185 = vector.shape_cast %184 : vector<16xf32> to vector<16x1xf32>
        %cst_89 = arith.constant 6.400000e+01 : f32
        %186 = vector.broadcast %cst_89 : f32 to vector<16x1xf32>
        %187 = arith.divf %185, %186 : vector<16x1xf32>
        %188 = vector.broadcast %187 : vector<16x1xf32> to vector<16x64xf32>
        %189 = arith.subf %177, %188 : vector<16x64xf32>
        %190 = arith.mulf %189, %189 : vector<16x64xf32>
        %cst_90 = arith.constant dense<0.000000e+00> : vector<16xf32>
        %191 = vector.multi_reduction <add>, %190, %cst_90 [1] : vector<16x64xf32> to vector<16xf32>
        %192 = vector.shape_cast %191 : vector<16xf32> to vector<16x1xf32>
        %cst_91 = arith.constant 6.400000e+01 : f32
        %193 = vector.broadcast %cst_91 : f32 to vector<16x1xf32>
        %194 = arith.divf %192, %193 : vector<16x1xf32>
        %195 = vector.broadcast %187 : vector<16x1xf32> to vector<16x64xf32>
        %196 = arith.subf %177, %195 : vector<16x64xf32>
        %cst_92 = arith.constant 9.99999974E-6 : f32
        %197 = vector.broadcast %cst_92 : f32 to vector<16x1xf32>
        %198 = arith.addf %194, %197 : vector<16x1xf32>
        %199 = math.rsqrt %198 : vector<16x1xf32>
        %200 = vector.broadcast %199 : vector<16x1xf32> to vector<16x64xf32>
        %201 = arith.mulf %196, %200 : vector<16x64xf32>
        %202 = vector.broadcast %182 : vector<1x64xf32> to vector<16x64xf32>
        %203 = arith.mulf %201, %202 : vector<16x64xf32>
        %204 = vector.broadcast %183 : vector<1x64xf32> to vector<16x64xf32>
        %205 = arith.addf %203, %204 : vector<16x64xf32>
        %c0_93 = arith.constant 0 : index
        %c0_94 = arith.constant 0 : index
        %206 = vector.load %arg45[%c0_93, %c0_94] : memref<16x64xf32, #tpu.memory_space<vmem>>, vector<16x64xf32>
        tpu.vector_store %arg45[%c0_93, %c0_94], %205 {strides = array<i32>} : memref<16x64xf32, #tpu.memory_space<vmem>>, vector<16x64xf32>,
      } else {
      }
    } else {
    }
    %c2_i32_0 = arith.constant 2 : i32
    %3 = arith.cmpi sge, %arg0, %c2_i32_0 : i32
    %4 = arith.extui %3 : i1 to i32
    %c0_i32_1 = arith.constant 0 : i32
    %5 = arith.cmpi ne, %4, %c0_i32_1 : i32
    scf.if %5 {
      %c2_i32_2 = arith.constant 2 : i32
      %6 = arith.cmpi eq, %arg0, %c2_i32_2 : i32
      %7 = arith.extui %6 : i1 to i32
      %c0_i32_3 = arith.constant 0 : i32
      %8 = arith.cmpi ne, %7, %c0_i32_3 : i32
      scf.if %8 {
        %c0_144 = arith.constant 0 : index
        %c0_145 = arith.constant 0 : index
        %314 = vector.load %arg2[%c0_144, %c0_145] : memref<16x1xf32, #tpu.memory_space<vmem>>, vector<16x1xf32>
        %c0_146 = arith.constant 0 : index
        %c0_147 = arith.constant 0 : index
        %315 = vector.load %arg3[%c0_146, %c0_147] : memref<1x64xf32, #tpu.memory_space<vmem>>, vector<1x64xf32>
        %316 = vector.broadcast %314 : vector<16x1xf32> to vector<16x64xf32>
        %317 = vector.broadcast %315 : vector<1x64xf32> to vector<16x64xf32>
        %318 = arith.mulf %316, %317 : vector<16x64xf32>
        %c0_148 = arith.constant 0 : index
        %c0_149 = arith.constant 0 : index
        %319 = vector.load %arg4[%c0_148, %c0_149] : memref<1x64xf32, #tpu.memory_space<vmem>>, vector<1x64xf32>
        %320 = vector.broadcast %319 : vector<1x64xf32> to vector<16x64xf32>
        %321 = arith.addf %318, %320 : vector<16x64xf32>
        %c0_150 = arith.constant 0 : index
        %c0_151 = arith.constant 0 : index
        %322 = vector.load %arg46[%c0_150, %c0_151] : memref<16x64xf32, #tpu.memory_space<vmem>>, vector<16x64xf32>
        tpu.vector_store %arg46[%c0_150, %c0_151], %321 {strides = array<i32>} : memref<16x64xf32, #tpu.memory_space<vmem>>, vector<16x64xf32>,
      } else {
      }
      %c0 = arith.constant 0 : index
      %c0_4 = arith.constant 0 : index
      %9 = vector.load %arg46[%c0, %c0_4] : memref<16x64xf32, #tpu.memory_space<vmem>>, vector<16x64xf32>
      %c0_5 = arith.constant 0 : index
      %c0_6 = arith.constant 0 : index
      %c0_7 = arith.constant 0 : index
      %10 = vector.load %arg22[%c0_5, %c0_6, %c0_7] : memref<1x64x192xbf16, #tpu.memory_space<vmem>>, vector<1x64x192xbf16>
      %11 = vector.shape_cast %10 : vector<1x64x192xbf16> to vector<64x192xbf16>
      %cst = arith.constant dense<0.000000e+00> : vector<16x192xf32>
      %12 = tpu.matmul %9, %11, %cst {dimension_numbers = #tpu.dot_dimension_numbers<[1], [0], [0], [1], [0, 0, 1, 1], [], []>} : vector<16x64xf32>, vector<64x192xbf16>, vector<16x192xf32> -> vector<16x192xf32>
      %c0_8 = arith.constant 0 : index
      %c0_9 = arith.constant 0 : index
      %c0_10 = arith.constant 0 : index
      %13 = vector.load %arg23[%c0_8, %c0_9, %c0_10] : memref<1x1x192xf32, #tpu.memory_space<vmem>>, vector<1x1x192xf32>
      %14 = vector.shape_cast %13 : vector<1x1x192xf32> to vector<1x192xf32>
      %15 = vector.broadcast %14 : vector<1x192xf32> to vector<16x192xf32>
      %16 = arith.addf %12, %15 : vector<16x192xf32>
      %17 = vector.extract_strided_slice %16 {offsets = [0, 0], sizes = [16, 64], strides = [1, 1]} : vector<16x192xf32> to vector<16x64xf32>
      %18 = vector.extract_strided_slice %16 {offsets = [0, 64], sizes = [16, 64], strides = [1, 1]} : vector<16x192xf32> to vector<16x64xf32>
      %19 = vector.extract_strided_slice %16 {offsets = [0, 128], sizes = [16, 64], strides = [1, 1]} : vector<16x192xf32> to vector<16x64xf32>
      %c0_11 = arith.constant 0 : index
      %c0_12 = arith.constant 0 : index
      %c0_13 = arith.constant 0 : index
      %20 = vector.load %arg24[%c0_11, %c0_12, %c0_13] : memref<1x64x64xbf16, #tpu.memory_space<vmem>>, vector<1x64x64xbf16>
      %21 = vector.shape_cast %20 : vector<1x64x64xbf16> to vector<64x64xbf16>
      %c0_14 = arith.constant 0 : index
      %c0_15 = arith.constant 0 : index
      %22 = vector.load %arg6[%c0_14, %c0_15] : memref<16x16xf32, #tpu.memory_space<vmem>>, vector<16x16xf32>
      %cst_16 = arith.constant 0.000000e+00 : f32
      %23 = vector.broadcast %cst_16 : f32 to vector<16x64xf32>
      %24 = vector.extract_strided_slice %17 {offsets = [0, 0], sizes = [16, 16], strides = [1, 1]} : vector<16x64xf32> to vector<16x16xf32>
      %cst_17 = arith.constant 2.500000e-01 : f32
      %25 = vector.broadcast %cst_17 : f32 to vector<16x16xf32>
      %26 = arith.mulf %24, %25 : vector<16x16xf32>
      %27 = vector.extract_strided_slice %18 {offsets = [0, 0], sizes = [16, 16], strides = [1, 1]} : vector<16x64xf32> to vector<16x16xf32>
      %cst_18 = arith.constant dense<0.000000e+00> : vector<16x16xf32>
      %28 = tpu.matmul %26, %27, %cst_18 {dimension_numbers = #tpu.dot_dimension_numbers<[1], [1], [0], [0], [0, 0, 1, 0], [], []>} : vector<16x16xf32>, vector<16x16xf32>, vector<16x16xf32> -> vector<16x16xf32>
      %29 = arith.addf %28, %22 : vector<16x16xf32>
      %cst_19 = arith.constant dense<0xFF800000> : vector<16xf32>
      %30 = vector.multi_reduction <maximumf>, %29, %cst_19 [1] : vector<16x16xf32> to vector<16xf32>
      %31 = vector.shape_cast %30 : vector<16xf32> to vector<16x1xf32>
      %32 = vector.broadcast %31 : vector<16x1xf32> to vector<16x16xf32>
      %33 = arith.subf %29, %32 : vector<16x16xf32>
      %34 = math.exp %33 : vector<16x16xf32>
      %cst_20 = arith.constant dense<0.000000e+00> : vector<16xf32>
      %35 = vector.multi_reduction <add>, %34, %cst_20 [1] : vector<16x16xf32> to vector<16xf32>
      %36 = vector.shape_cast %35 : vector<16xf32> to vector<16x1xf32>
      %37 = vector.broadcast %36 : vector<16x1xf32> to vector<16x16xf32>
      %38 = arith.divf %34, %37 : vector<16x16xf32>
      %39 = vector.extract_strided_slice %19 {offsets = [0, 0], sizes = [16, 16], strides = [1, 1]} : vector<16x64xf32> to vector<16x16xf32>
      %cst_21 = arith.constant dense<0.000000e+00> : vector<16x16xf32>
      %40 = tpu.matmul %38, %39, %cst_21 {dimension_numbers = #tpu.dot_dimension_numbers<[1], [0], [0], [1], [0, 0, 1, 1], [], []>} : vector<16x16xf32>, vector<16x16xf32>, vector<16x16xf32> -> vector<16x16xf32>
      %41 = vector.extract_strided_slice %21 {offsets = [0, 0], sizes = [16, 64], strides = [1, 1]} : vector<64x64xbf16> to vector<16x64xbf16>
      %cst_22 = arith.constant dense<0.000000e+00> : vector<16x64xf32>
      %42 = tpu.matmul %40, %41, %cst_22 {dimension_numbers = #tpu.dot_dimension_numbers<[1], [0], [0], [1], [0, 0, 1, 1], [], []>} : vector<16x16xf32>, vector<16x64xbf16>, vector<16x64xf32> -> vector<16x64xf32>
      %43 = arith.addf %23, %42 : vector<16x64xf32>
      %44 = vector.extract_strided_slice %17 {offsets = [0, 16], sizes = [16, 16], strides = [1, 1]} : vector<16x64xf32> to vector<16x16xf32>
      %cst_23 = arith.constant 2.500000e-01 : f32
      %45 = vector.broadcast %cst_23 : f32 to vector<16x16xf32>
      %46 = arith.mulf %44, %45 : vector<16x16xf32>
      %47 = vector.extract_strided_slice %18 {offsets = [0, 16], sizes = [16, 16], strides = [1, 1]} : vector<16x64xf32> to vector<16x16xf32>
      %cst_24 = arith.constant dense<0.000000e+00> : vector<16x16xf32>
      %48 = tpu.matmul %46, %47, %cst_24 {dimension_numbers = #tpu.dot_dimension_numbers<[1], [1], [0], [0], [0, 0, 1, 0], [], []>} : vector<16x16xf32>, vector<16x16xf32>, vector<16x16xf32> -> vector<16x16xf32>
      %49 = arith.addf %48, %22 : vector<16x16xf32>
      %cst_25 = arith.constant dense<0xFF800000> : vector<16xf32>
      %50 = vector.multi_reduction <maximumf>, %49, %cst_25 [1] : vector<16x16xf32> to vector<16xf32>
      %51 = vector.shape_cast %50 : vector<16xf32> to vector<16x1xf32>
      %52 = vector.broadcast %51 : vector<16x1xf32> to vector<16x16xf32>
      %53 = arith.subf %49, %52 : vector<16x16xf32>
      %54 = math.exp %53 : vector<16x16xf32>
      %cst_26 = arith.constant dense<0.000000e+00> : vector<16xf32>
      %55 = vector.multi_reduction <add>, %54, %cst_26 [1] : vector<16x16xf32> to vector<16xf32>
      %56 = vector.shape_cast %55 : vector<16xf32> to vector<16x1xf32>
      %57 = vector.broadcast %56 : vector<16x1xf32> to vector<16x16xf32>
      %58 = arith.divf %54, %57 : vector<16x16xf32>
      %59 = vector.extract_strided_slice %19 {offsets = [0, 16], sizes = [16, 16], strides = [1, 1]} : vector<16x64xf32> to vector<16x16xf32>
      %cst_27 = arith.constant dense<0.000000e+00> : vector<16x16xf32>
      %60 = tpu.matmul %58, %59, %cst_27 {dimension_numbers = #tpu.dot_dimension_numbers<[1], [0], [0], [1], [0, 0, 1, 1], [], []>} : vector<16x16xf32>, vector<16x16xf32>, vector<16x16xf32> -> vector<16x16xf32>
      %61 = vector.extract_strided_slice %21 {offsets = [16, 0], sizes = [16, 64], strides = [1, 1]} : vector<64x64xbf16> to vector<16x64xbf16>
      %cst_28 = arith.constant dense<0.000000e+00> : vector<16x64xf32>
      %62 = tpu.matmul %60, %61, %cst_28 {dimension_numbers = #tpu.dot_dimension_numbers<[1], [0], [0], [1], [0, 0, 1, 1], [], []>} : vector<16x16xf32>, vector<16x64xbf16>, vector<16x64xf32> -> vector<16x64xf32>
      %63 = arith.addf %43, %62 : vector<16x64xf32>
      %64 = vector.extract_strided_slice %17 {offsets = [0, 32], sizes = [16, 16], strides = [1, 1]} : vector<16x64xf32> to vector<16x16xf32>
      %cst_29 = arith.constant 2.500000e-01 : f32
      %65 = vector.broadcast %cst_29 : f32 to vector<16x16xf32>
      %66 = arith.mulf %64, %65 : vector<16x16xf32>
      %67 = vector.extract_strided_slice %18 {offsets = [0, 32], sizes = [16, 16], strides = [1, 1]} : vector<16x64xf32> to vector<16x16xf32>
      %cst_30 = arith.constant dense<0.000000e+00> : vector<16x16xf32>
      %68 = tpu.matmul %66, %67, %cst_30 {dimension_numbers = #tpu.dot_dimension_numbers<[1], [1], [0], [0], [0, 0, 1, 0], [], []>} : vector<16x16xf32>, vector<16x16xf32>, vector<16x16xf32> -> vector<16x16xf32>
      %69 = arith.addf %68, %22 : vector<16x16xf32>
      %cst_31 = arith.constant dense<0xFF800000> : vector<16xf32>
      %70 = vector.multi_reduction <maximumf>, %69, %cst_31 [1] : vector<16x16xf32> to vector<16xf32>
      %71 = vector.shape_cast %70 : vector<16xf32> to vector<16x1xf32>
      %72 = vector.broadcast %71 : vector<16x1xf32> to vector<16x16xf32>
      %73 = arith.subf %69, %72 : vector<16x16xf32>
      %74 = math.exp %73 : vector<16x16xf32>
      %cst_32 = arith.constant dense<0.000000e+00> : vector<16xf32>
      %75 = vector.multi_reduction <add>, %74, %cst_32 [1] : vector<16x16xf32> to vector<16xf32>
      %76 = vector.shape_cast %75 : vector<16xf32> to vector<16x1xf32>
      %77 = vector.broadcast %76 : vector<16x1xf32> to vector<16x16xf32>
      %78 = arith.divf %74, %77 : vector<16x16xf32>
      %79 = vector.extract_strided_slice %19 {offsets = [0, 32], sizes = [16, 16], strides = [1, 1]} : vector<16x64xf32> to vector<16x16xf32>
      %cst_33 = arith.constant dense<0.000000e+00> : vector<16x16xf32>
      %80 = tpu.matmul %78, %79, %cst_33 {dimension_numbers = #tpu.dot_dimension_numbers<[1], [0], [0], [1], [0, 0, 1, 1], [], []>} : vector<16x16xf32>, vector<16x16xf32>, vector<16x16xf32> -> vector<16x16xf32>
      %81 = vector.extract_strided_slice %21 {offsets = [32, 0], sizes = [16, 64], strides = [1, 1]} : vector<64x64xbf16> to vector<16x64xbf16>
      %cst_34 = arith.constant dense<0.000000e+00> : vector<16x64xf32>
      %82 = tpu.matmul %80, %81, %cst_34 {dimension_numbers = #tpu.dot_dimension_numbers<[1], [0], [0], [1], [0, 0, 1, 1], [], []>} : vector<16x16xf32>, vector<16x64xbf16>, vector<16x64xf32> -> vector<16x64xf32>
      %83 = arith.addf %63, %82 : vector<16x64xf32>
      %84 = vector.extract_strided_slice %17 {offsets = [0, 48], sizes = [16, 16], strides = [1, 1]} : vector<16x64xf32> to vector<16x16xf32>
      %cst_35 = arith.constant 2.500000e-01 : f32
      %85 = vector.broadcast %cst_35 : f32 to vector<16x16xf32>
      %86 = arith.mulf %84, %85 : vector<16x16xf32>
      %87 = vector.extract_strided_slice %18 {offsets = [0, 48], sizes = [16, 16], strides = [1, 1]} : vector<16x64xf32> to vector<16x16xf32>
      %cst_36 = arith.constant dense<0.000000e+00> : vector<16x16xf32>
      %88 = tpu.matmul %86, %87, %cst_36 {dimension_numbers = #tpu.dot_dimension_numbers<[1], [1], [0], [0], [0, 0, 1, 0], [], []>} : vector<16x16xf32>, vector<16x16xf32>, vector<16x16xf32> -> vector<16x16xf32>
      %89 = arith.addf %88, %22 : vector<16x16xf32>
      %cst_37 = arith.constant dense<0xFF800000> : vector<16xf32>
      %90 = vector.multi_reduction <maximumf>, %89, %cst_37 [1] : vector<16x16xf32> to vector<16xf32>
      %91 = vector.shape_cast %90 : vector<16xf32> to vector<16x1xf32>
      %92 = vector.broadcast %91 : vector<16x1xf32> to vector<16x16xf32>
      %93 = arith.subf %89, %92 : vector<16x16xf32>
      %94 = math.exp %93 : vector<16x16xf32>
      %cst_38 = arith.constant dense<0.000000e+00> : vector<16xf32>
      %95 = vector.multi_reduction <add>, %94, %cst_38 [1] : vector<16x16xf32> to vector<16xf32>
      %96 = vector.shape_cast %95 : vector<16xf32> to vector<16x1xf32>
      %97 = vector.broadcast %96 : vector<16x1xf32> to vector<16x16xf32>
      %98 = arith.divf %94, %97 : vector<16x16xf32>
      %99 = vector.extract_strided_slice %19 {offsets = [0, 48], sizes = [16, 16], strides = [1, 1]} : vector<16x64xf32> to vector<16x16xf32>
      %cst_39 = arith.constant dense<0.000000e+00> : vector<16x16xf32>
      %100 = tpu.matmul %98, %99, %cst_39 {dimension_numbers = #tpu.dot_dimension_numbers<[1], [0], [0], [1], [0, 0, 1, 1], [], []>} : vector<16x16xf32>, vector<16x16xf32>, vector<16x16xf32> -> vector<16x16xf32>
      %101 = vector.extract_strided_slice %21 {offsets = [48, 0], sizes = [16, 64], strides = [1, 1]} : vector<64x64xbf16> to vector<16x64xbf16>
      %cst_40 = arith.constant dense<0.000000e+00> : vector<16x64xf32>
      %102 = tpu.matmul %100, %101, %cst_40 {dimension_numbers = #tpu.dot_dimension_numbers<[1], [0], [0], [1], [0, 0, 1, 1], [], []>} : vector<16x16xf32>, vector<16x64xbf16>, vector<16x64xf32> -> vector<16x64xf32>
      %103 = arith.addf %83, %102 : vector<16x64xf32>
      %c0_41 = arith.constant 0 : index
      %c0_42 = arith.constant 0 : index
      %c0_43 = arith.constant 0 : index
      %104 = vector.load %arg25[%c0_41, %c0_42, %c0_43] : memref<1x1x64xf32, #tpu.memory_space<vmem>>, vector<1x1x64xf32>
      %105 = vector.shape_cast %104 : vector<1x1x64xf32> to vector<1x64xf32>
      %106 = vector.broadcast %105 : vector<1x64xf32> to vector<16x64xf32>
      %107 = arith.addf %103, %106 : vector<16x64xf32>
      %c0_44 = arith.constant 0 : index
      %c0_45 = arith.constant 0 : index
      %c0_46 = arith.constant 0 : index
      %108 = vector.load %arg32[%c0_44, %c0_45, %c0_46] : memref<1x1x64xf32, #tpu.memory_space<vmem>>, vector<1x1x64xf32>
      %109 = vector.shape_cast %108 : vector<1x1x64xf32> to vector<1x64xf32>
      %c0_47 = arith.constant 0 : index
      %c0_48 = arith.constant 0 : index
      %c0_49 = arith.constant 0 : index
      %110 = vector.load %arg33[%c0_47, %c0_48, %c0_49] : memref<1x1x64xf32, #tpu.memory_space<vmem>>, vector<1x1x64xf32>
      %111 = vector.shape_cast %110 : vector<1x1x64xf32> to vector<1x64xf32>
      %112 = arith.addf %9, %107 : vector<16x64xf32>
      %cst_50 = arith.constant dense<0.000000e+00> : vector<16xf32>
      %113 = vector.multi_reduction <add>, %112, %cst_50 [1] : vector<16x64xf32> to vector<16xf32>
      %114 = vector.shape_cast %113 : vector<16xf32> to vector<16x1xf32>
      %cst_51 = arith.constant 6.400000e+01 : f32
      %115 = vector.broadcast %cst_51 : f32 to vector<16x1xf32>
      %116 = arith.divf %114, %115 : vector<16x1xf32>
      %117 = vector.broadcast %116 : vector<16x1xf32> to vector<16x64xf32>
      %118 = arith.subf %112, %117 : vector<16x64xf32>
      %119 = arith.mulf %118, %118 : vector<16x64xf32>
      %cst_52 = arith.constant dense<0.000000e+00> : vector<16xf32>
      %120 = vector.multi_reduction <add>, %119, %cst_52 [1] : vector<16x64xf32> to vector<16xf32>
      %121 = vector.shape_cast %120 : vector<16xf32> to vector<16x1xf32>
      %cst_53 = arith.constant 6.400000e+01 : f32
      %122 = vector.broadcast %cst_53 : f32 to vector<16x1xf32>
      %123 = arith.divf %121, %122 : vector<16x1xf32>
      %124 = vector.broadcast %116 : vector<16x1xf32> to vector<16x64xf32>
      %125 = arith.subf %112, %124 : vector<16x64xf32>
      %cst_54 = arith.constant 9.99999974E-6 : f32
      %126 = vector.broadcast %cst_54 : f32 to vector<16x1xf32>
      %127 = arith.addf %123, %126 : vector<16x1xf32>
      %128 = math.rsqrt %127 : vector<16x1xf32>
      %129 = vector.broadcast %128 : vector<16x1xf32> to vector<16x64xf32>
      %130 = arith.mulf %125, %129 : vector<16x64xf32>
      %131 = vector.broadcast %109 : vector<1x64xf32> to vector<16x64xf32>
      %132 = arith.mulf %130, %131 : vector<16x64xf32>
      %133 = vector.broadcast %111 : vector<1x64xf32> to vector<16x64xf32>
      %134 = arith.addf %132, %133 : vector<16x64xf32>
      %c0_55 = arith.constant 0 : index
      %c0_56 = arith.constant 0 : index
      %135 = vector.load %arg45[%c0_55, %c0_56] : memref<16x64xf32, #tpu.memory_space<vmem>>, vector<16x64xf32>
      %c0_57 = arith.constant 0 : index
      %c0_58 = arith.constant 0 : index
      %c0_59 = arith.constant 0 : index
      %136 = vector.load %arg26[%c0_57, %c0_58, %c0_59] : memref<1x64x64xbf16, #tpu.memory_space<vmem>>, vector<1x64x64xbf16>
      %137 = vector.shape_cast %136 : vector<1x64x64xbf16> to vector<64x64xbf16>
      %cst_60 = arith.constant dense<0.000000e+00> : vector<16x64xf32>
      %138 = tpu.matmul %134, %137, %cst_60 {dimension_numbers = #tpu.dot_dimension_numbers<[1], [0], [0], [1], [0, 0, 1, 1], [], []>} : vector<16x64xf32>, vector<64x64xbf16>, vector<16x64xf32> -> vector<16x64xf32>
      %c0_61 = arith.constant 0 : index
      %c0_62 = arith.constant 0 : index
      %c0_63 = arith.constant 0 : index
      %139 = vector.load %arg27[%c0_61, %c0_62, %c0_63] : memref<1x1x64xf32, #tpu.memory_space<vmem>>, vector<1x1x64xf32>
      %140 = vector.shape_cast %139 : vector<1x1x64xf32> to vector<1x64xf32>
      %141 = vector.broadcast %140 : vector<1x64xf32> to vector<16x64xf32>
      %142 = arith.addf %138, %141 : vector<16x64xf32>
      %c0_64 = arith.constant 0 : index
      %c0_65 = arith.constant 0 : index
      %c0_66 = arith.constant 0 : index
      %143 = vector.load %arg28[%c0_64, %c0_65, %c0_66] : memref<1x64x128xbf16, #tpu.memory_space<vmem>>, vector<1x64x128xbf16>
      %144 = vector.shape_cast %143 : vector<1x64x128xbf16> to vector<64x128xbf16>
      %cst_67 = arith.constant dense<0.000000e+00> : vector<16x128xf32>
      %145 = tpu.matmul %135, %144, %cst_67 {dimension_numbers = #tpu.dot_dimension_numbers<[1], [0], [0], [1], [0, 0, 1, 1], [], []>} : vector<16x64xf32>, vector<64x128xbf16>, vector<16x128xf32> -> vector<16x128xf32>
      %c0_68 = arith.constant 0 : index
      %c0_69 = arith.constant 0 : index
      %c0_70 = arith.constant 0 : index
      %146 = vector.load %arg29[%c0_68, %c0_69, %c0_70] : memref<1x1x128xf32, #tpu.memory_space<vmem>>, vector<1x1x128xf32>
      %147 = vector.shape_cast %146 : vector<1x1x128xf32> to vector<1x128xf32>
      %148 = vector.broadcast %147 : vector<1x128xf32> to vector<16x128xf32>
      %149 = arith.addf %145, %148 : vector<16x128xf32>
      %150 = vector.extract_strided_slice %149 {offsets = [0, 0], sizes = [16, 64], strides = [1, 1]} : vector<16x128xf32> to vector<16x64xf32>
      %151 = vector.extract_strided_slice %149 {offsets = [0, 64], sizes = [16, 64], strides = [1, 1]} : vector<16x128xf32> to vector<16x64xf32>
      %c0_71 = arith.constant 0 : index
      %c0_72 = arith.constant 0 : index
      %c0_73 = arith.constant 0 : index
      %152 = vector.load %arg30[%c0_71, %c0_72, %c0_73] : memref<1x64x64xbf16, #tpu.memory_space<vmem>>, vector<1x64x64xbf16>
      %153 = vector.shape_cast %152 : vector<1x64x64xbf16> to vector<64x64xbf16>
      %c0_74 = arith.constant 0 : index
      %c0_75 = arith.constant 0 : index
      %154 = vector.load %arg7[%c0_74, %c0_75] : memref<16x16xf32, #tpu.memory_space<vmem>>, vector<16x16xf32>
      %cst_76 = arith.constant 0.000000e+00 : f32
      %155 = vector.broadcast %cst_76 : f32 to vector<16x64xf32>
      %156 = vector.extract_strided_slice %142 {offsets = [0, 0], sizes = [16, 16], strides = [1, 1]} : vector<16x64xf32> to vector<16x16xf32>
      %cst_77 = arith.constant 2.500000e-01 : f32
      %157 = vector.broadcast %cst_77 : f32 to vector<16x16xf32>
      %158 = arith.mulf %156, %157 : vector<16x16xf32>
      %159 = vector.extract_strided_slice %150 {offsets = [0, 0], sizes = [16, 16], strides = [1, 1]} : vector<16x64xf32> to vector<16x16xf32>
      %cst_78 = arith.constant dense<0.000000e+00> : vector<16x16xf32>
      %160 = tpu.matmul %158, %159, %cst_78 {dimension_numbers = #tpu.dot_dimension_numbers<[1], [1], [0], [0], [0, 0, 1, 0], [], []>} : vector<16x16xf32>, vector<16x16xf32>, vector<16x16xf32> -> vector<16x16xf32>
      %161 = arith.addf %160, %154 : vector<16x16xf32>
      %cst_79 = arith.constant dense<0xFF800000> : vector<16xf32>
      %162 = vector.multi_reduction <maximumf>, %161, %cst_79 [1] : vector<16x16xf32> to vector<16xf32>
      %163 = vector.shape_cast %162 : vector<16xf32> to vector<16x1xf32>
      %164 = vector.broadcast %163 : vector<16x1xf32> to vector<16x16xf32>
      %165 = arith.subf %161, %164 : vector<16x16xf32>
      %166 = math.exp %165 : vector<16x16xf32>
      %cst_80 = arith.constant dense<0.000000e+00> : vector<16xf32>
      %167 = vector.multi_reduction <add>, %166, %cst_80 [1] : vector<16x16xf32> to vector<16xf32>
      %168 = vector.shape_cast %167 : vector<16xf32> to vector<16x1xf32>
      %169 = vector.broadcast %168 : vector<16x1xf32> to vector<16x16xf32>
      %170 = arith.divf %166, %169 : vector<16x16xf32>
      %171 = vector.extract_strided_slice %151 {offsets = [0, 0], sizes = [16, 16], strides = [1, 1]} : vector<16x64xf32> to vector<16x16xf32>
      %cst_81 = arith.constant dense<0.000000e+00> : vector<16x16xf32>
      %172 = tpu.matmul %170, %171, %cst_81 {dimension_numbers = #tpu.dot_dimension_numbers<[1], [0], [0], [1], [0, 0, 1, 1], [], []>} : vector<16x16xf32>, vector<16x16xf32>, vector<16x16xf32> -> vector<16x16xf32>
      %173 = vector.extract_strided_slice %153 {offsets = [0, 0], sizes = [16, 64], strides = [1, 1]} : vector<64x64xbf16> to vector<16x64xbf16>
      %cst_82 = arith.constant dense<0.000000e+00> : vector<16x64xf32>
      %174 = tpu.matmul %172, %173, %cst_82 {dimension_numbers = #tpu.dot_dimension_numbers<[1], [0], [0], [1], [0, 0, 1, 1], [], []>} : vector<16x16xf32>, vector<16x64xbf16>, vector<16x64xf32> -> vector<16x64xf32>
      %175 = arith.addf %155, %174 : vector<16x64xf32>
      %176 = vector.extract_strided_slice %142 {offsets = [0, 16], sizes = [16, 16], strides = [1, 1]} : vector<16x64xf32> to vector<16x16xf32>
      %cst_83 = arith.constant 2.500000e-01 : f32
      %177 = vector.broadcast %cst_83 : f32 to vector<16x16xf32>
      %178 = arith.mulf %176, %177 : vector<16x16xf32>
      %179 = vector.extract_strided_slice %150 {offsets = [0, 16], sizes = [16, 16], strides = [1, 1]} : vector<16x64xf32> to vector<16x16xf32>
      %cst_84 = arith.constant dense<0.000000e+00> : vector<16x16xf32>
      %180 = tpu.matmul %178, %179, %cst_84 {dimension_numbers = #tpu.dot_dimension_numbers<[1], [1], [0], [0], [0, 0, 1, 0], [], []>} : vector<16x16xf32>, vector<16x16xf32>, vector<16x16xf32> -> vector<16x16xf32>
      %181 = arith.addf %180, %154 : vector<16x16xf32>
      %cst_85 = arith.constant dense<0xFF800000> : vector<16xf32>
      %182 = vector.multi_reduction <maximumf>, %181, %cst_85 [1] : vector<16x16xf32> to vector<16xf32>
      %183 = vector.shape_cast %182 : vector<16xf32> to vector<16x1xf32>
      %184 = vector.broadcast %183 : vector<16x1xf32> to vector<16x16xf32>
      %185 = arith.subf %181, %184 : vector<16x16xf32>
      %186 = math.exp %185 : vector<16x16xf32>
      %cst_86 = arith.constant dense<0.000000e+00> : vector<16xf32>
      %187 = vector.multi_reduction <add>, %186, %cst_86 [1] : vector<16x16xf32> to vector<16xf32>
      %188 = vector.shape_cast %187 : vector<16xf32> to vector<16x1xf32>
      %189 = vector.broadcast %188 : vector<16x1xf32> to vector<16x16xf32>
      %190 = arith.divf %186, %189 : vector<16x16xf32>
      %191 = vector.extract_strided_slice %151 {offsets = [0, 16], sizes = [16, 16], strides = [1, 1]} : vector<16x64xf32> to vector<16x16xf32>
      %cst_87 = arith.constant dense<0.000000e+00> : vector<16x16xf32>
      %192 = tpu.matmul %190, %191, %cst_87 {dimension_numbers = #tpu.dot_dimension_numbers<[1], [0], [0], [1], [0, 0, 1, 1], [], []>} : vector<16x16xf32>, vector<16x16xf32>, vector<16x16xf32> -> vector<16x16xf32>
      %193 = vector.extract_strided_slice %153 {offsets = [16, 0], sizes = [16, 64], strides = [1, 1]} : vector<64x64xbf16> to vector<16x64xbf16>
      %cst_88 = arith.constant dense<0.000000e+00> : vector<16x64xf32>
      %194 = tpu.matmul %192, %193, %cst_88 {dimension_numbers = #tpu.dot_dimension_numbers<[1], [0], [0], [1], [0, 0, 1, 1], [], []>} : vector<16x16xf32>, vector<16x64xbf16>, vector<16x64xf32> -> vector<16x64xf32>
      %195 = arith.addf %175, %194 : vector<16x64xf32>
      %196 = vector.extract_strided_slice %142 {offsets = [0, 32], sizes = [16, 16], strides = [1, 1]} : vector<16x64xf32> to vector<16x16xf32>
      %cst_89 = arith.constant 2.500000e-01 : f32
      %197 = vector.broadcast %cst_89 : f32 to vector<16x16xf32>
      %198 = arith.mulf %196, %197 : vector<16x16xf32>
      %199 = vector.extract_strided_slice %150 {offsets = [0, 32], sizes = [16, 16], strides = [1, 1]} : vector<16x64xf32> to vector<16x16xf32>
      %cst_90 = arith.constant dense<0.000000e+00> : vector<16x16xf32>
      %200 = tpu.matmul %198, %199, %cst_90 {dimension_numbers = #tpu.dot_dimension_numbers<[1], [1], [0], [0], [0, 0, 1, 0], [], []>} : vector<16x16xf32>, vector<16x16xf32>, vector<16x16xf32> -> vector<16x16xf32>
      %201 = arith.addf %200, %154 : vector<16x16xf32>
      %cst_91 = arith.constant dense<0xFF800000> : vector<16xf32>
      %202 = vector.multi_reduction <maximumf>, %201, %cst_91 [1] : vector<16x16xf32> to vector<16xf32>
      %203 = vector.shape_cast %202 : vector<16xf32> to vector<16x1xf32>
      %204 = vector.broadcast %203 : vector<16x1xf32> to vector<16x16xf32>
      %205 = arith.subf %201, %204 : vector<16x16xf32>
      %206 = math.exp %205 : vector<16x16xf32>
      %cst_92 = arith.constant dense<0.000000e+00> : vector<16xf32>
      %207 = vector.multi_reduction <add>, %206, %cst_92 [1] : vector<16x16xf32> to vector<16xf32>
      %208 = vector.shape_cast %207 : vector<16xf32> to vector<16x1xf32>
      %209 = vector.broadcast %208 : vector<16x1xf32> to vector<16x16xf32>
      %210 = arith.divf %206, %209 : vector<16x16xf32>
      %211 = vector.extract_strided_slice %151 {offsets = [0, 32], sizes = [16, 16], strides = [1, 1]} : vector<16x64xf32> to vector<16x16xf32>
      %cst_93 = arith.constant dense<0.000000e+00> : vector<16x16xf32>
      %212 = tpu.matmul %210, %211, %cst_93 {dimension_numbers = #tpu.dot_dimension_numbers<[1], [0], [0], [1], [0, 0, 1, 1], [], []>} : vector<16x16xf32>, vector<16x16xf32>, vector<16x16xf32> -> vector<16x16xf32>
      %213 = vector.extract_strided_slice %153 {offsets = [32, 0], sizes = [16, 64], strides = [1, 1]} : vector<64x64xbf16> to vector<16x64xbf16>
      %cst_94 = arith.constant dense<0.000000e+00> : vector<16x64xf32>
      %214 = tpu.matmul %212, %213, %cst_94 {dimension_numbers = #tpu.dot_dimension_numbers<[1], [0], [0], [1], [0, 0, 1, 1], [], []>} : vector<16x16xf32>, vector<16x64xbf16>, vector<16x64xf32> -> vector<16x64xf32>
      %215 = arith.addf %195, %214 : vector<16x64xf32>
      %216 = vector.extract_strided_slice %142 {offsets = [0, 48], sizes = [16, 16], strides = [1, 1]} : vector<16x64xf32> to vector<16x16xf32>
      %cst_95 = arith.constant 2.500000e-01 : f32
      %217 = vector.broadcast %cst_95 : f32 to vector<16x16xf32>
      %218 = arith.mulf %216, %217 : vector<16x16xf32>
      %219 = vector.extract_strided_slice %150 {offsets = [0, 48], sizes = [16, 16], strides = [1, 1]} : vector<16x64xf32> to vector<16x16xf32>
      %cst_96 = arith.constant dense<0.000000e+00> : vector<16x16xf32>
      %220 = tpu.matmul %218, %219, %cst_96 {dimension_numbers = #tpu.dot_dimension_numbers<[1], [1], [0], [0], [0, 0, 1, 0], [], []>} : vector<16x16xf32>, vector<16x16xf32>, vector<16x16xf32> -> vector<16x16xf32>
      %221 = arith.addf %220, %154 : vector<16x16xf32>
      %cst_97 = arith.constant dense<0xFF800000> : vector<16xf32>
      %222 = vector.multi_reduction <maximumf>, %221, %cst_97 [1] : vector<16x16xf32> to vector<16xf32>
      %223 = vector.shape_cast %222 : vector<16xf32> to vector<16x1xf32>
      %224 = vector.broadcast %223 : vector<16x1xf32> to vector<16x16xf32>
      %225 = arith.subf %221, %224 : vector<16x16xf32>
      %226 = math.exp %225 : vector<16x16xf32>
      %cst_98 = arith.constant dense<0.000000e+00> : vector<16xf32>
      %227 = vector.multi_reduction <add>, %226, %cst_98 [1] : vector<16x16xf32> to vector<16xf32>
      %228 = vector.shape_cast %227 : vector<16xf32> to vector<16x1xf32>
      %229 = vector.broadcast %228 : vector<16x1xf32> to vector<16x16xf32>
      %230 = arith.divf %226, %229 : vector<16x16xf32>
      %231 = vector.extract_strided_slice %151 {offsets = [0, 48], sizes = [16, 16], strides = [1, 1]} : vector<16x64xf32> to vector<16x16xf32>
      %cst_99 = arith.constant dense<0.000000e+00> : vector<16x16xf32>
      %232 = tpu.matmul %230, %231, %cst_99 {dimension_numbers = #tpu.dot_dimension_numbers<[1], [0], [0], [1], [0, 0, 1, 1], [], []>} : vector<16x16xf32>, vector<16x16xf32>, vector<16x16xf32> -> vector<16x16xf32>
      %233 = vector.extract_strided_slice %153 {offsets = [48, 0], sizes = [16, 64], strides = [1, 1]} : vector<64x64xbf16> to vector<16x64xbf16>
      %cst_100 = arith.constant dense<0.000000e+00> : vector<16x64xf32>
      %234 = tpu.matmul %232, %233, %cst_100 {dimension_numbers = #tpu.dot_dimension_numbers<[1], [0], [0], [1], [0, 0, 1, 1], [], []>} : vector<16x16xf32>, vector<16x64xbf16>, vector<16x64xf32> -> vector<16x64xf32>
      %235 = arith.addf %215, %234 : vector<16x64xf32>
      %c0_101 = arith.constant 0 : index
      %c0_102 = arith.constant 0 : index
      %c0_103 = arith.constant 0 : index
      %236 = vector.load %arg31[%c0_101, %c0_102, %c0_103] : memref<1x1x64xf32, #tpu.memory_space<vmem>>, vector<1x1x64xf32>
      %237 = vector.shape_cast %236 : vector<1x1x64xf32> to vector<1x64xf32>
      %238 = vector.broadcast %237 : vector<1x64xf32> to vector<16x64xf32>
      %239 = arith.addf %235, %238 : vector<16x64xf32>
      %c0_104 = arith.constant 0 : index
      %c0_105 = arith.constant 0 : index
      %c0_106 = arith.constant 0 : index
      %240 = vector.load %arg34[%c0_104, %c0_105, %c0_106] : memref<1x1x64xf32, #tpu.memory_space<vmem>>, vector<1x1x64xf32>
      %241 = vector.shape_cast %240 : vector<1x1x64xf32> to vector<1x64xf32>
      %c0_107 = arith.constant 0 : index
      %c0_108 = arith.constant 0 : index
      %c0_109 = arith.constant 0 : index
      %242 = vector.load %arg35[%c0_107, %c0_108, %c0_109] : memref<1x1x64xf32, #tpu.memory_space<vmem>>, vector<1x1x64xf32>
      %243 = vector.shape_cast %242 : vector<1x1x64xf32> to vector<1x64xf32>
      %244 = arith.addf %134, %239 : vector<16x64xf32>
      %cst_110 = arith.constant dense<0.000000e+00> : vector<16xf32>
      %245 = vector.multi_reduction <add>, %244, %cst_110 [1] : vector<16x64xf32> to vector<16xf32>
      %246 = vector.shape_cast %245 : vector<16xf32> to vector<16x1xf32>
      %cst_111 = arith.constant 6.400000e+01 : f32
      %247 = vector.broadcast %cst_111 : f32 to vector<16x1xf32>
      %248 = arith.divf %246, %247 : vector<16x1xf32>
      %249 = vector.broadcast %248 : vector<16x1xf32> to vector<16x64xf32>
      %250 = arith.subf %244, %249 : vector<16x64xf32>
      %251 = arith.mulf %250, %250 : vector<16x64xf32>
      %cst_112 = arith.constant dense<0.000000e+00> : vector<16xf32>
      %252 = vector.multi_reduction <add>, %251, %cst_112 [1] : vector<16x64xf32> to vector<16xf32>
      %253 = vector.shape_cast %252 : vector<16xf32> to vector<16x1xf32>
      %cst_113 = arith.constant 6.400000e+01 : f32
      %254 = vector.broadcast %cst_113 : f32 to vector<16x1xf32>
      %255 = arith.divf %253, %254 : vector<16x1xf32>
      %256 = vector.broadcast %248 : vector<16x1xf32> to vector<16x64xf32>
      %257 = arith.subf %244, %256 : vector<16x64xf32>
      %cst_114 = arith.constant 9.99999974E-6 : f32
      %258 = vector.broadcast %cst_114 : f32 to vector<16x1xf32>
      %259 = arith.addf %255, %258 : vector<16x1xf32>
      %260 = math.rsqrt %259 : vector<16x1xf32>
      %261 = vector.broadcast %260 : vector<16x1xf32> to vector<16x64xf32>
      %262 = arith.mulf %257, %261 : vector<16x64xf32>
      %263 = vector.broadcast %241 : vector<1x64xf32> to vector<16x64xf32>
      %264 = arith.mulf %262, %263 : vector<16x64xf32>
      %265 = vector.broadcast %243 : vector<1x64xf32> to vector<16x64xf32>
      %266 = arith.addf %264, %265 : vector<16x64xf32>
      %c0_115 = arith.constant 0 : index
      %c0_116 = arith.constant 0 : index
      %c0_117 = arith.constant 0 : index
      %267 = vector.load %arg38[%c0_115, %c0_116, %c0_117] : memref<1x64x2048xbf16, #tpu.memory_space<vmem>>, vector<1x64x2048xbf16>
      %268 = vector.shape_cast %267 : vector<1x64x2048xbf16> to vector<64x2048xbf16>
      %c0_118 = arith.constant 0 : index
      %c0_119 = arith.constant 0 : index
      %c0_120 = arith.constant 0 : index
      %269 = vector.load %arg39[%c0_118, %c0_119, %c0_120] : memref<1x1x2048xf32, #tpu.memory_space<vmem>>, vector<1x1x2048xf32>
      %270 = vector.shape_cast %269 : vector<1x1x2048xf32> to vector<1x2048xf32>
      %c0_121 = arith.constant 0 : index
      %c0_122 = arith.constant 0 : index
      %c0_123 = arith.constant 0 : index
      %271 = vector.load %arg40[%c0_121, %c0_122, %c0_123] : memref<1x2048x64xbf16, #tpu.memory_space<vmem>>, vector<1x2048x64xbf16>
      %272 = vector.shape_cast %271 : vector<1x2048x64xbf16> to vector<2048x64xbf16>
      %c0_124 = arith.constant 0 : index
      %c0_125 = arith.constant 0 : index
      %c0_126 = arith.constant 0 : index
      %273 = vector.load %arg41[%c0_124, %c0_125, %c0_126] : memref<1x1x64xf32, #tpu.memory_space<vmem>>, vector<1x1x64xf32>
      %274 = vector.shape_cast %273 : vector<1x1x64xf32> to vector<1x64xf32>
      %cst_127 = arith.constant dense<0.000000e+00> : vector<16x2048xf32>
      %275 = tpu.matmul %266, %268, %cst_127 {dimension_numbers = #tpu.dot_dimension_numbers<[1], [0], [0], [1], [0, 0, 1, 1], [], []>} : vector<16x64xf32>, vector<64x2048xbf16>, vector<16x2048xf32> -> vector<16x2048xf32>
      %276 = vector.broadcast %270 : vector<1x2048xf32> to vector<16x2048xf32>
      %277 = arith.addf %275, %276 : vector<16x2048xf32>
      %cst_128 = arith.constant 0.000000e+00 : f32
      %278 = vector.broadcast %cst_128 : f32 to vector<16x2048xf32>
      %279 = arith.maximumf %277, %278 : vector<16x2048xf32>
      %cst_129 = arith.constant dense<0.000000e+00> : vector<16x64xf32>
      %280 = tpu.matmul %279, %272, %cst_129 {dimension_numbers = #tpu.dot_dimension_numbers<[1], [0], [0], [1], [0, 0, 1, 1], [], []>} : vector<16x2048xf32>, vector<2048x64xbf16>, vector<16x64xf32> -> vector<16x64xf32>
      %281 = vector.broadcast %274 : vector<1x64xf32> to vector<16x64xf32>
      %282 = arith.addf %280, %281 : vector<16x64xf32>
      %c0_130 = arith.constant 0 : index
      %c0_131 = arith.constant 0 : index
      %c0_132 = arith.constant 0 : index
      %283 = vector.load %arg36[%c0_130, %c0_131, %c0_132] : memref<1x1x64xf32, #tpu.memory_space<vmem>>, vector<1x1x64xf32>
      %284 = vector.shape_cast %283 : vector<1x1x64xf32> to vector<1x64xf32>
      %c0_133 = arith.constant 0 : index
      %c0_134 = arith.constant 0 : index
      %c0_135 = arith.constant 0 : index
      %285 = vector.load %arg37[%c0_133, %c0_134, %c0_135] : memref<1x1x64xf32, #tpu.memory_space<vmem>>, vector<1x1x64xf32>
      %286 = vector.shape_cast %285 : vector<1x1x64xf32> to vector<1x64xf32>
      %287 = arith.addf %266, %282 : vector<16x64xf32>
      %cst_136 = arith.constant dense<0.000000e+00> : vector<16xf32>
      %288 = vector.multi_reduction <add>, %287, %cst_136 [1] : vector<16x64xf32> to vector<16xf32>
      %289 = vector.shape_cast %288 : vector<16xf32> to vector<16x1xf32>
      %cst_137 = arith.constant 6.400000e+01 : f32
      %290 = vector.broadcast %cst_137 : f32 to vector<16x1xf32>
      %291 = arith.divf %289, %290 : vector<16x1xf32>
      %292 = vector.broadcast %291 : vector<16x1xf32> to vector<16x64xf32>
      %293 = arith.subf %287, %292 : vector<16x64xf32>
      %294 = arith.mulf %293, %293 : vector<16x64xf32>
      %cst_138 = arith.constant dense<0.000000e+00> : vector<16xf32>
      %295 = vector.multi_reduction <add>, %294, %cst_138 [1] : vector<16x64xf32> to vector<16xf32>
      %296 = vector.shape_cast %295 : vector<16xf32> to vector<16x1xf32>
      %cst_139 = arith.constant 6.400000e+01 : f32
      %297 = vector.broadcast %cst_139 : f32 to vector<16x1xf32>
      %298 = arith.divf %296, %297 : vector<16x1xf32>
      %299 = vector.broadcast %291 : vector<16x1xf32> to vector<16x64xf32>
      %300 = arith.subf %287, %299 : vector<16x64xf32>
      %cst_140 = arith.constant 9.99999974E-6 : f32
      %301 = vector.broadcast %cst_140 : f32 to vector<16x1xf32>
      %302 = arith.addf %298, %301 : vector<16x1xf32>
      %303 = math.rsqrt %302 : vector<16x1xf32>
      %304 = vector.broadcast %303 : vector<16x1xf32> to vector<16x64xf32>
      %305 = arith.mulf %300, %304 : vector<16x64xf32>
      %306 = vector.broadcast %284 : vector<1x64xf32> to vector<16x64xf32>
      %307 = arith.mulf %305, %306 : vector<16x64xf32>
      %308 = vector.broadcast %286 : vector<1x64xf32> to vector<16x64xf32>
      %309 = arith.addf %307, %308 : vector<16x64xf32>
      %c0_141 = arith.constant 0 : index
      %c0_142 = arith.constant 0 : index
      %310 = vector.load %arg46[%c0_141, %c0_142] : memref<16x64xf32, #tpu.memory_space<vmem>>, vector<16x64xf32>
      tpu.vector_store %arg46[%c0_141, %c0_142], %309 {strides = array<i32>} : memref<16x64xf32, #tpu.memory_space<vmem>>, vector<16x64xf32>,
      %c7_i32 = arith.constant 7 : i32
      %311 = arith.cmpi eq, %arg0, %c7_i32 : i32
      %312 = arith.extui %311 : i1 to i32
      %c0_i32_143 = arith.constant 0 : i32
      %313 = arith.cmpi ne, %312, %c0_i32_143 : i32
      scf.if %313 {
        %c0_144 = arith.constant 0 : index
        %c0_145 = arith.constant 0 : index
        %314 = vector.load %arg42[%c0_144, %c0_145] : memref<1x64xf32, #tpu.memory_space<vmem>>, vector<1x64xf32>
        %c0_146 = arith.constant 0 : index
        %c0_147 = arith.constant 0 : index
        %315 = vector.load %arg43[%c0_146, %c0_147] : memref<1x64xf32, #tpu.memory_space<vmem>>, vector<1x64xf32>
        %cst_148 = arith.constant dense<0.000000e+00> : vector<16xf32>
        %316 = vector.multi_reduction <add>, %309, %cst_148 [1] : vector<16x64xf32> to vector<16xf32>
        %317 = vector.shape_cast %316 : vector<16xf32> to vector<16x1xf32>
        %cst_149 = arith.constant 6.400000e+01 : f32
        %318 = vector.broadcast %cst_149 : f32 to vector<16x1xf32>
        %319 = arith.divf %317, %318 : vector<16x1xf32>
        %320 = vector.broadcast %319 : vector<16x1xf32> to vector<16x64xf32>
        %321 = arith.subf %309, %320 : vector<16x64xf32>
        %322 = arith.mulf %321, %321 : vector<16x64xf32>
        %cst_150 = arith.constant dense<0.000000e+00> : vector<16xf32>
        %323 = vector.multi_reduction <add>, %322, %cst_150 [1] : vector<16x64xf32> to vector<16xf32>
        %324 = vector.shape_cast %323 : vector<16xf32> to vector<16x1xf32>
        %cst_151 = arith.constant 6.400000e+01 : f32
        %325 = vector.broadcast %cst_151 : f32 to vector<16x1xf32>
        %326 = arith.divf %324, %325 : vector<16x1xf32>
        %327 = vector.broadcast %319 : vector<16x1xf32> to vector<16x64xf32>
        %328 = arith.subf %309, %327 : vector<16x64xf32>
        %cst_152 = arith.constant 9.99999974E-6 : f32
        %329 = vector.broadcast %cst_152 : f32 to vector<16x1xf32>
        %330 = arith.addf %326, %329 : vector<16x1xf32>
        %331 = math.rsqrt %330 : vector<16x1xf32>
        %332 = vector.broadcast %331 : vector<16x1xf32> to vector<16x64xf32>
        %333 = arith.mulf %328, %332 : vector<16x64xf32>
        %334 = vector.broadcast %314 : vector<1x64xf32> to vector<16x64xf32>
        %335 = arith.mulf %333, %334 : vector<16x64xf32>
        %336 = vector.broadcast %315 : vector<1x64xf32> to vector<16x64xf32>
        %337 = arith.addf %335, %336 : vector<16x64xf32>
        %c0_153 = arith.constant 0 : index
        %c0_154 = arith.constant 0 : index
        %338 = vector.load %arg44[%c0_153, %c0_154] : memref<16x64xf32, #tpu.memory_space<vmem>>, vector<16x64xf32>
        tpu.vector_store %arg44[%c0_153, %c0_154], %337 {strides = array<i32>} : memref<16x64xf32, #tpu.memory_space<vmem>>, vector<16x64xf32>,
      } else {
      }
    } else {
    }
    return
  }
  func.func @transform_0(%arg0: i32) -> (i32, i32) {
    %c0_i32 = arith.constant 0 : i32
    %c0_i32_0 = arith.constant 0 : i32
    %c0_i32_1 = arith.constant 0 : i32
    return %c0_i32, %c0_i32_0 : i32, i32
  }
  func.func @transform_1(%arg0: i32) -> (i32, i32) {
    %c0_i32 = arith.constant 0 : i32
    %c0_i32_0 = arith.constant 0 : i32
    %c0_i32_1 = arith.constant 0 : i32
    return %c0_i32, %c0_i32_0 : i32, i32
  }
  func.func @transform_2(%arg0: i32) -> (i32, i32) {
    %c0_i32 = arith.constant 0 : i32
    %c0_i32_0 = arith.constant 0 : i32
    %c0_i32_1 = arith.constant 0 : i32
    return %c0_i32, %c0_i32_0 : i32, i32
  }
  func.func @transform_3(%arg0: i32) -> (i32, i32) {
    %c0_i32 = arith.constant 0 : i32
    %c0_i32_0 = arith.constant 0 : i32
    %c0_i32_1 = arith.constant 0 : i32
    return %c0_i32, %c0_i32_0 : i32, i32
  }
  func.func @transform_4(%arg0: i32) -> (i32, i32) {
    %c0_i32 = arith.constant 0 : i32
    %c0_i32_0 = arith.constant 0 : i32
    %c0_i32_1 = arith.constant 0 : i32
    return %c0_i32, %c0_i32_0 : i32, i32
  }
  func.func @transform_5(%arg0: i32) -> (i32, i32) {
    %c0_i32 = arith.constant 0 : i32
    %c0_i32_0 = arith.constant 0 : i32
    %c0_i32_1 = arith.constant 0 : i32
    return %c0_i32, %c0_i32_0 : i32, i32
  }
  func.func @transform_6(%arg0: i32) -> (i32, i32) {
    %c0_i32 = arith.constant 0 : i32
    %c0_i32_0 = arith.constant 0 : i32
    %c0_i32_1 = arith.constant 0 : i32
    return %c0_i32, %c0_i32_0 : i32, i32
  }
  func.func @transform_7(%arg0: i32) -> (i32, i32, i32) {
    %c1_i32 = arith.constant 1 : i32
    %0 = arith.minsi %arg0, %c1_i32 : i32
    %c0_i32 = arith.constant 0 : i32
    %c0_i32_0 = arith.constant 0 : i32
    %c0_i32_1 = arith.constant 0 : i32
    return %0, %c0_i32, %c0_i32_0 : i32, i32, i32
  }
  func.func @transform_8(%arg0: i32) -> (i32, i32, i32) {
    %c1_i32 = arith.constant 1 : i32
    %0 = arith.minsi %arg0, %c1_i32 : i32
    %c0_i32 = arith.constant 0 : i32
    %c0_i32_0 = arith.constant 0 : i32
    %c0_i32_1 = arith.constant 0 : i32
    return %0, %c0_i32, %c0_i32_0 : i32, i32, i32
  }
  func.func @transform_9(%arg0: i32) -> (i32, i32, i32) {
    %c1_i32 = arith.constant 1 : i32
    %0 = arith.minsi %arg0, %c1_i32 : i32
    %c0_i32 = arith.constant 0 : i32
    %c0_i32_0 = arith.constant 0 : i32
    %c0_i32_1 = arith.constant 0 : i32
    return %0, %c0_i32, %c0_i32_0 : i32, i32, i32
  }
  func.func @transform_10(%arg0: i32) -> (i32, i32, i32) {
    %c1_i32 = arith.constant 1 : i32
    %0 = arith.minsi %arg0, %c1_i32 : i32
    %c0_i32 = arith.constant 0 : i32
    %c0_i32_0 = arith.constant 0 : i32
    %c0_i32_1 = arith.constant 0 : i32
    return %0, %c0_i32, %c0_i32_0 : i32, i32, i32
  }
  func.func @transform_11(%arg0: i32) -> (i32, i32, i32) {
    %c1_i32 = arith.constant 1 : i32
    %0 = arith.minsi %arg0, %c1_i32 : i32
    %c0_i32 = arith.constant 0 : i32
    %c0_i32_0 = arith.constant 0 : i32
    %c0_i32_1 = arith.constant 0 : i32
    return %0, %c0_i32, %c0_i32_0 : i32, i32, i32
  }
  func.func @transform_12(%arg0: i32) -> (i32, i32, i32) {
    %c1_i32 = arith.constant 1 : i32
    %0 = arith.minsi %arg0, %c1_i32 : i32
    %c0_i32 = arith.constant 0 : i32
    %c0_i32_0 = arith.constant 0 : i32
    %c0_i32_1 = arith.constant 0 : i32
    return %0, %c0_i32, %c0_i32_0 : i32, i32, i32
  }
  func.func @transform_13(%arg0: i32) -> (i32, i32, i32) {
    %c1_i32 = arith.constant 1 : i32
    %0 = arith.minsi %arg0, %c1_i32 : i32
    %c0_i32 = arith.constant 0 : i32
    %c0_i32_0 = arith.constant 0 : i32
    %c0_i32_1 = arith.constant 0 : i32
    return %0, %c0_i32, %c0_i32_0 : i32, i32, i32
  }
  func.func @transform_14(%arg0: i32) -> (i32, i32, i32) {
    %c1_i32 = arith.constant 1 : i32
    %0 = arith.minsi %arg0, %c1_i32 : i32
    %c0_i32 = arith.constant 0 : i32
    %c0_i32_0 = arith.constant 0 : i32
    %c0_i32_1 = arith.constant 0 : i32
    return %0, %c0_i32, %c0_i32_0 : i32, i32, i32
  }
  func.func @transform_15(%arg0: i32) -> (i32, i32, i32) {
    %c1_i32 = arith.constant 1 : i32
    %0 = arith.minsi %arg0, %c1_i32 : i32
    %c0_i32 = arith.constant 0 : i32
    %c0_i32_0 = arith.constant 0 : i32
    %c0_i32_1 = arith.constant 0 : i32
    return %0, %c0_i32, %c0_i32_0 : i32, i32, i32
  }
  func.func @transform_16(%arg0: i32) -> (i32, i32, i32) {
    %c1_i32 = arith.constant 1 : i32
    %0 = arith.minsi %arg0, %c1_i32 : i32
    %c0_i32 = arith.constant 0 : i32
    %c0_i32_0 = arith.constant 0 : i32
    %c0_i32_1 = arith.constant 0 : i32
    return %0, %c0_i32, %c0_i32_0 : i32, i32, i32
  }
  func.func @transform_17(%arg0: i32) -> (i32, i32, i32) {
    %c1_i32 = arith.constant 1 : i32
    %0 = arith.minsi %arg0, %c1_i32 : i32
    %c0_i32 = arith.constant 0 : i32
    %c0_i32_0 = arith.constant 0 : i32
    %c0_i32_1 = arith.constant 0 : i32
    return %0, %c0_i32, %c0_i32_0 : i32, i32, i32
  }
  func.func @transform_18(%arg0: i32) -> (i32, i32, i32) {
    %c1_i32 = arith.constant 1 : i32
    %0 = arith.minsi %arg0, %c1_i32 : i32
    %c0_i32 = arith.constant 0 : i32
    %c0_i32_0 = arith.constant 0 : i32
    %c0_i32_1 = arith.constant 0 : i32
    return %0, %c0_i32, %c0_i32_0 : i32, i32, i32
  }
  func.func @transform_19(%arg0: i32) -> (i32, i32) {
    %c0_i32 = arith.constant 0 : i32
    %c0_i32_0 = arith.constant 0 : i32
    %c0_i32_1 = arith.constant 0 : i32
    return %c0_i32, %c0_i32_0 : i32, i32
  }
  func.func @transform_20(%arg0: i32) -> (i32, i32) {
    %c0_i32 = arith.constant 0 : i32
    %c0_i32_0 = arith.constant 0 : i32
    %c0_i32_1 = arith.constant 0 : i32
    return %c0_i32, %c0_i32_0 : i32, i32
  }
  func.func @transform_21(%arg0: i32) -> (i32, i32, i32) {
    %c2_i32 = arith.constant 2 : i32
    %0 = arith.subi %arg0, %c2_i32 : i32
    %c0_i32 = arith.constant 0 : i32
    %1 = arith.maxsi %0, %c0_i32 : i32
    %c0_i32_0 = arith.constant 0 : i32
    %c0_i32_1 = arith.constant 0 : i32
    %c0_i32_2 = arith.constant 0 : i32
    return %1, %c0_i32_0, %c0_i32_1 : i32, i32, i32
  }
  func.func @transform_22(%arg0: i32) -> (i32, i32, i32) {
    %c2_i32 = arith.constant 2 : i32
    %0 = arith.subi %arg0, %c2_i32 : i32
    %c0_i32 = arith.constant 0 : i32
    %1 = arith.maxsi %0, %c0_i32 : i32
    %c0_i32_0 = arith.constant 0 : i32
    %c0_i32_1 = arith.constant 0 : i32
    %c0_i32_2 = arith.constant 0 : i32
    return %1, %c0_i32_0, %c0_i32_1 : i32, i32, i32
  }
  func.func @transform_23(%arg0: i32) -> (i32, i32, i32) {
    %c2_i32 = arith.constant 2 : i32
    %0 = arith.subi %arg0, %c2_i32 : i32
    %c0_i32 = arith.constant 0 : i32
    %1 = arith.maxsi %0, %c0_i32 : i32
    %c0_i32_0 = arith.constant 0 : i32
    %c0_i32_1 = arith.constant 0 : i32
    %c0_i32_2 = arith.constant 0 : i32
    return %1, %c0_i32_0, %c0_i32_1 : i32, i32, i32
  }
  func.func @transform_24(%arg0: i32) -> (i32, i32, i32) {
    %c2_i32 = arith.constant 2 : i32
    %0 = arith.subi %arg0, %c2_i32 : i32
    %c0_i32 = arith.constant 0 : i32
    %1 = arith.maxsi %0, %c0_i32 : i32
    %c0_i32_0 = arith.constant 0 : i32
    %c0_i32_1 = arith.constant 0 : i32
    %c0_i32_2 = arith.constant 0 : i32
    return %1, %c0_i32_0, %c0_i32_1 : i32, i32, i32
  }
  func.func @transform_25(%arg0: i32) -> (i32, i32, i32) {
    %c2_i32 = arith.constant 2 : i32
    %0 = arith.subi %arg0, %c2_i32 : i32
    %c0_i32 = arith.constant 0 : i32
    %1 = arith.maxsi %0, %c0_i32 : i32
    %c0_i32_0 = arith.constant 0 : i32
    %c0_i32_1 = arith.constant 0 : i32
    %c0_i32_2 = arith.constant 0 : i32
    return %1, %c0_i32_0, %c0_i32_1 : i32, i32, i32
  }
  func.func @transform_26(%arg0: i32) -> (i32, i32, i32) {
    %c2_i32 = arith.constant 2 : i32
    %0 = arith.subi %arg0, %c2_i32 : i32
    %c0_i32 = arith.constant 0 : i32
    %1 = arith.maxsi %0, %c0_i32 : i32
    %c0_i32_0 = arith.constant 0 : i32
    %c0_i32_1 = arith.constant 0 : i32
    %c0_i32_2 = arith.constant 0 : i32
    return %1, %c0_i32_0, %c0_i32_1 : i32, i32, i32
  }
  func.func @transform_27(%arg0: i32) -> (i32, i32, i32) {
    %c2_i32 = arith.constant 2 : i32
    %0 = arith.subi %arg0, %c2_i32 : i32
    %c0_i32 = arith.constant 0 : i32
    %1 = arith.maxsi %0, %c0_i32 : i32
    %c0_i32_0 = arith.constant 0 : i32
    %c0_i32_1 = arith.constant 0 : i32
    %c0_i32_2 = arith.constant 0 : i32
    return %1, %c0_i32_0, %c0_i32_1 : i32, i32, i32
  }
  func.func @transform_28(%arg0: i32) -> (i32, i32, i32) {
    %c2_i32 = arith.constant 2 : i32
    %0 = arith.subi %arg0, %c2_i32 : i32
    %c0_i32 = arith.constant 0 : i32
    %1 = arith.maxsi %0, %c0_i32 : i32
    %c0_i32_0 = arith.constant 0 : i32
    %c0_i32_1 = arith.constant 0 : i32
    %c0_i32_2 = arith.constant 0 : i32
    return %1, %c0_i32_0, %c0_i32_1 : i32, i32, i32
  }
  func.func @transform_29(%arg0: i32) -> (i32, i32, i32) {
    %c2_i32 = arith.constant 2 : i32
    %0 = arith.subi %arg0, %c2_i32 : i32
    %c0_i32 = arith.constant 0 : i32
    %1 = arith.maxsi %0, %c0_i32 : i32
    %c0_i32_0 = arith.constant 0 : i32
    %c0_i32_1 = arith.constant 0 : i32
    %c0_i32_2 = arith.constant 0 : i32
    return %1, %c0_i32_0, %c0_i32_1 : i32, i32, i32
  }
  func.func @transform_30(%arg0: i32) -> (i32, i32, i32) {
    %c2_i32 = arith.constant 2 : i32
    %0 = arith.subi %arg0, %c2_i32 : i32
    %c0_i32 = arith.constant 0 : i32
    %1 = arith.maxsi %0, %c0_i32 : i32
    %c0_i32_0 = arith.constant 0 : i32
    %c0_i32_1 = arith.constant 0 : i32
    %c0_i32_2 = arith.constant 0 : i32
    return %1, %c0_i32_0, %c0_i32_1 : i32, i32, i32
  }
  func.func @transform_31(%arg0: i32) -> (i32, i32, i32) {
    %c2_i32 = arith.constant 2 : i32
    %0 = arith.subi %arg0, %c2_i32 : i32
    %c0_i32 = arith.constant 0 : i32
    %1 = arith.maxsi %0, %c0_i32 : i32
    %c0_i32_0 = arith.constant 0 : i32
    %c0_i32_1 = arith.constant 0 : i32
    %c0_i32_2 = arith.constant 0 : i32
    return %1, %c0_i32_0, %c0_i32_1 : i32, i32, i32
  }
  func.func @transform_32(%arg0: i32) -> (i32, i32, i32) {
    %c2_i32 = arith.constant 2 : i32
    %0 = arith.subi %arg0, %c2_i32 : i32
    %c0_i32 = arith.constant 0 : i32
    %1 = arith.maxsi %0, %c0_i32 : i32
    %c0_i32_0 = arith.constant 0 : i32
    %c0_i32_1 = arith.constant 0 : i32
    %c0_i32_2 = arith.constant 0 : i32
    return %1, %c0_i32_0, %c0_i32_1 : i32, i32, i32
  }
  func.func @transform_33(%arg0: i32) -> (i32, i32, i32) {
    %c2_i32 = arith.constant 2 : i32
    %0 = arith.subi %arg0, %c2_i32 : i32
    %c0_i32 = arith.constant 0 : i32
    %1 = arith.maxsi %0, %c0_i32 : i32
    %c0_i32_0 = arith.constant 0 : i32
    %c0_i32_1 = arith.constant 0 : i32
    %c0_i32_2 = arith.constant 0 : i32
    return %1, %c0_i32_0, %c0_i32_1 : i32, i32, i32
  }
  func.func @transform_34(%arg0: i32) -> (i32, i32, i32) {
    %c2_i32 = arith.constant 2 : i32
    %0 = arith.subi %arg0, %c2_i32 : i32
    %c0_i32 = arith.constant 0 : i32
    %1 = arith.maxsi %0, %c0_i32 : i32
    %c0_i32_0 = arith.constant 0 : i32
    %c0_i32_1 = arith.constant 0 : i32
    %c0_i32_2 = arith.constant 0 : i32
    return %1, %c0_i32_0, %c0_i32_1 : i32, i32, i32
  }
  func.func @transform_35(%arg0: i32) -> (i32, i32, i32) {
    %c2_i32 = arith.constant 2 : i32
    %0 = arith.subi %arg0, %c2_i32 : i32
    %c0_i32 = arith.constant 0 : i32
    %1 = arith.maxsi %0, %c0_i32 : i32
    %c0_i32_0 = arith.constant 0 : i32
    %c0_i32_1 = arith.constant 0 : i32
    %c0_i32_2 = arith.constant 0 : i32
    return %1, %c0_i32_0, %c0_i32_1 : i32, i32, i32
  }
  func.func @transform_36(%arg0: i32) -> (i32, i32, i32) {
    %c2_i32 = arith.constant 2 : i32
    %0 = arith.subi %arg0, %c2_i32 : i32
    %c0_i32 = arith.constant 0 : i32
    %1 = arith.maxsi %0, %c0_i32 : i32
    %c0_i32_0 = arith.constant 0 : i32
    %c0_i32_1 = arith.constant 0 : i32
    %c0_i32_2 = arith.constant 0 : i32
    return %1, %c0_i32_0, %c0_i32_1 : i32, i32, i32
  }
  func.func @transform_37(%arg0: i32) -> (i32, i32, i32) {
    %c2_i32 = arith.constant 2 : i32
    %0 = arith.subi %arg0, %c2_i32 : i32
    %c0_i32 = arith.constant 0 : i32
    %1 = arith.maxsi %0, %c0_i32 : i32
    %c0_i32_0 = arith.constant 0 : i32
    %c0_i32_1 = arith.constant 0 : i32
    %c0_i32_2 = arith.constant 0 : i32
    return %1, %c0_i32_0, %c0_i32_1 : i32, i32, i32
  }
  func.func @transform_38(%arg0: i32) -> (i32, i32, i32) {
    %c2_i32 = arith.constant 2 : i32
    %0 = arith.subi %arg0, %c2_i32 : i32
    %c0_i32 = arith.constant 0 : i32
    %1 = arith.maxsi %0, %c0_i32 : i32
    %c0_i32_0 = arith.constant 0 : i32
    %c0_i32_1 = arith.constant 0 : i32
    %c0_i32_2 = arith.constant 0 : i32
    return %1, %c0_i32_0, %c0_i32_1 : i32, i32, i32
  }
  func.func @transform_39(%arg0: i32) -> (i32, i32, i32) {
    %c2_i32 = arith.constant 2 : i32
    %0 = arith.subi %arg0, %c2_i32 : i32
    %c0_i32 = arith.constant 0 : i32
    %1 = arith.maxsi %0, %c0_i32 : i32
    %c0_i32_0 = arith.constant 0 : i32
    %c0_i32_1 = arith.constant 0 : i32
    %c0_i32_2 = arith.constant 0 : i32
    return %1, %c0_i32_0, %c0_i32_1 : i32, i32, i32
  }
  func.func @transform_40(%arg0: i32) -> (i32, i32, i32) {
    %c2_i32 = arith.constant 2 : i32
    %0 = arith.subi %arg0, %c2_i32 : i32
    %c0_i32 = arith.constant 0 : i32
    %1 = arith.maxsi %0, %c0_i32 : i32
    %c0_i32_0 = arith.constant 0 : i32
    %c0_i32_1 = arith.constant 0 : i32
    %c0_i32_2 = arith.constant 0 : i32
    return %1, %c0_i32_0, %c0_i32_1 : i32, i32, i32
  }
  func.func @transform_41(%arg0: i32) -> (i32, i32) {
    %c0_i32 = arith.constant 0 : i32
    %c0_i32_0 = arith.constant 0 : i32
    %c0_i32_1 = arith.constant 0 : i32
    return %c0_i32, %c0_i32_0 : i32, i32
  }
  func.func @transform_42(%arg0: i32) -> (i32, i32) {
    %c0_i32 = arith.constant 0 : i32
    %c0_i32_0 = arith.constant 0 : i32
    %c0_i32_1 = arith.constant 0 : i32
    return %c0_i32, %c0_i32_0 : i32, i32
  }
  func.func @transform_43(%arg0: i32) -> (i32, i32) {
    %c0_i32 = arith.constant 0 : i32
    %c0_i32_0 = arith.constant 0 : i32
    %c0_i32_1 = arith.constant 0 : i32
    return %c0_i32, %c0_i32_0 : i32, i32
  }
}

</mosaic_0001>

<bundles_post_ra>
// kernel: eq.22
= control target key start
LH: loop header
LB: loop body
LE: loop exit
PB: predicated region body
PF: predicated region fallthrough
CT: control target
= control target key end

     0   :  { %vm7_vm0 = vcmask 64512   ;;  %vm13_vm1 = vcmask 130112   ;;  %s39_s0 = inlined_call_operand.vmem [shape: s32[2,8], index: 0, kind: input, shape index: {}]   ;;  %s40_s1 = inlined_call_operand.vmem [shape: s32[16], index: 1, kind: output, shape index: {}]  }
   0x1   :  { %v4_v0 = vld [vmem:[%s39_s0] sm:$0x3]  ;;  %s22_s0 = smov 8  }
   0x2   :  { %5 = vst [vmem:[#allocation1] sm:$0x3] %v4_v0 }
   0x9   :  { %v10_v1 = vld [vmem:[#allocation1 + $0x1] sm:$0x1]   ;;  %v6_v2 = vld [vmem:[#allocation1] sm:$0x1]  }
   0xa   :  { %11 = vrot.lane.b32.xlu0 %v10_v1, %s22_s0  ;;  %8 = vst.msk [vmem:[#allocation0] sm:$0x1] %vm7_vm0, %v6_v2  }
  0x7c   :  { %v12_v3 = vpop.permute.xlu0 %11  }
  0x7d   :  { %14 = vst.msk [vmem:[#allocation0] sm:$0x1] %vm13_vm1, %v12_v3  }
  0x84   :  { %v17_v4 = vld [vmem:[#allocation0] sm:$0x1] }
  0x85   :  { %20 = vst [vmem:[%s40_s1] sm:$0x1] %v17_v4 }

// kernel: stock_price_transformer.1
= control target key start
LH: loop header
LB: loop body
LE: loop exit
PB: predicated region body
PF: predicated region fallthrough
CT: control target
= control target key end

     0   :  { %s12187_s6 = smov 1   ;;  %s12188_s10 = smov 2   ;;  %s13924_s0 = inlined_call_operand.smem [shape: u32[44], index: -1, kind: input, shape index: {}] }
   0x1   :  { %s12256_s5 = sld [smem:[%s13924_s0]]   ;;  %s12189_s14 = smov 3  }
   0x2   :  { %s12261_s9 = sld [smem:[%s13924_s0 + %s12187_s6]]   ;;  %s12190_s18 = smov 4  }
   0x3   :  { %s12266_s13 = sld [smem:[%s13924_s0 + %s12188_s10]]   ;;  %s12191_s22 = smov 5  }
   0x4   :  { %s12271_s17 = sld [smem:[%s13924_s0 + %s12189_s14]]   ;;  %s12192_s26 = smov 6  }
   0x5   :  { %s12276_s21 = sld [smem:[%s13924_s0 + %s12190_s18]]   ;;  %s12193_s30 = smov 7  }
   0x6   :  { %s12281_s25 = sld [smem:[%s13924_s0 + %s12191_s22]]   ;;  %s12194_s4 = smov 8  }
   0x7   :  { %13944 = sst [smem:[#allocation4_spill]] %s12256_s5  ;;  %s12195_s10 = smov 9  }
   0x8   :  { %13945 = sst [smem:[#allocation5_spill]] %s12261_s9  ;;  %s12196_s15 = smov 10  }
   0x9   :  { %13946 = sst [smem:[#allocation6_spill]] %s12266_s13  ;;  %s12197_s20 = smov 11  }
   0xa   :  { %13947 = sst [smem:[#allocation7_spill]] %s12271_s17  ;;  %s12199_s1 = smov 13  }
   0xb   :  { %13948 = sst [smem:[#allocation8_spill]] %s12276_s21  ;;  %s12200_s7 = smov 14  }
   0xc   :  { %13949 = sst [smem:[#allocation9_spill]] %s12281_s25  ;;  %s12202_s22 = smov 16  }
   0xd   :  { %s12286_s29 = sld [smem:[%s13924_s0 + %s12192_s26]]   ;;  %s12198_s26 = smov 12  }
   0xe   :  { %s12291_s3 = sld [smem:[%s13924_s0 + %s12193_s30]]   ;;  %s12203_s28 = smov 17  }
   0xf   :  { %s12296_s8 = sld [smem:[%s13924_s0 + %s12194_s4]]  }
  0x10   :  { %s12301_s14 = sld [smem:[%s13924_s0 + %s12195_s10]]  }
  0x11   :  { %s12306_s19 = sld [smem:[%s13924_s0 + %s12196_s15]]   ;;  %s12201_s15 = smov 15  }
  0x12   :  { %s12311_s24 = sld [smem:[%s13924_s0 + %s12197_s20]]  }
  0x13   :  { %13950 = sst [smem:[#allocation10_spill]] %s12286_s29 }
  0x14   :  { %13951 = sst [smem:[#allocation11_spill]] %s12291_s3 }
  0x15   :  { %13952 = sst [smem:[#allocation12_spill]] %s12296_s8 }
  0x16   :  { %13953 = sst [smem:[#allocation13_spill]] %s12301_s14 }
  0x17   :  { %13954 = sst [smem:[#allocation14_spill]] %s12306_s19 }
  0x18   :  { %13955 = sst [smem:[#allocation15_spill]] %s12311_s24 }
  0x19   :  { %s12316_s30 = sld [smem:[%s13924_s0 + %s12198_s26]]  }
  0x1a   :  { %s12321_s6 = sld [smem:[%s13924_s0 + %s12199_s1]]  }
  0x1b   :  { %s12326_s12 = sld [smem:[%s13924_s0 + %s12200_s7]]   ;;  %s12204_s7 = smov 18  }
  0x1c   :  { %s12331_s20 = sld [smem:[%s13924_s0 + %s12201_s15]]   ;;  %s12205_s15 = smov 19  }
  0x1d   :  { %s12336_s27 = sld [smem:[%s13924_s0 + %s12202_s22]]   ;;  %s12206_s22 = smov 20  }
  0x1e   :  { %s12341_s4 = sld [smem:[%s13924_s0 + %s12203_s28]]   ;;  %s12207_s28 = smov 21  }
  0x1f   :  { %13956 = sst [smem:[#allocation16_spill]] %s12316_s30 }
  0x20   :  { %13957 = sst [smem:[#allocation17_spill]] %s12321_s6 }
  0x21   :  { %13958 = sst [smem:[#allocation18_spill]] %s12326_s12 }
  0x22   :  { %13959 = sst [smem:[#allocation19_spill]] %s12331_s20 }
  0x23   :  { %13960 = sst [smem:[#allocation20_spill]] %s12336_s27 }
  0x24   :  { %13961 = sst [smem:[#allocation21_spill]] %s12341_s4 }
  0x25   :  { %s12346_s29 = sld [smem:[%s13924_s0 + %s12204_s7]]   ;;  %s12208_s7 = smov 22  }
  0x26   :  { %s12351_s25 = sld [smem:[%s13924_s0 + %s12205_s15]]   ;;  %s12209_s15 = smov 23  }
  0x27   :  { %s12356_s9 = sld [smem:[%s13924_s0 + %s12206_s22]]   ;;  %s12210_s22 = smov 24  }
  0x28   :  { %s12361_s21 = sld [smem:[%s13924_s0 + %s12207_s28]]   ;;  %s12211_s28 = smov 25  }
  0x29   :  { %s12366_s17 = sld [smem:[%s13924_s0 + %s12208_s7]]   ;;  %s12212_s7 = smov 26  }
  0x2a   :  { %s12381_s13 = sld [smem:[%s13924_s0 + %s12211_s28]]   ;;  %s12215_s28 = smov 29  }
  0x2b   :  { %13962 = sst [smem:[#allocation22_spill]] %s12346_s29 }
  0x2c   :  { %13963 = sst [smem:[#allocation23_spill]] %s12351_s25 }
  0x2d   :  { %13964 = sst [smem:[#allocation24_spill]] %s12356_s9 }
  0x2e   :  { %13965 = sst [smem:[#allocation25_spill]] %s12361_s21 }
  0x2f   :  { %13966 = sst [smem:[#allocation26_spill]] %s12366_s17 }
  0x30   :  { %s12371_s25 = sld [smem:[%s13924_s0 + %s12209_s15]]   ;;  %s12213_s15 = smov 27  }
  0x31   :  { %s12376_s9 = sld [smem:[%s13924_s0 + %s12210_s22]]   ;;  %s12214_s22 = smov 28  }
  0x32   :  { %13969 = sst [smem:[#allocation29_spill]] %s12381_s13 }
  0x33   :  { %s12386_s5 = sld [smem:[%s13924_s0 + %s12212_s7]]   ;;  %s12216_s7 = smov 30  }
  0x34   :  { %s12401_s13 = sld [smem:[%s13924_s0 + %s12215_s28]]   ;;  %s12219_s28 = smov 33  }
  0x36   :  { %13967 = sst [smem:[#allocation27_spill]] %s12371_s25 }
  0x37   :  { %13968 = sst [smem:[#allocation28_spill]] %s12376_s9 }
  0x38   :  { %s12391_s25 = sld [smem:[%s13924_s0 + %s12213_s15]]   ;;  %s12217_s15 = smov 31  }
  0x39   :  { %13970 = sst [smem:[#allocation30_spill]] %s12386_s5 }
  0x3a   :  { %s12396_s9 = sld [smem:[%s13924_s0 + %s12214_s22]]   ;;  %s12218_s22 = smov 32  }
  0x3b   :  { %13973 = sst [smem:[#allocation33_spill]] %s12401_s13 }
  0x3c   :  { %s12406_s5 = sld [smem:[%s13924_s0 + %s12216_s7]]   ;;  %s12220_s7 = smov 34  }
  0x3d   :  { %s12421_s13 = sld [smem:[%s13924_s0 + %s12219_s28]]   ;;  %s12223_s28 = smov 37  }
  0x3e   :  { %13971 = sst [smem:[#allocation31_spill]] %s12391_s25 }
  0x3f   :  { %s12411_s25 = sld [smem:[%s13924_s0 + %s12217_s15]]   ;;  %s12221_s15 = smov 35  }
  0x40   :  { %13972 = sst [smem:[#allocation32_spill]] %s12396_s9 }
  0x41   :  { %s12416_s9 = sld [smem:[%s13924_s0 + %s12218_s22]]   ;;  %s12222_s22 = smov 36  }
  0x42   :  { %13974 = sst [smem:[#allocation34_spill]] %s12406_s5 }
  0x43   :  { %13977 = sst [smem:[#allocation37_spill]] %s12421_s13 }
  0x44   :  { %s12426_s5 = sld [smem:[%s13924_s0 + %s12220_s7]]   ;;  %s12224_s7 = smov 38  }
  0x45   :  { %13975 = sst [smem:[#allocation35_spill]] %s12411_s25 }
  0x46   :  { %s12431_s25 = sld [smem:[%s13924_s0 + %s12221_s15]]   ;;  %s12225_s15 = smov 39  }
  0x47   :  { %13976 = sst [smem:[#allocation36_spill]] %s12416_s9 }
  0x48   :  { %s12436_s9 = sld [smem:[%s13924_s0 + %s12222_s22]]   ;;  %s12226_s22 = smov 40  }
  0x49   :  { %s12441_s13 = sld [smem:[%s13924_s0 + %s12223_s28]]   ;;  %s12227_s28 = smov 41  }
  0x4a   :  { %13978 = sst [smem:[#allocation38_spill]] %s12426_s5 }
  0x4b   :  { %s12446_s5 = sld [smem:[%s13924_s0 + %s12224_s7]]   ;;  %s12228_s7 = smov 42  }
  0x4c   :  { %13979 = sst [smem:[#allocation39_spill]] %s12431_s25 }
  0x4d   :  { %s12451_s25 = sld [smem:[%s13924_s0 + %s12225_s15]]   ;;  %s12229_s15 = smov 43  }
  0x4e   :  { %13980 = sst [smem:[#allocation40_spill]] %s12436_s9 }
  0x4f   :  { %13981 = sst [smem:[#allocation41_spill]] %s12441_s13 }
  0x50   :  { %s12456_s9 = sld [smem:[%s13924_s0 + %s12226_s22]]   ;;  %s12473_s22 = smov 0  }
  0x51   :  { %13982 = sst [smem:[#allocation42_spill]] %s12446_s5 }
  0x52   :  { %s12461_s13 = sld [smem:[%s13924_s0 + %s12227_s28]]  }
  0x53   :  { %13983 = sst [smem:[#allocation43_spill]] %s12451_s25 }
  0x54   :  { %s12466_s5 = sld [smem:[%s13924_s0 + %s12228_s7]]  }
  0x55   :  { %s12471_s25 = sld [smem:[%s13924_s0 + %s12229_s15]]  }
  0x58   :  { %13984 = sst [smem:[#allocation44_spill]] %s12461_s13 }
  0x5a   :  { %13985 = sst [smem:[#allocation45_spill]] %s12466_s5 }
  0x5b   :  { %13986 = sst [smem:[#allocation46_spill]] %s12471_s25 }
  0x5c LB: > { %13987 = sst [smem:[#allocation47_spill]] %s12185_s22  ;;  %s12479_s23 = sadd.s32 4294967295, %s12185_s22   ;;  %s12185_s22 = sphi %s12473_s22, %s97_s22  }
  0x5d   : > { %13988 = sst [smem:[#allocation48_spill]] %s12479_s23  ;;  %p9390_p0 = scmp.ge.s32.totalorder %s12185_s22, 1 }
  0x5e   : > { %p1784_p1 = scmp.lt.s32.totalorder %s12185_s22, 9 }
  0x60   : > { %p1785_p2 = pnand %p9390_p0, %p1784_p1 }
  0x62   : > { %1788 = sbr.rel (%p1785_p2) target bundleno = 7808 (0x1e80), region = 192 }
  0x67   : > { %s13989_s3 = sld [smem:[#allocation11_spill]]  ;;  %p2084_p3 = scmp.lt.s32.totalorder %s12479_s23, 1 }
  0x68   : > { %s13990_s8 = sld [smem:[#allocation12_spill]]  ;;  %s9437_s0 = sadd.s32 4294967294, %s12479_s23 }
  0x69   : > { %s13992_s14 = sld [smem:[#allocation13_spill]]  ;;  %p2179_p4 = scmp.gt.s32.totalorder %s9437_s0, 0 }
  0x6a   : > { %p9438_p5 = scmp.lt.s32.totalorder %s9437_s0, 5  ;;  %s13997_s20 = sld [smem:[#allocation19_spill]] }
  0x6b   : > { %s2085_s26 = scalar_select %p2084_p3, %s12479_s23, 1 }
  0x6c   : > { %s14090_s0 = smov (!%p2179_p4, %s9437_s0), 0  ;;  %s13999_s27 = sld [smem:[#allocation20_spill]] }
  0x6d   : > { %s14092_s26 = smov (!%p2084_p3, %s2085_s26), 1  ;;  %s14094_s0 = smov (!%p9438_p5, %s14090_s0), 5 }
  0x6e   : > { %13998 = sst [smem:[#allocation49_spill]] %s14092_s26  ;;  %s11433_s28 = sshll.u32 %s14092_s26, 6 }
  0x6f   : > { %s14000_s4 = sld [smem:[#allocation21_spill]]  ;;  %s9399_s1 = sshll.u32 %s14092_s26, 1 }
  0x70   : > { %s12493_s2 = scalar_lea.vmem %s13989_s3, %s11433_s28  ;;  %s12496_s7 = scalar_lea.vmem %s13990_s8, %s9399_s1 }
  0x71   : > { %14002 = sst [smem:[#allocation50_spill]] %s12493_s2  ;;  %s11434_s10 = sshll.u32 %s14092_s26, 5 }
  0x72   : > { %14003 = sst [smem:[#allocation51_spill]] %s12496_s7  ;;  %s12502_s15 = scalar_lea.vmem %s13992_s14, %s11434_s10 }
  0x73   : > { %s14004_s21 = sld [smem:[#allocation25_spill]]  ;;  %s11435_s1 = sshll.u32 %s14092_s26, 9 }
  0x74   : > { %s14005_s17 = sld [smem:[#allocation26_spill]]  ;;  %s12514_s7 = scalar_lea.vmem %s13997_s20, %s11435_s1 }
  0x75   : > { %14006 = sst [smem:[#allocation52_spill]] %s12502_s15  ;;  %s9428_s19 = sshll.u32 %s14092_s26, 4 }
  0x76   : > { %s14008_s25 = sld [smem:[#allocation27_spill]]  ;;  %s12518_s14 = scalar_lea.vmem %s13999_s27, %s9428_s19 }
  0x77   : > { %s14009_s13 = sld [smem:[#allocation29_spill]]  ;;  %s11436_s24 = sshll.u32 %s14092_s26, 10 }
  0x78   : > { %s14011_s8 = sld [smem:[#allocation31_spill]]  ;;  %s12522_s5 = scalar_lea.vmem %s14000_s4, %s11436_s24 }
  0x79   : > { %14012 = sst [smem:[#allocation53_spill]] %s12514_s7  ;;  %s11439_s1 = sshll.u32 %s14094_s0, 6 }
  0x7a   : > { %s14013_s11 = sld [smem:[#allocation32_spill]]  ;;  %s9451_s30 = sshll.u32 %s14094_s0, 1 }
  0x7b   : > { %s14014_s10 = sld [smem:[#allocation33_spill]]  ;;  %s12529_s19 = scalar_lea.vmem %s14004_s21, %s11439_s1 }
  0x7c   : > { %14015 = sst [smem:[#allocation54_spill]] %s12518_s14  ;;  %s12532_s14 = scalar_lea.vmem %s14005_s17, %s9451_s30 }
  0x7d   : > { %s14016_s16 = sld [smem:[#allocation34_spill]]  ;;  %s11444_s24 = sshll.u32 %s14094_s0, 5 }
  0x7e   : > { %s14017_s22 = sld [smem:[#allocation35_spill]]  ;;  %s12538_s12 = scalar_lea.vmem %s14008_s25, %s11444_s24 }
  0x7f   : > { %14018 = sst [smem:[#allocation55_spill]] %s12522_s5  ;;  %s12541_s26 = scalar_lea.vmem %s14009_s13, %s11444_s24 }
  0x80   : > { %s14019_s28 = sld [smem:[#allocation36_spill]]  ;;  %s12546_s23 = scalar_lea.vmem %s14011_s8, %s11444_s24 }
  0x81   : > { %s14020_s6 = sld [smem:[#allocation37_spill]]  ;;  %s2255_s1 = scalar_lea.vmem %s14013_s11, %s14094_s0 }
  0x82   : > { %s14021_s20 = sld [smem:[#allocation38_spill]]  ;;  %s12551_s30 = scalar_lea.vmem %s14014_s10, %s11444_s24 }
  0x83   : > { %s14022_s7 = sld [smem:[#allocation39_spill]]  ;;  %s2275_s17 = scalar_lea.vmem %s14016_s16, %s14094_s0 }
  0x84   : > { %14023 = sst [smem:[#allocation56_spill]] %s12529_s19  ;;  %s2284_s21 = scalar_lea.vmem %s14017_s22, %s14094_s0 }
  0x85   : > { %s14024_s27 = sld [smem:[#allocation40_spill]]  ;;  %s11476_s19 = sshll.u32 %s14094_s0, 9 }
  0x86   : > { %14025 = sst [smem:[#allocation57_spill]] %s12532_s14  ;;  %s2293_s14 = scalar_lea.vmem %s14019_s28, %s14094_s0 }
  0x87   : > { %s14026_s4 = sld [smem:[#allocation41_spill]]  ;;  %s2302_s18 = scalar_lea.vmem %s14020_s6, %s14094_s0 }
  0x88   : > { %14027 = sst [smem:[#allocation58_spill]] %s12538_s12  ;;  %s2311_s5 = scalar_lea.vmem %s14021_s20, %s14094_s0 }
  0x89   : > { %s14028_s29 = sld [smem:[#allocation42_spill]]  ;;  %s2320_s25 = scalar_lea.vmem %s14022_s7, %s14094_s0 }
  0x8a   : > { %14029 = sst [smem:[#allocation59_spill]] %s12541_s26  ;;  %s9558_s26 = sshll.u32 %s14094_s0, 4 }
  0x8b   : > { %s14030_s2 = sld [smem:[#allocation43_spill]]  ;;  %s2329_s12 = scalar_lea.vmem %s14024_s27, %s14094_s0 }
  0x8c   : > { %14031 = sst [smem:[#allocation60_spill]] %s12546_s23  ;;  %s11481_s8 = sshll.u32 %s14094_s0, 10 }
  0x8d   : > { %s12569_s13 = scalar_lea.vmem %s14026_s4, %s11476_s19  ;;  %s2370_s23 = scalar_lea.vmem %s12456_s9, %s14094_s0 }
  0x8e   : > { %s14032_s11 = sld [smem:[#allocation48_spill]] }
  0x8f   : > { %s12573_s3 = scalar_lea.vmem %s14028_s29, %s9558_s26 }
  0x91   : > { %s12577_s15 = scalar_lea.vmem %s14030_s2, %s11481_s8 }
  0x94   : > { %p9573_p6 = scmp.ge.s32.totalorder %s14032_s11, 2 }
  0x95   : > { %s14033_s16 = sld [smem:[#allocation48_spill]] (!%p9573_p6) }
  0x96   : > { %2378 = sbr.rel (%p9573_p6) target bundleno = 2949 (0xb85), region = 196 }
  0x9b   : > { %p9574_p7 = scmp.ne.s32.totalorder %s14033_s16, 0 }
  0x9c   : > { %s14034_s6 = sld [smem:[#allocation4_spill]] (!%p9574_p7) }
  0x9d   : > { %2382 = sbr.rel (%p9574_p7) target bundleno = 292 (0x124), region = 200  ;;  %s14035_s20 = sld [smem:[#allocation6_spill]] (!%p9574_p7) }
  0x9e   : > { %s14036_s27 = sld [smem:[#allocation7_spill]] (!%p9574_p7) }
  0xa2   : > { %v2383_v0 = vld [vmem:[%s14034_s6] sm:$0xff]  ;;  %v12230_v1 = vmov 0   ;;  %v2384_v2 = vld [vmem:[%s14034_s6 + $0x8] sm:$0xff]  ;;  %vm2407_vm0 = vcmask 523264  }
  0xa3   : > { %11974 = vset.pattern.permute.xlu0 %v12230_v1  ;;  %v11975_v3 = vld [vmem:[%s14035_s20] ss:$0 sm:$0xff] }
  0xa4   : > { %2388 = vperm.xlu0 %11974, %v2383_v0   ;;  %v11976_v4 = vld [vmem:[%s14036_s27] ss:$0 sm:$0xff] }
  0xac   : > { %2393 = vperm.xlu0 %11974, %v2384_v2  }
 0x116   : > { %v2389_v5 = vpop.permute.xlu0 %2388 }
 0x117   : > { %v2399_v6 = vmul.f32 %v11975_v3, %v2389_v5 }
 0x119   : > { %v2405_v7 = vadd.f32 %v11976_v4, %v2399_v6 }
 0x11b   : > { %2408 = vst.msk [vmem:[#allocation2] sm:$0xff] %vm2407_vm0, %v2405_v7 }
 0x11e   : > { %v2394_v8 = vpop.permute.xlu0 %2393 }
 0x11f   : > { %v2400_v9 = vmul.f32 %v11975_v3, %v2394_v8 }
 0x121   : > { %v2406_v10 = vadd.f32 %v11976_v4, %v2400_v9 }
 0x123   : > { %2409 = vst.msk [vmem:[#allocation2 + $0x8] sm:$0xff] %vm2407_vm0, %v2406_v10 }
 0x124 PF: > { %s14037_s29 = sld [smem:[#allocation50_spill]]  ;;  %v12601_v32 = vld [vmem:[#allocation2] sm:$0xff]  ;;  %vm2466_vm1 = vcmask 523264   ;;  %s12231_s22 = smov 64   ;;  %vm2521_vm2 = vcmask 130048  }
 0x125   : > { %s14038_s4 = sld [smem:[#allocation51_spill]]  ;;  %s12232_s26 = smov 48  }
 0x126   : > { %s12233_s2 = smov 112   ;;  %s12234_s7 = smov 32  }
 0x127   : > { %s12235_s28 = smov 16   ;;  %s14039_s10 = sld [smem:[#allocation52_spill]] }
 0x128   : > { %s12236_s19 = smov 96   ;;  %s12237_s24 = smov 80  }
 0x129   : > { %s14040_s8 = sld [smem:[#allocation8_spill]] }
 0x12a   : > { %v9601_v11 = vld [vmem:[%s14037_s29 + $0x30] sm:$0xf]  ;;  %v11491_v12 = vld [vmem:[%s14037_s29 + $0x34] sm:$0xf0]  ;;  %v9593_v13 = vld [vmem:[%s14037_s29 + $0x20] sm:$0xf] }
 0x12b   : > { %v9602_v14 = vor.u32 %v11491_v12, %v9601_v11  ;;  %v11489_v15 = vld [vmem:[%s14037_s29 + $0x24] sm:$0xf0]  ;;  %v9585_v17 = vld [vmem:[%s14037_s29 + $0x10] sm:$0xf]  ;;  %v11490_v18 = vld [vmem:[%s14037_s29 + $0x34] sm:$0xf] }
 0x12c   : > { %v9594_v16 = vor.u32 %v11489_v15, %v9593_v13  ;;  %v9603_v19 = vld [vmem:[%s14037_s29 + $0x38] sm:$0xf0]  ;;  %v11487_v20 = vld [vmem:[%s14037_s29 + $0x14] sm:$0xf0]  ;;  %v11488_v22 = vld [vmem:[%s14037_s29 + $0x24] sm:$0xf] }
 0x12d   : > { %2477 = vmatpush.bf16.msra.mxu0 %v9602_v14  ;;  %v9606_v21 = vor.u32 %v11490_v18, %v9603_v19  ;;  %v9595_v23 = vld [vmem:[%s14037_s29 + $0x28] sm:$0xf0]  ;;  %v11486_v24 = vld [vmem:[%s14037_s29 + $0x14] sm:$0xf]  ;;  %v9587_v26 = vld [vmem:[%s14037_s29 + $0x18] sm:$0xf0]  ;;  %v9586_v27 = vor.u32 %v11487_v20, %v9585_v17 }
 0x12e   : > { %v9598_v25 = vor.u32 %v11488_v22, %v9595_v23  ;;  %v9577_v28 = vld [vmem:[%s14037_s29] sm:$0xf]  ;;  %v11485_v29 = vld [vmem:[%s14037_s29 + $0x4] sm:$0xf0]  ;;  %v9590_v30 = vor.u32 %v11486_v24, %v9587_v26  ;;  %v11484_v34 = vld [vmem:[%s14037_s29 + $0x4] sm:$0xf] }
 0x12f   : > { %2492 = vmatpush.bf16.msra.mxu1 %v9606_v21  ;;  %v9578_v31 = vor.u32 %v11485_v29, %v9577_v28  ;;  %v12605_v33 = vld [vmem:[#allocation2 + $0x8] sm:$0xff]  ;;  %v2420_v38 = vld [vmem:[%s14038_s4] sm:$0x3]  ;;  %s14041_s11 = sld [smem:[#allocation14_spill]] }
 0x130   : > { %v9579_v35 = vld [vmem:[%s14037_s29 + $0x8] sm:$0xf0]  ;;  %v2422_v39 = vperm.slane %v2420_v38, 0  ;;  %v2423_v46 = vperm.slane %v2420_v38, 1  ;;  %v11492_v51 = vld [vmem:[%s14039_s10] sm:$0xff]  ;;  %s14042_s16 = sld [smem:[#allocation49_spill]] }
 0x131   : > { %2478 = vmatpush.bf16.msra.mxu0 %v9594_v16  ;;  %v9582_v36 = vor.u32 %v11484_v34, %v9579_v35  ;;  %v12644_v57 = vld [vmem:[%s14040_s8] sm:$0xff]  ;;  %v12649_v61 = vld [vmem:[%s14040_s8 + $0x8] sm:$0xff]  ;;  %s14044_s27 = sld [smem:[#allocation53_spill]] }
 0x132   : > { %s14045_s29 = sld [smem:[#allocation15_spill]] }
 0x133   : > { %2493 = vmatpush.bf16.msra.mxu1 %v9598_v25  ;;  %s14046_s4 = sld [smem:[#allocation16_spill]] }
 0x135   : > { %2479 = vmatpush.bf16.msra.mxu0 %v9586_v27 }
 0x136   : > { %s14043_s20 = scalar_lea.vmem %s14041_s11, %s14042_s16 }
 0x137   : > { %2494 = vmatpush.bf16.msra.mxu1 %v9590_v30 }
 0x139   : > { %2480 = vmatpush.bf16.msra.mxu0 %v9578_v31 }
 0x13b   : > { %2495 = vmatpush.bf16.msra.mxu1 %v9582_v36 }
 0x13c   : > { %9607 = vmatmul.msk.f32.vlgmr.msra.gmra.mxu0 %vm2466_vm1, %v12601_v32 }
 0x13e   : > { %9609 = vmatmul.msk.f32.vlgmr.msra.gmra.mxu1 %vm2466_vm1, %v12601_v32 }
 0x13f   : > { %2802 = vmatpush.bf16.msrb.mxu1 %v11492_v51 }
 0x144   : > { %9608 = vmatmul.msk.f32.gmra.mxu0 %vm2466_vm1, %v12605_v33 }
 0x146   : > { %9610 = vmatmul.msk.f32.gmra.mxu1 %vm2466_vm1, %v12605_v33 }
 0x1b9   : > { %v2482_v37 = vpop.f32.mrf.mxu0 }
 0x1ba   : > { %v12616_v42 = vadd.f32 %v2482_v37, %v2422_v39 }
 0x1bb   : > { %v2497_v45 = vpop.f32.mrf.mxu1 }
 0x1bc   : > { %v2513_v44 = vmul.f32 0.25, %v12616_v42  ;;  %v12626_v48 = vadd.f32 %v2497_v45, %v2423_v46 }
 0x1c1   : > { %v2485_v40 = vpop.f32.mrf.mxu0 }
 0x1c2   : > { %v2486_v41 = vadd.f32 %v2485_v40, %v2422_v39 }
 0x1c3   : > { %v2500_v47 = vpop.f32.mrf.mxu1 }
 0x1c4   : > { %2519 = vrot.lane.b32.xlu0 %v2486_v41, %s12231_s22  ;;  %v2514_v43 = vmul.f32 0.25, %v2486_v41  ;;  %v12628_v49 = vadd.f32 %v2500_v47, %v2423_v46 }
 0x1c6   : > { %2623 = vmatpush.msra.mxu3 %v12628_v49 }
 0x1c8   : > { %2624 = vmatpush.msra.mxu3 %v12626_v48 }
 0x1cc   : > { %2517 = vrot.lane.b32.xlu0 %v12616_v42, %s12231_s22  ;;  %s14047_s22 = scalar_lea.vmem %s14045_s29, %s14042_s16 }
 0x1d4   : > { %2638 = vrot.lane.b32.xlu0 %v2486_v41, %s12232_s26 }
 0x1dc   : > { %2634 = vrot.lane.b32.xlu0 %v2514_v43, %s12233_s2 }
 0x1e4   : > { %2816 = vrot.lane.b32.xlu0 %v2486_v41, %s12234_s7 }
 0x1ec   : > { %2967 = vrot.lane.b32.xlu0 %v2486_v41, %s12235_s28 }
 0x1f4   : > { %2810 = vrot.lane.b32.xlu0 %v2513_v44, %s12236_s19 }
 0x1fc   : > { %2963 = vrot.lane.b32.xlu0 %v2514_v43, %s12237_s24 }
 0x236   : > { %v2520_v50 = vpop.permute.xlu0 %2519 }
 0x237   : > { %9611 = vmatpush.xpose.msk.msra.mxu2 %vm2521_vm2, %v2520_v50 }
 0x23e   : > { %v2518_v52 = vpop.permute.xlu0 %2517 }
 0x23f   : > { %9612 = vmatpush.xpose.msk.msra.mxu2 %vm2521_vm2, %v2518_v52 }
 0x242   : > { %9613 = vmatmul.msk.f32.vlgmr.msra.gmra.mxu2 %vm2521_vm2, %v2513_v44 }
 0x246   : > { %v2639_v53 = vpop.permute.xlu0 %2638 }
 0x247   : > { %9617 = vmatpush.xpose.msk.msrb.mxu3 %vm2521_vm2, %v2639_v53 }
 0x24a   : > { %9614 = vmatmul.msk.f32.gmra.mxu2 %vm2521_vm2, %v2514_v43 }
 0x24e   : > { %v12638_v54 = vpop.permute.xlu0 %2634 }
 0x256   : > { %v12640_v55 = vpop.permute.xlu0 %2816 }
 0x25e   : > { %v2968_v56 = vpop.permute.xlu0 %2967 }
 0x25f   : > { %9647 = vmatpush.xpose.msk.msra.mxu1 %vm2521_vm2, %v2968_v56 }
 0x266   : > { %v2811_v41 = vpop.permute.xlu0 %2810 }
 0x26e   : > { %v2964_v51 = vpop.permute.xlu0 %2963 }
 0x2c5   : > { %v2549_v58 = vpop.f32.mrf.mxu2 }
 0x2c6   : > { %v2550_v59 = vadd.f32 %v2549_v58, %v12644_v57 }
 0x2c8   : > { %v2555_v60 = vsel %vm2521_vm2, %v2550_v59, -inf }
 0x2c9   : > { %2556 = vmax.xlane.f32.xlu1 %v2555_v60 }
 0x2cd   : > { %v2552_v62 = vpop.f32.mrf.mxu2 }
 0x2ce   : > { %v2553_v63 = vadd.f32 %v2552_v62, %v12649_v61 }
 0x2d0   : > { %v2558_v0 = vsel %vm2521_vm2, %v2553_v63, -inf }
 0x2d1   : > { %2559 = vmax.xlane.f32.xlu1 %v2558_v0 }
 0x2ea   : > { %2636 = vrot.lane.b32.xlu1 %v12616_v42, %s12232_s26  ;;  %s14048_s26 = scalar_lea.vmem %s14046_s4, %s14042_s16 }
 0x2f2   : > { %2965 = vrot.lane.b32.xlu1 %v12616_v42, %s12235_s28  ;;  %s14051_s28 = sld [smem:[#allocation22_spill]] }
 0x2fa   : > { %2812 = vrot.lane.b32.xlu1 %v2514_v43, %s12236_s19 }
 0x33c   : > { %v2557_v1 = vpop.xlane.xlu1 %2556 }
 0x33d   : > { %v2561_v2 = vsub.f32 %v2550_v59, %v2557_v1 }
 0x33f   : > { %v2563_v3 = vmul.f32 1.442695, %v2561_v2 }
 0x341   : > { %11998 = vpow2.f32 %v2563_v3 }
 0x344   : > { %v2560_v4 = vpop.xlane.xlu1 %2559 }
 0x345   : > { %v2562_v5 = vsub.f32 %v2553_v63, %v2560_v4 }
 0x347   : > { %v11999_v6 = vpop.eup %11998  ;;  %v2565_v7 = vmul.f32 1.442695, %v2562_v5 }
 0x348   : > { %v2567_v8 = vsel %vm2521_vm2, %v11999_v6, 0.0 }
 0x349   : > { %12000 = vpow2.f32 %v2565_v7  ;;  %2568 = vadd.xlane.f32.xlu2 %v2567_v8 }
 0x34f   : > { %v12001_v9 = vpop.eup %12000 }
 0x350   : > { %v2570_v10 = vsel %vm2521_vm2, %v12001_v9, 0.0 }
 0x351   : > { %2571 = vadd.xlane.f32.xlu2 %v2570_v10 }
 0x35c   : > { %v2637_v11 = vpop.permute.xlu1 %2636 }
 0x35d   : > { %9618 = vmatpush.xpose.msk.msrb.mxu3 %vm2521_vm2, %v2637_v11 }
 0x364   : > { %v2966_v12 = vpop.permute.xlu1 %2965 }
 0x365   : > { %9648 = vmatpush.xpose.msk.msra.mxu1 %vm2521_vm2, %v2966_v12 }
 0x369   : > { %2632 = vrot.lane.b32.xlu2 %v2513_v44, %s12233_s2 }
 0x371   : > { %2814 = vrot.lane.b32.xlu2 %v12616_v42, %s12234_s7  ;;  %v2813_v42 = vpop.permute.xlu1 %2812  ;;  %s14050_s7 = sld [smem:[#allocation54_spill]] }
 0x379   : > { %2961 = vrot.lane.b32.xlu2 %v2513_v44, %s12237_s24 }
 0x3bc   : > { %v2569_v13 = vpop.xlane.xlu2 %2568 }
 0x3bd   : > { %12002 = vrcp.f32 %v2569_v13  ;;  %v2584_v18 = vand.u32 2147483648, %v2569_v13  ;;  %v2582_v20 = vand.u32 2147483647, %v2569_v13  ;;  %vm2578_vm4 = vweird.f32 %v2569_v13 }
 0x3bf   : > { %v2585_v23 = vor.u32 1.1754944e-38, %v2584_v18  ;;  %vm2583_vm6 = vcmp.eq.f32.partialorder %v2582_v20, 8.507059e+37 }
 0x3c3   : > { %v12003_v14 = vpop.eup %12002 }
 0x3c4   : > { %v2574_v15 = vmul.f32 %v12003_v14, %v2569_v13  ;;  %v2572_v16 = vpop.xlane.xlu2 %2571  ;;  %vm2579_vm3 = vweird.f32 %v12003_v14 }
 0x3c5   : > { %12004 = vrcp.f32 %v2572_v16  ;;  %vm2580_vm5 = vmor %vm2578_vm4, %vm2579_vm3  ;;  %v2599_v30 = vand.u32 2147483648, %v2572_v16  ;;  %v2597_v34 = vand.u32 2147483647, %v2572_v16  ;;  %vm2593_vm8 = vweird.f32 %v2572_v16 }
 0x3c6   : > { %v2575_v17 = vsub.f32 1.0, %v2574_v15 }
 0x3c7   : > { %v2600_v36 = vor.u32 1.1754944e-38, %v2599_v30  ;;  %vm2598_vm10 = vcmp.eq.f32.partialorder %v2597_v34, 8.507059e+37 }
 0x3c8   : > { %v2576_v19 = vmul.f32 %v12003_v14, %v2575_v17 }
 0x3ca   : > { %v2577_v21 = vadd.f32 %v12003_v14, %v2576_v19 }
 0x3cb   : > { %v12005_v22 = vpop.eup %12004 }
 0x3cc   : > { %v2589_v24 = vmul.f32 %v12005_v22, %v2572_v16  ;;  %v2633_v25 = vpop.permute.xlu2 %2632  ;;  %v2581_v26 = vsel %vm2580_vm5, %v12003_v14, %v2577_v21  ;;  %vm2594_vm7 = vweird.f32 %v12005_v22 }
 0x3cd   : > { %v2586_v27 = vsel %vm2583_vm6, %v2585_v23, %v2581_v26  ;;  %vm2595_vm9 = vmor %vm2593_vm8, %vm2594_vm7 }
 0x3ce   : > { %v2590_v28 = vsub.f32 1.0, %v2589_v24  ;;  %v2587_v29 = vmul.f32 %v11999_v6, %v2586_v27 }
 0x3d0   : > { %v2591_v31 = vmul.f32 %v12005_v22, %v2590_v28  ;;  %9615 = vmatmul.msk.f32.vlgmr.msra.gmra.mxu3 %vm2521_vm2, %v2587_v29 }
 0x3d1   : > { %9635 = vmatpush.xpose.msk.msra.mxu3 %vm2521_vm2, %v12640_v55 }
 0x3d2   : > { %v2592_v35 = vadd.f32 %v12005_v22, %v2591_v31 }
 0x3d4   : > { %v2815_v37 = vpop.permute.xlu2 %2814  ;;  %v2596_v38 = vsel %vm2595_vm9, %v12005_v22, %v2592_v35 }
 0x3d5   : > { %9636 = vmatpush.xpose.msk.msra.mxu3 %vm2521_vm2, %v2815_v37  ;;  %v2601_v39 = vsel %vm2598_vm10, %v2600_v36, %v2596_v38 }
 0x3d6   : > { %v2602_v40 = vmul.f32 %v12001_v9, %v2601_v39 }
 0x3d8   : > { %9616 = vmatmul.msk.f32.gmra.mxu3 %vm2521_vm2, %v2602_v40 }
 0x3dc   : > { %v2962_v45 = vpop.permute.xlu2 %2961 }
 0x3e0   : > { %9619 = vmatmul.msk.f32.vlgmr.msrb.gmra.mxu3 %vm2521_vm2, %v2633_v25  ;;  %v11977_v25 = vpack.i.bf16 %v12626_v48, %v12628_v49 }
 0x3e8   : > { %9620 = vmatmul.msk.f32.gmra.mxu3 %vm2521_vm2, %v12638_v54 }
 0x3f0   : > { %9637 = vmatmul.msk.f32.vlgmr.msra.gmra.mxu3 %vm2521_vm2, %v2811_v41 }
 0x3f8   : > { %9638 = vmatmul.msk.f32.gmra.mxu3 %vm2521_vm2, %v2813_v42 }
 0x453   : > { %v2626_v43 = vpop.f32.mrf.mxu3 }
 0x454   : > { %9633 = vmatmul.msk.f32.vlgmr.msrb.gmra.mxu1 %vm2521_vm2, %v2626_v43 }
 0x45b   : > { %v2629_v44 = vpop.f32.mrf.mxu3 }
 0x45c   : > { %9634 = vmatmul.msk.f32.gmra.mxu1 %vm2521_vm2, %v2629_v44 }
 0x463   : > { %v2665_v46 = vpop.f32.mrf.mxu3 }
 0x464   : > { %v2666_v47 = vadd.f32 %v2665_v46, %v12644_v57  ;;  %9649 = vmatmul.msk.f32.vlgmr.msra.gmra.mxu1 %vm2521_vm2, %v2962_v45 }
 0x466   : > { %v2671_v50 = vsel %vm2521_vm2, %v2666_v47, -inf }
 0x467   : > { %2672 = vmax.xlane.f32.xlu2 %v2671_v50 }
 0x46b   : > { %v2668_v52 = vpop.f32.mrf.mxu3 }
 0x46c   : > { %v2669_v53 = vadd.f32 %v2668_v52, %v12649_v61  ;;  %9650 = vmatmul.msk.f32.gmra.mxu1 %vm2521_vm2, %v2964_v51 }
 0x46e   : > { %v2674_v54 = vsel %vm2521_vm2, %v2669_v53, -inf }
 0x46f   : > { %2675 = vmax.xlane.f32.xlu1 %v2674_v54 }
 0x473   : > { %v2843_v55 = vpop.f32.mrf.mxu3 }
 0x474   : > { %v2844_v56 = vadd.f32 %v2843_v55, %v12644_v57 }
 0x476   : > { %v2849_v58 = vsel %vm2521_vm2, %v2844_v56, -inf }
 0x477   : > { %2850 = vmax.xlane.f32.xlu2 %v2849_v58 }
 0x47b   : > { %v2846_v59 = vpop.f32.mrf.mxu3 }
 0x47c   : > { %v2847_v60 = vadd.f32 %v2846_v59, %v12649_v61 }
 0x47e   : > { %v2852_v62 = vsel %vm2521_vm2, %v2847_v60, -inf }
 0x47f   : > { %2853 = vmax.xlane.f32.xlu2 %v2852_v62 }
 0x4d1   : > { %v12688_v63 = vpop.f32.mrf.mxu1 }
 0x4d9   : > { %v12690_v0 = vpop.f32.mrf.mxu1 }
 0x4da   : > { %v2673_v1 = vpop.xlane.xlu2 %2672 }
 0x4db   : > { %v2677_v2 = vsub.f32 %v2666_v47, %v2673_v1 }
 0x4dd   : > { %v2679_v3 = vmul.f32 1.442695, %v2677_v2 }
 0x4df   : > { %12006 = vpow2.f32 %v2679_v3 }
 0x4e1   : > { %v2994_v4 = vpop.f32.mrf.mxu1 }
 0x4e2   : > { %v2995_v5 = vadd.f32 %v2994_v4, %v12644_v57  ;;  %v2676_v6 = vpop.xlane.xlu1 %2675 }
 0x4e3   : > { %v2678_v7 = vsub.f32 %v2669_v53, %v2676_v6 }
 0x4e4   : > { %v3000_v8 = vsel %vm2521_vm2, %v2995_v5, -inf }
 0x4e5   : > { %3001 = vmax.xlane.f32.xlu0 %v3000_v8  ;;  %v2681_v9 = vmul.f32 1.442695, %v2678_v7  ;;  %v12694_v10 = vpop.eup %12006 }
 0x4e6   : > { %v2683_v57 = vsel %vm2521_vm2, %v12694_v10, 0.0 }
 0x4e7   : > { %12008 = vpow2.f32 %v2681_v9 }
 0x4e9   : > { %v2997_v11 = vpop.f32.mrf.mxu1 }
 0x4ea   : > { %v2998_v12 = vadd.f32 %v2997_v11, %v12649_v61  ;;  %v2851_v13 = vpop.xlane.xlu2 %2850 }
 0x4eb   : > { %v2855_v14 = vsub.f32 %v2844_v56, %v2851_v13 }
 0x4ec   : > { %v3003_v15 = vsel %vm2521_vm2, %v2998_v12, -inf }
 0x4ed   : > { %v2857_v16 = vmul.f32 1.442695, %v2855_v14  ;;  %3004 = vmax.xlane.f32.xlu1 %v3003_v15  ;;  %2684 = vadd.xlane.f32.xlu0 %v2683_v57  ;;  %v12700_v17 = vpop.eup %12008 }
 0x4ee   : > { %v2686_v20 = vsel %vm2521_vm2, %v12700_v17, 0.0 }
 0x4ef   : > { %12010 = vpow2.f32 %v2857_v16 }
 0x4f2   : > { %v2854_v18 = vpop.xlane.xlu2 %2853 }
 0x4f3   : > { %v2856_v19 = vsub.f32 %v2847_v60, %v2854_v18 }
 0x4f5   : > { %v12704_v61 = vpop.eup %12010  ;;  %v2859_v21 = vmul.f32 1.442695, %v2856_v19  ;;  %2687 = vadd.xlane.f32.xlu1 %v2686_v20 }
 0x4f6   : > { %v2861_v22 = vsel %vm2521_vm2, %v12704_v61, 0.0 }
 0x4f7   : > { %12012 = vpow2.f32 %v2859_v21  ;;  %2862 = vadd.xlane.f32.xlu0 %v2861_v22 }
 0x4fd   : > { %v12708_v23 = vpop.eup %12012 }
 0x4fe   : > { %v2864_v24 = vsel %vm2521_vm2, %v12708_v23, 0.0 }
 0x4ff   : > { %2865 = vadd.xlane.f32.xlu0 %v2864_v24 }
 0x50e   : > { %11978 = vrot.lane.b32.xlu1 %v11977_v25, %s12233_s2  ;;  %s14049_s2 = sld [smem:[#allocation55_spill]] }
 0x513   : > { %11988 = vrot.lane.b32.xlu0 %v11977_v25, %s12236_s19  ;;  %s14053_s19 = sld [smem:[#allocation17_spill]] }
 0x519   : > { %s14055_s11 = scalar_lea.vmem %s14053_s19, %s14042_s16 }
 0x558   : > { %v3002_v26 = vpop.xlane.xlu0 %3001 }
 0x559   : > { %v3006_v27 = vsub.f32 %v2995_v5, %v3002_v26 }
 0x55b   : > { %v3008_v28 = vmul.f32 1.442695, %v3006_v27 }
 0x55d   : > { %12014 = vpow2.f32 %v3008_v28 }
 0x560   : > { %v3005_v29 = vpop.xlane.xlu1 %3004  ;;  %v2685_v30 = vpop.xlane.xlu0 %2684 }
 0x561   : > { %v3007_v31 = vsub.f32 %v2998_v12, %v3005_v29  ;;  %12016 = vrcp.f32 %v2685_v30  ;;  %v2700_v51 = vand.u32 2147483648, %v2685_v30  ;;  %vm2694_vm12 = vweird.f32 %v2685_v30 }
 0x562   : > { %v2698_v52 = vand.u32 2147483647, %v2685_v30 }
 0x563   : > { %v12716_v34 = vpop.eup %12014  ;;  %v3010_v35 = vmul.f32 1.442695, %v3007_v31  ;;  %v2701_v56 = vor.u32 1.1754944e-38, %v2700_v51 }
 0x564   : > { %v3012_v36 = vsel %vm2521_vm2, %v12716_v34, 0.0  ;;  %vm2699_vm14 = vcmp.eq.f32.partialorder %v2698_v52, 8.507059e+37 }
 0x565   : > { %3013 = vadd.xlane.f32.xlu2 %v3012_v36  ;;  %12018 = vpow2.f32 %v3010_v35  ;;  %v11493_v35 = vld [vmem:[%s14039_s10 + $0x8] sm:$0xff] }
 0x566   : > { %2775 = vmatpush.bf16.msrb.mxu0 %v11493_v35 }
 0x567   : > { %v12017_v49 = vpop.eup %12016 }
 0x568   : > { %v2688_v48 = vpop.xlane.xlu1 %2687  ;;  %v2690_v39 = vmul.f32 %v12017_v49, %v2685_v30  ;;  %vm2695_vm11 = vweird.f32 %v12017_v49 }
 0x569   : > { %12020 = vrcp.f32 %v2688_v48  ;;  %vm2696_vm13 = vmor %vm2694_vm12, %vm2695_vm11  ;;  %v2715_v3 = vand.u32 2147483648, %v2688_v48  ;;  %vm2709_vm0 = vweird.f32 %v2688_v48  ;;  %v2713_v6 = vand.u32 2147483647, %v2688_v48 }
 0x56a   : > { %v2863_v40 = vpop.xlane.xlu0 %2862  ;;  %v2691_v41 = vsub.f32 1.0, %v2690_v39 }
 0x56b   : > { %v12720_v37 = vpop.eup %12018  ;;  %12022 = vrcp.f32 %v2863_v40  ;;  %v2716_v13 = vor.u32 1.1754944e-38, %v2715_v3  ;;  %vm2714_vm4 = vcmp.eq.f32.partialorder %v2713_v6, 8.507059e+37  ;;  %v2878_v16 = vand.u32 2147483648, %v2863_v40 }
 0x56c   : > { %v3015_v38 = vsel %vm2521_vm2, %v12720_v37, 0.0  ;;  %v2692_v43 = vmul.f32 %v12017_v49, %v2691_v41  ;;  %vm2872_vm6 = vweird.f32 %v2863_v40  ;;  %v2876_v18 = vand.u32 2147483647, %v2863_v40 }
 0x56d   : > { %3016 = vadd.xlane.f32.xlu2 %v3015_v38  ;;  %v2879_v22 = vor.u32 1.1754944e-38, %v2878_v16 }
 0x56e   : > { %v2693_v45 = vadd.f32 %v12017_v49, %v2692_v43  ;;  %vm2877_vm8 = vcmp.eq.f32.partialorder %v2876_v18, 8.507059e+37 }
 0x56f   : > { %v12021_v42 = vpop.eup %12020 }
 0x570   : > { %v2705_v44 = vmul.f32 %v12021_v42, %v2688_v48  ;;  %v2697_v55 = vsel %vm2696_vm13, %v12017_v49, %v2693_v45  ;;  %vm2710_vm15 = vweird.f32 %v12021_v42 }
 0x571   : > { %v12023_v50 = vpop.eup %12022  ;;  %v2702_v60 = vsel %vm2699_vm14, %v2701_v56, %v2697_v55  ;;  %vm2711_vm3 = vmor %vm2709_vm0, %vm2710_vm15 }
 0x572   : > { %v2706_v46 = vsub.f32 1.0, %v2705_v44  ;;  %v12724_v47 = vpop.xlane.xlu0 %2865  ;;  %v2868_v54 = vmul.f32 %v12023_v50, %v2863_v40  ;;  %v2703_v5 = vmul.f32 %v12694_v10, %v2702_v60  ;;  %vm2873_vm5 = vweird.f32 %v12023_v50 }
 0x573   : > { %12024 = vrcp.f32 %v12724_v47  ;;  %vm2874_vm7 = vmor %vm2872_vm6, %vm2873_vm5  ;;  %v2893_v26 = vand.u32 2147483648, %v12724_v47  ;;  %vm2887_vm10 = vweird.f32 %v12724_v47  ;;  %v2891_v28 = vand.u32 2147483647, %v12724_v47 }
 0x574   : > { %v2707_v53 = vmul.f32 %v12021_v42, %v2706_v46  ;;  %v2869_v62 = vsub.f32 1.0, %v2868_v54 }
 0x575   : > { %v2894_v29 = vor.u32 1.1754944e-38, %v2893_v26  ;;  %vm2892_vm12 = vcmp.eq.f32.partialorder %v2891_v28, 8.507059e+37 }
 0x576   : > { %v2708_v1 = vadd.f32 %v12021_v42, %v2707_v53  ;;  %v2870_v8 = vmul.f32 %v12023_v50, %v2869_v62 }
 0x578   : > { %v2712_v12 = vsel %vm2711_vm3, %v12021_v42, %v2708_v1  ;;  %v2871_v57 = vadd.f32 %v12023_v50, %v2870_v8  ;;  %v11494_v1 = vld [vmem:[%s14039_s10 + $0x10] sm:$0xff] }
 0x579   : > { %v12025_v2 = vpop.eup %12024  ;;  %v2717_v15 = vsel %vm2714_vm4, %v2716_v13, %v2712_v12  ;;  %2951 = vmatpush.bf16.msra.mxu0 %v11494_v1 }
 0x57a   : > { %v2883_v9 = vmul.f32 %v12025_v2, %v12724_v47  ;;  %v2718_v19 = vmul.f32 %v12700_v17, %v2717_v15  ;;  %v2875_v20 = vsel %vm2874_vm7, %v12023_v50, %v2871_v57  ;;  %vm2888_vm9 = vweird.f32 %v12025_v2 }
 0x57b   : > { %v2880_v24 = vsel %vm2877_vm8, %v2879_v22, %v2875_v20  ;;  %vm2889_vm11 = vmor %vm2887_vm10, %vm2888_vm9 }
 0x57c   : > { %v2884_v10 = vsub.f32 1.0, %v2883_v9  ;;  %v2881_v27 = vmul.f32 %v12704_v61, %v2880_v24 }
 0x57e   : > { %v2885_v21 = vmul.f32 %v12025_v2, %v2884_v10 }
 0x580   : > { %v11979_v58 = vpop.permute.xlu1 %11978 }
 0x581   : > { %v11980_v59 = vunpack.i.l.bf16 %v11979_v58  ;;  %v11981_v4 = vunpack.i.h.bf16 %v11979_v58 }
 0x583   : > { %2747 = vmatpush.msrb.mxu2 %v11980_v59 }
 0x585   : > { %v11989_v7 = vpop.permute.xlu0 %11988  ;;  %2748 = vmatpush.msrb.mxu2 %v11981_v4  ;;  %11983 = vrot.lane.b32.xlu2 %v11977_v25, %s12237_s24  ;;  %v2886_v25 = vadd.f32 %v12025_v2, %v2885_v21  ;;  %s14054_s24 = sld [smem:[#allocation18_spill]] }
 0x586   : > { %v11990_v11 = vunpack.i.l.bf16 %v11989_v7  ;;  %9621 = vmatmul.msk.f32.vlgmr.msrb.gmra.mxu2 %vm2521_vm2, %v2703_v5  ;;  %v11991_v14 = vunpack.i.h.bf16 %v11989_v7 }
 0x587   : > { %v2890_v17 = vsel %vm2889_vm11, %v12025_v2, %v2886_v25 }
 0x588   : > { %2923 = vmatpush.msra.mxu2 %v11990_v11  ;;  %v2895_v30 = vsel %vm2892_vm12, %v2894_v29, %v2890_v17 }
 0x589   : > { %v2896_v31 = vmul.f32 %v12708_v23, %v2895_v30 }
 0x58a   : > { %2924 = vmatpush.msra.mxu2 %v11991_v14  ;;  %v11992_v14 = vld [vmem:[%s14043_s20] ss:$0 sm:$0xff] }
 0x58b   : > { %s14056_s20 = scalar_lea.vmem %s14054_s24, %s14042_s16 }
 0x58e   : > { %9622 = vmatmul.msk.f32.gmra.mxu2 %vm2521_vm2, %v2718_v19 }
 0x596   : > { %9639 = vmatmul.msk.f32.vlgmr.msra.gmra.mxu2 %vm2521_vm2, %v2881_v27  ;;  %v12238_v27 = vmov 64.0  }
 0x59e   : > { %9640 = vmatmul.msk.f32.gmra.mxu2 %vm2521_vm2, %v2896_v31 }
 0x5d8   : > { %v3014_v36 = vpop.xlane.xlu2 %3013 }
 0x5d9   : > { %12026 = vrcp.f32 %v3014_v36  ;;  %v3029_v40 = vand.u32 2147483648, %v3014_v36  ;;  %v3027_v41 = vand.u32 2147483647, %v3014_v36  ;;  %vm3023_vm14 = vweird.f32 %v3014_v36 }
 0x5db   : > { %v3030_v44 = vor.u32 1.1754944e-38, %v3029_v40  ;;  %vm3028_vm0 = vcmp.eq.f32.partialorder %v3027_v41, 8.507059e+37  ;;  %v9853_v41 = vld [vmem:[%s14044_s27 + $0x180] sm:$0xf] }
 0x5df   : > { %v12027_v48 = vpop.eup %12026 }
 0x5e0   : > { %v3019_v49 = vmul.f32 %v12027_v48, %v3014_v36  ;;  %v3017_v61 = vpop.xlane.xlu2 %3016  ;;  %vm3024_vm13 = vweird.f32 %v12027_v48 }
 0x5e1   : > { %12028 = vrcp.f32 %v3017_v61  ;;  %vm3025_vm15 = vmor %vm3023_vm14, %vm3024_vm13  ;;  %v3044_v52 = vand.u32 2147483648, %v3017_v61  ;;  %v3042_v56 = vand.u32 2147483647, %v3017_v61  ;;  %vm3038_vm4 = vweird.f32 %v3017_v61 }
 0x5e2   : > { %v3020_v38 = vsub.f32 1.0, %v3019_v49  ;;  %12030 = vrcp.f32 %v12238_v27 }
 0x5e3   : > { %v3045_v59 = vor.u32 1.1754944e-38, %v3044_v52  ;;  %vm3043_vm6 = vcmp.eq.f32.partialorder %v3042_v56, 8.507059e+37  ;;  %v9863_v52 = vld [vmem:[%s14044_s27 + $0x1c8] sm:$0xf0]  ;;  %v11528_v56 = vld [vmem:[%s14044_s27 + $0x104] sm:$0xf] }
 0x5e4   : > { %v3021_v39 = vmul.f32 %v12027_v48, %v3020_v38 }
 0x5e6   : > { %v3022_v42 = vadd.f32 %v12027_v48, %v3021_v39 }
 0x5e7   : > { %v12029_v43 = vpop.eup %12028 }
 0x5e8   : > { %v3026_v23 = vsel %vm3025_vm15, %v12027_v48, %v3022_v42  ;;  %v3034_v45 = vmul.f32 %v12029_v43, %v3017_v61  ;;  %v11984_v46 = vpop.permute.xlu2 %11983  ;;  %vm3039_vm3 = vweird.f32 %v12029_v43  ;;  %v12031_v28 = vpop.eup %12030  ;;  %v11552_v42 = vld [vmem:[%s14044_s27 + $0x1bc] sm:$0xf0] }
 0x5e9   : > { %v3031_v47 = vsel %vm3028_vm0, %v3030_v44, %v3026_v23  ;;  %v11985_v50 = vunpack.i.l.bf16 %v11984_v46  ;;  %v11986_v53 = vunpack.i.h.bf16 %v11984_v46  ;;  %vm3040_vm5 = vmor %vm3038_vm4, %vm3039_vm3  ;;  %v3129_v17 = vmul.f32 64.0, %v12031_v28  ;;  %v9855_v44 = vld [vmem:[%s14044_s27 + $0x1c0] sm:$0xf0]  ;;  %v11553_v46 = vld [vmem:[%s14044_s27 + $0x1c4] sm:$0xf0] }
 0x5ea   : > { %v3035_v51 = vsub.f32 1.0, %v3034_v45  ;;  %v3032_v55 = vmul.f32 %v12716_v34, %v3031_v47  ;;  %v11495_v34 = vld [vmem:[%s14039_s10 + $0x18] sm:$0xff]  ;;  %v9854_v23 = vor.u32 %v11552_v42, %v9853_v41  ;;  %v9861_v45 = vld [vmem:[%s14044_s27 + $0x188] sm:$0xf]  ;;  %v9805_v41 = vld [vmem:[%s14044_s27 + $0x110] sm:$0xf]  ;;  %s14052_s10 = scalar_lea.vmem %s14051_s28, %s14042_s16 }
 0x5eb   : > { %3074 = vmatpush.msrb.mxu3 %v11985_v50  ;;  %3102 = vmatpush.bf16.msrb.mxu2 %v11495_v34  ;;  %v3130_v29 = vsub.f32 1.0, %v3129_v17  ;;  %v9862_v50 = vor.u32 %v11553_v46, %v9861_v45  ;;  %v11529_v34 = vld [vmem:[%s14044_s27 + $0x10c] sm:$0xf]  ;;  %v11554_v17 = vld [vmem:[%s14044_s27 + $0x1cc] sm:$0xf0] }
 0x5ec   : > { %v3036_v54 = vmul.f32 %v12029_v43, %v3035_v51  ;;  %v11545_v51 = vld [vmem:[%s14044_s27 + $0x18c] sm:$0xf]  ;;  %v11538_v42 = vld [vmem:[%s14044_s27 + $0x14c] sm:$0xf0]  ;;  %v9807_v45 = vld [vmem:[%s14044_s27 + $0x150] sm:$0xf0] }
 0x5ed   : > { %3075 = vmatpush.msrb.mxu3 %v11986_v53  ;;  %v9866_v53 = vor.u32 %v11545_v51, %v9863_v52  ;;  %v9813_v46 = vld [vmem:[%s14044_s27 + $0x118] sm:$0xf]  ;;  %v11531_v52 = vld [vmem:[%s14044_s27 + $0x11c] sm:$0xf] }
 0x5ee   : > { %9651 = vmatmul.msk.f32.vlgmr.msrb.gmra.mxu3 %vm2521_vm2, %v3032_v55  ;;  %v3037_v58 = vadd.f32 %v12029_v43, %v3036_v54  ;;  %v9789_v54 = vld [vmem:[%s14044_s27 + $0x100] sm:$0xf] }
 0x5ef   : > { %3900 = vmatpush.bf16.msra.mxu3 %v9862_v50  ;;  %v11536_v55 = vld [vmem:[%s14044_s27 + $0x13c] sm:$0xf0]  ;;  %3915 = vmatpush.bf16.msra.mxu2 %v9866_v53  ;;  %v9815_v53 = vld [vmem:[%s14044_s27 + $0x158] sm:$0xf0] }
 0x5f0   : > { %v3041_v60 = vsel %vm3040_vm5, %v12029_v43, %v3037_v58  ;;  %v11544_v43 = vld [vmem:[%s14044_s27 + $0x184] sm:$0xf]  ;;  %v9790_v58 = vor.u32 %v11536_v55, %v9789_v54  ;;  %v9818_v55 = vor.u32 %v11531_v52, %v9815_v53 }
 0x5f1   : > { %v3046_v62 = vsel %vm3043_vm6, %v3045_v59, %v3041_v60  ;;  %v9858_v47 = vor.u32 %v11544_v43, %v9855_v44  ;;  %v9791_v59 = vld [vmem:[%s14044_s27 + $0x140] sm:$0xf0]  ;;  %v9797_v60 = vld [vmem:[%s14044_s27 + $0x108] sm:$0xf]  ;;  %v11530_v43 = vld [vmem:[%s14044_s27 + $0x114] sm:$0xf]  ;;  %v9806_v44 = vor.u32 %v11538_v42, %v9805_v41 }
 0x5f2   : > { %v3047_v2 = vmul.f32 %v12720_v37, %v3046_v62  ;;  %v11537_v62 = vld [vmem:[%s14044_s27 + $0x144] sm:$0xf0]  ;;  %v9794_v1 = vor.u32 %v11528_v56, %v9791_v59  ;;  %v9810_v50 = vor.u32 %v11530_v43, %v9807_v45  ;;  %v9741_v56 = vld [vmem:[%s14044_s27 + $0x90] sm:$0xf]  ;;  %v11514_v59 = vld [vmem:[%s14044_s27 + $0x94] sm:$0xf] }
 0x5f3   : > { %3885 = vmatpush.bf16.msrb.mxu1 %v9858_v47  ;;  %v11539_v47 = vld [vmem:[%s14044_s27 + $0x154] sm:$0xf0]  ;;  %v11557_v41 = vld [vmem:[%s14044_s27 + $0x1e4] sm:$0xf0]  ;;  %v11549_v42 = vld [vmem:[%s14044_s27 + $0x1ac] sm:$0xf] }
 0x5f4   : > { %v9814_v51 = vor.u32 %v11539_v47, %v9813_v46  ;;  %v9895_v43 = vld [vmem:[%s14044_s27 + $0x1e8] sm:$0xf0]  ;;  %v9821_v46 = vld [vmem:[%s14044_s27 + $0x120] sm:$0xf] }
 0x5f5   : > { %v11540_v47 = vld [vmem:[%s14044_s27 + $0x15c] sm:$0xf0]  ;;  %v9898_v53 = vor.u32 %v11549_v42, %v9895_v43  ;;  %v11534_v42 = vld [vmem:[%s14044_s27 + $0x134] sm:$0xf] }
 0x5f6   : > { %9652 = vmatmul.msk.f32.gmra.mxu3 %vm2521_vm2, %v3047_v2  ;;  %v9798_v2 = vor.u32 %v11537_v62, %v9797_v60  ;;  %v9743_v62 = vld [vmem:[%s14044_s27 + $0xd0] sm:$0xf0] }
 0x5f7   : > { %3886 = vmatpush.bf16.msrb.mxu1 %v9794_v1  ;;  %v9749_v1 = vld [vmem:[%s14044_s27 + $0x98] sm:$0xf]  ;;  %v9839_v43 = vld [vmem:[%s14044_s27 + $0x170] sm:$0xf0] }
 0x5f8   : > { %3901 = vmatpush.bf16.msra.mxu3 %v9798_v2  ;;  %v11523_v2 = vld [vmem:[%s14044_s27 + $0xd4] sm:$0xf0] }
 0x609   : > { %v2750_v3 = vpop.f32.mrf.mxu2 }
 0x60a   : > { %9627 = vmatmul.msk.f32.vlgmr.msrb.gmra.mxu0 %vm2521_vm2, %v2750_v3  ;;  %v9799_v3 = vld [vmem:[%s14044_s27 + $0x148] sm:$0xf0] }
 0x60b   : > { %3870 = vmatpush.bf16.msrb.mxu0 %v9854_v23 }
 0x60f   : > { %3871 = vmatpush.bf16.msrb.mxu0 %v9790_v58  ;;  %v11522_v58 = vld [vmem:[%s14044_s27 + $0xcc] sm:$0xf0] }
 0x610   : > { %v9742_v60 = vor.u32 %v11522_v58, %v9741_v56  ;;  %v11541_v56 = vld [vmem:[%s14044_s27 + $0x164] sm:$0xf0]  ;;  %v11533_v58 = vld [vmem:[%s14044_s27 + $0x12c] sm:$0xf] }
 0x611   : > { %v2753_v4 = vpop.f32.mrf.mxu2 }
 0x612   : > { %9628 = vmatmul.msk.f32.gmra.mxu0 %vm2521_vm2, %v2753_v4  ;;  %v9802_v4 = vor.u32 %v11529_v34, %v9799_v3  ;;  %v9746_v34 = vor.u32 %v11514_v59, %v9743_v62  ;;  %v9750_v3 = vor.u32 %v11523_v2, %v9749_v1  ;;  %v9831_v59 = vld [vmem:[%s14044_s27 + $0x168] sm:$0xf0]  ;;  %v9822_v1 = vor.u32 %v11540_v47, %v9821_v46  ;;  %v9847_v46 = vld [vmem:[%s14044_s27 + $0x178] sm:$0xf0] }
 0x614   : > { %3916 = vmatpush.bf16.msra.mxu2 %v9802_v4  ;;  %v11515_v4 = vld [vmem:[%s14044_s27 + $0x9c] sm:$0xf] }
 0x619   : > { %v2926_v5 = vpop.f32.mrf.mxu2 }
 0x61a   : > { %9645 = vmatmul.msk.f32.vlgmr.msra.gmra.mxu0 %vm2521_vm2, %v2926_v5  ;;  %v9725_v5 = vld [vmem:[%s14044_s27 + $0x80] sm:$0xf] }
 0x621   : > { %v2929_v6 = vpop.f32.mrf.mxu2 }
 0x622   : > { %9646 = vmatmul.msk.f32.gmra.mxu0 %vm2521_vm2, %v2929_v6  ;;  %v11520_v6 = vld [vmem:[%s14044_s27 + $0xbc] sm:$0xf0] }
 0x671   : > { %v3077_v7 = vpop.f32.mrf.mxu3 }
 0x672   : > { %9657 = vmatmul.msk.f32.vlgmr.msrb.gmra.mxu2 %vm2521_vm2, %v3077_v7  ;;  %v11512_v7 = vld [vmem:[%s14044_s27 + $0x84] sm:$0xf] }
 0x679   : > { %v3080_v37 = vpop.f32.mrf.mxu3 }
 0x67a   : > { %9658 = vmatmul.msk.f32.gmra.mxu2 %vm2521_vm2, %v3080_v37  ;;  %vm3133_vm2 = vweird.f32 %v12031_v28  ;;  %v9726_v37 = vor.u32 %v11520_v6, %v9725_v5  ;;  %v9751_v5 = vld [vmem:[%s14044_s27 + $0xd8] sm:$0xf0]  ;;  %v9677_v6 = vld [vmem:[%s14044_s27 + $0x10] sm:$0xf] }
 0x67c   : > { %3872 = vmatpush.bf16.msrb.mxu0 %v9726_v37  ;;  %v11506_v37 = vld [vmem:[%s14044_s27 + $0x4c] sm:$0xf0] }
 0x687   : > { %v2777_v8 = vpop.f32.mrf.mxu0 }
 0x688   : > { %v2805_v12 = vadd.f32 %v12688_v63, %v2777_v8  ;;  %v9727_v8 = vld [vmem:[%s14044_s27 + $0xc0] sm:$0xf0] }
 0x68f   : > { %v2780_v9 = vpop.f32.mrf.mxu0 }
 0x690   : > { %v2808_v18 = vadd.f32 %v12690_v0, %v2780_v9  ;;  %v3131_v0 = vmul.f32 %v12031_v28, %v3130_v29  ;;  %v9733_v9 = vld [vmem:[%s14044_s27 + $0x88] sm:$0xf]  ;;  %v11546_v29 = vld [vmem:[%s14044_s27 + $0x194] sm:$0xf] }
 0x697   : > { %v2953_v11 = vpop.f32.mrf.mxu0 }
 0x698   : > { %v2959_v13 = vadd.f32 %v2953_v11, %v2805_v12  ;;  %v11521_v11 = vld [vmem:[%s14044_s27 + $0xc4] sm:$0xf0]  ;;  %v9730_v12 = vor.u32 %v11512_v7, %v9727_v8  ;;  %v9754_v7 = vor.u32 %v11515_v4, %v9751_v5  ;;  %v11498_v8 = vld [vmem:[%s14044_s27 + $0x14] sm:$0xf]  ;;  %v9834_v5 = vor.u32 %v11533_v58, %v9831_v59  ;;  %v9781_v58 = vld [vmem:[%s14044_s27 + $0xb8] sm:$0xf] }
 0x699   : > { %v11527_v59 = vld [vmem:[%s14044_s27 + $0xf4] sm:$0xf0] }
 0x69a   : > { %3887 = vmatpush.bf16.msrb.mxu1 %v9730_v12  ;;  %v9678_v12 = vor.u32 %v11506_v37, %v9677_v6  ;;  %v11516_v6 = vld [vmem:[%s14044_s27 + $0xa4] sm:$0xf]  ;;  %v9765_v37 = vld [vmem:[%s14044_s27 + $0xa8] sm:$0xf] }
 0x69f   : > { %v2956_v16 = vpop.f32.mrf.mxu0 }
 0x6a0   : > { %v2960_v20 = vadd.f32 %v2956_v16, %v2808_v18  ;;  %v11504_v16 = vld [vmem:[%s14044_s27 + $0x3c] sm:$0xf0]  ;;  %v11496_v18 = vld [vmem:[%s14044_s27 + $0x4] sm:$0xf] }
 0x6f5   : > { %v3104_v15 = vpop.f32.mrf.mxu2 }
 0x6f6   : > { %v3110_v57 = vadd.f32 %v3104_v15, %v2959_v13  ;;  %v9734_v13 = vor.u32 %v11521_v11, %v9733_v9  ;;  %v9735_v15 = vld [vmem:[%s14044_s27 + $0xc8] sm:$0xf0]  ;;  %v9679_v9 = vld [vmem:[%s14044_s27 + $0x50] sm:$0xf0] }
 0x6f8   : > { %v3116_v10 = vadd.f32 %v11992_v14, %v3110_v57  ;;  %3902 = vmatpush.bf16.msra.mxu3 %v9734_v13  ;;  %v9682_v13 = vor.u32 %v11498_v8, %v9679_v9  ;;  %v11517_v9 = vld [vmem:[%s14044_s27 + $0xac] sm:$0xf] }
 0x6fa   : > { %v3120_v19 = vadd.f32 %v3116_v10, %v12601_v32  ;;  %v3132_v32 = vadd.f32 %v12031_v28, %v3131_v0  ;;  %v9661_v10 = vld [vmem:[%s14044_s27] sm:$0xf] }
 0x6fc   : > { %v3122_v21 = vsel %vm2466_vm1, %v3120_v19, 0.0  ;;  %v12762_v30 = vsel %vm3133_vm2, %v12031_v28, %v3132_v32  ;;  %v9869_v28 = vld [vmem:[%s14044_s27 + $0x190] sm:$0xf]  ;;  %v9871_v32 = vld [vmem:[%s14044_s27 + $0x1d0] sm:$0xf0] }
 0x6fd   : > { %v3107_v22 = vpop.f32.mrf.mxu2  ;;  %3123 = vadd.xlane.f32.xlu1 %v3122_v21  ;;  %v9669_v21 = vld [vmem:[%s14044_s27 + $0x8] sm:$0xf]  ;;  %v9870_v0 = vor.u32 %v11554_v17, %v9869_v28  ;;  %v11993_v17 = vld [vmem:[%s14047_s22] ss:$0 sm:$0xff] }
 0x6fe   : > { %v3111_v24 = vadd.f32 %v3107_v22, %v2960_v20  ;;  %v9663_v20 = vld [vmem:[%s14044_s27 + $0x40] sm:$0xf0]  ;;  %v11505_v22 = vld [vmem:[%s14044_s27 + $0x44] sm:$0xf0] }
 0x700   : > { %v3117_v25 = vadd.f32 %v11992_v14, %v3111_v24  ;;  %v11513_v14 = vld [vmem:[%s14044_s27 + $0x8c] sm:$0xf]  ;;  %v9666_v24 = vor.u32 %v11496_v18, %v9663_v20  ;;  %v9687_v18 = vld [vmem:[%s14044_s27 + $0x58] sm:$0xf0] }
 0x701   : > { %v9738_v57 = vor.u32 %v11513_v14, %v9735_v15  ;;  %v9685_v14 = vld [vmem:[%s14044_s27 + $0x18] sm:$0xf] }
 0x702   : > { %v3121_v63 = vadd.f32 %v3117_v25, %v12605_v33  ;;  %v9670_v25 = vor.u32 %v11505_v22, %v9669_v21  ;;  %3888 = vmatpush.bf16.msrb.mxu1 %v9666_v24  ;;  %v11507_v15 = vld [vmem:[%s14044_s27 + $0x54] sm:$0xf0] }
 0x703   : > { %3917 = vmatpush.bf16.msra.mxu2 %v9738_v57  ;;  %v11499_v57 = vld [vmem:[%s14044_s27 + $0x1c] sm:$0xf] }
 0x704   : > { %v3125_v26 = vsel %vm2466_vm1, %v3121_v63, 0.0  ;;  %3903 = vmatpush.bf16.msra.mxu3 %v9670_v25 }
 0x705   : > { %3126 = vadd.xlane.f32.xlu0 %v3125_v26  ;;  %v9671_v26 = vld [vmem:[%s14044_s27 + $0x48] sm:$0xf0] }
 0x770   : > { %v3124_v31 = vpop.xlane.xlu1 %3123 }
 0x771   : > { %v3135_v33 = vmul.f32 %v12762_v30, %v3124_v31  ;;  %v9877_v31 = vld [vmem:[%s14044_s27 + $0x198] sm:$0xf] }
 0x773   : > { %v12765_v35 = vsub.f32 %v3120_v19, %v3135_v33  ;;  %v9662_v19 = vor.u32 %v11504_v16, %v9661_v10  ;;  %v11555_v33 = vld [vmem:[%s14044_s27 + $0x1d4] sm:$0xf0]  ;;  %v9686_v16 = vor.u32 %v11507_v15, %v9685_v14  ;;  %v9693_v15 = vld [vmem:[%s14044_s27 + $0x20] sm:$0xf] }
 0x775   : > { %v3139_v36 = vmul.f32 %v12765_v35, %v12765_v35  ;;  %3873 = vmatpush.bf16.msrb.mxu0 %v9662_v19  ;;  %v9690_v19 = vor.u32 %v11499_v57, %v9687_v18  ;;  %v11508_v57 = vld [vmem:[%s14044_s27 + $0x5c] sm:$0xf0]  ;;  %v11500_v18 = vld [vmem:[%s14044_s27 + $0x24] sm:$0xf] }
 0x777   : > { %v3141_v48 = vsel %vm2466_vm1, %v3139_v36, 0.0  ;;  %v9874_v36 = vor.u32 %v11546_v29, %v9871_v32  ;;  %v11994_v29 = vld [vmem:[%s14048_s26] ss:$0 sm:$0xff] }
 0x778   : > { %3142 = vadd.xlane.f32.xlu2 %v3141_v48  ;;  %v3127_v49 = vpop.xlane.xlu0 %3126  ;;  %v9878_v48 = vor.u32 %v11555_v33, %v9877_v31  ;;  %v9885_v33 = vld [vmem:[%s14044_s27 + $0x1a0] sm:$0xf] }
 0x779   : > { %v3136_v61 = vmul.f32 %v12762_v30, %v3127_v49  ;;  %v11547_v49 = vld [vmem:[%s14044_s27 + $0x19c] sm:$0xf]  ;;  %3930 = vmatpush.bf16.msra.mxu0 %v9870_v0  ;;  %3945 = vmatpush.bf16.msra.mxu1 %v9874_v36  ;;  %v11556_v36 = vld [vmem:[%s14044_s27 + $0x1dc] sm:$0xf0] }
 0x77a   : > { %3960 = vmatpush.bf16.msrb.mxu3 %v9878_v48  ;;  %v11548_v48 = vld [vmem:[%s14044_s27 + $0x1a4] sm:$0xf] }
 0x77b   : > { %v12771_v38 = vsub.f32 %v3121_v63, %v3136_v61  ;;  %v11497_v63 = vld [vmem:[%s14044_s27 + $0xc] sm:$0xf]  ;;  %v9879_v61 = vld [vmem:[%s14044_s27 + $0x1d8] sm:$0xf0] }
 0x77c   : > { %v9674_v27 = vor.u32 %v11497_v63, %v9671_v26 }
 0x77d   : > { %v3140_v39 = vmul.f32 %v12771_v38, %v12771_v38  ;;  %3931 = vmatpush.bf16.msra.mxu0 %v9806_v44  ;;  %3946 = vmatpush.bf16.msra.mxu1 %v9810_v50  ;;  %v11532_v50 = vld [vmem:[%s14044_s27 + $0x124] sm:$0xf] }
 0x77e   : > { %3918 = vmatpush.bf16.msra.mxu2 %v9674_v27  ;;  %3961 = vmatpush.bf16.msrb.mxu3 %v9814_v51 }
 0x77f   : > { %v3144_v40 = vsel %vm2466_vm1, %v3140_v39, 0.0  ;;  %v9882_v39 = vor.u32 %v11547_v49, %v9879_v61  ;;  %v9887_v61 = vld [vmem:[%s14044_s27 + $0x1e0] sm:$0xf0] }
 0x780   : > { %3145 = vadd.xlane.f32.xlu1 %v3144_v40  ;;  %v9890_v45 = vor.u32 %v11548_v48, %v9887_v61  ;;  %v9837_v61 = vld [vmem:[%s14044_s27 + $0x130] sm:$0xf] }
 0x781   : > { %3932 = vmatpush.bf16.msra.mxu0 %v9742_v60  ;;  %3947 = vmatpush.bf16.msra.mxu1 %v9746_v34  ;;  %v9757_v34 = vld [vmem:[%s14044_s27 + $0xa0] sm:$0xf] }
 0x782   : > { %3975 = vmatpush.bf16.msrb.mxu2 %v9882_v39  ;;  %3962 = vmatpush.bf16.msrb.mxu3 %v9750_v3  ;;  %v9893_v39 = vld [vmem:[%s14044_s27 + $0x1a8] sm:$0xf]  ;;  %v11524_v3 = vld [vmem:[%s14044_s27 + $0xdc] sm:$0xf0] }
 0x783   : > { %v9894_v52 = vor.u32 %v11557_v41, %v9893_v39  ;;  %v11542_v39 = vld [vmem:[%s14044_s27 + $0x16c] sm:$0xf0] }
 0x784   : > { %v9838_v47 = vor.u32 %v11542_v39, %v9837_v61  ;;  %v11586_v61 = vld [vmem:[%s14049_s2 + $0xd0] sm:$0xff]  ;;  %v11561_v39 = vld [vmem:[%s14049_s2 + $0x8] sm:$0xff] }
 0x785   : > { %3933 = vmatpush.bf16.msra.mxu0 %v9678_v12  ;;  %3948 = vmatpush.bf16.msra.mxu1 %v9682_v13  ;;  %v9758_v13 = vor.u32 %v11524_v3, %v9757_v34  ;;  %v9709_v34 = vld [vmem:[%s14044_s27 + $0x30] sm:$0xf] }
 0x786   : > { %3976 = vmatpush.bf16.msrb.mxu2 %v9818_v55  ;;  %3963 = vmatpush.bf16.msrb.mxu3 %v9686_v16  ;;  %v9829_v55 = vld [vmem:[%s14044_s27 + $0x128] sm:$0xf]  ;;  %v11510_v3 = vld [vmem:[%s14044_s27 + $0x6c] sm:$0xf0] }
 0x787   : > { %v9830_v4 = vor.u32 %v11541_v56, %v9829_v55  ;;  %v11518_v55 = vld [vmem:[%s14044_s27 + $0xb4] sm:$0xf] }
 0x788   : > { %v9775_v56 = vld [vmem:[%s14044_s27 + $0xf0] sm:$0xf0] }
 0x78a   : > { %3977 = vmatpush.bf16.msrb.mxu2 %v9754_v7  ;;  %v9759_v7 = vld [vmem:[%s14044_s27 + $0xe0] sm:$0xf0] }
 0x78b   : > { %v9762_v14 = vor.u32 %v11516_v6, %v9759_v7  ;;  %v11502_v6 = vld [vmem:[%s14044_s27 + $0x34] sm:$0xf] }
 0x78c   : > { %v9711_v7 = vld [vmem:[%s14044_s27 + $0x70] sm:$0xf0] }
 0x78e   : > { %3978 = vmatpush.bf16.msrb.mxu2 %v9690_v19  ;;  %v9695_v19 = vld [vmem:[%s14044_s27 + $0x60] sm:$0xf0] }
 0x7eb   : > { %v3143_v40 = vpop.xlane.xlu2 %3142 }
 0x7ec   : > { %v3147_v23 = vmul.f32 %v3143_v40, %v12762_v30 }
 0x7ee   : > { %v3149_v54 = vadd.f32 1e-05, %v3147_v23 }
 0x7f0   : > { %12032 = vrsqrt.f32 %v3149_v54  ;;  %vm3157_vm8 = vweird.f32 %v3149_v54 }
 0x7f3   : > { %v3146_v11 = vpop.xlane.xlu1 %3145 }
 0x7f4   : > { %v3148_v10 = vmul.f32 %v3146_v11, %v12762_v30  ;;  %v9767_v11 = vld [vmem:[%s14044_s27 + $0xe8] sm:$0xf0] }
 0x7f5   : > { %v9770_v16 = vor.u32 %v11517_v9, %v9767_v11  ;;  %v9719_v9 = vld [vmem:[%s14044_s27 + $0x78] sm:$0xf0]  ;;  %v9710_v11 = vor.u32 %v11510_v3, %v9709_v34  ;;  %v11620_v34 = vld [vmem:[%s14049_s2 + $0x1e0] sm:$0xff] }
 0x7f6   : > { %v12033_v20 = vpop.eup %12032  ;;  %v3150_v21 = vadd.f32 1e-05, %v3148_v10  ;;  %v11595_v3 = vld [vmem:[%s14049_s2 + $0x118] sm:$0xff] }
 0x7f7   : > { %v3152_v22 = vmul.f32 %v12033_v20, %v3149_v54  ;;  %vm3158_vm7 = vweird.f32 %v12033_v20  ;;  %v9823_v54 = vld [vmem:[%s14044_s27 + $0x160] sm:$0xf0] }
 0x7f8   : > { %12034 = vrsqrt.f32 %v3150_v21  ;;  %vm3159_vm9 = vmor %vm3157_vm8, %vm3158_vm7  ;;  %vm3167_vm11 = vweird.f32 %v3150_v21  ;;  %v9826_v2 = vor.u32 %v11532_v50, %v9823_v54  ;;  %v9842_v50 = vor.u32 %v11534_v42, %v9839_v43  ;;  %v11585_v42 = vld [vmem:[%s14049_s2 + $0xc8] sm:$0xff]  ;;  %v11560_v43 = vld [vmem:[%s14049_s2] sm:$0xff] }
 0x7f9   : > { %v3153_v24 = vmul.f32 %v12033_v20, %v3152_v22  ;;  %v11501_v22 = vld [vmem:[%s14044_s27 + $0x2c] sm:$0xf] }
 0x7fb   : > { %v3154_v25 = vmul.f32 0.5, %v3153_v24  ;;  %v9703_v24 = vld [vmem:[%s14044_s27 + $0x68] sm:$0xf0] }
 0x7fd   : > { %v3155_v63 = vsub.f32 1.5, %v3154_v25  ;;  %v9694_v25 = vor.u32 %v11508_v57, %v9693_v15  ;;  %v11567_v57 = vld [vmem:[%s14049_s2 + $0x38] sm:$0xff] }
 0x7fe   : > { %v12035_v26 = vpop.eup %12034 }
 0x7ff   : > { %v3156_v27 = vmul.f32 %v12033_v20, %v3155_v63  ;;  %v3162_v28 = vmul.f32 %v12035_v26, %v3150_v21  ;;  %vm3168_vm10 = vweird.f32 %v12035_v26  ;;  %v11509_v21 = vld [vmem:[%s14044_s27 + $0x64] sm:$0xf0]  ;;  %v9698_v63 = vor.u32 %v11500_v18, %v9695_v19  ;;  %v11591_v18 = vld [vmem:[%s14049_s2 + $0xf8] sm:$0xff]  ;;  %v11566_v19 = vld [vmem:[%s14049_s2 + $0x30] sm:$0xff] }
 0x800   : > { %vm3169_vm12 = vmor %vm3167_vm11, %vm3168_vm10 }
 0x801   : > { %v3160_v0 = vsel %vm3159_vm9, %v12033_v20, %v3156_v27  ;;  %v3163_v32 = vmul.f32 %v12035_v26, %v3162_v28  ;;  %v9701_v20 = vld [vmem:[%s14044_s27 + $0x28] sm:$0xf]  ;;  %v11558_v27 = vld [vmem:[%s14044_s27 + $0x1ec] sm:$0xf0] }
 0x802   : > { %v3171_v31 = vmul.f32 %v3160_v0, %v12765_v35  ;;  %v9886_v35 = vor.u32 %v11556_v36, %v9885_v33  ;;  %v9702_v28 = vor.u32 %v11509_v21, %v9701_v20  ;;  %v9903_v0 = vld [vmem:[%s14044_s27 + $0x1f0] sm:$0xf0]  ;;  %v11551_v33 = vld [vmem:[%s14044_s27 + $0x1bc] sm:$0xf] }
 0x803   : > { %v3164_v49 = vmul.f32 0.5, %v3163_v32  ;;  %v9909_v32 = vld [vmem:[%s14044_s27 + $0x1b8] sm:$0xf]  ;;  %v9911_v36 = vld [vmem:[%s14044_s27 + $0x1f8] sm:$0xf0]  ;;  %v11574_v20 = vld [vmem:[%s14049_s2 + $0x70] sm:$0xff] }
 0x804   : > { %v3176_v40 = vmul.f32 %v11993_v17, %v3171_v31  ;;  %v11559_v31 = vld [vmem:[%s14044_s27 + $0x1f4] sm:$0xf0]  ;;  %v9914_v41 = vor.u32 %v11551_v33, %v9911_v36  ;;  %v11582_v21 = vld [vmem:[%s14049_s2 + $0xb0] sm:$0xff] }
 0x805   : > { %v3165_v23 = vsub.f32 1.5, %v3164_v49  ;;  %v11587_v33 = vld [vmem:[%s14049_s2 + $0xd8] sm:$0xff]  ;;  %v11562_v36 = vld [vmem:[%s14049_s2 + $0x10] sm:$0xff] }
 0x806   : > { %v12857_v44 = vadd.f32 %v11994_v29, %v3176_v40  ;;  %v9910_v40 = vor.u32 %v11559_v31, %v9909_v32  ;;  %v11571_v32 = vld [vmem:[%s14049_s2 + $0x58] sm:$0xff] }
 0x807   : > { %v3166_v51 = vmul.f32 %v12035_v26, %v3165_v23  ;;  %v9845_v23 = vld [vmem:[%s14044_s27 + $0x138] sm:$0xf] }
 0x808   : > { %9915 = vmatmul.msk.f32.vlgmr.msrb.gmra.mxu0 %vm2466_vm1, %v12857_v44  ;;  %9917 = vmatmul.msk.f32.vlgmr.msrb.gmra.mxu1 %vm2466_vm1, %v12857_v44  ;;  %v11579_v31 = vld [vmem:[%s14049_s2 + $0x98] sm:$0xff] }
 0x809   : > { %v3170_v60 = vsel %vm3169_vm12, %v12035_v26, %v3166_v51  ;;  %9919 = vmatmul.msk.f32.vlgmr.msra.gmra.mxu3 %vm2466_vm1, %v12857_v44  ;;  %9921 = vmatmul.msk.f32.vlgmr.msra.gmra.mxu2 %vm2466_vm1, %v12857_v44  ;;  %v9901_v26 = vld [vmem:[%s14044_s27 + $0x1b0] sm:$0xf] }
 0x80a   : > { %v3172_v62 = vmul.f32 %v3170_v60, %v12771_v38  ;;  %3990 = vmatpush.bf16.msrb.mxu0 %v9886_v35  ;;  %4005 = vmatpush.bf16.msrb.mxu1 %v9890_v45  ;;  %v11525_v38 = vld [vmem:[%s14044_s27 + $0xe4] sm:$0xf0]  ;;  %v9902_v48 = vor.u32 %v11558_v27, %v9901_v26  ;;  %v11543_v35 = vld [vmem:[%s14044_s27 + $0x174] sm:$0xf0]  ;;  %v11535_v45 = vld [vmem:[%s14044_s27 + $0x13c] sm:$0xf] }
 0x80b   : > { %4020 = vmatpush.bf16.msra.mxu3 %v9894_v52  ;;  %4035 = vmatpush.bf16.msra.mxu2 %v9898_v53  ;;  %v9766_v10 = vor.u32 %v11525_v38, %v9765_v37  ;;  %v9773_v51 = vld [vmem:[%s14044_s27 + $0xb0] sm:$0xf]  ;;  %v9846_v53 = vor.u32 %v11543_v35, %v9845_v23  ;;  %v9850_v54 = vor.u32 %v11535_v45, %v9847_v46  ;;  %v11519_v60 = vld [vmem:[%s14044_s27 + $0xbc] sm:$0xf]  ;;  %v9717_v37 = vld [vmem:[%s14044_s27 + $0x38] sm:$0xf] }
 0x80c   : > { %v3177_v8 = vmul.f32 %v11993_v17, %v3172_v62  ;;  %v9706_v17 = vor.u32 %v11501_v22, %v9703_v24  ;;  %v11526_v52 = vld [vmem:[%s14044_s27 + $0xec] sm:$0xf0]  ;;  %v9783_v62 = vld [vmem:[%s14044_s27 + $0xf8] sm:$0xf0]  ;;  %v11565_v24 = vld [vmem:[%s14049_s2 + $0x28] sm:$0xff] }
 0x80d   : > { %v11503_v38 = vld [vmem:[%s14044_s27 + $0x3c] sm:$0xf]  ;;  %v11590_v22 = vld [vmem:[%s14049_s2 + $0xf0] sm:$0xff]  ;;  %v11589_v26 = vld [vmem:[%s14049_s2 + $0xe8] sm:$0xff] }
 0x80e   : > { %v12884_v12 = vadd.f32 %v11994_v29, %v3177_v8  ;;  %3991 = vmatpush.bf16.msrb.mxu0 %v9822_v1  ;;  %4006 = vmatpush.bf16.msrb.mxu1 %v9826_v2  ;;  %v11550_v29 = vld [vmem:[%s14044_s27 + $0x1b4] sm:$0xf]  ;;  %v9774_v1 = vor.u32 %v11526_v52, %v9773_v51  ;;  %v9778_v2 = vor.u32 %v11518_v55, %v9775_v56  ;;  %v11511_v8 = vld [vmem:[%s14044_s27 + $0x74] sm:$0xf0]  ;;  %v11564_v27 = vld [vmem:[%s14049_s2 + $0x20] sm:$0xff]  ;;  %s14057_s27 = sld [smem:[#allocation48_spill]] }
 0x80f   : > { %4021 = vmatpush.bf16.msra.mxu3 %v9830_v4  ;;  %4036 = vmatpush.bf16.msra.mxu2 %v9834_v5  ;;  %v9906_v49 = vor.u32 %v11550_v29, %v9903_v0  ;;  %v9782_v4 = vor.u32 %v11527_v59, %v9781_v58  ;;  %v9786_v5 = vor.u32 %v11519_v60, %v9783_v62  ;;  %v11588_v29 = vld [vmem:[%s14049_s2 + $0xe0] sm:$0xff]  ;;  %v11563_v0 = vld [vmem:[%s14049_s2 + $0x18] sm:$0xff]  ;;  %v11598_v52 = vld [vmem:[%s14049_s2 + $0x130] sm:$0xff] }
 0x810   : > { %9916 = vmatmul.msk.f32.gmra.mxu0 %vm2466_vm1, %v12884_v12  ;;  %9918 = vmatmul.msk.f32.gmra.mxu1 %vm2466_vm1, %v12884_v12  ;;  %v9722_v15 = vor.u32 %v11503_v38, %v9719_v9  ;;  %v11568_v23 = vld [vmem:[%s14049_s2 + $0x40] sm:$0xff]  ;;  %v11599_v35 = vld [vmem:[%s14049_s2 + $0x138] sm:$0xff]  ;;  %v11622_v55 = vld [vmem:[%s14049_s2 + $0x1f0] sm:$0xff] }
 0x811   : > { %9920 = vmatmul.msk.f32.gmra.mxu3 %vm2466_vm1, %v12884_v12  ;;  %9922 = vmatmul.msk.f32.gmra.mxu2 %vm2466_vm1, %v12884_v12  ;;  %v11607_v45 = vld [vmem:[%s14049_s2 + $0x178] sm:$0xff]  ;;  %v11576_v46 = vld [vmem:[%s14049_s2 + $0x80] sm:$0xff]  ;;  %v11597_v56 = vld [vmem:[%s14049_s2 + $0x128] sm:$0xff] }
 0x812   : > { %3992 = vmatpush.bf16.msrb.mxu0 %v9758_v13  ;;  %4007 = vmatpush.bf16.msrb.mxu1 %v9762_v14  ;;  %v9714_v13 = vor.u32 %v11502_v6, %v9711_v7  ;;  %v9718_v14 = vor.u32 %v11511_v8, %v9717_v37  ;;  %v11623_v51 = vld [vmem:[%s14049_s2 + $0x1f8] sm:$0xff]  ;;  %v11605_v58 = vld [vmem:[%s14049_s2 + $0x168] sm:$0xff]  ;;  %v11596_v62 = vld [vmem:[%s14049_s2 + $0x120] sm:$0xff] }
 0x813   : > { %4022 = vmatpush.bf16.msra.mxu3 %v9766_v10  ;;  %4037 = vmatpush.bf16.msra.mxu2 %v9770_v16  ;;  %v11575_v10 = vld [vmem:[%s14049_s2 + $0x78] sm:$0xff]  ;;  %v11613_v59 = vld [vmem:[%s14049_s2 + $0x1a8] sm:$0xff]  ;;  %v11594_v7 = vld [vmem:[%s14049_s2 + $0x110] sm:$0xff] }
 0x814   : > { %v11583_v16 = vld [vmem:[%s14049_s2 + $0xb8] sm:$0xff]  ;;  %v11621_v60 = vld [vmem:[%s14049_s2 + $0x1e8] sm:$0xff]  ;;  %v11602_v37 = vld [vmem:[%s14049_s2 + $0x150] sm:$0xff]  ;;  %p10459_p8 = scmp.ne.s32.totalorder %s14057_s27, 1 }
 0x815   : > { %v11619_v6 = vld [vmem:[%s14049_s2 + $0x1d8] sm:$0xff]  ;;  %v11593_v8 = vld [vmem:[%s14049_s2 + $0x108] sm:$0xff]  ;;  %v11610_v9 = vld [vmem:[%s14049_s2 + $0x190] sm:$0xff]  ;;  %s14058_s16 = sld [smem:[#allocation23_spill]] (!%p10459_p8) }
 0x816   : > { %3993 = vmatpush.bf16.msrb.mxu0 %v9694_v25  ;;  %4008 = vmatpush.bf16.msrb.mxu1 %v9698_v63  ;;  %v11573_v25 = vld [vmem:[%s14049_s2 + $0x68] sm:$0xff]  ;;  %s14059_s29 = sld [smem:[#allocation24_spill]] (!%p10459_p8) }
 0x817   : > { %4023 = vmatpush.bf16.msra.mxu3 %v9702_v28  ;;  %4038 = vmatpush.bf16.msra.mxu2 %v9706_v17  ;;  %v11581_v63 = vld [vmem:[%s14049_s2 + $0xa8] sm:$0xff]  ;;  %v11572_v28 = vld [vmem:[%s14049_s2 + $0x60] sm:$0xff] }
 0x818   : > { %9923 = vmatmul.msk.f32.vlgmr.msra.gmra.mxu0 %vm2466_vm1, %v12857_v44  ;;  %9925 = vmatmul.msk.f32.vlgmr.msra.gmra.mxu1 %vm2466_vm1, %v12857_v44  ;;  %v11580_v17 = vld [vmem:[%s14049_s2 + $0xa0] sm:$0xff]  ;;  %v11601_v38 = vld [vmem:[%s14049_s2 + $0x148] sm:$0xff] }
 0x819   : > { %9927 = vmatmul.msk.f32.vlgmr.msrb.gmra.mxu3 %vm2466_vm1, %v12857_v44  ;;  %9929 = vmatmul.msk.f32.vlgmr.msrb.gmra.mxu2 %vm2466_vm1, %v12857_v44 }
 0x81a   : > { %4050 = vmatpush.bf16.msra.mxu0 %v9902_v48  ;;  %4065 = vmatpush.bf16.msra.mxu1 %v9906_v49  ;;  %v11570_v48 = vld [vmem:[%s14049_s2 + $0x50] sm:$0xff] }
 0x81b   : > { %4080 = vmatpush.bf16.msrb.mxu3 %v9910_v40  ;;  %4095 = vmatpush.bf16.msrb.mxu2 %v9914_v41  ;;  %v11578_v49 = vld [vmem:[%s14049_s2 + $0x90] sm:$0xff]  ;;  %v11569_v40 = vld [vmem:[%s14049_s2 + $0x48] sm:$0xff] }
 0x81c   : > { %v11577_v41 = vld [vmem:[%s14049_s2 + $0x88] sm:$0xff] }
 0x81e   : > { %4051 = vmatpush.bf16.msra.mxu0 %v9838_v47  ;;  %4066 = vmatpush.bf16.msra.mxu1 %v9842_v50  ;;  %v11584_v47 = vld [vmem:[%s14049_s2 + $0xc0] sm:$0xff]  ;;  %v11615_v50 = vld [vmem:[%s14049_s2 + $0x1b8] sm:$0xff] }
 0x81f   : > { %4081 = vmatpush.bf16.msrb.mxu3 %v9846_v53  ;;  %4096 = vmatpush.bf16.msrb.mxu2 %v9850_v54  ;;  %v11606_v53 = vld [vmem:[%s14049_s2 + $0x170] sm:$0xff] }
 0x820   : > { %9924 = vmatmul.msk.f32.gmra.mxu0 %vm2466_vm1, %v12884_v12  ;;  %9926 = vmatmul.msk.f32.gmra.mxu1 %vm2466_vm1, %v12884_v12  ;;  %v11614_v54 = vld [vmem:[%s14049_s2 + $0x1b0] sm:$0xff] }
 0x821   : > { %9928 = vmatmul.msk.f32.gmra.mxu3 %vm2466_vm1, %v12884_v12  ;;  %9930 = vmatmul.msk.f32.gmra.mxu2 %vm2466_vm1, %v12884_v12 }
 0x822   : > { %4052 = vmatpush.bf16.msra.mxu0 %v9774_v1  ;;  %4067 = vmatpush.bf16.msra.mxu1 %v9778_v2  ;;  %v11604_v1 = vld [vmem:[%s14049_s2 + $0x160] sm:$0xff] }
 0x823   : > { %4082 = vmatpush.bf16.msrb.mxu3 %v9782_v4  ;;  %4097 = vmatpush.bf16.msrb.mxu2 %v9786_v5  ;;  %v11612_v2 = vld [vmem:[%s14049_s2 + $0x1a0] sm:$0xff]  ;;  %v11603_v4 = vld [vmem:[%s14049_s2 + $0x158] sm:$0xff] }
 0x824   : > { %v11611_v5 = vld [vmem:[%s14049_s2 + $0x198] sm:$0xff] }
 0x826   : > { %4053 = vmatpush.bf16.msra.mxu0 %v9710_v11  ;;  %4068 = vmatpush.bf16.msra.mxu1 %v9714_v13  ;;  %v11618_v11 = vld [vmem:[%s14049_s2 + $0x1d0] sm:$0xff]  ;;  %v11592_v13 = vld [vmem:[%s14049_s2 + $0x100] sm:$0xff] }
 0x827   : > { %4083 = vmatpush.bf16.msrb.mxu3 %v9718_v14  ;;  %4098 = vmatpush.bf16.msrb.mxu2 %v9722_v15  ;;  %v11600_v14 = vld [vmem:[%s14049_s2 + $0x140] sm:$0xff]  ;;  %v11609_v15 = vld [vmem:[%s14049_s2 + $0x188] sm:$0xff] }
 0x828   : > { %9931 = vmatmul.msk.f32.vlgmr.msrb.gmra.mxu0 %vm2466_vm1, %v12857_v44  ;;  %9933 = vmatmul.msk.f32.vlgmr.msrb.gmra.mxu1 %vm2466_vm1, %v12857_v44 }
 0x829   : > { %9935 = vmatmul.msk.f32.vlgmr.msra.gmra.mxu3 %vm2466_vm1, %v12857_v44  ;;  %9937 = vmatmul.msk.f32.vlgmr.msra.gmra.mxu2 %vm2466_vm1, %v12857_v44 }
 0x82a   : > { %4909 = vmatpush.bf16.msrb.mxu0 %v11567_v57  ;;  %4924 = vmatpush.bf16.msrb.mxu1 %v11575_v10  ;;  %v11617_v57 = vld [vmem:[%s14049_s2 + $0x1c8] sm:$0xff]  ;;  %v11608_v10 = vld [vmem:[%s14049_s2 + $0x180] sm:$0xff] }
 0x82b   : > { %4939 = vmatpush.bf16.msra.mxu3 %v11583_v16  ;;  %4954 = vmatpush.bf16.msra.mxu2 %v11591_v18  ;;  %v11616_v16 = vld [vmem:[%s14049_s2 + $0x1c0] sm:$0xff] }
 0x82c   : > { %v13047_v18 = vld [vmem:[%s14050_s7] sm:$0xff] }
 0x82e   : > { %4910 = vmatpush.bf16.msrb.mxu0 %v11566_v19  ;;  %4925 = vmatpush.bf16.msrb.mxu1 %v11574_v20  ;;  %v3508_v19 = vperm.slane %v13047_v18, 0  ;;  %v3509_v20 = vperm.slane %v13047_v18, 1 }
 0x82f   : > { %4940 = vmatpush.bf16.msra.mxu3 %v11582_v21  ;;  %4955 = vmatpush.bf16.msra.mxu2 %v11590_v22 }
 0x830   : > { %9932 = vmatmul.msk.f32.gmra.mxu0 %vm2466_vm1, %v12884_v12  ;;  %9934 = vmatmul.msk.f32.gmra.mxu1 %vm2466_vm1, %v12884_v12 }
 0x831   : > { %9936 = vmatmul.msk.f32.gmra.mxu3 %vm2466_vm1, %v12884_v12  ;;  %9938 = vmatmul.msk.f32.gmra.mxu2 %vm2466_vm1, %v12884_v12 }
 0x832   : > { %4911 = vmatpush.bf16.msrb.mxu0 %v11565_v24  ;;  %4926 = vmatpush.bf16.msrb.mxu1 %v11573_v25 }
 0x833   : > { %4941 = vmatpush.bf16.msra.mxu3 %v11581_v63  ;;  %4956 = vmatpush.bf16.msra.mxu2 %v11589_v26  ;;  %v11631_v63 = vld [vmem:[%s14049_s2 + $0x238] sm:$0xff] }
 0x834   : > { %v11639_v26 = vld [vmem:[%s14049_s2 + $0x278] sm:$0xff] }
 0x836   : > { %4912 = vmatpush.bf16.msrb.mxu0 %v11564_v27  ;;  %4927 = vmatpush.bf16.msrb.mxu1 %v11572_v28 }
 0x837   : > { %4942 = vmatpush.bf16.msra.mxu3 %v11580_v17  ;;  %4957 = vmatpush.bf16.msra.mxu2 %v11588_v29  ;;  %v3510_v17 = vperm.slane %v13047_v18, 2  ;;  %v3511_v29 = vperm.slane %v13047_v18, 3 }
 0x838   : > { %9939 = vmatmul.msk.f32.vlgmr.msra.gmra.mxu0 %vm2466_vm1, %v12857_v44  ;;  %9941 = vmatmul.msk.f32.vlgmr.msra.gmra.mxu1 %vm2466_vm1, %v12857_v44 }
 0x839   : > { %9943 = vmatmul.msk.f32.vlgmr.msrb.gmra.mxu3 %vm2466_vm1, %v12857_v44  ;;  %9945 = vmatmul.msk.f32.vlgmr.msrb.gmra.mxu2 %vm2466_vm1, %v12857_v44 }
 0x83a   : > { %4913 = vmatpush.bf16.msrb.mxu0 %v11563_v0  ;;  %4928 = vmatpush.bf16.msrb.mxu1 %v11571_v32  ;;  %v11630_v0 = vld [vmem:[%s14049_s2 + $0x230] sm:$0xff] }
 0x83b   : > { %4943 = vmatpush.bf16.msra.mxu3 %v11579_v31  ;;  %4958 = vmatpush.bf16.msra.mxu2 %v11587_v33  ;;  %v11638_v32 = vld [vmem:[%s14049_s2 + $0x270] sm:$0xff] }
 0x83e   : > { %4914 = vmatpush.bf16.msrb.mxu0 %v11562_v36  ;;  %4929 = vmatpush.bf16.msrb.mxu1 %v11570_v48 }
 0x83f   : > { %4944 = vmatpush.bf16.msra.mxu3 %v11578_v49  ;;  %4959 = vmatpush.bf16.msra.mxu2 %v11586_v61 }
 0x840   : > { %9940 = vmatmul.msk.f32.gmra.mxu0 %vm2466_vm1, %v12884_v12  ;;  %9942 = vmatmul.msk.f32.gmra.mxu1 %vm2466_vm1, %v12884_v12 }
 0x841   : > { %9944 = vmatmul.msk.f32.gmra.mxu3 %vm2466_vm1, %v12884_v12  ;;  %9946 = vmatmul.msk.f32.gmra.mxu2 %vm2466_vm1, %v12884_v12 }
 0x842   : > { %4915 = vmatpush.bf16.msrb.mxu0 %v11561_v39  ;;  %4930 = vmatpush.bf16.msrb.mxu1 %v11569_v40 }
 0x843   : > { %4945 = vmatpush.bf16.msra.mxu3 %v11577_v41  ;;  %4960 = vmatpush.bf16.msra.mxu2 %v11585_v42  ;;  %v11647_v41 = vld [vmem:[%s14049_s2 + $0x2b8] sm:$0xff] }
 0x844   : > { %v11655_v42 = vld [vmem:[%s14049_s2 + $0x2f8] sm:$0xff] }
 0x846   : > { %4916 = vmatpush.bf16.msrb.mxu0 %v11560_v43  ;;  %4931 = vmatpush.bf16.msrb.mxu1 %v11568_v23 }
 0x847   : > { %4946 = vmatpush.bf16.msra.mxu3 %v11576_v46  ;;  %4961 = vmatpush.bf16.msra.mxu2 %v11584_v47  ;;  %v11629_v46 = vld [vmem:[%s14049_s2 + $0x228] sm:$0xff] }
 0x848   : > { %v11637_v47 = vld [vmem:[%s14049_s2 + $0x268] sm:$0xff] }
 0x84a   : > { %4969 = vmatpush.bf16.msra.mxu0 %v11599_v35  ;;  %4984 = vmatpush.bf16.msra.mxu1 %v11607_v45 }
 0x84b   : > { %4999 = vmatpush.bf16.msrb.mxu3 %v11615_v50  ;;  %5014 = vmatpush.bf16.msrb.mxu2 %v11623_v51  ;;  %v11646_v50 = vld [vmem:[%s14049_s2 + $0x2b0] sm:$0xff] }
 0x84c   : > { %v11654_v51 = vld [vmem:[%s14049_s2 + $0x2f0] sm:$0xff] }
 0x84e   : > { %4970 = vmatpush.bf16.msra.mxu0 %v11598_v52  ;;  %4985 = vmatpush.bf16.msra.mxu1 %v11606_v53  ;;  %v3512_v52 = vperm.slane %v13047_v18, 4  ;;  %v3513_v53 = vperm.slane %v13047_v18, 5 }
 0x84f   : > { %5000 = vmatpush.bf16.msrb.mxu3 %v11614_v54  ;;  %5015 = vmatpush.bf16.msrb.mxu2 %v11622_v55 }
 0x852   : > { %4971 = vmatpush.bf16.msra.mxu0 %v11597_v56  ;;  %4986 = vmatpush.bf16.msra.mxu1 %v11605_v58  ;;  %v11628_v56 = vld [vmem:[%s14049_s2 + $0x220] sm:$0xff] }
 0x853   : > { %5001 = vmatpush.bf16.msrb.mxu3 %v11613_v59  ;;  %5016 = vmatpush.bf16.msrb.mxu2 %v11621_v60  ;;  %v11636_v58 = vld [vmem:[%s14049_s2 + $0x260] sm:$0xff] }
 0x856   : > { %4972 = vmatpush.bf16.msra.mxu0 %v11596_v62  ;;  %4987 = vmatpush.bf16.msra.mxu1 %v11604_v1 }
 0x857   : > { %5002 = vmatpush.bf16.msrb.mxu3 %v11612_v2  ;;  %5017 = vmatpush.bf16.msrb.mxu2 %v11620_v34 }
 0x85a   : > { %4973 = vmatpush.bf16.msra.mxu0 %v11595_v3  ;;  %4988 = vmatpush.bf16.msra.mxu1 %v11603_v4  ;;  %v11645_v3 = vld [vmem:[%s14049_s2 + $0x2a8] sm:$0xff] }
 0x85b   : > { %5003 = vmatpush.bf16.msrb.mxu3 %v11611_v5  ;;  %5018 = vmatpush.bf16.msrb.mxu2 %v11619_v6  ;;  %v11653_v4 = vld [vmem:[%s14049_s2 + $0x2e8] sm:$0xff] }
 0x85e   : > { %4974 = vmatpush.bf16.msra.mxu0 %v11594_v7  ;;  %4989 = vmatpush.bf16.msra.mxu1 %v11602_v37 }
 0x85f   : > { %5004 = vmatpush.bf16.msrb.mxu3 %v11610_v9  ;;  %5019 = vmatpush.bf16.msrb.mxu2 %v11618_v11  ;;  %v3514_v9 = vperm.slane %v13047_v18, 6  ;;  %v3515_v11 = vperm.slane %v13047_v18, 7 }
 0x862   : > { %4975 = vmatpush.bf16.msra.mxu0 %v11593_v8  ;;  %4990 = vmatpush.bf16.msra.mxu1 %v11601_v38  ;;  %v11627_v8 = vld [vmem:[%s14049_s2 + $0x218] sm:$0xff] }
 0x863   : > { %5005 = vmatpush.bf16.msrb.mxu3 %v11609_v15  ;;  %5020 = vmatpush.bf16.msrb.mxu2 %v11617_v57  ;;  %v11635_v38 = vld [vmem:[%s14049_s2 + $0x258] sm:$0xff] }
 0x866   : > { %4976 = vmatpush.bf16.msra.mxu0 %v11592_v13  ;;  %4991 = vmatpush.bf16.msra.mxu1 %v11600_v14  ;;  %v11644_v13 = vld [vmem:[%s14049_s2 + $0x2a0] sm:$0xff] }
 0x867   : > { %5006 = vmatpush.bf16.msrb.mxu3 %v11608_v10  ;;  %5021 = vmatpush.bf16.msrb.mxu2 %v11616_v16  ;;  %v11652_v14 = vld [vmem:[%s14049_s2 + $0x2e0] sm:$0xff]  ;;  %v11626_v10 = vld [vmem:[%s14049_s2 + $0x210] sm:$0xff] }
 0x868   : > { %v11634_v16 = vld [vmem:[%s14049_s2 + $0x250] sm:$0xff] }
 0x885   : > { %v3875_v21 = vpop.f32.mrf.mxu0  ;;  %v3890_v22 = vpop.f32.mrf.mxu1 }
 0x886   : > { %v3876_v24 = vadd.f32 %v3875_v21, %v3508_v19  ;;  %v3891_v25 = vadd.f32 %v3890_v22, %v3509_v20 }
 0x888   : > { %v4106_v27 = vmax.f32 %v3876_v24, 0.0  ;;  %v4107_v28 = vmax.f32 %v3891_v25, 0.0  ;;  %v11643_v25 = vld [vmem:[%s14049_s2 + $0x298] sm:$0xff] }
 0x88a   : > { %4917 = vmatmul.f32.vlgmr.msrb.gmra.mxu0 %v4106_v27  ;;  %4932 = vmatmul.f32.vlgmr.msrb.gmra.mxu1 %v4107_v28  ;;  %v13080_v28 = vld [vmem:[%s14050_s7 + $0x8] sm:$0xff] }
 0x88b   : > { %5029 = vmatpush.bf16.msrb.mxu0 %v11631_v63  ;;  %5044 = vmatpush.bf16.msrb.mxu1 %v11639_v26  ;;  %v11651_v63 = vld [vmem:[%s14049_s2 + $0x2d8] sm:$0xff] }
 0x88c   : > { %v3905_v31 = vpop.f32.mrf.mxu3  ;;  %v3920_v33 = vpop.f32.mrf.mxu2 }
 0x88d   : > { %v3906_v36 = vadd.f32 %v3905_v31, %v3510_v17  ;;  %v3921_v48 = vadd.f32 %v3920_v33, %v3511_v29  ;;  %v3878_v49 = vpop.f32.mrf.mxu0  ;;  %v3893_v61 = vpop.f32.mrf.mxu1  ;;  %v11642_v31 = vld [vmem:[%s14049_s2 + $0x290] sm:$0xff] }
 0x88e   : > { %v3879_v39 = vadd.f32 %v3878_v49, %v3508_v19  ;;  %v3894_v40 = vadd.f32 %v3893_v61, %v3509_v20  ;;  %v11650_v33 = vld [vmem:[%s14049_s2 + $0x2d0] sm:$0xff] }
 0x88f   : > { %v4108_v43 = vmax.f32 %v3906_v36, 0.0  ;;  %v4109_v23 = vmax.f32 %v3921_v48, 0.0  ;;  %5030 = vmatpush.bf16.msrb.mxu0 %v11630_v0  ;;  %5045 = vmatpush.bf16.msrb.mxu1 %v11638_v32  ;;  %v11625_v0 = vld [vmem:[%s14049_s2 + $0x208] sm:$0xff]  ;;  %v3516_v36 = vperm.slane %v13080_v28, 0  ;;  %v3517_v48 = vperm.slane %v13080_v28, 1 }
 0x890   : > { %v4122_v35 = vmax.f32 %v3879_v39, 0.0  ;;  %v4123_v45 = vmax.f32 %v3894_v40, 0.0  ;;  %v11633_v32 = vld [vmem:[%s14049_s2 + $0x248] sm:$0xff]  ;;  %v11624_v39 = vld [vmem:[%s14049_s2 + $0x200] sm:$0xff] }
 0x891   : > { %4947 = vmatmul.f32.vlgmr.msra.gmra.mxu3 %v4108_v43  ;;  %4962 = vmatmul.f32.vlgmr.msra.gmra.mxu2 %v4109_v23  ;;  %v11632_v40 = vld [vmem:[%s14049_s2 + $0x240] sm:$0xff] }
 0x892   : > { %5059 = vmatpush.bf16.msra.mxu3 %v11647_v41  ;;  %5074 = vmatpush.bf16.msra.mxu2 %v11655_v42 }
 0x893   : > { %4920 = vmatmul.f32.gmra.mxu0 %v4122_v35  ;;  %4935 = vmatmul.f32.gmra.mxu1 %v4123_v45  ;;  %v11663_v35 = vld [vmem:[%s14049_s2 + $0x338] sm:$0xff] }
 0x894   : > { %5031 = vmatpush.bf16.msrb.mxu0 %v11629_v46  ;;  %5046 = vmatpush.bf16.msrb.mxu1 %v11637_v47  ;;  %v3908_v54 = vpop.f32.mrf.mxu3  ;;  %v3923_v55 = vpop.f32.mrf.mxu2  ;;  %v11671_v45 = vld [vmem:[%s14049_s2 + $0x378] sm:$0xff] }
 0x895   : > { %v3909_v59 = vadd.f32 %v3908_v54, %v3510_v17  ;;  %v3924_v60 = vadd.f32 %v3923_v55, %v3511_v29  ;;  %v3935_v62 = vpop.f32.mrf.mxu0  ;;  %v3950_v1 = vpop.f32.mrf.mxu1 }
 0x896   : > { %5060 = vmatpush.bf16.msra.mxu3 %v11646_v50  ;;  %5075 = vmatpush.bf16.msra.mxu2 %v11654_v51  ;;  %v3936_v2 = vadd.f32 %v3935_v62, %v3512_v52  ;;  %v3951_v34 = vadd.f32 %v3950_v1, %v3513_v53  ;;  %v11640_v62 = vld [vmem:[%s14049_s2 + $0x280] sm:$0xff] }
 0x897   : > { %v4124_v5 = vmax.f32 %v3909_v59, 0.0  ;;  %v4125_v6 = vmax.f32 %v3924_v60, 0.0  ;;  %v11662_v59 = vld [vmem:[%s14049_s2 + $0x330] sm:$0xff]  ;;  %v11648_v1 = vld [vmem:[%s14049_s2 + $0x2c0] sm:$0xff] }
 0x898   : > { %v4110_v7 = vmax.f32 %v3936_v2, 0.0  ;;  %v4111_v37 = vmax.f32 %v3951_v34, 0.0  ;;  %5032 = vmatpush.bf16.msrb.mxu0 %v11628_v56  ;;  %5047 = vmatpush.bf16.msrb.mxu1 %v11636_v58  ;;  %v3518_v56 = vperm.slane %v13080_v28, 2  ;;  %v3519_v58 = vperm.slane %v13080_v28, 3  ;;  %v11670_v60 = vld [vmem:[%s14049_s2 + $0x370] sm:$0xff] }
 0x899   : > { %4950 = vmatmul.f32.gmra.mxu3 %v4124_v5  ;;  %4965 = vmatmul.f32.gmra.mxu2 %v4125_v6 }
 0x89a   : > { %5061 = vmatpush.bf16.msra.mxu3 %v11645_v3  ;;  %5076 = vmatpush.bf16.msra.mxu2 %v11653_v4  ;;  %v11679_v3 = vld [vmem:[%s14049_s2 + $0x3b8] sm:$0xff] }
 0x89b   : > { %4977 = vmatmul.f32.vlgmr.msra.gmra.mxu0 %v4110_v7  ;;  %4992 = vmatmul.f32.vlgmr.msra.gmra.mxu1 %v4111_v37  ;;  %v11687_v4 = vld [vmem:[%s14049_s2 + $0x3f8] sm:$0xff] }
 0x89c   : > { %5033 = vmatpush.bf16.msrb.mxu0 %v11627_v8  ;;  %5048 = vmatpush.bf16.msrb.mxu1 %v11635_v38  ;;  %v3965_v15 = vpop.f32.mrf.mxu3  ;;  %v3980_v57 = vpop.f32.mrf.mxu2  ;;  %v11661_v8 = vld [vmem:[%s14049_s2 + $0x328] sm:$0xff] }
 0x89d   : > { %v3966_v19 = vadd.f32 %v3965_v15, %v3514_v9  ;;  %v3981_v20 = vadd.f32 %v3980_v57, %v3515_v11  ;;  %v3938_v21 = vpop.f32.mrf.mxu0  ;;  %v3953_v18 = vpop.f32.mrf.mxu1  ;;  %v11669_v38 = vld [vmem:[%s14049_s2 + $0x368] sm:$0xff]  ;;  %v11678_v15 = vld [vmem:[%s14049_s2 + $0x3b0] sm:$0xff] }
 0x89e   : > { %5062 = vmatpush.bf16.msra.mxu3 %v11644_v13  ;;  %5077 = vmatpush.bf16.msra.mxu2 %v11652_v14  ;;  %v3939_v22 = vadd.f32 %v3938_v21, %v3512_v52  ;;  %v3954_v24 = vadd.f32 %v3953_v18, %v3513_v53  ;;  %v11641_v52 = vld [vmem:[%s14049_s2 + $0x288] sm:$0xff]  ;;  %v11686_v57 = vld [vmem:[%s14049_s2 + $0x3f0] sm:$0xff] }
 0x89f   : > { %v4112_v26 = vmax.f32 %v3966_v19, 0.0  ;;  %v4113_v27 = vmax.f32 %v3981_v20, 0.0  ;;  %v11649_v53 = vld [vmem:[%s14049_s2 + $0x2c8] sm:$0xff]  ;;  %v11660_v19 = vld [vmem:[%s14049_s2 + $0x320] sm:$0xff] }
 0x8a0   : > { %v4126_v17 = vmax.f32 %v3939_v22, 0.0  ;;  %v4127_v29 = vmax.f32 %v3954_v24, 0.0  ;;  %5034 = vmatpush.bf16.msrb.mxu0 %v11626_v10  ;;  %5049 = vmatpush.bf16.msrb.mxu1 %v11634_v16  ;;  %v11668_v20 = vld [vmem:[%s14049_s2 + $0x360] sm:$0xff]  ;;  %v11677_v22 = vld [vmem:[%s14049_s2 + $0x3a8] sm:$0xff] }
 0x8a1   : > { %5007 = vmatmul.f32.vlgmr.msrb.gmra.mxu3 %v4112_v26  ;;  %5022 = vmatmul.f32.vlgmr.msrb.gmra.mxu2 %v4113_v27  ;;  %v11685_v24 = vld [vmem:[%s14049_s2 + $0x3e8] sm:$0xff]  ;;  %v11659_v26 = vld [vmem:[%s14049_s2 + $0x318] sm:$0xff] }
 0x8a2   : > { %5063 = vmatpush.bf16.msra.mxu3 %v11643_v25  ;;  %5078 = vmatpush.bf16.msra.mxu2 %v11651_v63  ;;  %v11667_v27 = vld [vmem:[%s14049_s2 + $0x358] sm:$0xff] }
 0x8a3   : > { %4980 = vmatmul.f32.gmra.mxu0 %v4126_v17  ;;  %4995 = vmatmul.f32.gmra.mxu1 %v4127_v29 }
 0x8a4   : > { %5035 = vmatpush.bf16.msrb.mxu0 %v11625_v0  ;;  %5050 = vmatpush.bf16.msrb.mxu1 %v11633_v32  ;;  %v3968_v49 = vpop.f32.mrf.mxu3  ;;  %v3983_v61 = vpop.f32.mrf.mxu2  ;;  %v11676_v0 = vld [vmem:[%s14049_s2 + $0x3a0] sm:$0xff] }
 0x8a5   : > { %v3969_v41 = vadd.f32 %v3968_v49, %v3514_v9  ;;  %v3984_v42 = vadd.f32 %v3983_v61, %v3515_v11  ;;  %v3995_v43 = vpop.f32.mrf.mxu0  ;;  %v4010_v23 = vpop.f32.mrf.mxu1  ;;  %v11684_v32 = vld [vmem:[%s14049_s2 + $0x3e0] sm:$0xff] }
 0x8a6   : > { %5064 = vmatpush.bf16.msra.mxu3 %v11642_v31  ;;  %5079 = vmatpush.bf16.msra.mxu2 %v11650_v33  ;;  %v3996_v46 = vadd.f32 %v3995_v43, %v3516_v36  ;;  %v4011_v47 = vadd.f32 %v4010_v23, %v3517_v48  ;;  %v11658_v31 = vld [vmem:[%s14049_s2 + $0x310] sm:$0xff] }
 0x8a7   : > { %v4128_v50 = vmax.f32 %v3969_v41, 0.0  ;;  %v4129_v51 = vmax.f32 %v3984_v42, 0.0  ;;  %v11666_v33 = vld [vmem:[%s14049_s2 + $0x350] sm:$0xff]  ;;  %v3520_v41 = vperm.slane %v13080_v28, 4  ;;  %v3521_v42 = vperm.slane %v13080_v28, 5 }
 0x8a8   : > { %v4114_v54 = vmax.f32 %v3996_v46, 0.0  ;;  %v4115_v55 = vmax.f32 %v4011_v47, 0.0  ;;  %5036 = vmatpush.bf16.msrb.mxu0 %v11624_v39  ;;  %5051 = vmatpush.bf16.msrb.mxu1 %v11632_v40  ;;  %v11657_v39 = vld [vmem:[%s14049_s2 + $0x308] sm:$0xff]  ;;  %v11674_v43 = vld [vmem:[%s14049_s2 + $0x390] sm:$0xff] }
 0x8a9   : > { %5010 = vmatmul.f32.gmra.mxu3 %v4128_v50  ;;  %5025 = vmatmul.f32.gmra.mxu2 %v4129_v51  ;;  %v11665_v40 = vld [vmem:[%s14049_s2 + $0x348] sm:$0xff]  ;;  %v11682_v23 = vld [vmem:[%s14049_s2 + $0x3d0] sm:$0xff] }
 0x8aa   : > { %5065 = vmatpush.bf16.msra.mxu3 %v11641_v52  ;;  %5080 = vmatpush.bf16.msra.mxu2 %v11649_v53  ;;  %v11673_v52 = vld [vmem:[%s14049_s2 + $0x388] sm:$0xff] }
 0x8ab   : > { %5037 = vmatmul.f32.vlgmr.msrb.gmra.mxu0 %v4114_v54  ;;  %5052 = vmatmul.f32.vlgmr.msrb.gmra.mxu1 %v4115_v55  ;;  %v11681_v53 = vld [vmem:[%s14049_s2 + $0x3c8] sm:$0xff]  ;;  %v3522_v54 = vperm.slane %v13080_v28, 6  ;;  %v3523_v55 = vperm.slane %v13080_v28, 7 }
 0x8ac   : > { %5089 = vmatpush.bf16.msra.mxu0 %v11663_v35  ;;  %5104 = vmatpush.bf16.msra.mxu1 %v11671_v45  ;;  %v4025_v2 = vpop.f32.mrf.mxu3  ;;  %v4040_v34 = vpop.f32.mrf.mxu2  ;;  %v11656_v35 = vld [vmem:[%s14049_s2 + $0x300] sm:$0xff] }
 0x8ad   : > { %v4026_v5 = vadd.f32 %v4025_v2, %v3518_v56  ;;  %v4041_v6 = vadd.f32 %v4040_v34, %v3519_v58  ;;  %v3998_v7 = vpop.f32.mrf.mxu0  ;;  %v4013_v37 = vpop.f32.mrf.mxu1  ;;  %v11664_v45 = vld [vmem:[%s14049_s2 + $0x340] sm:$0xff] }
 0x8ae   : > { %v3999_v9 = vadd.f32 %v3998_v7, %v3516_v36  ;;  %v4014_v11 = vadd.f32 %v4013_v37, %v3517_v48  ;;  %5066 = vmatpush.bf16.msra.mxu3 %v11640_v62  ;;  %5081 = vmatpush.bf16.msra.mxu2 %v11648_v1  ;;  %v11675_v36 = vld [vmem:[%s14049_s2 + $0x398] sm:$0xff]  ;;  %v11672_v62 = vld [vmem:[%s14049_s2 + $0x380] sm:$0xff] }
 0x8af   : > { %v4116_v13 = vmax.f32 %v4026_v5, 0.0  ;;  %v4117_v14 = vmax.f32 %v4041_v6, 0.0  ;;  %v11683_v48 = vld [vmem:[%s14049_s2 + $0x3d8] sm:$0xff]  ;;  %v11680_v1 = vld [vmem:[%s14049_s2 + $0x3c0] sm:$0xff] }
 0x8b0   : > { %5090 = vmatpush.bf16.msra.mxu0 %v11662_v59  ;;  %5105 = vmatpush.bf16.msra.mxu1 %v11670_v60  ;;  %v4130_v10 = vmax.f32 %v3999_v9, 0.0  ;;  %v4131_v16 = vmax.f32 %v4014_v11, 0.0 }
 0x8b1   : > { %5067 = vmatmul.f32.vlgmr.msra.gmra.mxu3 %v4116_v13  ;;  %5082 = vmatmul.f32.vlgmr.msra.gmra.mxu2 %v4117_v14 }
 0x8b2   : > { %5119 = vmatpush.bf16.msrb.mxu3 %v11679_v3  ;;  %5134 = vmatpush.bf16.msrb.mxu2 %v11687_v4 }
 0x8b3   : > { %5040 = vmatmul.f32.gmra.mxu0 %v4130_v10  ;;  %5055 = vmatmul.f32.gmra.mxu1 %v4131_v16 }
 0x8b4   : > { %5091 = vmatpush.bf16.msra.mxu0 %v11661_v8  ;;  %5106 = vmatpush.bf16.msra.mxu1 %v11669_v38  ;;  %v4028_v21 = vpop.f32.mrf.mxu3  ;;  %v4043_v18 = vpop.f32.mrf.mxu2 }
 0x8b5   : > { %v4029_v25 = vadd.f32 %v4028_v21, %v3518_v56  ;;  %v4044_v63 = vadd.f32 %v4043_v18, %v3519_v58  ;;  %v4055_v49 = vpop.f32.mrf.mxu0  ;;  %v4070_v61 = vpop.f32.mrf.mxu1 }
 0x8b6   : > { %5120 = vmatpush.bf16.msrb.mxu3 %v11678_v15  ;;  %5135 = vmatpush.bf16.msrb.mxu2 %v11686_v57  ;;  %v4056_v46 = vadd.f32 %v4055_v49, %v3520_v41  ;;  %v4071_v47 = vadd.f32 %v4070_v61, %v3521_v42 }
 0x8b7   : > { %v4132_v17 = vmax.f32 %v4029_v25, 0.0  ;;  %v4133_v29 = vmax.f32 %v4044_v63, 0.0 }
 0x8b8   : > { %5092 = vmatpush.bf16.msra.mxu0 %v11660_v19  ;;  %5107 = vmatpush.bf16.msra.mxu1 %v11668_v20  ;;  %v4118_v56 = vmax.f32 %v4056_v46, 0.0  ;;  %v4119_v58 = vmax.f32 %v4071_v47, 0.0  ;;  %v11995_v20 = vld [vmem:[%s14052_s10] ss:$0 sm:$0xff] }
 0x8b9   : > { %5070 = vmatmul.f32.gmra.mxu3 %v4132_v17  ;;  %5085 = vmatmul.f32.gmra.mxu2 %v4133_v29 }
 0x8ba   : > { %5121 = vmatpush.bf16.msrb.mxu3 %v11677_v22  ;;  %5136 = vmatpush.bf16.msrb.mxu2 %v11685_v24 }
 0x8bc   : > { %5093 = vmatpush.bf16.msra.mxu0 %v11659_v26  ;;  %5108 = vmatpush.bf16.msra.mxu1 %v11667_v27  ;;  %v4085_v50 = vpop.f32.mrf.mxu3  ;;  %v4100_v51 = vpop.f32.mrf.mxu2 }
 0x8bd   : > { %v4058_v59 = vpop.f32.mrf.mxu0  ;;  %v4073_v60 = vpop.f32.mrf.mxu1  ;;  %v4086_v2 = vadd.f32 %v4085_v50, %v3522_v54  ;;  %v4101_v34 = vadd.f32 %v4100_v51, %v3523_v55 }
 0x8be   : > { %5122 = vmatpush.bf16.msrb.mxu3 %v11676_v0  ;;  %5137 = vmatpush.bf16.msrb.mxu2 %v11684_v32  ;;  %v4059_v3 = vadd.f32 %v4058_v59, %v3520_v41  ;;  %v4074_v4 = vadd.f32 %v4073_v60, %v3521_v42 }
 0x8bf   : > { %v4120_v5 = vmax.f32 %v4086_v2, 0.0  ;;  %v4121_v28 = vmax.f32 %v4101_v34, 0.0 }
 0x8c0   : > { %5094 = vmatpush.bf16.msra.mxu0 %v11658_v31  ;;  %5109 = vmatpush.bf16.msra.mxu1 %v11666_v33  ;;  %v4134_v37 = vmax.f32 %v4059_v3, 0.0  ;;  %v4135_v8 = vmax.f32 %v4074_v4, 0.0 }
 0x8c2   : > { %5123 = vmatpush.bf16.msrb.mxu3 %v11675_v36  ;;  %5138 = vmatpush.bf16.msrb.mxu2 %v11683_v48 }
 0x8c4   : > { %5095 = vmatpush.bf16.msra.mxu0 %v11657_v39  ;;  %5110 = vmatpush.bf16.msra.mxu1 %v11665_v40  ;;  %v4088_v6 = vpop.f32.mrf.mxu3  ;;  %v4103_v7 = vpop.f32.mrf.mxu2 }
 0x8c5   : > { %v4089_v38 = vadd.f32 %v4088_v6, %v3522_v54  ;;  %v4104_v9 = vadd.f32 %v4103_v7, %v3523_v55 }
 0x8c6   : > { %5124 = vmatpush.bf16.msrb.mxu3 %v11674_v43  ;;  %5139 = vmatpush.bf16.msrb.mxu2 %v11682_v23 }
 0x8c7   : > { %v4136_v11 = vmax.f32 %v4089_v38, 0.0  ;;  %v4137_v13 = vmax.f32 %v4104_v9, 0.0 }
 0x8c8   : > { %5096 = vmatpush.bf16.msra.mxu0 %v11656_v35  ;;  %5111 = vmatpush.bf16.msra.mxu1 %v11664_v45 }
 0x8ca   : > { %5125 = vmatpush.bf16.msrb.mxu3 %v11673_v52  ;;  %5140 = vmatpush.bf16.msrb.mxu2 %v11681_v53 }
 0x8cb   : > { %5097 = vmatmul.f32.vlgmr.msra.gmra.mxu0 %v4118_v56  ;;  %5112 = vmatmul.f32.vlgmr.msra.gmra.mxu1 %v4119_v58 }
 0x8ce   : > { %5126 = vmatpush.bf16.msrb.mxu3 %v11672_v62  ;;  %5141 = vmatpush.bf16.msrb.mxu2 %v11680_v1 }
 0x8d1   : > { %5127 = vmatmul.f32.vlgmr.msrb.gmra.mxu3 %v4120_v5  ;;  %5142 = vmatmul.f32.vlgmr.msrb.gmra.mxu2 %v4121_v28 }
 0x8d3   : > { %5100 = vmatmul.f32.gmra.mxu0 %v4134_v37  ;;  %5115 = vmatmul.f32.gmra.mxu1 %v4135_v8 }
 0x8d9   : > { %5130 = vmatmul.f32.gmra.mxu3 %v4136_v11  ;;  %5145 = vmatmul.f32.gmra.mxu2 %v4137_v13 }
 0x907   : > { %v4918_v14 = vpop.f32.mrf.mxu0  ;;  %v4933_v15 = vpop.f32.mrf.mxu1 }
 0x908   : > { %v4919_v24 = vadd.f32 %v11995_v20, %v4918_v14 }
 0x90a   : > { %v4934_v63 = vadd.f32 %v4933_v15, %v4919_v24 }
 0x910   : > { %v4921_v57 = vpop.f32.mrf.mxu0  ;;  %v4936_v19 = vpop.f32.mrf.mxu1 }
 0x911   : > { %v4922_v0 = vadd.f32 %v11995_v20, %v4921_v57 }
 0x913   : > { %v4937_v31 = vadd.f32 %v4936_v19, %v4922_v0 }
 0x914   : > { %v4948_v10 = vpop.f32.mrf.mxu3  ;;  %v4963_v16 = vpop.f32.mrf.mxu2 }
 0x915   : > { %v4949_v26 = vadd.f32 %v4948_v10, %v4934_v63 }
 0x917   : > { %v4964_v32 = vadd.f32 %v4963_v16, %v4949_v26 }
 0x918   : > { %v4978_v21 = vpop.f32.mrf.mxu0  ;;  %v4993_v25 = vpop.f32.mrf.mxu1 }
 0x919   : > { %v4979_v36 = vadd.f32 %v4978_v21, %v4964_v32 }
 0x91b   : > { %v4994_v40 = vadd.f32 %v4993_v25, %v4979_v36 }
 0x91c   : > { %v4951_v18 = vpop.f32.mrf.mxu3  ;;  %v4966_v22 = vpop.f32.mrf.mxu2 }
 0x91d   : > { %v4952_v48 = vadd.f32 %v4951_v18, %v4937_v31 }
 0x91f   : > { %v4967_v41 = vadd.f32 %v4966_v22, %v4952_v48 }
 0x920   : > { %v4981_v27 = vpop.f32.mrf.mxu0  ;;  %v4996_v33 = vpop.f32.mrf.mxu1 }
 0x921   : > { %v4982_v43 = vadd.f32 %v4981_v27, %v4967_v41 }
 0x923   : > { %v4997_v45 = vadd.f32 %v4996_v33, %v4982_v43 }
 0x924   : > { %v5008_v17 = vpop.f32.mrf.mxu3  ;;  %v5023_v29 = vpop.f32.mrf.mxu2 }
 0x925   : > { %v5009_v42 = vadd.f32 %v5008_v17, %v4994_v40 }
 0x927   : > { %v5024_v35 = vadd.f32 %v5023_v29, %v5009_v42 }
 0x928   : > { %v5038_v49 = vpop.f32.mrf.mxu0  ;;  %v5053_v23 = vpop.f32.mrf.mxu1 }
 0x929   : > { %v5039_v51 = vadd.f32 %v5038_v49, %v5024_v35 }
 0x92b   : > { %v5054_v53 = vadd.f32 %v5053_v23, %v5039_v51  ;;  %v11996_v23 = vld [vmem:[%s14055_s11] ss:$0 sm:$0xff] }
 0x92c   : > { %v5011_v61 = vpop.f32.mrf.mxu3  ;;  %v5026_v39 = vpop.f32.mrf.mxu2 }
 0x92d   : > { %v5012_v52 = vadd.f32 %v5011_v61, %v4997_v45 }
 0x92f   : > { %v5027_v54 = vadd.f32 %v5026_v39, %v5012_v52 }
 0x930   : > { %v5041_v46 = vpop.f32.mrf.mxu0  ;;  %v5056_v55 = vpop.f32.mrf.mxu1 }
 0x931   : > { %v5042_v59 = vadd.f32 %v5041_v46, %v5027_v54  ;;  %v11997_v46 = vld [vmem:[%s14056_s20] ss:$0 sm:$0xff] }
 0x933   : > { %v5057_v2 = vadd.f32 %v5056_v55, %v5042_v59 }
 0x934   : > { %v5068_v47 = vpop.f32.mrf.mxu3  ;;  %v5083_v50 = vpop.f32.mrf.mxu2 }
 0x935   : > { %v5069_v56 = vadd.f32 %v5068_v47, %v5054_v53 }
 0x937   : > { %v5084_v1 = vadd.f32 %v5083_v50, %v5069_v56 }
 0x93c   : > { %v5071_v60 = vpop.f32.mrf.mxu3  ;;  %v5086_v62 = vpop.f32.mrf.mxu2 }
 0x93d   : > { %v5072_v4 = vadd.f32 %v5071_v60, %v5057_v2 }
 0x93f   : > { %v5087_v37 = vadd.f32 %v5086_v62, %v5072_v4 }
 0x948   : > { %v5098_v58 = vpop.f32.mrf.mxu0  ;;  %v5113_v3 = vpop.f32.mrf.mxu1 }
 0x949   : > { %v5099_v34 = vadd.f32 %v5098_v58, %v5084_v1 }
 0x94b   : > { %v5114_v5 = vadd.f32 %v5113_v3, %v5099_v34 }
 0x950   : > { %v5101_v28 = vpop.f32.mrf.mxu0  ;;  %v5116_v13 = vpop.f32.mrf.mxu1 }
 0x951   : > { %v5102_v38 = vadd.f32 %v5101_v28, %v5087_v37 }
 0x953   : > { %v5117_v14 = vadd.f32 %v5116_v13, %v5102_v38 }
 0x954   : > { %v5128_v6 = vpop.f32.mrf.mxu3  ;;  %v5143_v7 = vpop.f32.mrf.mxu2 }
 0x955   : > { %v5129_v8 = vadd.f32 %v5128_v6, %v5114_v5 }
 0x957   : > { %v5144_v9 = vadd.f32 %v5143_v7, %v5129_v8 }
 0x959   : > { %v5151_v11 = vadd.f32 %v5144_v9, %v12857_v44 }
 0x95b   : > { %v5153_v15 = vsel %vm2466_vm1, %v5151_v11, 0.0 }
 0x95c   : > { %v5131_v57 = vpop.f32.mrf.mxu3  ;;  %5154 = vadd.xlane.f32.xlu1 %v5153_v15  ;;  %v5146_v16 = vpop.f32.mrf.mxu2 }
 0x95d   : > { %v5132_v10 = vadd.f32 %v5131_v57, %v5117_v14 }
 0x95f   : > { %v5147_v19 = vadd.f32 %v5146_v16, %v5132_v10 }
 0x961   : > { %v5152_v20 = vadd.f32 %v5147_v19, %v12884_v12 }
 0x963   : > { %v5156_v21 = vsel %vm2466_vm1, %v5152_v20, 0.0 }
 0x964   : > { %5157 = vadd.xlane.f32.xlu0 %v5156_v21 }
 0x9cf   : > { %v5155_v18 = vpop.xlane.xlu1 %5154 }
 0x9d0   : > { %v5159_v22 = vmul.f32 %v5155_v18, %v12762_v30 }
 0x9d2   : > { %v5161_v24 = vsub.f32 %v5151_v11, %v5159_v22 }
 0x9d4   : > { %v5163_v25 = vmul.f32 %v5161_v24, %v5161_v24 }
 0x9d6   : > { %v5165_v44 = vsel %vm2466_vm1, %v5163_v25, 0.0 }
 0x9d7   : > { %5166 = vadd.xlane.f32.xlu2 %v5165_v44  ;;  %v5158_v63 = vpop.xlane.xlu0 %5157 }
 0x9d8   : > { %v5160_v26 = vmul.f32 %v5158_v63, %v12762_v30 }
 0x9da   : > { %v5162_v27 = vsub.f32 %v5152_v20, %v5160_v26 }
 0x9dc   : > { %v5164_v17 = vmul.f32 %v5162_v27, %v5162_v27 }
 0x9de   : > { %v5168_v29 = vsel %vm2466_vm1, %v5164_v17, 0.0 }
 0x9df   : > { %5169 = vadd.xlane.f32.xlu1 %v5168_v29 }
 0xa4a   : > { %v5167_v12 = vpop.xlane.xlu2 %5166 }
 0xa4b   : > { %v5171_v0 = vmul.f32 %v5167_v12, %v12762_v30 }
 0xa4d   : > { %v5173_v32 = vadd.f32 1e-05, %v5171_v0 }
 0xa4f   : > { %12036 = vrsqrt.f32 %v5173_v32  ;;  %vm5181_vm14 = vweird.f32 %v5173_v32 }
 0xa52   : > { %v5170_v31 = vpop.xlane.xlu1 %5169 }
 0xa53   : > { %v5172_v33 = vmul.f32 %v5170_v31, %v12762_v30 }
 0xa55   : > { %v12037_v36 = vpop.eup %12036  ;;  %v5174_v48 = vadd.f32 1e-05, %v5172_v33 }
 0xa56   : > { %v5176_v49 = vmul.f32 %v12037_v36, %v5173_v32  ;;  %vm5182_vm13 = vweird.f32 %v12037_v36 }
 0xa57   : > { %12038 = vrsqrt.f32 %v5174_v48  ;;  %vm5183_vm15 = vmor %vm5181_vm14, %vm5182_vm13  ;;  %vm5191_vm3 = vweird.f32 %v5174_v48 }
 0xa58   : > { %v5177_v61 = vmul.f32 %v12037_v36, %v5176_v49 }
 0xa5a   : > { %v5178_v39 = vmul.f32 0.5, %v5177_v61 }
 0xa5c   : > { %v5179_v40 = vsub.f32 1.5, %v5178_v39 }
 0xa5d   : > { %v12039_v41 = vpop.eup %12038 }
 0xa5e   : > { %v5180_v42 = vmul.f32 %v12037_v36, %v5179_v40  ;;  %v5186_v43 = vmul.f32 %v12039_v41, %v5174_v48  ;;  %vm5192_vm0 = vweird.f32 %v12039_v41 }
 0xa5f   : > { %vm5193_vm4 = vmor %vm5191_vm3, %vm5192_vm0 }
 0xa60   : > { %v5184_v35 = vsel %vm5183_vm15, %v12037_v36, %v5180_v42  ;;  %v5187_v45 = vmul.f32 %v12039_v41, %v5186_v43 }
 0xa61   : > { %v5195_v47 = vmul.f32 %v5184_v35, %v5161_v24 }
 0xa62   : > { %v5188_v50 = vmul.f32 0.5, %v5187_v45 }
 0xa63   : > { %v5200_v51 = vmul.f32 %v11996_v23, %v5195_v47 }
 0xa64   : > { %v5189_v52 = vsub.f32 1.5, %v5188_v50 }
 0xa65   : > { %v5205_v53 = vadd.f32 %v11997_v46, %v5200_v51 }
 0xa66   : > { %v5190_v54 = vmul.f32 %v12039_v41, %v5189_v52 }
 0xa67   : > { %5207 = vst.msk [vmem:[#allocation2] sm:$0xff] %vm2466_vm1, %v5205_v53 }
 0xa68   : > { %v5194_v55 = vsel %vm5193_vm4, %v12039_v41, %v5190_v54 }
 0xa69   : > { %v5196_v56 = vmul.f32 %v5194_v55, %v5162_v27 }
 0xa6b   : > { %v5201_v58 = vmul.f32 %v11996_v23, %v5196_v56  ;;  %5212 = sbr.rel (%p10459_p8) target bundleno = 2949 (0xb85), region = 204 }
 0xa6d   : > { %v5206_v59 = vadd.f32 %v11997_v46, %v5201_v58 }
 0xa6f   : > { %5208 = vst.msk [vmem:[#allocation2 + $0x8] sm:$0xff] %vm2466_vm1, %v5206_v59 }
 0xa70   : > { %v5215_v60 = vsel %vm2466_vm1, %v5205_v53, 0.0  ;;  %v5218_v62 = vsel %vm2466_vm1, %v5206_v59, 0.0  ;;  %v12040_v22 = vld [vmem:[%s14058_s16] ss:$0 sm:$0xff] }
 0xa71   : > { %5216 = vadd.xlane.f32.xlu0 %v5215_v60  ;;  %v12041_v63 = vld [vmem:[%s14059_s29] ss:$0 sm:$0xff] }
 0xa79   : > { %5219 = vadd.xlane.f32.xlu0 %v5218_v62 }
 0xae4   : > { %v5217_v1 = vpop.xlane.xlu0 %5216 }
 0xae5   : > { %v5221_v2 = vmul.f32 %v5217_v1, %v12762_v30 }
 0xae7   : > { %v5223_v34 = vsub.f32 %v5205_v53, %v5221_v2 }
 0xae9   : > { %v5225_v3 = vmul.f32 %v5223_v34, %v5223_v34 }
 0xaeb   : > { %v5227_v4 = vsel %vm2466_vm1, %v5225_v3, 0.0 }
 0xaec   : > { %5228 = vadd.xlane.f32.xlu1 %v5227_v4  ;;  %v5220_v5 = vpop.xlane.xlu0 %5219 }
 0xaed   : > { %v5222_v28 = vmul.f32 %v5220_v5, %v12762_v30 }
 0xaef   : > { %v5224_v6 = vsub.f32 %v5206_v59, %v5222_v28 }
 0xaf1   : > { %v5226_v7 = vmul.f32 %v5224_v6, %v5224_v6 }
 0xaf3   : > { %v5230_v37 = vsel %vm2466_vm1, %v5226_v7, 0.0 }
 0xaf4   : > { %5231 = vadd.xlane.f32.xlu1 %v5230_v37 }
 0xb5f   : > { %v5229_v8 = vpop.xlane.xlu1 %5228 }
 0xb60   : > { %v5233_v38 = vmul.f32 %v5229_v8, %v12762_v30 }
 0xb62   : > { %v5235_v9 = vadd.f32 1e-05, %v5233_v38 }
 0xb64   : > { %12042 = vrsqrt.f32 %v5235_v9  ;;  %vm5243_vm6 = vweird.f32 %v5235_v9 }
 0xb67   : > { %v5232_v11 = vpop.xlane.xlu1 %5231 }
 0xb68   : > { %v5234_v13 = vmul.f32 %v5232_v11, %v12762_v30 }
 0xb6a   : > { %v12043_v14 = vpop.eup %12042  ;;  %v5236_v15 = vadd.f32 1e-05, %v5234_v13 }
 0xb6b   : > { %v5238_v57 = vmul.f32 %v12043_v14, %v5235_v9  ;;  %vm5244_vm5 = vweird.f32 %v12043_v14 }
 0xb6c   : > { %12044 = vrsqrt.f32 %v5236_v15  ;;  %vm5245_vm2 = vmor %vm5243_vm6, %vm5244_vm5  ;;  %vm5253_vm8 = vweird.f32 %v5236_v15 }
 0xb6d   : > { %v5239_v10 = vmul.f32 %v12043_v14, %v5238_v57 }
 0xb6f   : > { %v5240_v16 = vmul.f32 0.5, %v5239_v10 }
 0xb71   : > { %v5241_v19 = vsub.f32 1.5, %v5240_v16 }
 0xb72   : > { %v12045_v20 = vpop.eup %12044 }
 0xb73   : > { %v5242_v21 = vmul.f32 %v12043_v14, %v5241_v19  ;;  %v5248_v18 = vmul.f32 %v12045_v20, %v5236_v15  ;;  %vm5254_vm7 = vweird.f32 %v12045_v20 }
 0xb74   : > { %vm5255_vm9 = vmor %vm5253_vm8, %vm5254_vm7 }
 0xb75   : > { %v5246_v24 = vsel %vm5245_vm2, %v12043_v14, %v5242_v21  ;;  %v5249_v25 = vmul.f32 %v12045_v20, %v5248_v18 }
 0xb76   : > { %v5257_v44 = vmul.f32 %v5246_v24, %v5223_v34 }
 0xb77   : > { %v5250_v30 = vmul.f32 0.5, %v5249_v25 }
 0xb78   : > { %v5262_v26 = vmul.f32 %v12040_v22, %v5257_v44 }
 0xb79   : > { %v5251_v27 = vsub.f32 1.5, %v5250_v30 }
 0xb7a   : > { %v5267_v17 = vadd.f32 %v12041_v63, %v5262_v26 }
 0xb7b   : > { %v5252_v29 = vmul.f32 %v12045_v20, %v5251_v27 }
 0xb7c   : > { %5269 = vst.msk [vmem:[#allocation2] sm:$0xff] %vm2466_vm1, %v5267_v17 }
 0xb7d   : > { %v5256_v12 = vsel %vm5255_vm9, %v12045_v20, %v5252_v29 }
 0xb7e   : > { %v5258_v0 = vmul.f32 %v5256_v12, %v5224_v6 }
 0xb80   : > { %v5263_v32 = vmul.f32 %v12040_v22, %v5258_v0 }
 0xb82   : > { %v5268_v31 = vadd.f32 %v12041_v63, %v5263_v32 }
 0xb84   : > { %5270 = vst.msk [vmem:[#allocation2 + $0x8] sm:$0xff] %vm2466_vm1, %v5268_v31 }
 0xb85 PF: > { %s14060_s4 = sld [smem:[#allocation48_spill]] }
 0xb8b   : > { %p10460_p9 = scmp.lt.s32.totalorder %s14060_s4, 2 }
 0xb8c   : > { %s14061_s22 = sld [smem:[#allocation48_spill]] (!%p10460_p9) }
 0xb8d   : > { %5274 = sbr.rel (%p10460_p9) target bundleno = 7808 (0x1e80), region = 208 }
 0xb92   : > { %p10461_p10 = scmp.ne.s32.totalorder %s14061_s22, 2 }
 0xb93   : > { %s14062_s26 = sld [smem:[#allocation5_spill]] (!%p10461_p10) }
 0xb94   : > { %5278 = sbr.rel (%p10461_p10) target bundleno = 3099 (0xc1b), region = 212  ;;  %s14063_s2 = sld [smem:[#allocation6_spill]] (!%p10461_p10) }
 0xb95   : > { %s14064_s7 = sld [smem:[#allocation7_spill]] (!%p10461_p10) }
 0xb99   : > { %v5279_v33 = vld [vmem:[%s14062_s26] sm:$0xff]  ;;  %v12239_v36 = vmov 0   ;;  %v5280_v48 = vld [vmem:[%s14062_s26 + $0x8] sm:$0xff]  ;;  %vm5303_vm1 = vcmask 523264  }
 0xb9a   : > { %12046 = vset.pattern.permute.xlu0 %v12239_v36  ;;  %v12047_v49 = vld [vmem:[%s14063_s2] ss:$0 sm:$0xff] }
 0xb9b   : > { %5284 = vperm.xlu0 %12046, %v5279_v33   ;;  %v12048_v61 = vld [vmem:[%s14064_s7] ss:$0 sm:$0xff] }
 0xba3   : > { %5289 = vperm.xlu0 %12046, %v5280_v48  }
 0xc0d   : > { %v5285_v39 = vpop.permute.xlu0 %5284 }
 0xc0e   : > { %v5295_v40 = vmul.f32 %v12047_v49, %v5285_v39 }
 0xc10   : > { %v5301_v41 = vadd.f32 %v12048_v61, %v5295_v40 }
 0xc12   : > { %5304 = vst.msk [vmem:[#allocation3] sm:$0xff] %vm5303_vm1, %v5301_v41 }
 0xc15   : > { %v5290_v42 = vpop.permute.xlu0 %5289 }
 0xc16   : > { %v5296_v43 = vmul.f32 %v12047_v49, %v5290_v42 }
 0xc18   : > { %v5302_v23 = vadd.f32 %v12048_v61, %v5296_v43 }
 0xc1a   : > { %5305 = vst.msk [vmem:[#allocation3 + $0x8] sm:$0xff] %vm5303_vm1, %v5302_v23 }
 0xc1b PF: > { %s14065_s28 = sld [smem:[#allocation56_spill]]  ;;  %v13186_v28 = vld [vmem:[#allocation3] sm:$0xff]  ;;  %vm5362_vm10 = vcmask 523264   ;;  %s12240_s19 = smov 64   ;;  %vm5417_vm11 = vcmask 130048  }
 0xc1c   : > { %s14066_s10 = sld [smem:[#allocation57_spill]]  ;;  %s12241_s24 = smov 48  }
 0xc1d   : > { %s12242_s11 = smov 112   ;;  %s14067_s20 = sld [smem:[#allocation9_spill]] }
 0xc1e   : > { %s14068_s27 = sld [smem:[#allocation58_spill]]  ;;  %s12243_s16 = smov 16  }
 0xc1f   : > { %s12244_s29 = smov 96   ;;  %s12245_s4 = smov 32  }
 0xc20   : > { %s12246_s22 = smov 80   ;;  %s14069_s2 = sld [smem:[#allocation28_spill]] }
 0xc21   : > { %v10488_v35 = vld [vmem:[%s14065_s28 + $0x30] sm:$0xf]  ;;  %v11695_v45 = vld [vmem:[%s14065_s28 + $0x34] sm:$0xf0]  ;;  %v10480_v46 = vld [vmem:[%s14065_s28 + $0x20] sm:$0xf] }
 0xc22   : > { %v10489_v47 = vor.u32 %v11695_v45, %v10488_v35  ;;  %v11693_v50 = vld [vmem:[%s14065_s28 + $0x24] sm:$0xf0]  ;;  %v10472_v52 = vld [vmem:[%s14065_s28 + $0x10] sm:$0xf]  ;;  %v11694_v53 = vld [vmem:[%s14065_s28 + $0x34] sm:$0xf] }
 0xc23   : > { %v10481_v51 = vor.u32 %v11693_v50, %v10480_v46  ;;  %v10490_v54 = vld [vmem:[%s14065_s28 + $0x38] sm:$0xf0]  ;;  %v11691_v55 = vld [vmem:[%s14065_s28 + $0x14] sm:$0xf0]  ;;  %v11692_v58 = vld [vmem:[%s14065_s28 + $0x24] sm:$0xf] }
 0xc24   : > { %5373 = vmatpush.bf16.msra.mxu0 %v10489_v47  ;;  %v10493_v56 = vor.u32 %v11694_v53, %v10490_v54  ;;  %v10482_v59 = vld [vmem:[%s14065_s28 + $0x28] sm:$0xf0]  ;;  %v11690_v60 = vld [vmem:[%s14065_s28 + $0x14] sm:$0xf]  ;;  %v10464_v62 = vld [vmem:[%s14065_s28] sm:$0xf]  ;;  %v10473_v3 = vor.u32 %v11691_v55, %v10472_v52 }
 0xc25   : > { %v11689_v1 = vld [vmem:[%s14065_s28 + $0x4] sm:$0xf0]  ;;  %v10485_v2 = vor.u32 %v11692_v58, %v10482_v59  ;;  %v10474_v34 = vld [vmem:[%s14065_s28 + $0x18] sm:$0xf0]  ;;  %v11688_v7 = vld [vmem:[%s14065_s28 + $0x4] sm:$0xf] }
 0xc26   : > { %5388 = vmatpush.bf16.msra.mxu1 %v10493_v56  ;;  %v10477_v4 = vor.u32 %v11690_v60, %v10474_v34  ;;  %v10465_v5 = vor.u32 %v11689_v1, %v10464_v62  ;;  %v13190_v6 = vld [vmem:[#allocation3 + $0x8] sm:$0xff]  ;;  %v10466_v37 = vld [vmem:[%s14065_s28 + $0x8] sm:$0xf0]  ;;  %v5316_v9 = vld [vmem:[%s14066_s10] sm:$0x3]  ;;  %s14070_s7 = scalar_lea.vmem %s14069_s2, %s14094_s0  ;;  %s14071_s28 = sld [smem:[#allocation60_spill]] }
 0xc27   : > { %v10469_v8 = vor.u32 %v11688_v7, %v10466_v37  ;;  %v5318_v11 = vperm.slane %v5316_v9, 0  ;;  %v5319_v16 = vperm.slane %v5316_v9, 1  ;;  %v13233_v44 = vld [vmem:[%s14067_s20] sm:$0xff]  ;;  %v13238_v27 = vld [vmem:[%s14067_s20 + $0x8] sm:$0xff]  ;;  %s14072_s10 = sld [smem:[#allocation59_spill]] }
 0xc28   : > { %5374 = vmatpush.bf16.msra.mxu0 %v10481_v51  ;;  %v11696_v51 = vld [vmem:[%s14068_s27] sm:$0xff] }
 0xc2a   : > { %5389 = vmatpush.bf16.msra.mxu1 %v10485_v2 }
 0xc2c   : > { %5375 = vmatpush.bf16.msra.mxu0 %v10473_v3 }
 0xc2e   : > { %5390 = vmatpush.bf16.msra.mxu1 %v10477_v4 }
 0xc30   : > { %5376 = vmatpush.bf16.msra.mxu0 %v10465_v5 }
 0xc32   : > { %5391 = vmatpush.bf16.msra.mxu1 %v10469_v8 }
 0xc33   : > { %10494 = vmatmul.msk.f32.vlgmr.msra.gmra.mxu0 %vm5362_vm10, %v13186_v28 }
 0xc35   : > { %10496 = vmatmul.msk.f32.vlgmr.msra.gmra.mxu1 %vm5362_vm10, %v13186_v28 }
 0xc36   : > { %5698 = vmatpush.bf16.msrb.mxu1 %v11696_v51 }
 0xc3b   : > { %10495 = vmatmul.msk.f32.gmra.mxu0 %vm5362_vm10, %v13190_v6 }
 0xc3d   : > { %10497 = vmatmul.msk.f32.gmra.mxu1 %vm5362_vm10, %v13190_v6 }
 0xcb0   : > { %v5378_v38 = vpop.f32.mrf.mxu0 }
 0xcb1   : > { %v13205_v15 = vadd.f32 %v5378_v38, %v5318_v11 }
 0xcb2   : > { %v5393_v10 = vpop.f32.mrf.mxu1 }
 0xcb3   : > { %v13216_v20 = vadd.f32 %v5393_v10, %v5319_v16  ;;  %v13225_v24 = vmul.f32 0.25, %v13205_v15 }
 0xcb8   : > { %v5381_v13 = vpop.f32.mrf.mxu0 }
 0xcb9   : > { %v13201_v14 = vadd.f32 %v5381_v13, %v5318_v11 }
 0xcba   : > { %v5396_v19 = vpop.f32.mrf.mxu1 }
 0xcbb   : > { %5415 = vrot.lane.b32.xlu0 %v13201_v14, %s12240_s19  ;;  %v13212_v57 = vmul.f32 0.25, %v13201_v14  ;;  %v13218_v21 = vadd.f32 %v5396_v19, %v5319_v16 }
 0xcbd   : > { %5519 = vmatpush.msra.mxu3 %v13218_v21 }
 0xcbf   : > { %5520 = vmatpush.msra.mxu3 %v13216_v20 }
 0xcc3   : > { %5413 = vrot.lane.b32.xlu0 %v13205_v15, %s12240_s19 }
 0xccb   : > { %5534 = vrot.lane.b32.xlu0 %v13201_v14, %s12241_s24 }
 0xcd3   : > { %5530 = vrot.lane.b32.xlu0 %v13212_v57, %s12242_s11 }
 0xd2d   : > { %v5416_v18 = vpop.permute.xlu0 %5415 }
 0xd2e   : > { %10498 = vmatpush.xpose.msk.msra.mxu2 %vm5417_vm11, %v5416_v18 }
 0xd35   : > { %v5414_v22 = vpop.permute.xlu0 %5413 }
 0xd36   : > { %10499 = vmatpush.xpose.msk.msra.mxu2 %vm5417_vm11, %v5414_v22  ;;  %v13262_v22 = vpack.i.bf16 %v13216_v20, %v13218_v21 }
 0xd39   : > { %10500 = vmatmul.msk.f32.vlgmr.msra.gmra.mxu2 %vm5417_vm11, %v13225_v24 }
 0xd3d   : > { %v5535_v25 = vpop.permute.xlu0 %5534 }
 0xd3e   : > { %10504 = vmatpush.xpose.msk.msrb.mxu3 %vm5417_vm11, %v5535_v25 }
 0xd41   : > { %10501 = vmatmul.msk.f32.gmra.mxu2 %vm5417_vm11, %v13212_v57 }
 0xd45   : > { %v5531_v8 = vpop.permute.xlu0 %5530 }
 0xdbc   : > { %v5445_v63 = vpop.f32.mrf.mxu2 }
 0xdbd   : > { %v5446_v30 = vadd.f32 %v5445_v63, %v13233_v44 }
 0xdbf   : > { %v5451_v26 = vsel %vm5417_vm11, %v5446_v30, -inf }
 0xdc0   : > { %5452 = vmax.xlane.f32.xlu1 %v5451_v26 }
 0xdc4   : > { %v5448_v17 = vpop.f32.mrf.mxu2 }
 0xdc5   : > { %v5449_v29 = vadd.f32 %v5448_v17, %v13238_v27 }
 0xdc7   : > { %v5454_v12 = vsel %vm5417_vm11, %v5449_v29, -inf }
 0xdc8   : > { %5455 = vmax.xlane.f32.xlu1 %v5454_v12 }
 0xde1   : > { %5532 = vrot.lane.b32.xlu1 %v13205_v15, %s12241_s24 }
 0xe33   : > { %v5453_v0 = vpop.xlane.xlu1 %5452 }
 0xe34   : > { %v5457_v32 = vsub.f32 %v5446_v30, %v5453_v0 }
 0xe36   : > { %v5459_v31 = vmul.f32 1.442695, %v5457_v32 }
 0xe38   : > { %12095 = vpow2.f32 %v5459_v31 }
 0xe3b   : > { %v5456_v33 = vpop.xlane.xlu1 %5455 }
 0xe3c   : > { %v5458_v36 = vsub.f32 %v5449_v29, %v5456_v33 }
 0xe3e   : > { %v12096_v48 = vpop.eup %12095  ;;  %v5461_v49 = vmul.f32 1.442695, %v5458_v36  ;;  %v11697_v36 = vld [vmem:[%s14068_s27 + $0x8] sm:$0xff] }
 0xe3f   : > { %v5463_v61 = vsel %vm5417_vm11, %v12096_v48, 0.0  ;;  %5671 = vmatpush.bf16.msrb.mxu0 %v11697_v36 }
 0xe40   : > { %12097 = vpow2.f32 %v5461_v49  ;;  %5464 = vadd.xlane.f32.xlu2 %v5463_v61 }
 0xe46   : > { %v12098_v39 = vpop.eup %12097 }
 0xe47   : > { %v5466_v40 = vsel %vm5417_vm11, %v12098_v39, 0.0 }
 0xe48   : > { %5467 = vadd.xlane.f32.xlu2 %v5466_v40 }
 0xe53   : > { %v5533_v41 = vpop.permute.xlu1 %5532 }
 0xe54   : > { %10505 = vmatpush.xpose.msk.msrb.mxu3 %vm5417_vm11, %v5533_v41 }
 0xe60   : > { %5528 = vrot.lane.b32.xlu2 %v13225_v24, %s12242_s11 }
 0xeb3   : > { %v5465_v42 = vpop.xlane.xlu2 %5464 }
 0xeb4   : > { %12099 = vrcp.f32 %v5465_v42  ;;  %v5480_v46 = vand.u32 2147483648, %v5465_v42  ;;  %v5478_v50 = vand.u32 2147483647, %v5465_v42  ;;  %vm5474_vm13 = vweird.f32 %v5465_v42 }
 0xeb6   : > { %v5481_v54 = vor.u32 1.1754944e-38, %v5480_v46  ;;  %vm5479_vm15 = vcmp.eq.f32.partialorder %v5478_v50, 8.507059e+37 }
 0xeba   : > { %v12100_v43 = vpop.eup %12099 }
 0xebb   : > { %v5470_v23 = vmul.f32 %v12100_v43, %v5465_v42  ;;  %v5468_v35 = vpop.xlane.xlu2 %5467  ;;  %vm5475_vm12 = vweird.f32 %v12100_v43 }
 0xebc   : > { %12101 = vrcp.f32 %v5468_v35  ;;  %vm5476_vm14 = vmor %vm5474_vm13, %vm5475_vm12  ;;  %v5495_v62 = vand.u32 2147483648, %v5468_v35  ;;  %v5493_v2 = vand.u32 2147483647, %v5468_v35  ;;  %vm5489_vm3 = vweird.f32 %v5468_v35 }
 0xebd   : > { %v5471_v45 = vsub.f32 1.0, %v5470_v23 }
 0xebe   : > { %v5496_v3 = vor.u32 1.1754944e-38, %v5495_v62  ;;  %vm5494_vm5 = vcmp.eq.f32.partialorder %v5493_v2, 8.507059e+37 }
 0xebf   : > { %v5472_v47 = vmul.f32 %v12100_v43, %v5471_v45 }
 0xec1   : > { %v5473_v52 = vadd.f32 %v12100_v43, %v5472_v47 }
 0xec2   : > { %v12102_v53 = vpop.eup %12101 }
 0xec3   : > { %v5485_v55 = vmul.f32 %v12102_v53, %v5468_v35  ;;  %v5477_v56 = vsel %vm5476_vm14, %v12100_v43, %v5473_v52  ;;  %vm5490_vm0 = vweird.f32 %v12102_v53  ;;  %v5529_v37 = vpop.permute.xlu2 %5528 }
 0xec4   : > { %v5482_v58 = vsel %vm5479_vm15, %v5481_v54, %v5477_v56  ;;  %vm5491_vm4 = vmor %vm5489_vm3, %vm5490_vm0 }
 0xec5   : > { %v5486_v59 = vsub.f32 1.0, %v5485_v55  ;;  %v5483_v60 = vmul.f32 %v12096_v48, %v5482_v58 }
 0xec7   : > { %v5487_v1 = vmul.f32 %v12102_v53, %v5486_v59  ;;  %10502 = vmatmul.msk.f32.vlgmr.msra.gmra.mxu3 %vm5417_vm11, %v5483_v60 }
 0xec8   : > { %11904 = vmatpush.bf16.msra.mxu3 %v11697_v36 }
 0xec9   : > { %v5488_v34 = vadd.f32 %v12102_v53, %v5487_v1 }
 0xecb   : > { %v5492_v4 = vsel %vm5491_vm4, %v12102_v53, %v5488_v34 }
 0xecc   : > { %v5497_v5 = vsel %vm5494_vm5, %v5496_v3, %v5492_v4 }
 0xecd   : > { %v5498_v7 = vmul.f32 %v12098_v39, %v5497_v5 }
 0xecf   : > { %10503 = vmatmul.msk.f32.gmra.mxu3 %vm5417_vm11, %v5498_v7 }
 0xed7   : > { %10506 = vmatmul.msk.f32.vlgmr.msrb.gmra.mxu3 %vm5417_vm11, %v5529_v37 }
 0xedf   : > { %10507 = vmatmul.msk.f32.gmra.mxu3 %vm5417_vm11, %v5531_v8 }
 0xf4a   : > { %v5522_v38 = vpop.f32.mrf.mxu3 }
 0xf4b   : > { %10520 = vmatmul.msk.f32.vlgmr.msrb.gmra.mxu1 %vm5417_vm11, %v5522_v38 }
 0xf52   : > { %v5525_v9 = vpop.f32.mrf.mxu3 }
 0xf53   : > { %10521 = vmatmul.msk.f32.gmra.mxu1 %vm5417_vm11, %v5525_v9 }
 0xf5a   : > { %v5561_v11 = vpop.f32.mrf.mxu3 }
 0xf5b   : > { %v5562_v13 = vadd.f32 %v5561_v11, %v13233_v44 }
 0xf5d   : > { %v5567_v10 = vsel %vm5417_vm11, %v5562_v13, -inf }
 0xf5e   : > { %5568 = vmax.xlane.f32.xlu0 %v5567_v10 }
 0xf62   : > { %v5564_v16 = vpop.f32.mrf.mxu3 }
 0xf63   : > { %v5565_v19 = vadd.f32 %v5564_v16, %v13238_v27 }
 0xf65   : > { %v5570_v18 = vsel %vm5417_vm11, %v5565_v19, -inf }
 0xf66   : > { %5571 = vmax.xlane.f32.xlu2 %v5570_v18 }
 0xf7e   : > { %12050 = vrot.lane.b32.xlu2 %v13262_v22, %s12242_s11 }
 0xf86   : > { %5861 = vrot.lane.b32.xlu2 %v13205_v15, %s12243_s16 }
 0xf8e   : > { %5708 = vrot.lane.b32.xlu2 %v13212_v57, %s12244_s29 }
 0xfc8   : > { %v13293_v3 = vpop.f32.mrf.mxu1 }
 0xfd0   : > { %v13297_v7 = vpop.f32.mrf.mxu1 }
 0xfd1   : > { %v5569_v25 = vpop.xlane.xlu0 %5568 }
 0xfd2   : > { %v5573_v63 = vsub.f32 %v5562_v13, %v5569_v25 }
 0xfd4   : > { %v5575_v30 = vmul.f32 1.442695, %v5573_v63 }
 0xfd6   : > { %12103 = vpow2.f32 %v5575_v30 }
 0xfd9   : > { %v5572_v26 = vpop.xlane.xlu2 %5571 }
 0xfda   : > { %v5574_v17 = vsub.f32 %v5565_v19, %v5572_v26 }
 0xfdc   : > { %v12104_v29 = vpop.eup %12103  ;;  %v5577_v20 = vmul.f32 1.442695, %v5574_v17 }
 0xfdd   : > { %v5579_v21 = vsel %vm5417_vm11, %v12104_v29, 0.0 }
 0xfde   : > { %12105 = vpow2.f32 %v5577_v20  ;;  %5580 = vadd.xlane.f32.xlu1 %v5579_v21 }
 0xfe1   : > { %v12051_v12 = vpop.permute.xlu2 %12050 }
 0xfe2   : > { %v12052_v0 = vunpack.i.l.bf16 %v12051_v12  ;;  %v12053_v31 = vunpack.i.h.bf16 %v12051_v12 }
 0xfe4   : > { %v12106_v32 = vpop.eup %12105  ;;  %5643 = vmatpush.msrb.mxu2 %v12052_v0 }
 0xfe5   : > { %v5582_v33 = vsel %vm5417_vm11, %v12106_v32, 0.0 }
 0xfe6   : > { %5644 = vmatpush.msrb.mxu2 %v12053_v31  ;;  %5583 = vadd.xlane.f32.xlu0 %v5582_v33 }
 0xfe9   : > { %v5862_v60 = vpop.permute.xlu2 %5861 }
 0xff1   : > { %v5709_v9 = vpop.permute.xlu2 %5708 }
 0xff7   : > { %5863 = vrot.lane.b32.xlu1 %v13201_v14, %s12243_s16 }
 0xffa   : > { %5712 = vrot.lane.b32.xlu0 %v13201_v14, %s12245_s4 }
 0xfff   : > { %5706 = vrot.lane.b32.xlu1 %v13225_v24, %s12244_s29 }
0x1002   : > { %5710 = vrot.lane.b32.xlu0 %v13205_v15, %s12245_s4 }
0x1007   : > { %5859 = vrot.lane.b32.xlu1 %v13212_v57, %s12246_s22 }
0x100a   : > { %5857 = vrot.lane.b32.xlu0 %v13225_v24, %s12246_s22 }
0x1051   : > { %v5581_v48 = vpop.xlane.xlu1 %5580 }
0x1052   : > { %12107 = vrcp.f32 %v5581_v48  ;;  %v5596_v40 = vand.u32 2147483648, %v5581_v48  ;;  %v5594_v15 = vand.u32 2147483647, %v5581_v48  ;;  %vm5590_vm2 = vweird.f32 %v5581_v48 }
0x1054   : > { %v5597_v43 = vor.u32 1.1754944e-38, %v5596_v40  ;;  %vm5595_vm8 = vcmp.eq.f32.partialorder %v5594_v15, 8.507059e+37 }
0x1058   : > { %v12108_v49 = vpop.eup %12107 }
0x1059   : > { %v5586_v14 = vmul.f32 %v12108_v49, %v5581_v48  ;;  %v5584_v61 = vpop.xlane.xlu0 %5583  ;;  %vm5591_vm6 = vweird.f32 %v12108_v49 }
0x105a   : > { %12109 = vrcp.f32 %v5584_v61  ;;  %vm5592_vm7 = vmor %vm5590_vm2, %vm5591_vm6  ;;  %v5611_v47 = vand.u32 2147483648, %v5584_v61  ;;  %v5609_v51 = vand.u32 2147483647, %v5584_v61  ;;  %vm5605_vm1 = vweird.f32 %v5584_v61 }
0x105b   : > { %v5587_v39 = vsub.f32 1.0, %v5586_v14 }
0x105c   : > { %v5612_v53 = vor.u32 1.1754944e-38, %v5611_v47  ;;  %vm5610_vm13 = vcmp.eq.f32.partialorder %v5609_v51, 8.507059e+37  ;;  %v11698_v47 = vld [vmem:[%s14068_s27 + $0x10] sm:$0xff] }
0x105d   : > { %v5588_v41 = vmul.f32 %v12108_v49, %v5587_v39  ;;  %5847 = vmatpush.bf16.msra.mxu0 %v11698_v47 }
0x105f   : > { %v5589_v42 = vadd.f32 %v12108_v49, %v5588_v41 }
0x1060   : > { %v12110_v57 = vpop.eup %12109 }
0x1061   : > { %v5601_v24 = vmul.f32 %v12110_v57, %v5584_v61  ;;  %v5593_v23 = vsel %vm5592_vm7, %v12108_v49, %v5589_v42  ;;  %vm5606_vm9 = vweird.f32 %v12110_v57 }
0x1062   : > { %v5598_v35 = vsel %vm5595_vm8, %v5597_v43, %v5593_v23  ;;  %vm5607_vm12 = vmor %vm5605_vm1, %vm5606_vm9 }
0x1063   : > { %v5602_v45 = vsub.f32 1.0, %v5601_v24  ;;  %v5599_v46 = vmul.f32 %v12104_v29, %v5598_v35 }
0x1065   : > { %v5603_v50 = vmul.f32 %v12110_v57, %v5602_v45  ;;  %10508 = vmatmul.msk.f32.vlgmr.msrb.gmra.mxu2 %vm5417_vm11, %v5599_v46 }
0x1067   : > { %v5604_v52 = vadd.f32 %v12110_v57, %v5603_v50 }
0x1069   : > { %v5864_v54 = vpop.permute.xlu1 %5863  ;;  %v5608_v55 = vsel %vm5607_vm12, %v12110_v57, %v5604_v52 }
0x106a   : > { %10534 = vmatpush.xpose.msk.msra.mxu1 %vm5417_vm11, %v5864_v54  ;;  %v5613_v56 = vsel %vm5610_vm13, %v5612_v53, %v5608_v55 }
0x106b   : > { %v5614_v58 = vmul.f32 %v12106_v32, %v5613_v56 }
0x106c   : > { %v5713_v59 = vpop.permute.xlu0 %5712 }
0x106d   : > { %10509 = vmatmul.msk.f32.gmra.mxu2 %vm5417_vm11, %v5614_v58  ;;  %10522 = vmatpush.xpose.msk.msrb.mxu3 %vm5417_vm11, %v5713_v59 }
0x106e   : > { %10535 = vmatpush.xpose.msk.msra.mxu1 %vm5417_vm11, %v5862_v60 }
0x1071   : > { %v5707_v1 = vpop.permute.xlu1 %5706 }
0x1074   : > { %v5711_v62 = vpop.permute.xlu0 %5710 }
0x1075   : > { %10523 = vmatpush.xpose.msk.msrb.mxu3 %vm5417_vm11, %v5711_v62 }
0x1079   : > { %v5860_v34 = vpop.permute.xlu1 %5859 }
0x107c   : > { %v5858_v2 = vpop.permute.xlu0 %5857 }
0x107d   : > { %10536 = vmatmul.msk.f32.vlgmr.msra.gmra.mxu1 %vm5417_vm11, %v5858_v2 }
0x1085   : > { %10537 = vmatmul.msk.f32.gmra.mxu1 %vm5417_vm11, %v5860_v34 }
0x10e8   : > { %v5646_v4 = vpop.f32.mrf.mxu2 }
0x10e9   : > { %10514 = vmatmul.msk.f32.vlgmr.msrb.gmra.mxu0 %vm5417_vm11, %v5646_v4 }
0x10f0   : > { %v5649_v5 = vpop.f32.mrf.mxu2 }
0x10f1   : > { %10515 = vmatmul.msk.f32.vlgmr.msra.gmra.mxu3 %vm5417_vm11, %v5649_v5 }
0x10f9   : > { %10524 = vmatmul.msk.f32.vlgmr.msrb.gmra.mxu3 %vm5417_vm11, %v5707_v1 }
0x10fa   : > { %v5890_v37 = vpop.f32.mrf.mxu1 }
0x10fb   : > { %v5891_v8 = vadd.f32 %v5890_v37, %v13233_v44 }
0x10fd   : > { %v5896_v38 = vsel %vm5417_vm11, %v5891_v8, -inf }
0x10fe   : > { %5897 = vmax.xlane.f32.xlu0 %v5896_v38 }
0x1101   : > { %10525 = vmatmul.msk.f32.gmra.mxu3 %vm5417_vm11, %v5709_v9 }
0x1102   : > { %v5893_v11 = vpop.f32.mrf.mxu1 }
0x1103   : > { %v5894_v13 = vadd.f32 %v5893_v11, %v13238_v27 }
0x1105   : > { %v5899_v10 = vsel %vm5417_vm11, %v5894_v13, -inf }
0x1106   : > { %5900 = vmax.xlane.f32.xlu1 %v5899_v10 }
0x1171   : > { %v5898_v16 = vpop.xlane.xlu0 %5897 }
0x1172   : > { %v5902_v18 = vsub.f32 %v5891_v8, %v5898_v16 }
0x1174   : > { %v13305_v19 = vpop.f32.mrf.mxu3  ;;  %v5904_v25 = vmul.f32 1.442695, %v5902_v18 }
0x1176   : > { %12111 = vpow2.f32 %v5904_v25 }
0x1179   : > { %v5901_v63 = vpop.xlane.xlu1 %5900 }
0x117a   : > { %v5903_v17 = vsub.f32 %v5894_v13, %v5901_v63 }
0x117c   : > { %v5739_v30 = vpop.f32.mrf.mxu3  ;;  %v5906_v20 = vmul.f32 1.442695, %v5903_v17  ;;  %v13309_v21 = vpop.eup %12111 }
0x117d   : > { %v5740_v26 = vadd.f32 %v5739_v30, %v13233_v44  ;;  %v5908_v31 = vsel %vm5417_vm11, %v13309_v21, 0.0 }
0x117e   : > { %12113 = vpow2.f32 %v5906_v20 }
0x117f   : > { %v5745_v29 = vsel %vm5417_vm11, %v5740_v26, -inf }
0x1180   : > { %5746 = vmax.xlane.f32.xlu2 %v5745_v29 }
0x1184   : > { %v5742_v12 = vpop.f32.mrf.mxu3  ;;  %v13315_v44 = vpop.eup %12113 }
0x1185   : > { %v5743_v0 = vadd.f32 %v5742_v12, %v13238_v27  ;;  %v5911_v33 = vsel %vm5417_vm11, %v13315_v44, 0.0 }
0x1187   : > { %v5748_v32 = vsel %vm5417_vm11, %v5743_v0, -inf }
0x1188   : > { %5749 = vmax.xlane.f32.xlu0 %v5748_v32  ;;  %5909 = vadd.xlane.f32.xlu2 %v5908_v31 }
0x1190   : > { %5912 = vadd.xlane.f32.xlu0 %v5911_v33 }
0x11a4   : > { %12060 = vrot.lane.b32.xlu0 %v13262_v22, %s12244_s29 }
0x11f3   : > { %v5747_v36 = vpop.xlane.xlu2 %5746 }
0x11f4   : > { %v5751_v48 = vsub.f32 %v5740_v26, %v5747_v36 }
0x11f6   : > { %v5753_v27 = vmul.f32 1.442695, %v5751_v48 }
0x11f8   : > { %12115 = vpow2.f32 %v5753_v27 }
0x11fb   : > { %v5750_v49 = vpop.xlane.xlu0 %5749  ;;  %v5910_v23 = vpop.xlane.xlu2 %5909 }
0x11fc   : > { %v5752_v14 = vsub.f32 %v5743_v0, %v5750_v49  ;;  %v5925_v9 = vand.u32 2147483648, %v5910_v23  ;;  %vm5919_vm5 = vweird.f32 %v5910_v23  ;;  %v5923_v13 = vand.u32 2147483647, %v5910_v23 }
0x11fe   : > { %v12116_v61 = vpop.eup %12115  ;;  %v5755_v39 = vmul.f32 1.442695, %v5752_v14  ;;  %v5926_v30 = vor.u32 1.1754944e-38, %v5925_v9  ;;  %vm5924_vm8 = vcmp.eq.f32.partialorder %v5923_v13, 8.507059e+37 }
0x11ff   : > { %v5757_v40 = vsel %vm5417_vm11, %v12116_v61, 0.0 }
0x1200   : > { %5758 = vadd.xlane.f32.xlu1 %v5757_v40  ;;  %12117 = vpow2.f32 %v5755_v39 }
0x1201   : > { %12119 = vrcp.f32 %v5910_v23 }
0x1203   : > { %v13326_v42 = vpop.xlane.xlu0 %5912 }
0x1204   : > { %v5940_v33 = vand.u32 2147483648, %v13326_v42  ;;  %vm5934_vm13 = vweird.f32 %v13326_v42  ;;  %v5938_v49 = vand.u32 2147483647, %v13326_v42 }
0x1206   : > { %v13322_v41 = vpop.eup %12117 }
0x1207   : > { %v5760_v15 = vsel %vm5417_vm11, %v13322_v41, 0.0  ;;  %v12120_v45 = vpop.eup %12119 }
0x1208   : > { %5761 = vadd.xlane.f32.xlu2 %v5760_v15  ;;  %v5915_v46 = vmul.f32 %v12120_v45, %v5910_v23  ;;  %vm5920_vm4 = vweird.f32 %v12120_v45 }
0x1209   : > { %vm5921_vm6 = vmor %vm5919_vm5, %vm5920_vm4 }
0x120a   : > { %v5916_v53 = vsub.f32 1.0, %v5915_v46 }
0x120c   : > { %v5917_v59 = vmul.f32 %v12120_v45, %v5916_v53 }
0x120e   : > { %v5918_v37 = vadd.f32 %v12120_v45, %v5917_v59  ;;  %v12247_v59 = vmov 64.0  }
0x1210   : > { %v5922_v25 = vsel %vm5921_vm6, %v12120_v45, %v5918_v37 }
0x1211   : > { %v5927_v20 = vsel %vm5924_vm8, %v5926_v30, %v5922_v25  ;;  %v6079_v25 = vld [vmem:[#allocation2] sm:$0xff]  ;;  %v11703_v30 = vld [vmem:[%s14072_s10 + $0x18] sm:$0xff] }
0x1212   : > { %v5928_v27 = vmul.f32 %v13309_v21, %v5927_v20  ;;  %6127 = vmatpush.bf16.msrb.mxu0 %v11703_v30 }
0x1216   : > { %v12061_v57 = vpop.permute.xlu0 %12060 }
0x1217   : > { %v12062_v43 = vunpack.i.l.bf16 %v12061_v57  ;;  %v12063_v24 = vunpack.i.h.bf16 %v12061_v57 }
0x1219   : > { %12055 = vrot.lane.b32.xlu1 %v13262_v22, %s12246_s22  ;;  %5819 = vmatpush.msra.mxu2 %v12062_v43  ;;  %v5673_v43 = vpop.f32.mrf.mxu0 }
0x121b   : > { %5820 = vmatpush.msra.mxu2 %v12063_v24  ;;  %v5701_v24 = vadd.f32 %v13293_v3, %v5673_v43 }
0x1273   : > { %v5759_v35 = vpop.xlane.xlu1 %5758 }
0x1274   : > { %12121 = vrcp.f32 %v5759_v35  ;;  %v5774_v22 = vand.u32 2147483648, %v5759_v35  ;;  %v5772_v58 = vand.u32 2147483647, %v5759_v35  ;;  %vm5768_vm15 = vweird.f32 %v5759_v35 }
0x1275   : > { %12123 = vrcp.f32 %v13326_v42 }
0x1276   : > { %v5775_v1 = vor.u32 1.1754944e-38, %v5774_v22  ;;  %vm5773_vm3 = vcmp.eq.f32.partialorder %v5772_v58, 8.507059e+37 }
0x127a   : > { %v12122_v50 = vpop.eup %12121 }
0x127b   : > { %v5764_v51 = vmul.f32 %v12122_v50, %v5759_v35  ;;  %v5762_v52 = vpop.xlane.xlu2 %5761  ;;  %v12124_v55 = vpop.eup %12123  ;;  %vm5769_vm14 = vweird.f32 %v12122_v50  ;;  %v12084_v35 = vld [vmem:[%s14070_s7] ss:$0 sm:$0xff] }
0x127c   : > { %12125 = vrcp.f32 %v5762_v52  ;;  %v5930_v60 = vmul.f32 %v12124_v55, %v13326_v42  ;;  %vm5770_vm0 = vmor %vm5768_vm15, %vm5769_vm14  ;;  %v5789_v10 = vand.u32 2147483648, %v5762_v52  ;;  %v5787_v18 = vand.u32 2147483647, %v5762_v52 }
0x127d   : > { %v5765_v54 = vsub.f32 1.0, %v5764_v51  ;;  %vm5783_vm7 = vweird.f32 %v5762_v52  ;;  %vm5935_vm12 = vweird.f32 %v12124_v55  ;;  %vm5939_vm15 = vcmp.eq.f32.partialorder %v5938_v49, 8.507059e+37 }
0x127e   : > { %v5931_v8 = vsub.f32 1.0, %v5930_v60  ;;  %v5790_v17 = vor.u32 1.1754944e-38, %v5789_v10  ;;  %vm5788_vm1 = vcmp.eq.f32.partialorder %v5787_v18, 8.507059e+37  ;;  %vm5936_vm14 = vmor %vm5934_vm13, %vm5935_vm12  ;;  %v5704_v51 = vadd.f32 %v13297_v7, %v13305_v19  ;;  %v11707_v19 = vld [vmem:[%s14071_s28 + $0x18] sm:$0xff]  ;;  %v11704_v18 = vld [vmem:[%s14071_s28] sm:$0xff] }
0x127f   : > { %v5766_v56 = vmul.f32 %v12122_v50, %v5765_v54  ;;  %12127 = vrcp.f32 %v12247_v59  ;;  %6184 = vmatpush.bf16.msrb.mxu1 %v11707_v19 }
0x1280   : > { %v5932_v63 = vmul.f32 %v12124_v55, %v5931_v8 }
0x1281   : > { %v5767_v62 = vadd.f32 %v12122_v50, %v5766_v56 }
0x1282   : > { %v12126_v2 = vpop.eup %12125  ;;  %v5933_v31 = vadd.f32 %v12124_v55, %v5932_v63  ;;  %v6080_v63 = vld [vmem:[#allocation2 + $0x8] sm:$0xff] }
0x1283   : > { %v5771_v34 = vsel %vm5770_vm0, %v12122_v50, %v5767_v62  ;;  %v5779_v5 = vmul.f32 %v12126_v2, %v5762_v52  ;;  %vm5784_vm2 = vweird.f32 %v12126_v2  ;;  %v11706_v62 = vld [vmem:[%s14071_s28 + $0x10] sm:$0xff] }
0x1284   : > { %v5776_v4 = vsel %vm5773_vm3, %v5775_v1, %v5771_v34  ;;  %vm5785_vm9 = vmor %vm5783_vm7, %vm5784_vm2  ;;  %v5937_v14 = vsel %vm5936_vm14, %v12124_v55, %v5933_v31  ;;  %6185 = vmatpush.bf16.msrb.mxu1 %v11706_v62 }
0x1285   : > { %v5777_v38 = vmul.f32 %v12116_v61, %v5776_v4  ;;  %v5780_v11 = vsub.f32 1.0, %v5779_v5  ;;  %v5941_v61 = vor.u32 1.1754944e-38, %v5940_v33  ;;  %v12128_v60 = vpop.eup %12127 }
0x1286   : > { %v6025_v7 = vmul.f32 64.0, %v12128_v60  ;;  %vm6029_vm0 = vweird.f32 %v12128_v60 }
0x1287   : > { %10526 = vmatmul.msk.f32.vlgmr.msra.gmra.mxu2 %vm5417_vm11, %v5777_v38  ;;  %v5781_v16 = vmul.f32 %v12126_v2, %v5780_v11  ;;  %v5942_v39 = vsel %vm5939_vm15, %v5941_v61, %v5937_v14 }
0x1288   : > { %v5943_v40 = vmul.f32 %v13315_v44, %v5942_v39 }
0x1289   : > { %v5782_v26 = vadd.f32 %v12126_v2, %v5781_v16 }
0x128b   : > { %v12056_v29 = vpop.permute.xlu1 %12055  ;;  %v5786_v0 = vsel %vm5785_vm9, %v12126_v2, %v5782_v26  ;;  %v11705_v2 = vld [vmem:[%s14071_s28 + $0x8] sm:$0xff]  ;;  %v11702_v26 = vld [vmem:[%s14072_s10 + $0x10] sm:$0xff]  ;;  %s14076_s28 = sld [smem:[#allocation30_spill]] }
0x128c   : > { %v12057_v12 = vunpack.i.l.bf16 %v12056_v29  ;;  %v5791_v32 = vsel %vm5788_vm1, %v5790_v17, %v5786_v0  ;;  %v12058_v36 = vunpack.i.h.bf16 %v12056_v29  ;;  %6186 = vmatpush.bf16.msrb.mxu1 %v11705_v2  ;;  %6128 = vmatpush.bf16.msrb.mxu0 %v11702_v26  ;;  %v11701_v17 = vld [vmem:[%s14072_s10 + $0x8] sm:$0xff]  ;;  %v11700_v29 = vld [vmem:[%s14072_s10] sm:$0xff] }
0x128d   : > { %v5792_v48 = vmul.f32 %v13322_v41, %v5791_v32  ;;  %v11699_v41 = vld [vmem:[%s14068_s27 + $0x18] sm:$0xff] }
0x128e   : > { %5970 = vmatpush.msra.mxu3 %v12057_v12  ;;  %5998 = vmatpush.bf16.msrb.mxu2 %v11699_v41  ;;  %v12085_v41 = vld [vmem:[%s2284_s21] ss:$0 sm:$0xff] }
0x128f   : > { %10527 = vmatmul.msk.f32.gmra.mxu2 %vm5417_vm11, %v5792_v48 }
0x1290   : > { %5971 = vmatpush.msra.mxu3 %v12058_v36  ;;  %6187 = vmatpush.bf16.msrb.mxu1 %v11704_v18 }
0x1291   : > { %10538 = vmatmul.msk.f32.vlgmr.msra.gmra.mxu3 %vm5417_vm11, %v5928_v27  ;;  %6129 = vmatpush.bf16.msrb.mxu0 %v11701_v17  ;;  %s14077_s21 = scalar_lea.vmem %s14076_s28, %s14094_s0 }
0x1293   : > { %10580 = vmatmul.msk.f32.vlgmr.msrb.gmra.mxu1 %vm5362_vm10, %v6079_v25 }
0x1295   : > { %6130 = vmatpush.bf16.msrb.mxu0 %v11700_v29 }
0x1299   : > { %10539 = vmatmul.msk.f32.gmra.mxu3 %vm5417_vm11, %v5943_v40 }
0x129b   : > { %10581 = vmatmul.msk.f32.gmra.mxu1 %vm5362_vm10, %v6080_v63 }
0x130a   : > { %v5822_v21 = vpop.f32.mrf.mxu2 }
0x130b   : > { %10532 = vmatmul.msk.f32.vlgmr.msra.gmra.mxu0 %vm5417_vm11, %v5822_v21 }
0x1312   : > { %v5825_v15 = vpop.f32.mrf.mxu2 }
0x1313   : > { %10533 = vmatmul.msk.f32.gmra.mxu0 %vm5417_vm11, %v5825_v15 }
0x1314   : > { %v5973_v42 = vpop.f32.mrf.mxu3 }
0x1315   : > { %10544 = vmatmul.msk.f32.vlgmr.msrb.gmra.mxu2 %vm5417_vm11, %v5973_v42 }
0x131c   : > { %v5976_v57 = vpop.f32.mrf.mxu3 }
0x131d   : > { %10545 = vmatmul.msk.f32.gmra.mxu2 %vm5417_vm11, %v5976_v57  ;;  %v12086_v57 = vld [vmem:[%s2293_s14] ss:$0 sm:$0xff]  ;;  %s14078_s14 = sld [smem:[#allocation10_spill]] }
0x1388   : > { %v5849_v44 = vpop.f32.mrf.mxu0 }
0x1389   : > { %v5855_v23 = vadd.f32 %v5849_v44, %v5701_v24 }
0x1390   : > { %v5852_v50 = vpop.f32.mrf.mxu0 }
0x1391   : > { %v5856_v53 = vadd.f32 %v5852_v50, %v5704_v51  ;;  %v6189_v51 = vpop.f32.mrf.mxu1 }
0x1398   : > { %v6000_v45 = vpop.f32.mrf.mxu2 }
0x1399   : > { %v6006_v46 = vadd.f32 %v6000_v45, %v5855_v23 }
0x139b   : > { %v6012_v47 = vadd.f32 %v12084_v35, %v6006_v46 }
0x139d   : > { %v6016_v52 = vadd.f32 %v6012_v47, %v13186_v28  ;;  %v6026_v28 = vsub.f32 1.0, %v6025_v7 }
0x139f   : > { %v6018_v54 = vsel %vm5362_vm10, %v6016_v52, 0.0  ;;  %v6027_v1 = vmul.f32 %v12128_v60, %v6026_v28  ;;  %v13407_v28 = vld [vmem:[%s14078_s14] sm:$0xff] }
0x13a0   : > { %6019 = vadd.xlane.f32.xlu2 %v6018_v54  ;;  %v6003_v55 = vpop.f32.mrf.mxu2 }
0x13a1   : > { %v6007_v3 = vadd.f32 %v6003_v55, %v5856_v53  ;;  %v6028_v34 = vadd.f32 %v12128_v60, %v6027_v1  ;;  %v6192_v53 = vpop.f32.mrf.mxu1 }
0x13a3   : > { %v6013_v22 = vadd.f32 %v12084_v35, %v6007_v3  ;;  %v13361_v4 = vsel %vm6029_vm0, %v12128_v60, %v6028_v34  ;;  %v12088_v3 = vld [vmem:[%s14077_s21] ss:$0 sm:$0xff]  ;;  %v13412_v34 = vld [vmem:[%s14078_s14 + $0x8] sm:$0xff] }
0x13a5   : > { %v6017_v56 = vadd.f32 %v6013_v22, %v13190_v6 }
0x13a7   : > { %v6021_v58 = vsel %vm5362_vm10, %v6017_v56, 0.0 }
0x13a8   : > { %6022 = vadd.xlane.f32.xlu2 %v6021_v58 }
0x1413   : > { %v6020_v6 = vpop.xlane.xlu2 %6019 }
0x1414   : > { %v6031_v5 = vmul.f32 %v13361_v4, %v6020_v6 }
0x1416   : > { %v6033_v37 = vsub.f32 %v6016_v52, %v6031_v5  ;;  %v12087_v52 = vld [vmem:[%s2255_s1] ss:$0 sm:$0xff] }
0x1417   : > { %v6193_v54 = vadd.f32 %v12087_v52, %v6192_v53  ;;  %v6190_v55 = vadd.f32 %v12087_v52, %v6189_v51 }
0x1418   : > { %v6035_v8 = vmul.f32 %v6033_v37, %v6033_v37 }
0x1419   : > { %10582 = vmatpush.xpose.msk.msrb.mxu3 %vm5417_vm11, %v6193_v54  ;;  %v13422_v26 = vpack.i.bf16 %v6190_v55, %v6193_v54 }
0x141a   : > { %v6037_v38 = vsel %vm5362_vm10, %v6035_v8, 0.0 }
0x141b   : > { %6038 = vadd.xlane.f32.xlu2 %v6037_v38  ;;  %v6023_v9 = vpop.xlane.xlu2 %6022 }
0x141c   : > { %v6032_v11 = vmul.f32 %v13361_v4, %v6023_v9 }
0x141d   : > { %10583 = vmatpush.xpose.msk.msrb.mxu3 %vm5417_vm11, %v6190_v55 }
0x141e   : > { %v6034_v13 = vsub.f32 %v6017_v56, %v6032_v11 }
0x1420   : > { %v6036_v10 = vmul.f32 %v6034_v13, %v6034_v13 }
0x1422   : > { %v6040_v16 = vsel %vm5362_vm10, %v6036_v10, 0.0 }
0x1423   : > { %6041 = vadd.xlane.f32.xlu0 %v6040_v16 }
0x1437   : > { %6331 = vrot.lane.b32.xlu0 %v6193_v54, %s12242_s11 }
0x148e   : > { %v6039_v20 = vpop.xlane.xlu2 %6038 }
0x148f   : > { %v6043_v12 = vmul.f32 %v6039_v20, %v13361_v4 }
0x1491   : > { %v6045_v0 = vadd.f32 1e-05, %v6043_v12 }
0x1493   : > { %12129 = vrsqrt.f32 %v6045_v0  ;;  %vm6053_vm4 = vweird.f32 %v6045_v0 }
0x1496   : > { %v6042_v32 = vpop.xlane.xlu0 %6041 }
0x1497   : > { %v6044_v31 = vmul.f32 %v6042_v32, %v13361_v4 }
0x1499   : > { %v12130_v33 = vpop.eup %12129  ;;  %v6046_v36 = vadd.f32 1e-05, %v6044_v31 }
0x149a   : > { %v6048_v48 = vmul.f32 %v12130_v33, %v6045_v0  ;;  %vm6054_vm3 = vweird.f32 %v12130_v33 }
0x149b   : > { %12131 = vrsqrt.f32 %v6046_v36  ;;  %vm6055_vm5 = vmor %vm6053_vm4, %vm6054_vm3  ;;  %vm6063_vm2 = vweird.f32 %v6046_v36 }
0x149c   : > { %v6049_v27 = vmul.f32 %v12130_v33, %v6048_v48 }
0x149e   : > { %v6050_v49 = vmul.f32 0.5, %v6049_v27 }
0x14a0   : > { %v6051_v14 = vsub.f32 1.5, %v6050_v49 }
0x14a1   : > { %v12132_v61 = vpop.eup %12131 }
0x14a2   : > { %v6052_v39 = vmul.f32 %v12130_v33, %v6051_v14  ;;  %v6058_v40 = vmul.f32 %v12132_v61, %v6046_v36  ;;  %vm6064_vm6 = vweird.f32 %v12132_v61 }
0x14a3   : > { %vm6065_vm7 = vmor %vm6063_vm2, %vm6064_vm6 }
0x14a4   : > { %v6056_v21 = vsel %vm6055_vm5, %v12130_v33, %v6052_v39  ;;  %v6059_v15 = vmul.f32 %v12132_v61, %v6058_v40 }
0x14a5   : > { %v6067_v42 = vmul.f32 %v6056_v21, %v6033_v37 }
0x14a6   : > { %v6060_v43 = vmul.f32 0.5, %v6059_v15 }
0x14a7   : > { %v6072_v44 = vmul.f32 %v12085_v41, %v6067_v42 }
0x14a8   : > { %v6061_v24 = vsub.f32 1.5, %v6060_v43 }
0x14a9   : > { %v13382_v23 = vadd.f32 %v12086_v57, %v6072_v44  ;;  %v6332_v19 = vpop.permute.xlu0 %6331 }
0x14aa   : > { %v6062_v35 = vmul.f32 %v12132_v61, %v6061_v24  ;;  %10588 = vmatpush.xpose.msk.msra.mxu0 %vm5417_vm11, %v6332_v19 }
0x14ab   : > { %10562 = vmatmul.msk.f32.vlgmr.msrb.gmra.mxu0 %vm5362_vm10, %v13382_v23 }
0x14ac   : > { %v6066_v45 = vsel %vm6065_vm7, %v12132_v61, %v6062_v35 }
0x14ad   : > { %v6068_v46 = vmul.f32 %v6066_v45, %v6034_v13 }
0x14af   : > { %v6073_v47 = vmul.f32 %v12085_v41, %v6068_v46 }
0x14b1   : > { %v13386_v50 = vadd.f32 %v12086_v57, %v6073_v47  ;;  %v11708_v57 = vld [vmem:[%s12551_s30] sm:$0xff] }
0x14b3   : > { %10563 = vmatmul.msk.f32.gmra.mxu0 %vm5362_vm10, %v13386_v50 }
0x1528   : > { %v6132_v22 = vpop.f32.mrf.mxu0 }
0x1529   : > { %v6133_v56 = vadd.f32 %v12088_v3, %v6132_v22 }
0x152b   : > { %v6205_v58 = vmul.f32 0.25, %v6133_v56 }
0x152d   : > { %10584 = vmatmul.msk.f32.vlgmr.msrb.gmra.mxu3 %vm5417_vm11, %v6205_v58 }
0x1530   : > { %v6135_v59 = vpop.f32.mrf.mxu0 }
0x1531   : > { %v6136_v60 = vadd.f32 %v12088_v3, %v6135_v59 }
0x1533   : > { %v6206_v7 = vmul.f32 0.25, %v6136_v60 }
0x1535   : > { %6327 = vrot.lane.b32.xlu0 %v6206_v7, %s12242_s11  ;;  %10585 = vmatmul.msk.f32.gmra.mxu3 %vm5417_vm11, %v6206_v7 }
0x153d   : > { %6658 = vrot.lane.b32.xlu0 %v6193_v54, %s12246_s22 }
0x1545   : > { %6501 = vrot.lane.b32.xlu0 %v6205_v58, %s12244_s29 }
0x154d   : > { %6654 = vrot.lane.b32.xlu0 %v6206_v7, %s12246_s22 }
0x15a7   : > { %v6328_v36 = vpop.permute.xlu0 %6327 }
0x15af   : > { %v6659_v45 = vpop.permute.xlu0 %6658 }
0x15b0   : > { %v6236_v62 = vpop.f32.mrf.mxu3 }
0x15b1   : > { %v6237_v1 = vadd.f32 %v6236_v62, %v13407_v28 }
0x15b3   : > { %v6242_v2 = vsel %vm5417_vm11, %v6237_v1, -inf }
0x15b4   : > { %6243 = vmax.xlane.f32.xlu1 %v6242_v2 }
0x15b7   : > { %v6502_v3 = vpop.permute.xlu0 %6501 }
0x15b8   : > { %v6239_v6 = vpop.f32.mrf.mxu3 }
0x15b9   : > { %v6240_v5 = vadd.f32 %v6239_v6, %v13412_v34 }
0x15bb   : > { %v6245_v37 = vsel %vm5417_vm11, %v6240_v5, -inf }
0x15bc   : > { %6246 = vmax.xlane.f32.xlu2 %v6245_v37 }
0x15cd   : > { %6329 = vrot.lane.b32.xlu1 %v6190_v55, %s12242_s11 }
0x15d5   : > { %6505 = vrot.lane.b32.xlu1 %v6190_v55, %s12244_s29 }
0x15dd   : > { %6652 = vrot.lane.b32.xlu1 %v6205_v58, %s12246_s22 }
0x1627   : > { %v6244_v8 = vpop.xlane.xlu1 %6243 }
0x1628   : > { %v6248_v38 = vsub.f32 %v6237_v1, %v6244_v8 }
0x162a   : > { %v6250_v9 = vmul.f32 1.442695, %v6248_v38 }
0x162c   : > { %12133 = vpow2.f32 %v6250_v9 }
0x162f   : > { %v6247_v11 = vpop.xlane.xlu2 %6246 }
0x1630   : > { %v6249_v13 = vsub.f32 %v6240_v5, %v6247_v11  ;;  %v6655_v11 = vpop.permute.xlu0 %6654 }
0x1632   : > { %v12134_v10 = vpop.eup %12133  ;;  %v6252_v16 = vmul.f32 1.442695, %v6249_v13 }
0x1633   : > { %v6254_v18 = vsel %vm5417_vm11, %v12134_v10, 0.0 }
0x1634   : > { %12135 = vpow2.f32 %v6252_v16  ;;  %6255 = vadd.xlane.f32.xlu2 %v6254_v18 }
0x163a   : > { %v12136_v25 = vpop.eup %12135 }
0x163b   : > { %v6257_v63 = vsel %vm5417_vm11, %v12136_v25, 0.0 }
0x163c   : > { %6258 = vadd.xlane.f32.xlu2 %v6257_v63 }
0x163f   : > { %v6330_v30 = vpop.permute.xlu1 %6329 }
0x1640   : > { %10589 = vmatpush.xpose.msk.msra.mxu0 %vm5417_vm11, %v6330_v30 }
0x1654   : > { %12065 = vrot.lane.b32.xlu2 %v13422_v26, %s12240_s19 }
0x165c   : > { %6325 = vrot.lane.b32.xlu2 %v6205_v58, %s12242_s11 }
0x1664   : > { %6507 = vrot.lane.b32.xlu2 %v6193_v54, %s12244_s29 }
0x166c   : > { %6656 = vrot.lane.b32.xlu2 %v6190_v55, %s12246_s22  ;;  %v6506_v55 = vpop.permute.xlu1 %6505 }
0x1674   : > { %6503 = vrot.lane.b32.xlu2 %v6206_v7, %s12244_s29  ;;  %v6653_v37 = vpop.permute.xlu1 %6652 }
0x16a7   : > { %v6256_v17 = vpop.xlane.xlu2 %6255 }
0x16a8   : > { %12137 = vrcp.f32 %v6256_v17  ;;  %v6271_v32 = vand.u32 2147483648, %v6256_v17  ;;  %v6269_v33 = vand.u32 2147483647, %v6256_v17  ;;  %vm6265_vm9 = vweird.f32 %v6256_v17 }
0x16aa   : > { %v6272_v49 = vor.u32 1.1754944e-38, %v6271_v32  ;;  %vm6270_vm12 = vcmp.eq.f32.partialorder %v6269_v33, 8.507059e+37 }
0x16ae   : > { %v12138_v29 = vpop.eup %12137 }
0x16af   : > { %v6261_v20 = vmul.f32 %v12138_v29, %v6256_v17  ;;  %v6259_v12 = vpop.xlane.xlu2 %6258  ;;  %vm6266_vm8 = vweird.f32 %v12138_v29 }
0x16b0   : > { %12139 = vrcp.f32 %v6259_v12  ;;  %vm6267_vm1 = vmor %vm6265_vm9, %vm6266_vm8  ;;  %v6286_v15 = vand.u32 2147483648, %v6259_v12  ;;  %v6284_v24 = vand.u32 2147483647, %v6259_v12  ;;  %vm6280_vm14 = vweird.f32 %v6259_v12 }
0x16b1   : > { %v6262_v0 = vsub.f32 1.0, %v6261_v20 }
0x16b2   : > { %v6287_v46 = vor.u32 1.1754944e-38, %v6286_v15  ;;  %vm6285_vm0 = vcmp.eq.f32.partialorder %v6284_v24, 8.507059e+37 }
0x16b3   : > { %v6263_v31 = vmul.f32 %v12138_v29, %v6262_v0 }
0x16b5   : > { %v6264_v48 = vadd.f32 %v12138_v29, %v6263_v31 }
0x16b6   : > { %v12140_v27 = vpop.eup %12139 }
0x16b7   : > { %v6268_v14 = vsel %vm6267_vm1, %v12138_v29, %v6264_v48  ;;  %v6276_v61 = vmul.f32 %v12140_v27, %v6259_v12  ;;  %v12066_v39 = vpop.permute.xlu2 %12065  ;;  %vm6281_vm13 = vweird.f32 %v12140_v27 }
0x16b8   : > { %v6273_v40 = vsel %vm6270_vm12, %v6272_v49, %v6268_v14  ;;  %v12067_v41 = vunpack.i.l.bf16 %v12066_v39  ;;  %v12068_v42 = vunpack.i.h.bf16 %v12066_v39  ;;  %vm6282_vm15 = vmor %vm6280_vm14, %vm6281_vm13 }
0x16b9   : > { %v6277_v21 = vsub.f32 1.0, %v6276_v61  ;;  %v6274_v44 = vmul.f32 %v12134_v10, %v6273_v40 }
0x16ba   : > { %6316 = vmatpush.msra.mxu2 %v12067_v41 }
0x16bb   : > { %v6278_v43 = vmul.f32 %v12140_v27, %v6277_v21 }
0x16bc   : > { %6317 = vmatpush.msra.mxu2 %v12068_v42 }
0x16bd   : > { %10586 = vmatmul.msk.f32.vlgmr.msra.gmra.mxu2 %vm5417_vm11, %v6274_v44  ;;  %v6279_v35 = vadd.f32 %v12140_v27, %v6278_v43 }
0x16be   : > { %6493 = vmatpush.bf16.msrb.mxu2 %v11708_v57 }
0x16bf   : > { %v6326_v47 = vpop.permute.xlu2 %6325  ;;  %v6283_v51 = vsel %vm6282_vm15, %v12140_v27, %v6279_v35 }
0x16c0   : > { %10590 = vmatmul.msk.f32.vlgmr.msra.gmra.mxu0 %vm5417_vm11, %v6326_v47  ;;  %v6288_v52 = vsel %vm6285_vm0, %v6287_v46, %v6283_v51 }
0x16c1   : > { %v6289_v53 = vmul.f32 %v12136_v25, %v6288_v52 }
0x16c2   : > { %10618 = vmatpush.xpose.msk.msra.mxu2 %vm5417_vm11, %v6659_v45 }
0x16c5   : > { %10587 = vmatmul.msk.f32.gmra.mxu2 %vm5417_vm11, %v6289_v53 }
0x16c7   : > { %v6508_v54 = vpop.permute.xlu2 %6507 }
0x16c8   : > { %10591 = vmatmul.msk.f32.gmra.mxu0 %vm5417_vm11, %v6328_v36 }
0x16c9   : > { %10606 = vmatpush.xpose.msk.msrb.mxu0 %vm5417_vm11, %v6508_v54 }
0x16cd   : > { %10607 = vmatpush.xpose.msk.msrb.mxu0 %vm5417_vm11, %v6506_v55 }
0x16cf   : > { %v6657_v22 = vpop.permute.xlu2 %6656 }
0x16d0   : > { %10608 = vmatmul.msk.f32.vlgmr.msrb.gmra.mxu0 %vm5417_vm11, %v6502_v3  ;;  %10619 = vmatpush.xpose.msk.msra.mxu2 %vm5417_vm11, %v6657_v22 }
0x16d7   : > { %v6504_v56 = vpop.permute.xlu2 %6503 }
0x16d8   : > { %10609 = vmatmul.msk.f32.gmra.mxu0 %vm5417_vm11, %v6504_v56 }
0x173d   : > { %v6358_v58 = vpop.f32.mrf.mxu0 }
0x173e   : > { %v6359_v59 = vadd.f32 %v6358_v58, %v13407_v28 }
0x1740   : > { %v6319_v60 = vpop.f32.mrf.mxu2  ;;  %v6364_v7 = vsel %vm5417_vm11, %v6359_v59, -inf }
0x1741   : > { %10604 = vmatmul.msk.f32.vlgmr.msrb.gmra.mxu2 %vm5417_vm11, %v6319_v60  ;;  %6365 = vmax.xlane.f32.xlu1 %v6364_v7 }
0x1745   : > { %v6361_v19 = vpop.f32.mrf.mxu0 }
0x1746   : > { %v6362_v62 = vadd.f32 %v6361_v19, %v13412_v34 }
0x1748   : > { %v6322_v1 = vpop.f32.mrf.mxu2  ;;  %v6367_v2 = vsel %vm5417_vm11, %v6362_v62, -inf }
0x1749   : > { %10605 = vmatmul.msk.f32.gmra.mxu2 %vm5417_vm11, %v6322_v1  ;;  %6368 = vmax.xlane.f32.xlu2 %v6367_v2 }
0x174d   : > { %v6534_v6 = vpop.f32.mrf.mxu0 }
0x174e   : > { %v6535_v5 = vadd.f32 %v6534_v6, %v13407_v28  ;;  %v11709_v6 = vld [vmem:[%s12551_s30 + $0x8] sm:$0xff] }
0x174f   : > { %6466 = vmatpush.bf16.msra.mxu3 %v11709_v6 }
0x1750   : > { %v6540_v8 = vsel %vm5417_vm11, %v6535_v5, -inf }
0x1751   : > { %6541 = vmax.xlane.f32.xlu0 %v6540_v8  ;;  %10620 = vmatmul.msk.f32.vlgmr.msra.gmra.mxu2 %vm5417_vm11, %v6653_v37 }
0x1755   : > { %v6537_v38 = vpop.f32.mrf.mxu0 }
0x1756   : > { %v6538_v9 = vadd.f32 %v6537_v38, %v13412_v34 }
0x1758   : > { %v6543_v13 = vsel %vm5417_vm11, %v6538_v9, -inf }
0x1759   : > { %6544 = vmax.xlane.f32.xlu2 %v6543_v13  ;;  %10621 = vmatmul.msk.f32.gmra.mxu2 %vm5417_vm11, %v6655_v11 }
0x17b4   : > { %v6366_v10 = vpop.xlane.xlu1 %6365 }
0x17b5   : > { %v6370_v16 = vsub.f32 %v6359_v59, %v6366_v10 }
0x17b7   : > { %v6372_v18 = vmul.f32 1.442695, %v6370_v16 }
0x17b9   : > { %12141 = vpow2.f32 %v6372_v18 }
0x17bc   : > { %v6369_v17 = vpop.xlane.xlu2 %6368 }
0x17bd   : > { %v6371_v20 = vsub.f32 %v6362_v62, %v6369_v17 }
0x17bf   : > { %v12142_v25 = vpop.eup %12141  ;;  %v6374_v12 = vmul.f32 1.442695, %v6371_v20 }
0x17c0   : > { %v6376_v63 = vsel %vm5417_vm11, %v12142_v25, 0.0 }
0x17c1   : > { %6377 = vadd.xlane.f32.xlu0 %v6376_v63  ;;  %12143 = vpow2.f32 %v6374_v12 }
0x17c4   : > { %v13454_v30 = vpop.f32.mrf.mxu2  ;;  %v6542_v0 = vpop.xlane.xlu0 %6541 }
0x17c5   : > { %v6546_v33 = vsub.f32 %v6535_v5, %v6542_v0 }
0x17c7   : > { %v6548_v49 = vmul.f32 1.442695, %v6546_v33  ;;  %v13462_v61 = vpop.eup %12143 }
0x17c9   : > { %12145 = vpow2.f32 %v6548_v49 }
0x17cc   : > { %v13456_v29 = vpop.f32.mrf.mxu2  ;;  %v6545_v32 = vpop.xlane.xlu2 %6544 }
0x17cd   : > { %v6547_v48 = vsub.f32 %v6538_v9, %v6545_v32 }
0x17cf   : > { %v6550_v14 = vmul.f32 1.442695, %v6547_v48  ;;  %v13468_v21 = vpop.eup %12145 }
0x17d0   : > { %v6552_v42 = vsel %vm5417_vm11, %v13468_v21, 0.0 }
0x17d1   : > { %12147 = vpow2.f32 %v6550_v14 }
0x17d4   : > { %v6685_v31 = vpop.f32.mrf.mxu2 }
0x17d5   : > { %v6686_v36 = vadd.f32 %v6685_v31, %v13407_v28  ;;  %12070 = vrot.lane.b32.xlu0 %v13422_v26, %s12241_s24  ;;  %v6379_v28 = vsel %vm5417_vm11, %v13462_v61, 0.0 }
0x17d7   : > { %v6691_v27 = vsel %vm5417_vm11, %v6686_v36, -inf  ;;  %v13470_v15 = vpop.eup %12147 }
0x17d8   : > { %6692 = vmax.xlane.f32.xlu1 %v6691_v27  ;;  %v6555_v57 = vsel %vm5417_vm11, %v13470_v15, 0.0 }
0x17dc   : > { %v6688_v39 = vpop.f32.mrf.mxu2 }
0x17dd   : > { %v6689_v40 = vadd.f32 %v6688_v39, %v13412_v34 }
0x17df   : > { %v6694_v41 = vsel %vm5417_vm11, %v6689_v40, -inf }
0x17e0   : > { %6695 = vmax.xlane.f32.xlu2 %v6694_v41  ;;  %6380 = vadd.xlane.f32.xlu1 %v6379_v28 }
0x17e8   : > { %6553 = vadd.xlane.f32.xlu2 %v6552_v42  ;;  %6556 = vadd.xlane.f32.xlu1 %v6555_v57 }
0x1834   : > { %v6378_v34 = vpop.xlane.xlu0 %6377 }
0x1835   : > { %12149 = vrcp.f32 %v6378_v34  ;;  %v6393_v46 = vand.u32 2147483648, %v6378_v34  ;;  %vm6387_vm4 = vweird.f32 %v6378_v34  ;;  %v6391_v47 = vand.u32 2147483647, %v6378_v34 }
0x1837   : > { %v6394_v52 = vor.u32 1.1754944e-38, %v6393_v46  ;;  %vm6392_vm6 = vcmp.eq.f32.partialorder %v6391_v47, 8.507059e+37 }
0x183b   : > { %v12150_v43 = vpop.eup %12149 }
0x183c   : > { %v6383_v44 = vmul.f32 %v12150_v43, %v6378_v34  ;;  %vm6388_vm3 = vweird.f32 %v12150_v43 }
0x183d   : > { %vm6389_vm5 = vmor %vm6387_vm4, %vm6388_vm3 }
0x183e   : > { %v6384_v24 = vsub.f32 1.0, %v6383_v44 }
0x1840   : > { %v6385_v35 = vmul.f32 %v12150_v43, %v6384_v24 }
0x1842   : > { %v6386_v45 = vadd.f32 %v12150_v43, %v6385_v35 }
0x1844   : > { %v6390_v51 = vsel %vm6389_vm5, %v12150_v43, %v6386_v45 }
0x1845   : > { %v6395_v54 = vsel %vm6392_vm6, %v6394_v52, %v6390_v51 }
0x1846   : > { %v6396_v56 = vmul.f32 %v12142_v25, %v6395_v54 }
0x1847   : > { %v12071_v53 = vpop.permute.xlu0 %12070 }
0x1848   : > { %v12072_v55 = vunpack.i.l.bf16 %v12071_v53  ;;  %v12073_v3 = vunpack.i.h.bf16 %v12071_v53 }
0x184a   : > { %6438 = vmatpush.msra.mxu1 %v12072_v55 }
0x184b   : > { %v6693_v22 = vpop.xlane.xlu1 %6692 }
0x184c   : > { %v6697_v58 = vsub.f32 %v6686_v36, %v6693_v22  ;;  %6439 = vmatpush.msra.mxu1 %v12073_v3 }
0x184d   : > { %10592 = vmatmul.msk.f32.vlgmr.msra.gmra.mxu1 %vm5417_vm11, %v6396_v56 }
0x184e   : > { %v6699_v59 = vmul.f32 1.442695, %v6697_v58 }
0x1850   : > { %12151 = vpow2.f32 %v6699_v59 }
0x1853   : > { %v6696_v60 = vpop.xlane.xlu2 %6695  ;;  %v6381_v7 = vpop.xlane.xlu1 %6380 }
0x1854   : > { %v6698_v19 = vsub.f32 %v6689_v40, %v6696_v60  ;;  %12153 = vrcp.f32 %v6381_v7  ;;  %v6408_v9 = vand.u32 2147483648, %v6381_v7  ;;  %v6406_v10 = vand.u32 2147483647, %v6381_v7 }
0x1855   : > { %vm6402_vm7 = vweird.f32 %v6381_v7 }
0x1856   : > { %v13477_v62 = vpop.eup %12151  ;;  %v6701_v1 = vmul.f32 1.442695, %v6698_v19  ;;  %v6409_v18 = vor.u32 1.1754944e-38, %v6408_v9  ;;  %vm6407_vm9 = vcmp.eq.f32.partialorder %v6406_v10, 8.507059e+37 }
0x1857   : > { %v6703_v2 = vsel %vm5417_vm11, %v13477_v62, 0.0 }
0x1858   : > { %12155 = vpow2.f32 %v6701_v1  ;;  %6704 = vadd.xlane.f32.xlu2 %v6703_v2 }
0x185a   : > { %v12154_v5 = vpop.eup %12153 }
0x185b   : > { %v6398_v37 = vmul.f32 %v12154_v5, %v6381_v7  ;;  %vm6403_vm2 = vweird.f32 %v12154_v5  ;;  %v6554_v20 = vpop.xlane.xlu2 %6553  ;;  %v6557_v12 = vpop.xlane.xlu1 %6556 }
0x185c   : > { %vm6404_vm8 = vmor %vm6402_vm7, %vm6403_vm2  ;;  %12157 = vrcp.f32 %v6554_v20  ;;  %v6569_v39 = vand.u32 2147483648, %v6554_v20  ;;  %vm6563_vm12 = vweird.f32 %v6554_v20  ;;  %v6584_v35 = vand.u32 2147483648, %v6557_v12 }
0x185d   : > { %v6399_v8 = vsub.f32 1.0, %v6398_v37  ;;  %12159 = vrcp.f32 %v6557_v12  ;;  %vm6578_vm0 = vweird.f32 %v6557_v12  ;;  %v6582_v47 = vand.u32 2147483647, %v6557_v12 }
0x185e   : > { %v13482_v38 = vpop.eup %12155  ;;  %v6570_v28 = vor.u32 1.1754944e-38, %v6569_v39  ;;  %v6585_v53 = vor.u32 1.1754944e-38, %v6584_v35 }
0x185f   : > { %v6400_v11 = vmul.f32 %v12154_v5, %v6399_v8  ;;  %v6706_v13 = vsel %vm5417_vm11, %v13482_v38, 0.0  ;;  %vm6583_vm4 = vcmp.eq.f32.partialorder %v6582_v47, 8.507059e+37 }
0x1860   : > { %6707 = vadd.xlane.f32.xlu1 %v6706_v13 }
0x1861   : > { %v6401_v16 = vadd.f32 %v12154_v5, %v6400_v11 }
0x1862   : > { %v12158_v0 = vpop.eup %12157 }
0x1863   : > { %v6405_v25 = vsel %vm6404_vm8, %v12154_v5, %v6401_v16  ;;  %v6559_v32 = vmul.f32 %v12158_v0, %v6554_v20  ;;  %v12160_v33 = vpop.eup %12159  ;;  %vm6564_vm1 = vweird.f32 %v12158_v0 }
0x1864   : > { %v6410_v63 = vsel %vm6407_vm9, %v6409_v18, %v6405_v25  ;;  %v6574_v48 = vmul.f32 %v12160_v33, %v6557_v12  ;;  %vm6565_vm13 = vmor %vm6563_vm12, %vm6564_vm1  ;;  %vm6579_vm15 = vweird.f32 %v12160_v33 }
0x1865   : > { %v6411_v17 = vmul.f32 %v13462_v61, %v6410_v63  ;;  %v6560_v31 = vsub.f32 1.0, %v6559_v32  ;;  %vm6580_vm3 = vmor %vm6578_vm0, %vm6579_vm15 }
0x1866   : > { %v6575_v61 = vsub.f32 1.0, %v6574_v48 }
0x1867   : > { %10593 = vmatmul.msk.f32.gmra.mxu1 %vm5417_vm11, %v6411_v17  ;;  %v6561_v36 = vmul.f32 %v12158_v0, %v6560_v31  ;;  %v11710_v17 = vld [vmem:[%s12551_s30 + $0x10] sm:$0xff] }
0x1868   : > { %v6576_v41 = vmul.f32 %v12160_v33, %v6575_v61  ;;  %6642 = vmatpush.bf16.msrb.mxu3 %v11710_v17  ;;  %v10698_v17 = vld [vmem:[%s12569_s13 + $0xc0] sm:$0xf0] }
0x1869   : > { %v6562_v14 = vadd.f32 %v12158_v0, %v6561_v36 }
0x186a   : > { %v6577_v44 = vadd.f32 %v12160_v33, %v6576_v41 }
0x186b   : > { %v6566_v40 = vsel %vm6565_vm13, %v12158_v0, %v6562_v14 }
0x186c   : > { %v6581_v52 = vsel %vm6580_vm3, %v12160_v33, %v6577_v44 }
0x186d   : > { %v6586_v54 = vsel %vm6583_vm4, %v6585_v53, %v6581_v52  ;;  %v10824_v52 = vld [vmem:[%s12569_s13 + $0x180] sm:$0xf] }
0x186e   : > { %v6587_v22 = vmul.f32 %v13470_v15, %v6586_v54  ;;  %v11768_v53 = vld [vmem:[%s12569_s13 + $0x1bc] sm:$0xf0]  ;;  %v11760_v54 = vld [vmem:[%s12569_s13 + $0x184] sm:$0xf] }
0x1870   : > { %12075 = vrot.lane.b32.xlu2 %v13422_v26, %s12245_s4 }
0x1879   : > { %12080 = vrot.lane.b32.xlu1 %v13422_v26, %s12243_s16  ;;  %v6567_v26 = vand.u32 2147483647, %v6554_v20  ;;  %v11711_v20 = vld [vmem:[%s12551_s30 + $0x18] sm:$0xff] }
0x187b   : > { %vm6568_vm14 = vcmp.eq.f32.partialorder %v6567_v26, 8.507059e+37 }
0x187c   : > { %v6571_v57 = vsel %vm6568_vm14, %v6570_v28, %v6566_v40 }
0x187d   : > { %v6572_v46 = vmul.f32 %v13468_v21, %v6571_v57 }
0x18ca   : > { %v6441_v27 = vpop.f32.mrf.mxu1 }
0x18cb   : > { %10598 = vmatmul.msk.f32.vlgmr.msra.gmra.mxu3 %vm5417_vm11, %v6441_v27  ;;  %v6705_v49 = vpop.xlane.xlu2 %6704  ;;  %v12089_v27 = vld [vmem:[%s2275_s17] ss:$0 sm:$0xff] }
0x18cc   : > { %12161 = vrcp.f32 %v6705_v49  ;;  %v6720_v7 = vand.u32 2147483648, %v6705_v49  ;;  %vm6714_vm6 = vweird.f32 %v6705_v49  ;;  %v6718_v19 = vand.u32 2147483647, %v6705_v49 }
0x18ce   : > { %v6721_v6 = vor.u32 1.1754944e-38, %v6720_v7  ;;  %vm6719_vm7 = vcmp.eq.f32.partialorder %v6718_v19, 8.507059e+37  ;;  %v10760_v19 = vld [vmem:[%s12569_s13 + $0x100] sm:$0xf] }
0x18d2   : > { %v12162_v24 = vpop.eup %12161 }
0x18d3   : > { %v12076_v42 = vpop.permute.xlu2 %12075  ;;  %v6708_v43 = vpop.xlane.xlu1 %6707  ;;  %v6710_v51 = vmul.f32 %v12162_v24, %v6705_v49  ;;  %vm6715_vm5 = vweird.f32 %v12162_v24 }
0x18d4   : > { %v12077_v34 = vunpack.i.l.bf16 %v12076_v42  ;;  %v12078_v45 = vunpack.i.h.bf16 %v12076_v42  ;;  %12163 = vrcp.f32 %v6708_v43  ;;  %vm6716_vm2 = vmor %vm6714_vm6, %vm6715_vm5  ;;  %v6735_v9 = vand.u32 2147483648, %v6708_v43 }
0x18d5   : > { %v6711_v55 = vsub.f32 1.0, %v6710_v51  ;;  %vm6729_vm9 = vweird.f32 %v6708_v43  ;;  %v6733_v10 = vand.u32 2147483647, %v6708_v43 }
0x18d6   : > { %6614 = vmatpush.msrb.mxu1 %v12077_v34  ;;  %v6736_v18 = vor.u32 1.1754944e-38, %v6735_v9 }
0x18d7   : > { %v6712_v56 = vmul.f32 %v12162_v24, %v6711_v55  ;;  %vm6734_vm12 = vcmp.eq.f32.partialorder %v6733_v10, 8.507059e+37  ;;  %v10825_v55 = vor.u32 %v11768_v53, %v10824_v52  ;;  %v10776_v53 = vld [vmem:[%s12569_s13 + $0x110] sm:$0xf] }
0x18d8   : > { %6615 = vmatpush.msrb.mxu1 %v12078_v45 }
0x18d9   : > { %10610 = vmatmul.msk.f32.vlgmr.msrb.gmra.mxu1 %vm5417_vm11, %v6572_v46  ;;  %v6713_v59 = vadd.f32 %v12162_v24, %v6712_v56  ;;  %v11769_v56 = vld [vmem:[%s12569_s13 + $0x1c4] sm:$0xf0]  ;;  %7554 = vmatpush.bf16.msra.mxu3 %v10825_v55  ;;  %v11746_v55 = vld [vmem:[%s12569_s13 + $0x114] sm:$0xf] }
0x18da   : > { %v12164_v3 = vpop.eup %12163  ;;  %6793 = vmatpush.bf16.msra.mxu1 %v11711_v20  ;;  %v10704_v20 = vld [vmem:[%s12569_s13 + $0x88] sm:$0xf] }
0x18db   : > { %v6725_v58 = vmul.f32 %v12164_v3, %v6708_v43  ;;  %v6717_v1 = vsel %vm6716_vm2, %v12162_v24, %v6713_v59  ;;  %vm6730_vm8 = vweird.f32 %v12164_v3  ;;  %v11761_v59 = vld [vmem:[%s12569_s13 + $0x18c] sm:$0xf] }
0x18dc   : > { %v6722_v15 = vsel %vm6719_vm7, %v6721_v6, %v6717_v1  ;;  %vm6731_vm1 = vmor %vm6729_vm9, %vm6730_vm8  ;;  %v11752_v1 = vld [vmem:[%s12569_s13 + $0x13c] sm:$0xf0] }
0x18dd   : > { %v6726_v60 = vsub.f32 1.0, %v6725_v58  ;;  %v6723_v13 = vmul.f32 %v13477_v62, %v6722_v15  ;;  %v10761_v6 = vor.u32 %v11752_v1, %v10760_v19  ;;  %v10768_v15 = vld [vmem:[%s12569_s13 + $0x108] sm:$0xf]  ;;  %v10786_v19 = vld [vmem:[%s12569_s13 + $0x158] sm:$0xf0] }
0x18df   : > { %v6727_v2 = vmul.f32 %v12164_v3, %v6726_v60  ;;  %v10834_v60 = vld [vmem:[%s12569_s13 + $0x1c8] sm:$0xf0]  ;;  %7555 = vmatpush.bf16.msra.mxu3 %v10761_v6  ;;  %v11738_v6 = vld [vmem:[%s12569_s13 + $0xcc] sm:$0xf0] }
0x18e0   : > { %v10837_v7 = vor.u32 %v11761_v59, %v10834_v60 }
0x18e1   : > { %10611 = vmatmul.msk.f32.gmra.mxu1 %vm5417_vm11, %v6587_v22  ;;  %v6728_v8 = vadd.f32 %v12164_v3, %v6727_v2  ;;  %v10832_v22 = vld [vmem:[%s12569_s13 + $0x188] sm:$0xf]  ;;  %v11744_v2 = vld [vmem:[%s12569_s13 + $0x104] sm:$0xf] }
0x18e2   : > { %7599 = vmatpush.bf16.msrb.mxu1 %v10837_v7  ;;  %v11747_v7 = vld [vmem:[%s12569_s13 + $0x11c] sm:$0xf] }
0x18e3   : > { %v6732_v16 = vsel %vm6731_vm1, %v12164_v3, %v6728_v8  ;;  %v10826_v3 = vld [vmem:[%s12569_s13 + $0x1c0] sm:$0xf0]  ;;  %v10789_v1 = vor.u32 %v11747_v7, %v10786_v19 }
0x18e4   : > { %v6444_v21 = vpop.f32.mrf.mxu1  ;;  %v6737_v25 = vsel %vm6734_vm12, %v6736_v18, %v6732_v16  ;;  %v10829_v58 = vor.u32 %v11760_v54, %v10826_v3  ;;  %v10696_v16 = vld [vmem:[%s12569_s13 + $0x80] sm:$0xf]  ;;  %v11754_v54 = vld [vmem:[%s12569_s13 + $0x14c] sm:$0xf0]  ;;  %v10794_v19 = vld [vmem:[%s12569_s13 + $0x160] sm:$0xf0] }
0x18e5   : > { %10599 = vmatmul.msk.f32.gmra.mxu3 %vm5417_vm11, %v6444_v21  ;;  %v6738_v63 = vmul.f32 %v13482_v38, %v6737_v25  ;;  %v10833_v21 = vor.u32 %v11769_v56, %v10832_v22  ;;  %v11736_v18 = vld [vmem:[%s12569_s13 + $0xbc] sm:$0xf0]  ;;  %v11728_v25 = vld [vmem:[%s12569_s13 + $0x84] sm:$0xf]  ;;  %v10777_v3 = vor.u32 %v11754_v54, %v10776_v53  ;;  %v10778_v22 = vld [vmem:[%s12569_s13 + $0x150] sm:$0xf0] }
0x18e6   : > { %7569 = vmatpush.bf16.msrb.mxu2 %v10829_v58  ;;  %v10784_v56 = vld [vmem:[%s12569_s13 + $0x118] sm:$0xf]  ;;  %v10781_v59 = vor.u32 %v11746_v55, %v10778_v22  ;;  %v11765_v53 = vld [vmem:[%s12569_s13 + $0x1ac] sm:$0xf] }
0x18e7   : > { %v11755_v58 = vld [vmem:[%s12569_s13 + $0x154] sm:$0xf0]  ;;  %v10866_v54 = vld [vmem:[%s12569_s13 + $0x1e8] sm:$0xf0] }
0x18e8   : > { %v10785_v60 = vor.u32 %v11755_v58, %v10784_v56  ;;  %v10792_v56 = vld [vmem:[%s12569_s13 + $0x120] sm:$0xf]  ;;  %v10869_v7 = vor.u32 %v11765_v53, %v10866_v54  ;;  %v11750_v53 = vld [vmem:[%s12569_s13 + $0x134] sm:$0xf] }
0x18e9   : > { %v11756_v58 = vld [vmem:[%s12569_s13 + $0x15c] sm:$0xf0]  ;;  %v10810_v54 = vld [vmem:[%s12569_s13 + $0x170] sm:$0xf0] }
0x18eb   : > { %v12081_v5 = vpop.permute.xlu1 %12080 }
0x18ec   : > { %v12082_v37 = vunpack.i.l.bf16 %v12081_v5  ;;  %v12083_v11 = vunpack.i.h.bf16 %v12081_v5  ;;  %v10762_v5 = vld [vmem:[%s12569_s13 + $0x140] sm:$0xf0] }
0x18ed   : > { %v10765_v8 = vor.u32 %v11744_v2, %v10762_v5  ;;  %v10712_v2 = vld [vmem:[%s12569_s13 + $0x90] sm:$0xf]  ;;  %v11730_v5 = vld [vmem:[%s12569_s13 + $0x94] sm:$0xf] }
0x18ee   : > { %6765 = vmatpush.msra.mxu0 %v12082_v37  ;;  %v11753_v37 = vld [vmem:[%s12569_s13 + $0x144] sm:$0xf0] }
0x18ef   : > { %v10769_v9 = vor.u32 %v11753_v37, %v10768_v15  ;;  %7570 = vmatpush.bf16.msrb.mxu2 %v10765_v8  ;;  %v10713_v15 = vor.u32 %v11738_v6, %v10712_v2  ;;  %v10714_v37 = vld [vmem:[%s12569_s13 + $0xd0] sm:$0xf0]  ;;  %v10720_v8 = vld [vmem:[%s12569_s13 + $0x98] sm:$0xf]  ;;  %v11757_v2 = vld [vmem:[%s12569_s13 + $0x164] sm:$0xf0] }
0x18f0   : > { %6766 = vmatpush.msra.mxu0 %v12083_v11  ;;  %v11745_v11 = vld [vmem:[%s12569_s13 + $0x10c] sm:$0xf] }
0x18f1   : > { %10622 = vmatmul.msk.f32.vlgmr.msra.gmra.mxu0 %vm5417_vm11, %v6723_v13  ;;  %v10770_v13 = vld [vmem:[%s12569_s13 + $0x148] sm:$0xf0] }
0x18f2   : > { %7584 = vmatpush.bf16.msrb.mxu0 %v10833_v21  ;;  %v10773_v10 = vor.u32 %v11745_v11, %v10770_v13  ;;  %v10717_v11 = vor.u32 %v11730_v5, %v10714_v37  ;;  %v11749_v6 = vld [vmem:[%s12569_s13 + $0x12c] sm:$0xf] }
0x18f3   : > { %v10802_v5 = vld [vmem:[%s12569_s13 + $0x168] sm:$0xf0] }
0x18f4   : > { %7600 = vmatpush.bf16.msrb.mxu1 %v10773_v10  ;;  %v11731_v10 = vld [vmem:[%s12569_s13 + $0x9c] sm:$0xf] }
0x18f6   : > { %7585 = vmatpush.bf16.msrb.mxu0 %v10769_v9  ;;  %v11739_v9 = vld [vmem:[%s12569_s13 + $0xd4] sm:$0xf0] }
0x18f7   : > { %v10721_v13 = vor.u32 %v11739_v9, %v10720_v8  ;;  %v10793_v8 = vor.u32 %v11756_v58, %v10792_v56  ;;  %v10818_v56 = vld [vmem:[%s12569_s13 + $0x178] sm:$0xf0] }
0x18f9   : > { %10623 = vmatmul.msk.f32.gmra.mxu0 %vm5417_vm11, %v6738_v63  ;;  %v10697_v63 = vor.u32 %v11736_v18, %v10696_v16  ;;  %v10722_v16 = vld [vmem:[%s12569_s13 + $0xd8] sm:$0xf0]  ;;  %v10648_v18 = vld [vmem:[%s12569_s13 + $0x10] sm:$0xf] }
0x18fb   : > { %7556 = vmatpush.bf16.msra.mxu3 %v10697_v63  ;;  %v10725_v63 = vor.u32 %v11731_v10, %v10722_v16  ;;  %v10805_v16 = vor.u32 %v11749_v6, %v10802_v5  ;;  %v10752_v6 = vld [vmem:[%s12569_s13 + $0xb8] sm:$0xf] }
0x18fc   : > { %v11743_v5 = vld [vmem:[%s12569_s13 + $0xf4] sm:$0xf0] }
0x194e   : > { %v6468_v38 = vpop.f32.mrf.mxu3 }
0x194f   : > { %v6496_v36 = vadd.f32 %v13454_v30, %v6468_v38  ;;  %v10706_v38 = vld [vmem:[%s12569_s13 + $0xc8] sm:$0xf0] }
0x1956   : > { %v6617_v62 = vpop.f32.mrf.mxu1 }
0x1957   : > { %10616 = vmatmul.msk.f32.vlgmr.msrb.gmra.mxu3 %vm5417_vm11, %v6617_v62  ;;  %v11737_v62 = vld [vmem:[%s12569_s13 + $0xc4] sm:$0xf0] }
0x195e   : > { %v6620_v12 = vpop.f32.mrf.mxu1 }
0x195f   : > { %10617 = vmatmul.msk.f32.gmra.mxu3 %vm5417_vm11, %v6620_v12  ;;  %v10701_v12 = vor.u32 %v11728_v25, %v10698_v17  ;;  %v11722_v17 = vld [vmem:[%s12569_s13 + $0x4c] sm:$0xf0] }
0x1961   : > { %7571 = vmatpush.bf16.msrb.mxu2 %v10701_v12 }
0x1968   : > { %v6471_v31 = vpop.f32.mrf.mxu3 }
0x1969   : > { %v6499_v26 = vadd.f32 %v13456_v29, %v6471_v31 }
0x196e   : > { %v6768_v0 = vpop.f32.mrf.mxu0 }
0x196f   : > { %10628 = vmatmul.msk.f32.vlgmr.msra.gmra.mxu1 %vm5417_vm11, %v6768_v0  ;;  %v10705_v0 = vor.u32 %v11737_v62, %v10704_v20  ;;  %v11714_v20 = vld [vmem:[%s12569_s13 + $0x14] sm:$0xf] }
0x1970   : > { %v10650_v62 = vld [vmem:[%s12569_s13 + $0x50] sm:$0xf0] }
0x1971   : > { %7586 = vmatpush.bf16.msrb.mxu0 %v10705_v0  ;;  %v10649_v0 = vor.u32 %v11722_v17, %v10648_v18  ;;  %v11732_v18 = vld [vmem:[%s12569_s13 + $0xa4] sm:$0xf] }
0x1976   : > { %v6771_v32 = vpop.f32.mrf.mxu0 }
0x1977   : > { %10629 = vmatmul.msk.f32.gmra.mxu1 %vm5417_vm11, %v6771_v32  ;;  %v11729_v32 = vld [vmem:[%s12569_s13 + $0x8c] sm:$0xf] }
0x1978   : > { %v10709_v31 = vor.u32 %v11729_v32, %v10706_v38  ;;  %v10653_v32 = vor.u32 %v11714_v20, %v10650_v62  ;;  %v10656_v38 = vld [vmem:[%s12569_s13 + $0x18] sm:$0xf]  ;;  %v11733_v20 = vld [vmem:[%s12569_s13 + $0xac] sm:$0xf] }
0x1979   : > { %v10738_v62 = vld [vmem:[%s12569_s13 + $0xe8] sm:$0xf0] }
0x197a   : > { %7601 = vmatpush.bf16.msrb.mxu1 %v10709_v31  ;;  %v11723_v31 = vld [vmem:[%s12569_s13 + $0x54] sm:$0xf0] }
0x19da   : > { %v6644_v33 = vpop.f32.mrf.mxu3 }
0x19db   : > { %v6650_v48 = vadd.f32 %v6644_v33, %v6496_v36  ;;  %v10632_v33 = vld [vmem:[%s12569_s13] sm:$0xf] }
0x19dc   : > { %v11720_v36 = vld [vmem:[%s12569_s13 + $0x3c] sm:$0xf0] }
0x19e2   : > { %v6647_v39 = vpop.f32.mrf.mxu3 }
0x19e3   : > { %v6651_v41 = vadd.f32 %v6647_v39, %v6499_v26 }
0x19ec   : > { %v6795_v49 = vpop.f32.mrf.mxu1 }
0x19ed   : > { %v6801_v14 = vadd.f32 %v6795_v49, %v6650_v48  ;;  %v11712_v48 = vld [vmem:[%s12569_s13 + $0x4] sm:$0xf] }
0x19ee   : > { %v10634_v49 = vld [vmem:[%s12569_s13 + $0x40] sm:$0xf0] }
0x19ef   : > { %v6807_v61 = vadd.f32 %v12089_v27, %v6801_v14  ;;  %v10640_v14 = vld [vmem:[%s12569_s13 + $0x8] sm:$0xf]  ;;  %v10637_v39 = vor.u32 %v11712_v48, %v10634_v49  ;;  %v10658_v48 = vld [vmem:[%s12569_s13 + $0x58] sm:$0xf0] }
0x19f1   : > { %v6811_v40 = vadd.f32 %v6807_v61, %v13382_v23  ;;  %v11721_v61 = vld [vmem:[%s12569_s13 + $0x44] sm:$0xf0]  ;;  %7572 = vmatpush.bf16.msrb.mxu2 %v10637_v39 }
0x19f2   : > { %v10641_v26 = vor.u32 %v11721_v61, %v10640_v14 }
0x19f3   : > { %v6813_v28 = vsel %vm5362_vm10, %v6811_v40, 0.0 }
0x19f4   : > { %6814 = vadd.xlane.f32.xlu0 %v6813_v28  ;;  %v6798_v42 = vpop.f32.mrf.mxu1  ;;  %7587 = vmatpush.bf16.msrb.mxu0 %v10641_v26 }
0x19f5   : > { %v6802_v57 = vadd.f32 %v6798_v42, %v6651_v41  ;;  %v10642_v41 = vld [vmem:[%s12569_s13 + $0x48] sm:$0xf0]  ;;  %v10840_v42 = vld [vmem:[%s12569_s13 + $0x190] sm:$0xf] }
0x19f7   : > { %v6808_v34 = vadd.f32 %v12089_v27, %v6802_v57  ;;  %v10633_v27 = vor.u32 %v11720_v36, %v10632_v33  ;;  %v11770_v57 = vld [vmem:[%s12569_s13 + $0x1cc] sm:$0xf0]  ;;  %v11715_v33 = vld [vmem:[%s12569_s13 + $0x1c] sm:$0xf]  ;;  %v10657_v36 = vor.u32 %v11723_v31, %v10656_v38  ;;  %v10664_v38 = vld [vmem:[%s12569_s13 + $0x20] sm:$0xf] }
0x19f8   : > { %v10661_v14 = vor.u32 %v11715_v33, %v10658_v48  ;;  %v11724_v31 = vld [vmem:[%s12569_s13 + $0x5c] sm:$0xf0]  ;;  %v11716_v48 = vld [vmem:[%s12569_s13 + $0x24] sm:$0xf] }
0x19f9   : > { %v6812_v30 = vadd.f32 %v6808_v34, %v13386_v50  ;;  %7557 = vmatpush.bf16.msra.mxu3 %v10633_v27  ;;  %v11762_v34 = vld [vmem:[%s12569_s13 + $0x194] sm:$0xf] }
0x19fb   : > { %v6816_v43 = vsel %vm5362_vm10, %v6812_v30, 0.0 }
0x19fc   : > { %6817 = vadd.xlane.f32.xlu2 %v6816_v43  ;;  %v10842_v43 = vld [vmem:[%s12569_s13 + $0x1d0] sm:$0xf0] }
0x1a67   : > { %v6815_v44 = vpop.xlane.xlu0 %6814 }
0x1a68   : > { %v6819_v29 = vmul.f32 %v6815_v44, %v13361_v4  ;;  %v10848_v44 = vld [vmem:[%s12569_s13 + $0x198] sm:$0xf] }
0x1a6a   : > { %v13518_v23 = vsub.f32 %v6811_v40, %v6819_v29  ;;  %v11713_v40 = vld [vmem:[%s12569_s13 + $0xc] sm:$0xf]  ;;  %v11771_v29 = vld [vmem:[%s12569_s13 + $0x1d4] sm:$0xf0] }
0x1a6b   : > { %v10645_v28 = vor.u32 %v11713_v40, %v10642_v41 }
0x1a6c   : > { %v6823_v24 = vmul.f32 %v13518_v23, %v13518_v23 }
0x1a6d   : > { %7602 = vmatpush.bf16.msrb.mxu1 %v10645_v28 }
0x1a6e   : > { %v6825_v35 = vsel %vm5362_vm10, %v6823_v24, 0.0  ;;  %v10845_v24 = vor.u32 %v11762_v34, %v10842_v43  ;;  %v12091_v34 = vld [vmem:[%s2311_s5] ss:$0 sm:$0xff] }
0x1a6f   : > { %6826 = vadd.xlane.f32.xlu1 %v6825_v35  ;;  %v6818_v50 = vpop.xlane.xlu2 %6817  ;;  %v10849_v35 = vor.u32 %v11771_v29, %v10848_v44  ;;  %v10856_v29 = vld [vmem:[%s12569_s13 + $0x1a0] sm:$0xf] }
0x1a70   : > { %v6820_v45 = vmul.f32 %v6818_v50, %v13361_v4  ;;  %v11763_v50 = vld [vmem:[%s12569_s13 + $0x19c] sm:$0xf]  ;;  %7629 = vmatpush.bf16.msra.mxu2 %v10845_v24  ;;  %v11772_v24 = vld [vmem:[%s12569_s13 + $0x1dc] sm:$0xf0] }
0x1a71   : > { %7644 = vmatpush.bf16.msra.mxu0 %v10849_v35  ;;  %v11764_v35 = vld [vmem:[%s12569_s13 + $0x1a4] sm:$0xf] }
0x1a72   : > { %v13524_v46 = vsub.f32 %v6812_v30, %v6820_v45  ;;  %v10841_v30 = vor.u32 %v11770_v57, %v10840_v42  ;;  %v10850_v45 = vld [vmem:[%s12569_s13 + $0x1d8] sm:$0xf0]  ;;  %v12090_v57 = vld [vmem:[%s2302_s18] ss:$0 sm:$0xff] }
0x1a74   : > { %v6824_v47 = vmul.f32 %v13524_v46, %v13524_v46  ;;  %7614 = vmatpush.bf16.msrb.mxu3 %v10841_v30  ;;  %7630 = vmatpush.bf16.msra.mxu2 %v10781_v59 }
0x1a75   : > { %7645 = vmatpush.bf16.msra.mxu0 %v10785_v60 }
0x1a76   : > { %v6828_v51 = vsel %vm5362_vm10, %v6824_v47, 0.0 }
0x1a77   : > { %6829 = vadd.xlane.f32.xlu0 %v6828_v51  ;;  %v10853_v51 = vor.u32 %v11763_v50, %v10850_v45  ;;  %v10858_v45 = vld [vmem:[%s12569_s13 + $0x1e0] sm:$0xf0] }
0x1a78   : > { %7615 = vmatpush.bf16.msrb.mxu3 %v10777_v3  ;;  %7631 = vmatpush.bf16.msra.mxu2 %v10717_v11  ;;  %v10861_v22 = vor.u32 %v11764_v35, %v10858_v45  ;;  %v10728_v11 = vld [vmem:[%s12569_s13 + $0xa0] sm:$0xf]  ;;  %v10808_v45 = vld [vmem:[%s12569_s13 + $0x130] sm:$0xf] }
0x1a79   : > { %7659 = vmatpush.bf16.msra.mxu1 %v10853_v51  ;;  %7646 = vmatpush.bf16.msra.mxu0 %v10721_v13  ;;  %v11740_v13 = vld [vmem:[%s12569_s13 + $0xdc] sm:$0xf0] }
0x1a7c   : > { %7616 = vmatpush.bf16.msrb.mxu3 %v10713_v15  ;;  %7632 = vmatpush.bf16.msra.mxu2 %v10653_v32 }
0x1a7d   : > { %7660 = vmatpush.bf16.msra.mxu1 %v10789_v1  ;;  %7647 = vmatpush.bf16.msra.mxu0 %v10657_v36  ;;  %v10800_v1 = vld [vmem:[%s12569_s13 + $0x128] sm:$0xf]  ;;  %v10741_v36 = vor.u32 %v11733_v20, %v10738_v62  ;;  %v10690_v20 = vld [vmem:[%s12569_s13 + $0x78] sm:$0xf0] }
0x1a7e   : > { %v10801_v10 = vor.u32 %v11757_v2, %v10800_v1  ;;  %v11734_v1 = vld [vmem:[%s12569_s13 + $0xb4] sm:$0xf] }
0x1a7f   : > { %v10746_v2 = vld [vmem:[%s12569_s13 + $0xf0] sm:$0xf0] }
0x1a80   : > { %7617 = vmatpush.bf16.msrb.mxu3 %v10649_v0  ;;  %v10729_v0 = vor.u32 %v11740_v13, %v10728_v11  ;;  %v10680_v11 = vld [vmem:[%s12569_s13 + $0x30] sm:$0xf] }
0x1a81   : > { %7661 = vmatpush.bf16.msra.mxu1 %v10725_v63  ;;  %v10736_v63 = vld [vmem:[%s12569_s13 + $0xa8] sm:$0xf]  ;;  %v11726_v13 = vld [vmem:[%s12569_s13 + $0x6c] sm:$0xf0] }
0x1a82   : > { %v10681_v62 = vor.u32 %v11726_v13, %v10680_v11  ;;  %v11820_v11 = vld [vmem:[%s12577_s15 + $0x160] sm:$0xff]  ;;  %v11827_v13 = vld [vmem:[%s12577_s15 + $0x198] sm:$0xff] }
0x1a85   : > { %7662 = vmatpush.bf16.msra.mxu1 %v10661_v14  ;;  %v11725_v14 = vld [vmem:[%s12569_s13 + $0x64] sm:$0xf0] }
0x1ae2   : > { %v6827_v47 = vpop.xlane.xlu1 %6826 }
0x1ae3   : > { %v6831_v52 = vmul.f32 %v6827_v47, %v13361_v4  ;;  %v10864_v47 = vld [vmem:[%s12569_s13 + $0x1a8] sm:$0xf] }
0x1ae5   : > { %v6833_v21 = vadd.f32 1e-05, %v6831_v52  ;;  %v11773_v52 = vld [vmem:[%s12569_s13 + $0x1e4] sm:$0xf0] }
0x1ae6   : > { %v10865_v60 = vor.u32 %v11773_v52, %v10864_v47  ;;  %v11758_v47 = vld [vmem:[%s12569_s13 + $0x16c] sm:$0xf0] }
0x1ae7   : > { %12165 = vrsqrt.f32 %v6833_v21  ;;  %vm6841_vm13 = vweird.f32 %v6833_v21  ;;  %v10809_v58 = vor.u32 %v11758_v47, %v10808_v45  ;;  %v11786_v45 = vld [vmem:[%s12577_s15 + $0x50] sm:$0xff]  ;;  %v11793_v47 = vld [vmem:[%s12577_s15 + $0x88] sm:$0xff] }
0x1aea   : > { %v6830_v25 = vpop.xlane.xlu0 %6829 }
0x1aeb   : > { %v6832_v12 = vmul.f32 %v6830_v25, %v13361_v4  ;;  %v10730_v25 = vld [vmem:[%s12569_s13 + $0xe0] sm:$0xf0] }
0x1aec   : > { %v10733_v32 = vor.u32 %v11732_v18, %v10730_v25  ;;  %v11718_v18 = vld [vmem:[%s12569_s13 + $0x34] sm:$0xf] }
0x1aed   : > { %v12166_v27 = vpop.eup %12165  ;;  %v6834_v49 = vadd.f32 1e-05, %v6832_v12  ;;  %v10682_v25 = vld [vmem:[%s12569_s13 + $0x70] sm:$0xf0] }
0x1aee   : > { %v6836_v61 = vmul.f32 %v12166_v27, %v6833_v21  ;;  %vm6842_vm11 = vweird.f32 %v12166_v27  ;;  %v11748_v21 = vld [vmem:[%s12569_s13 + $0x124] sm:$0xf] }
0x1aef   : > { %12167 = vrsqrt.f32 %v6834_v49  ;;  %vm6843_vm14 = vmor %vm6841_vm13, %vm6842_vm11  ;;  %vm6851_vm0 = vweird.f32 %v6834_v49  ;;  %v10797_v9 = vor.u32 %v11748_v21, %v10794_v19  ;;  %v10813_v21 = vor.u32 %v11750_v53, %v10810_v54  ;;  %v11785_v53 = vld [vmem:[%s12577_s15 + $0x48] sm:$0xff]  ;;  %v11792_v54 = vld [vmem:[%s12577_s15 + $0x80] sm:$0xff] }
0x1af0   : > { %v6837_v39 = vmul.f32 %v12166_v27, %v6836_v61  ;;  %v11717_v61 = vld [vmem:[%s12569_s13 + $0x2c] sm:$0xf] }
0x1af2   : > { %v6838_v26 = vmul.f32 0.5, %v6837_v39  ;;  %v10674_v39 = vld [vmem:[%s12569_s13 + $0x68] sm:$0xf0] }
0x1af4   : > { %v6839_v40 = vsub.f32 1.5, %v6838_v26  ;;  %v10665_v26 = vor.u32 %v11724_v31, %v10664_v38  ;;  %v11799_v31 = vld [vmem:[%s12577_s15 + $0xb8] sm:$0xff] }
0x1af5   : > { %v12168_v41 = vpop.eup %12167 }
0x1af6   : > { %v6840_v28 = vmul.f32 %v12166_v27, %v6839_v40  ;;  %v6846_v42 = vmul.f32 %v12168_v41, %v6834_v49  ;;  %vm6852_vm15 = vweird.f32 %v12168_v41  ;;  %v10672_v49 = vld [vmem:[%s12569_s13 + $0x28] sm:$0xf] }
0x1af7   : > { %vm6853_vm3 = vmor %vm6851_vm0, %vm6852_vm15 }
0x1af8   : > { %v6844_v30 = vsel %vm6843_vm14, %v12166_v27, %v6840_v28  ;;  %v6847_v43 = vmul.f32 %v12168_v41, %v6846_v42  ;;  %v10666_v27 = vld [vmem:[%s12569_s13 + $0x60] sm:$0xf0]  ;;  %v11774_v28 = vld [vmem:[%s12569_s13 + $0x1ec] sm:$0xf0]  ;;  %v10673_v42 = vor.u32 %v11725_v14, %v10672_v49 }
0x1af9   : > { %v6855_v44 = vmul.f32 %v6844_v30, %v13518_v23  ;;  %v10857_v23 = vor.u32 %v11772_v24, %v10856_v29  ;;  %v10669_v40 = vor.u32 %v11716_v48, %v10666_v27  ;;  %v10874_v30 = vld [vmem:[%s12569_s13 + $0x1f0] sm:$0xf0]  ;;  %v11767_v29 = vld [vmem:[%s12569_s13 + $0x1bc] sm:$0xf] }
0x1afa   : > { %v6848_v50 = vmul.f32 0.5, %v6847_v43  ;;  %v10880_v43 = vld [vmem:[%s12569_s13 + $0x1b8] sm:$0xf]  ;;  %v10882_v24 = vld [vmem:[%s12569_s13 + $0x1f8] sm:$0xf0]  ;;  %v11798_v27 = vld [vmem:[%s12577_s15 + $0xb0] sm:$0xff] }
0x1afb   : > { %v6860_v51 = vmul.f32 %v12090_v57, %v6855_v44  ;;  %v11775_v44 = vld [vmem:[%s12569_s13 + $0x1f4] sm:$0xf0]  ;;  %v10885_v52 = vor.u32 %v11767_v29, %v10882_v24  ;;  %v11806_v49 = vld [vmem:[%s12577_s15 + $0xf0] sm:$0xff] }
0x1afc   : > { %v6849_v55 = vsub.f32 1.5, %v6848_v50  ;;  %v11791_v48 = vld [vmem:[%s12577_s15 + $0x78] sm:$0xff]  ;;  %v11782_v14 = vld [vmem:[%s12577_s15 + $0x30] sm:$0xff] }
0x1afd   : > { %v13610_v3 = vadd.f32 %v12091_v34, %v6860_v51  ;;  %v10881_v51 = vor.u32 %v11775_v44, %v10880_v43  ;;  %v11803_v43 = vld [vmem:[%s12577_s15 + $0xd8] sm:$0xff]  ;;  %v11794_v24 = vld [vmem:[%s12577_s15 + $0x90] sm:$0xff] }
0x1afe   : > { %v6850_v59 = vmul.f32 %v12168_v41, %v6849_v55  ;;  %v10816_v55 = vld [vmem:[%s12569_s13 + $0x138] sm:$0xf] }
0x1aff   : > { %10886 = vmatmul.msk.f32.vlgmr.msra.gmra.mxu3 %vm5362_vm10, %v13610_v3  ;;  %10888 = vmatmul.msk.f32.vlgmr.msrb.gmra.mxu2 %vm5362_vm10, %v13610_v3  ;;  %v11779_v44 = vld [vmem:[%s12577_s15 + $0x18] sm:$0xff] }
0x1b00   : > { %v6854_v15 = vsel %vm6853_vm3, %v12168_v41, %v6850_v59  ;;  %10890 = vmatmul.msk.f32.vlgmr.msrb.gmra.mxu0 %vm5362_vm10, %v13610_v3  ;;  %10892 = vmatmul.msk.f32.vlgmr.msrb.gmra.mxu1 %vm5362_vm10, %v13610_v3  ;;  %v10872_v41 = vld [vmem:[%s12569_s13 + $0x1b0] sm:$0xf]  ;;  %v11787_v29 = vld [vmem:[%s12577_s15 + $0x58] sm:$0xff] }
0x1b01   : > { %v6856_v37 = vmul.f32 %v6854_v15, %v13524_v46  ;;  %7674 = vmatpush.bf16.msra.mxu3 %v10857_v23  ;;  %7689 = vmatpush.bf16.msrb.mxu2 %v10861_v22  ;;  %v11741_v46 = vld [vmem:[%s12569_s13 + $0xe4] sm:$0xf0]  ;;  %v10873_v35 = vor.u32 %v11774_v28, %v10872_v41  ;;  %v11759_v23 = vld [vmem:[%s12569_s13 + $0x174] sm:$0xf0]  ;;  %v11751_v22 = vld [vmem:[%s12569_s13 + $0x13c] sm:$0xf] }
0x1b02   : > { %7704 = vmatpush.bf16.msrb.mxu0 %v10865_v60  ;;  %7719 = vmatpush.bf16.msrb.mxu1 %v10869_v7  ;;  %v10737_v33 = vor.u32 %v11741_v46, %v10736_v63  ;;  %v10744_v59 = vld [vmem:[%s12569_s13 + $0xb0] sm:$0xf]  ;;  %v10817_v7 = vor.u32 %v11759_v23, %v10816_v55  ;;  %v10821_v19 = vor.u32 %v11751_v22, %v10818_v56  ;;  %v11735_v15 = vld [vmem:[%s12569_s13 + $0xbc] sm:$0xf]  ;;  %v10688_v63 = vld [vmem:[%s12569_s13 + $0x38] sm:$0xf] }
0x1b03   : > { %v6861_v17 = vmul.f32 %v12090_v57, %v6856_v37  ;;  %v10677_v57 = vor.u32 %v11717_v61, %v10674_v39  ;;  %v11742_v60 = vld [vmem:[%s12569_s13 + $0xec] sm:$0xf0]  ;;  %v10754_v37 = vld [vmem:[%s12569_s13 + $0xf8] sm:$0xf0]  ;;  %v11797_v39 = vld [vmem:[%s12577_s15 + $0xa8] sm:$0xff] }
0x1b04   : > { %v11719_v46 = vld [vmem:[%s12569_s13 + $0x3c] sm:$0xf]  ;;  %v11790_v61 = vld [vmem:[%s12577_s15 + $0x70] sm:$0xff]  ;;  %v11789_v41 = vld [vmem:[%s12577_s15 + $0x68] sm:$0xff] }
0x1b05   : > { %v13637_v12 = vadd.f32 %v12091_v34, %v6861_v17  ;;  %7675 = vmatpush.bf16.msra.mxu3 %v10793_v8  ;;  %7690 = vmatpush.bf16.msrb.mxu2 %v10797_v9  ;;  %v11766_v34 = vld [vmem:[%s12569_s13 + $0x1b4] sm:$0xf]  ;;  %v10745_v8 = vor.u32 %v11742_v60, %v10744_v59  ;;  %v10749_v9 = vor.u32 %v11734_v1, %v10746_v2  ;;  %v11727_v17 = vld [vmem:[%s12569_s13 + $0x74] sm:$0xf0]  ;;  %v11796_v28 = vld [vmem:[%s12577_s15 + $0xa0] sm:$0xff] }
0x1b06   : > { %7705 = vmatpush.bf16.msrb.mxu0 %v10801_v10  ;;  %7720 = vmatpush.bf16.msrb.mxu1 %v10805_v16  ;;  %v10877_v50 = vor.u32 %v11766_v34, %v10874_v30  ;;  %v10753_v10 = vor.u32 %v11743_v5, %v10752_v6  ;;  %v10757_v16 = vor.u32 %v11735_v15, %v10754_v37  ;;  %v11788_v34 = vld [vmem:[%s12577_s15 + $0x60] sm:$0xff]  ;;  %v11795_v30 = vld [vmem:[%s12577_s15 + $0x98] sm:$0xff]  ;;  %v11830_v60 = vld [vmem:[%s12577_s15 + $0x1b0] sm:$0xff] }
0x1b07   : > { %10887 = vmatmul.msk.f32.gmra.mxu3 %vm5362_vm10, %v13637_v12  ;;  %10889 = vmatmul.msk.f32.gmra.mxu2 %vm5362_vm10, %v13637_v12  ;;  %v10693_v38 = vor.u32 %v11719_v46, %v10690_v20  ;;  %v11800_v55 = vld [vmem:[%s12577_s15 + $0xc0] sm:$0xff]  ;;  %v11831_v23 = vld [vmem:[%s12577_s15 + $0x1b8] sm:$0xff]  ;;  %v11822_v1 = vld [vmem:[%s12577_s15 + $0x170] sm:$0xff] }
0x1b08   : > { %10891 = vmatmul.msk.f32.gmra.mxu0 %vm5362_vm10, %v13637_v12  ;;  %10893 = vmatmul.msk.f32.gmra.mxu1 %vm5362_vm10, %v13637_v12  ;;  %v11839_v22 = vld [vmem:[%s12577_s15 + $0x1f8] sm:$0xff]  ;;  %v11776_v56 = vld [vmem:[%s12577_s15] sm:$0xff]  ;;  %v11829_v2 = vld [vmem:[%s12577_s15 + $0x1a8] sm:$0xff] }
0x1b09   : > { %7676 = vmatpush.bf16.msra.mxu3 %v10729_v0  ;;  %7691 = vmatpush.bf16.msrb.mxu2 %v10733_v32  ;;  %v10685_v0 = vor.u32 %v11718_v18, %v10682_v25  ;;  %v10689_v32 = vor.u32 %v11727_v17, %v10688_v63  ;;  %v11823_v59 = vld [vmem:[%s12577_s15 + $0x178] sm:$0xff]  ;;  %v11837_v6 = vld [vmem:[%s12577_s15 + $0x1e8] sm:$0xff]  ;;  %v11828_v37 = vld [vmem:[%s12577_s15 + $0x1a0] sm:$0xff] }
0x1b0a   : > { %7706 = vmatpush.bf16.msrb.mxu0 %v10737_v33  ;;  %7721 = vmatpush.bf16.msrb.mxu1 %v10741_v36  ;;  %v11807_v33 = vld [vmem:[%s12577_s15 + $0xf8] sm:$0xff]  ;;  %v11813_v5 = vld [vmem:[%s12577_s15 + $0x128] sm:$0xff]  ;;  %v11826_v25 = vld [vmem:[%s12577_s15 + $0x190] sm:$0xff] }
0x1b0b   : > { %v11783_v36 = vld [vmem:[%s12577_s15 + $0x38] sm:$0xff]  ;;  %v11821_v15 = vld [vmem:[%s12577_s15 + $0x168] sm:$0xff]  ;;  %v11834_v63 = vld [vmem:[%s12577_s15 + $0x1d0] sm:$0xff] }
0x1b0c   : > { %v11819_v18 = vld [vmem:[%s12577_s15 + $0x158] sm:$0xff]  ;;  %v11825_v17 = vld [vmem:[%s12577_s15 + $0x188] sm:$0xff]  ;;  %v11810_v20 = vld [vmem:[%s12577_s15 + $0x110] sm:$0xff] }
0x1b0d   : > { %7677 = vmatpush.bf16.msra.mxu3 %v10665_v26  ;;  %7692 = vmatpush.bf16.msrb.mxu2 %v10669_v40  ;;  %v11805_v26 = vld [vmem:[%s12577_s15 + $0xe8] sm:$0xff] }
0x1b0e   : > { %7707 = vmatpush.bf16.msrb.mxu0 %v10673_v42  ;;  %7722 = vmatpush.bf16.msrb.mxu1 %v10677_v57  ;;  %v11781_v40 = vld [vmem:[%s12577_s15 + $0x28] sm:$0xff]  ;;  %v11804_v42 = vld [vmem:[%s12577_s15 + $0xe0] sm:$0xff] }
0x1b0f   : > { %10894 = vmatmul.msk.f32.vlgmr.msrb.gmra.mxu3 %vm5362_vm10, %v13610_v3  ;;  %10896 = vmatmul.msk.f32.vlgmr.msra.gmra.mxu2 %vm5362_vm10, %v13610_v3  ;;  %v11780_v57 = vld [vmem:[%s12577_s15 + $0x20] sm:$0xff]  ;;  %v11833_v46 = vld [vmem:[%s12577_s15 + $0x1c8] sm:$0xff] }
0x1b10   : > { %10898 = vmatmul.msk.f32.vlgmr.msra.gmra.mxu0 %vm5362_vm10, %v13610_v3  ;;  %10900 = vmatmul.msk.f32.vlgmr.msra.gmra.mxu1 %vm5362_vm10, %v13610_v3 }
0x1b11   : > { %7734 = vmatpush.bf16.msrb.mxu3 %v10873_v35  ;;  %7749 = vmatpush.bf16.msra.mxu2 %v10877_v50  ;;  %v11802_v35 = vld [vmem:[%s12577_s15 + $0xd0] sm:$0xff] }
0x1b12   : > { %7764 = vmatpush.bf16.msra.mxu0 %v10881_v51  ;;  %7779 = vmatpush.bf16.msra.mxu1 %v10885_v52  ;;  %v11778_v50 = vld [vmem:[%s12577_s15 + $0x10] sm:$0xff]  ;;  %v11801_v51 = vld [vmem:[%s12577_s15 + $0xc8] sm:$0xff] }
0x1b13   : > { %v11777_v52 = vld [vmem:[%s12577_s15 + $0x8] sm:$0xff] }
0x1b15   : > { %7735 = vmatpush.bf16.msrb.mxu3 %v10809_v58  ;;  %7750 = vmatpush.bf16.msra.mxu2 %v10813_v21  ;;  %v11784_v58 = vld [vmem:[%s12577_s15 + $0x40] sm:$0xff]  ;;  %v11815_v21 = vld [vmem:[%s12577_s15 + $0x138] sm:$0xff] }
0x1b16   : > { %7765 = vmatpush.bf16.msra.mxu0 %v10817_v7  ;;  %7780 = vmatpush.bf16.msra.mxu1 %v10821_v19  ;;  %v11838_v7 = vld [vmem:[%s12577_s15 + $0x1f0] sm:$0xff] }
0x1b17   : > { %10895 = vmatmul.msk.f32.gmra.mxu3 %vm5362_vm10, %v13637_v12  ;;  %10897 = vmatmul.msk.f32.gmra.mxu2 %vm5362_vm10, %v13637_v12  ;;  %v11814_v19 = vld [vmem:[%s12577_s15 + $0x130] sm:$0xff] }
0x1b18   : > { %10899 = vmatmul.msk.f32.gmra.mxu0 %vm5362_vm10, %v13637_v12  ;;  %10901 = vmatmul.msk.f32.gmra.mxu1 %vm5362_vm10, %v13637_v12 }
0x1b19   : > { %7736 = vmatpush.bf16.msrb.mxu3 %v10745_v8  ;;  %7751 = vmatpush.bf16.msra.mxu2 %v10749_v9  ;;  %v11836_v8 = vld [vmem:[%s12577_s15 + $0x1e0] sm:$0xff] }
0x1b1a   : > { %7766 = vmatpush.bf16.msra.mxu0 %v10753_v10  ;;  %7781 = vmatpush.bf16.msra.mxu1 %v10757_v16  ;;  %v11812_v9 = vld [vmem:[%s12577_s15 + $0x120] sm:$0xff]  ;;  %v11835_v10 = vld [vmem:[%s12577_s15 + $0x1d8] sm:$0xff] }
0x1b1b   : > { %v11811_v16 = vld [vmem:[%s12577_s15 + $0x118] sm:$0xff] }
0x1b1d   : > { %7737 = vmatpush.bf16.msrb.mxu3 %v10681_v62  ;;  %7752 = vmatpush.bf16.msra.mxu2 %v10685_v0  ;;  %v11818_v62 = vld [vmem:[%s12577_s15 + $0x150] sm:$0xff]  ;;  %v11824_v0 = vld [vmem:[%s12577_s15 + $0x180] sm:$0xff] }
0x1b1e   : > { %7767 = vmatpush.bf16.msra.mxu0 %v10689_v32  ;;  %7782 = vmatpush.bf16.msra.mxu1 %v10693_v38  ;;  %v11832_v32 = vld [vmem:[%s12577_s15 + $0x1c0] sm:$0xff]  ;;  %v11809_v38 = vld [vmem:[%s12577_s15 + $0x108] sm:$0xff] }
0x1b1f   : > { %10902 = vmatmul.msk.f32.vlgmr.msra.gmra.mxu3 %vm5362_vm10, %v13610_v3  ;;  %10904 = vmatmul.msk.f32.vlgmr.msrb.gmra.mxu2 %vm5362_vm10, %v13610_v3 }
0x1b20   : > { %10906 = vmatmul.msk.f32.vlgmr.msrb.gmra.mxu0 %vm5362_vm10, %v13610_v3  ;;  %10908 = vmatmul.msk.f32.vlgmr.msrb.gmra.mxu1 %vm5362_vm10, %v13610_v3 }
0x1b21   : > { %8593 = vmatpush.bf16.msra.mxu3 %v11783_v36  ;;  %8608 = vmatpush.bf16.msrb.mxu2 %v11791_v48  ;;  %v11816_v36 = vld [vmem:[%s12577_s15 + $0x140] sm:$0xff] }
0x1b22   : > { %8623 = vmatpush.bf16.msrb.mxu0 %v11799_v31  ;;  %8638 = vmatpush.bf16.msrb.mxu1 %v11807_v33  ;;  %v11817_v31 = vld [vmem:[%s12577_s15 + $0x148] sm:$0xff]  ;;  %v11808_v33 = vld [vmem:[%s12577_s15 + $0x100] sm:$0xff] }
0x1b23   : > { %v13800_v48 = vld [vmem:[%s12573_s3] sm:$0xff] }
0x1b25   : > { %8594 = vmatpush.bf16.msra.mxu3 %v11782_v14  ;;  %8609 = vmatpush.bf16.msrb.mxu2 %v11790_v61 }
0x1b26   : > { %8624 = vmatpush.bf16.msrb.mxu0 %v11798_v27  ;;  %8639 = vmatpush.bf16.msrb.mxu1 %v11806_v49  ;;  %v7194_v27 = vperm.slane %v13800_v48, 2  ;;  %v7195_v49 = vperm.slane %v13800_v48, 3 }
0x1b27   : > { %10903 = vmatmul.msk.f32.gmra.mxu3 %vm5362_vm10, %v13637_v12  ;;  %10905 = vmatmul.msk.f32.gmra.mxu2 %vm5362_vm10, %v13637_v12 }
0x1b28   : > { %10907 = vmatmul.msk.f32.gmra.mxu0 %vm5362_vm10, %v13637_v12  ;;  %10909 = vmatmul.msk.f32.gmra.mxu1 %vm5362_vm10, %v13637_v12 }
0x1b29   : > { %8595 = vmatpush.bf16.msra.mxu3 %v11781_v40  ;;  %8610 = vmatpush.bf16.msrb.mxu2 %v11789_v41  ;;  %v11863_v40 = vld [vmem:[%s12577_s15 + $0x2b8] sm:$0xff] }
0x1b2a   : > { %8625 = vmatpush.bf16.msrb.mxu0 %v11797_v39  ;;  %8640 = vmatpush.bf16.msrb.mxu1 %v11805_v26  ;;  %v11871_v41 = vld [vmem:[%s12577_s15 + $0x2f8] sm:$0xff] }
0x1b2d   : > { %8596 = vmatpush.bf16.msra.mxu3 %v11780_v57  ;;  %8611 = vmatpush.bf16.msrb.mxu2 %v11788_v34 }
0x1b2e   : > { %8626 = vmatpush.bf16.msrb.mxu0 %v11796_v28  ;;  %8641 = vmatpush.bf16.msrb.mxu1 %v11804_v42  ;;  %v7192_v28 = vperm.slane %v13800_v48, 0  ;;  %v7193_v42 = vperm.slane %v13800_v48, 1 }
0x1b2f   : > { %10910 = vmatmul.msk.f32.vlgmr.msrb.gmra.mxu3 %vm5362_vm10, %v13610_v3  ;;  %10912 = vmatmul.msk.f32.vlgmr.msra.gmra.mxu2 %vm5362_vm10, %v13610_v3 }
0x1b30   : > { %10914 = vmatmul.msk.f32.vlgmr.msra.gmra.mxu0 %vm5362_vm10, %v13610_v3  ;;  %10916 = vmatmul.msk.f32.vlgmr.msra.gmra.mxu1 %vm5362_vm10, %v13610_v3 }
0x1b31   : > { %8597 = vmatpush.bf16.msra.mxu3 %v11779_v44  ;;  %8612 = vmatpush.bf16.msrb.mxu2 %v11787_v29 }
0x1b32   : > { %8627 = vmatpush.bf16.msrb.mxu0 %v11795_v30  ;;  %8642 = vmatpush.bf16.msrb.mxu1 %v11803_v43 }
0x1b35   : > { %8598 = vmatpush.bf16.msra.mxu3 %v11778_v50  ;;  %8613 = vmatpush.bf16.msrb.mxu2 %v11786_v45 }
0x1b36   : > { %8628 = vmatpush.bf16.msrb.mxu0 %v11794_v24  ;;  %8643 = vmatpush.bf16.msrb.mxu1 %v11802_v35  ;;  %v11862_v24 = vld [vmem:[%s12577_s15 + $0x2b0] sm:$0xff] }
0x1b37   : > { %10911 = vmatmul.msk.f32.gmra.mxu3 %vm5362_vm10, %v13637_v12  ;;  %10913 = vmatmul.msk.f32.gmra.mxu2 %vm5362_vm10, %v13637_v12  ;;  %v11870_v35 = vld [vmem:[%s12577_s15 + $0x2f0] sm:$0xff] }
0x1b38   : > { %10915 = vmatmul.msk.f32.gmra.mxu0 %vm5362_vm10, %v13637_v12  ;;  %10917 = vmatmul.msk.f32.gmra.mxu1 %vm5362_vm10, %v13637_v12 }
0x1b39   : > { %8599 = vmatpush.bf16.msra.mxu3 %v11777_v52  ;;  %8614 = vmatpush.bf16.msrb.mxu2 %v11785_v53  ;;  %v11847_v52 = vld [vmem:[%s12577_s15 + $0x238] sm:$0xff] }
0x1b3a   : > { %8629 = vmatpush.bf16.msrb.mxu0 %v11793_v47  ;;  %8644 = vmatpush.bf16.msrb.mxu1 %v11801_v51  ;;  %v11855_v53 = vld [vmem:[%s12577_s15 + $0x278] sm:$0xff] }
0x1b3d   : > { %8600 = vmatpush.bf16.msra.mxu3 %v11776_v56  ;;  %8615 = vmatpush.bf16.msrb.mxu2 %v11784_v58 }
0x1b3e   : > { %8630 = vmatpush.bf16.msrb.mxu0 %v11792_v54  ;;  %8645 = vmatpush.bf16.msrb.mxu1 %v11800_v55 }
0x1b41   : > { %8653 = vmatpush.bf16.msrb.mxu3 %v11815_v21  ;;  %8668 = vmatpush.bf16.msra.mxu2 %v11823_v59  ;;  %v11846_v21 = vld [vmem:[%s12577_s15 + $0x230] sm:$0xff] }
0x1b42   : > { %8683 = vmatpush.bf16.msra.mxu0 %v11831_v23  ;;  %8698 = vmatpush.bf16.msra.mxu1 %v11839_v22  ;;  %v11861_v23 = vld [vmem:[%s12577_s15 + $0x2a8] sm:$0xff]  ;;  %v11854_v59 = vld [vmem:[%s12577_s15 + $0x270] sm:$0xff] }
0x1b43   : > { %v11869_v22 = vld [vmem:[%s12577_s15 + $0x2e8] sm:$0xff] }
0x1b45   : > { %8654 = vmatpush.bf16.msrb.mxu3 %v11814_v19  ;;  %8669 = vmatpush.bf16.msra.mxu2 %v11822_v1  ;;  %v7198_v19 = vperm.slane %v13800_v48, 6  ;;  %v7199_v1 = vperm.slane %v13800_v48, 7 }
0x1b46   : > { %8684 = vmatpush.bf16.msra.mxu0 %v11830_v60  ;;  %8699 = vmatpush.bf16.msra.mxu1 %v11838_v7 }
0x1b49   : > { %8655 = vmatpush.bf16.msrb.mxu3 %v11813_v5  ;;  %8670 = vmatpush.bf16.msra.mxu2 %v11821_v15  ;;  %v11860_v5 = vld [vmem:[%s12577_s15 + $0x2a0] sm:$0xff] }
0x1b4a   : > { %8685 = vmatpush.bf16.msra.mxu0 %v11829_v2  ;;  %8700 = vmatpush.bf16.msra.mxu1 %v11837_v6  ;;  %v11868_v15 = vld [vmem:[%s12577_s15 + $0x2e0] sm:$0xff] }
0x1b4d   : > { %8656 = vmatpush.bf16.msrb.mxu3 %v11812_v9  ;;  %8671 = vmatpush.bf16.msra.mxu2 %v11820_v11 }
0x1b4e   : > { %8686 = vmatpush.bf16.msra.mxu0 %v11828_v37  ;;  %8701 = vmatpush.bf16.msra.mxu1 %v11836_v8 }
0x1b51   : > { %8657 = vmatpush.bf16.msrb.mxu3 %v11811_v16  ;;  %8672 = vmatpush.bf16.msra.mxu2 %v11819_v18 }
0x1b52   : > { %8687 = vmatpush.bf16.msra.mxu0 %v11827_v13  ;;  %8702 = vmatpush.bf16.msra.mxu1 %v11835_v10  ;;  %v11845_v13 = vld [vmem:[%s12577_s15 + $0x228] sm:$0xff] }
0x1b53   : > { %v11853_v10 = vld [vmem:[%s12577_s15 + $0x268] sm:$0xff] }
0x1b55   : > { %8658 = vmatpush.bf16.msrb.mxu3 %v11810_v20  ;;  %8673 = vmatpush.bf16.msra.mxu2 %v11818_v62 }
0x1b56   : > { %8688 = vmatpush.bf16.msra.mxu0 %v11826_v25  ;;  %8703 = vmatpush.bf16.msra.mxu1 %v11834_v63  ;;  %v11859_v25 = vld [vmem:[%s12577_s15 + $0x298] sm:$0xff] }
0x1b57   : > { %v11867_v63 = vld [vmem:[%s12577_s15 + $0x2d8] sm:$0xff] }
0x1b59   : > { %8659 = vmatpush.bf16.msrb.mxu3 %v11809_v38  ;;  %8674 = vmatpush.bf16.msra.mxu2 %v11817_v31 }
0x1b5a   : > { %8689 = vmatpush.bf16.msra.mxu0 %v11825_v17  ;;  %8704 = vmatpush.bf16.msra.mxu1 %v11833_v46  ;;  %v7196_v17 = vperm.slane %v13800_v48, 4  ;;  %v7197_v46 = vperm.slane %v13800_v48, 5  ;;  %v11858_v48 = vld [vmem:[%s12577_s15 + $0x290] sm:$0xff] }
0x1b5d   : > { %8660 = vmatpush.bf16.msrb.mxu3 %v11808_v33  ;;  %8675 = vmatpush.bf16.msra.mxu2 %v11816_v36 }
0x1b5e   : > { %8690 = vmatpush.bf16.msra.mxu0 %v11824_v0  ;;  %8705 = vmatpush.bf16.msra.mxu1 %v11832_v32  ;;  %v11844_v0 = vld [vmem:[%s12577_s15 + $0x220] sm:$0xff] }
0x1b5f   : > { %v11852_v32 = vld [vmem:[%s12577_s15 + $0x260] sm:$0xff] }
0x1b7d   : > { %v7589_v14 = vpop.f32.mrf.mxu0  ;;  %v7604_v61 = vpop.f32.mrf.mxu1 }
0x1b7e   : > { %v7590_v39 = vadd.f32 %v7589_v14, %v7194_v27  ;;  %v7605_v26 = vadd.f32 %v7604_v61, %v7195_v49 }
0x1b80   : > { %v7792_v57 = vmax.f32 %v7590_v39, 0.0  ;;  %v7793_v34 = vmax.f32 %v7605_v26, 0.0  ;;  %v11843_v26 = vld [vmem:[%s12577_s15 + $0x218] sm:$0xff] }
0x1b82   : > { %8631 = vmatmul.f32.vlgmr.msrb.gmra.mxu0 %v7792_v57  ;;  %8646 = vmatmul.f32.vlgmr.msrb.gmra.mxu1 %v7793_v34  ;;  %v7559_v30 = vpop.f32.mrf.mxu3  ;;  %v7574_v43 = vpop.f32.mrf.mxu2  ;;  %v11865_v57 = vld [vmem:[%s12577_s15 + $0x2c8] sm:$0xff] }
0x1b83   : > { %8743 = vmatpush.bf16.msrb.mxu0 %v11863_v40  ;;  %8758 = vmatpush.bf16.msrb.mxu1 %v11871_v41  ;;  %v7560_v44 = vadd.f32 %v7559_v30, %v7192_v28  ;;  %v7575_v29 = vadd.f32 %v7574_v43, %v7193_v42  ;;  %v11851_v40 = vld [vmem:[%s12577_s15 + $0x258] sm:$0xff]  ;;  %v13835_v34 = vld [vmem:[%s12573_s3 + $0x8] sm:$0xff] }
0x1b85   : > { %v7790_v50 = vmax.f32 %v7560_v44, 0.0  ;;  %v7791_v45 = vmax.f32 %v7575_v29, 0.0  ;;  %v7592_v47 = vpop.f32.mrf.mxu0  ;;  %v7607_v51 = vpop.f32.mrf.mxu1  ;;  %v11842_v44 = vld [vmem:[%s12577_s15 + $0x210] sm:$0xff] }
0x1b86   : > { %v7593_v54 = vadd.f32 %v7592_v47, %v7194_v27  ;;  %v7608_v55 = vadd.f32 %v7607_v51, %v7195_v49  ;;  %v11866_v27 = vld [vmem:[%s12577_s15 + $0x2d0] sm:$0xff] }
0x1b87   : > { %8744 = vmatpush.bf16.msrb.mxu0 %v11862_v24  ;;  %8759 = vmatpush.bf16.msrb.mxu1 %v11870_v35  ;;  %v11850_v29 = vld [vmem:[%s12577_s15 + $0x250] sm:$0xff] }
0x1b88   : > { %v7808_v56 = vmax.f32 %v7593_v54, 0.0  ;;  %v7809_v58 = vmax.f32 %v7608_v55, 0.0  ;;  %8601 = vmatmul.f32.vlgmr.msra.gmra.mxu3 %v7790_v50  ;;  %8616 = vmatmul.f32.vlgmr.msrb.gmra.mxu2 %v7791_v45  ;;  %v7202_v50 = vperm.slane %v13835_v34, 2  ;;  %v7203_v45 = vperm.slane %v13835_v34, 3  ;;  %v11895_v54 = vld [vmem:[%s12577_s15 + $0x3b8] sm:$0xff] }
0x1b89   : > { %8713 = vmatpush.bf16.msra.mxu3 %v11847_v52  ;;  %8728 = vmatpush.bf16.msrb.mxu2 %v11855_v53  ;;  %v11856_v52 = vld [vmem:[%s12577_s15 + $0x280] sm:$0xff]  ;;  %v11903_v55 = vld [vmem:[%s12577_s15 + $0x3f8] sm:$0xff] }
0x1b8a   : > { %8634 = vmatmul.f32.gmra.mxu0 %v7808_v56  ;;  %8649 = vmatmul.f32.gmra.mxu1 %v7809_v58  ;;  %v7562_v60 = vpop.f32.mrf.mxu3  ;;  %v7577_v7 = vpop.f32.mrf.mxu2  ;;  %v11864_v53 = vld [vmem:[%s12577_s15 + $0x2c0] sm:$0xff] }
0x1b8b   : > { %8745 = vmatpush.bf16.msrb.mxu0 %v11861_v23  ;;  %8760 = vmatpush.bf16.msrb.mxu1 %v11869_v22  ;;  %v7563_v2 = vadd.f32 %v7562_v60, %v7192_v28  ;;  %v7578_v6 = vadd.f32 %v7577_v7, %v7193_v42  ;;  %v11857_v42 = vld [vmem:[%s12577_s15 + $0x288] sm:$0xff] }
0x1b8c   : > { %v11841_v60 = vld [vmem:[%s12577_s15 + $0x208] sm:$0xff] }
0x1b8d   : > { %v7806_v37 = vmax.f32 %v7563_v2, 0.0  ;;  %v7807_v8 = vmax.f32 %v7578_v6, 0.0  ;;  %8714 = vmatpush.bf16.msra.mxu3 %v11846_v21  ;;  %8729 = vmatpush.bf16.msrb.mxu2 %v11854_v59  ;;  %v7649_v9 = vpop.f32.mrf.mxu0  ;;  %v7664_v11 = vpop.f32.mrf.mxu1  ;;  %v11849_v7 = vld [vmem:[%s12577_s15 + $0x248] sm:$0xff] }
0x1b8e   : > { %v7650_v16 = vadd.f32 %v7649_v9, %v7198_v19  ;;  %v7665_v18 = vadd.f32 %v7664_v11, %v7199_v1  ;;  %v11840_v9 = vld [vmem:[%s12577_s15 + $0x200] sm:$0xff] }
0x1b8f   : > { %8746 = vmatpush.bf16.msrb.mxu0 %v11860_v5  ;;  %8761 = vmatpush.bf16.msrb.mxu1 %v11868_v15  ;;  %v11894_v5 = vld [vmem:[%s12577_s15 + $0x3b0] sm:$0xff]  ;;  %v11848_v11 = vld [vmem:[%s12577_s15 + $0x240] sm:$0xff] }
0x1b90   : > { %v7796_v20 = vmax.f32 %v7650_v16, 0.0  ;;  %v7797_v62 = vmax.f32 %v7665_v18, 0.0  ;;  %8604 = vmatmul.f32.gmra.mxu3 %v7806_v37  ;;  %8619 = vmatmul.f32.gmra.mxu2 %v7807_v8  ;;  %v11902_v15 = vld [vmem:[%s12577_s15 + $0x3f0] sm:$0xff]  ;;  %v11879_v16 = vld [vmem:[%s12577_s15 + $0x338] sm:$0xff] }
0x1b91   : > { %8715 = vmatpush.bf16.msra.mxu3 %v11845_v13  ;;  %8730 = vmatpush.bf16.msrb.mxu2 %v11853_v10  ;;  %v11887_v18 = vld [vmem:[%s12577_s15 + $0x378] sm:$0xff] }
0x1b92   : > { %8691 = vmatmul.f32.vlgmr.msra.gmra.mxu0 %v7796_v20  ;;  %8706 = vmatmul.f32.vlgmr.msra.gmra.mxu1 %v7797_v62  ;;  %v7619_v38 = vpop.f32.mrf.mxu3  ;;  %v7634_v31 = vpop.f32.mrf.mxu2 }
0x1b93   : > { %8747 = vmatpush.bf16.msrb.mxu0 %v11859_v25  ;;  %8762 = vmatpush.bf16.msrb.mxu1 %v11867_v63  ;;  %v7620_v33 = vadd.f32 %v7619_v38, %v7196_v17  ;;  %v7635_v36 = vadd.f32 %v7634_v31, %v7197_v46  ;;  %v11893_v25 = vld [vmem:[%s12577_s15 + $0x3a8] sm:$0xff]  ;;  %v11878_v38 = vld [vmem:[%s12577_s15 + $0x330] sm:$0xff] }
0x1b94   : > { %v11901_v63 = vld [vmem:[%s12577_s15 + $0x3e8] sm:$0xff]  ;;  %v11886_v31 = vld [vmem:[%s12577_s15 + $0x370] sm:$0xff] }
0x1b95   : > { %v7794_v49 = vmax.f32 %v7620_v33, 0.0  ;;  %v7795_v14 = vmax.f32 %v7635_v36, 0.0  ;;  %8716 = vmatpush.bf16.msra.mxu3 %v11844_v0  ;;  %8731 = vmatpush.bf16.msrb.mxu2 %v11852_v32  ;;  %v7652_v61 = vpop.f32.mrf.mxu0  ;;  %v7667_v39 = vpop.f32.mrf.mxu1 }
0x1b96   : > { %v7653_v41 = vadd.f32 %v7652_v61, %v7198_v19  ;;  %v7668_v28 = vadd.f32 %v7667_v39, %v7199_v1  ;;  %v7200_v19 = vperm.slane %v13835_v34, 0  ;;  %v7201_v1 = vperm.slane %v13835_v34, 1 }
0x1b97   : > { %8748 = vmatpush.bf16.msrb.mxu0 %v11858_v48  ;;  %8763 = vmatpush.bf16.msrb.mxu1 %v11866_v27  ;;  %v11892_v48 = vld [vmem:[%s12577_s15 + $0x3a0] sm:$0xff] }
0x1b98   : > { %v7812_v30 = vmax.f32 %v7653_v41, 0.0  ;;  %v7813_v43 = vmax.f32 %v7668_v28, 0.0  ;;  %8661 = vmatmul.f32.vlgmr.msrb.gmra.mxu3 %v7794_v49  ;;  %8676 = vmatmul.f32.vlgmr.msra.gmra.mxu2 %v7795_v14  ;;  %v11900_v27 = vld [vmem:[%s12577_s15 + $0x3e0] sm:$0xff]  ;;  %v11891_v41 = vld [vmem:[%s12577_s15 + $0x398] sm:$0xff] }
0x1b99   : > { %8717 = vmatpush.bf16.msra.mxu3 %v11843_v26  ;;  %8732 = vmatpush.bf16.msrb.mxu2 %v11851_v40  ;;  %v11877_v26 = vld [vmem:[%s12577_s15 + $0x328] sm:$0xff]  ;;  %v11899_v28 = vld [vmem:[%s12577_s15 + $0x3d8] sm:$0xff] }
0x1b9a   : > { %8694 = vmatmul.f32.gmra.mxu0 %v7812_v30  ;;  %8709 = vmatmul.f32.gmra.mxu1 %v7813_v43  ;;  %v7622_v24 = vpop.f32.mrf.mxu3  ;;  %v7637_v35 = vpop.f32.mrf.mxu2  ;;  %v11885_v40 = vld [vmem:[%s12577_s15 + $0x368] sm:$0xff]  ;;  %v11876_v30 = vld [vmem:[%s12577_s15 + $0x320] sm:$0xff] }
0x1b9b   : > { %8749 = vmatpush.bf16.msrb.mxu0 %v11857_v42  ;;  %8764 = vmatpush.bf16.msrb.mxu1 %v11865_v57  ;;  %v7623_v47 = vadd.f32 %v7622_v24, %v7196_v17  ;;  %v7638_v51 = vadd.f32 %v7637_v35, %v7197_v46  ;;  %v11884_v43 = vld [vmem:[%s12577_s15 + $0x360] sm:$0xff]  ;;  %v11875_v24 = vld [vmem:[%s12577_s15 + $0x318] sm:$0xff] }
0x1b9c   : > { %v11883_v35 = vld [vmem:[%s12577_s15 + $0x358] sm:$0xff] }
0x1b9d   : > { %v7810_v23 = vmax.f32 %v7623_v47, 0.0  ;;  %v7811_v22 = vmax.f32 %v7638_v51, 0.0  ;;  %8718 = vmatpush.bf16.msra.mxu3 %v11842_v44  ;;  %8733 = vmatpush.bf16.msrb.mxu2 %v11850_v29  ;;  %v7709_v56 = vpop.f32.mrf.mxu0  ;;  %v7724_v58 = vpop.f32.mrf.mxu1  ;;  %v11890_v44 = vld [vmem:[%s12577_s15 + $0x390] sm:$0xff]  ;;  %v11889_v47 = vld [vmem:[%s12577_s15 + $0x388] sm:$0xff] }
0x1b9e   : > { %v7710_v21 = vadd.f32 %v7709_v56, %v7202_v50  ;;  %v7725_v59 = vadd.f32 %v7724_v58, %v7203_v45  ;;  %v11898_v29 = vld [vmem:[%s12577_s15 + $0x3d0] sm:$0xff]  ;;  %v11897_v51 = vld [vmem:[%s12577_s15 + $0x3c8] sm:$0xff] }
0x1b9f   : > { %8750 = vmatpush.bf16.msrb.mxu0 %v11856_v52  ;;  %8765 = vmatpush.bf16.msrb.mxu1 %v11864_v53  ;;  %v7206_v52 = vperm.slane %v13835_v34, 6  ;;  %v7207_v53 = vperm.slane %v13835_v34, 7 }
0x1ba0   : > { %v7800_v2 = vmax.f32 %v7710_v21, 0.0  ;;  %v7801_v6 = vmax.f32 %v7725_v59, 0.0  ;;  %8664 = vmatmul.f32.gmra.mxu3 %v7810_v23  ;;  %8679 = vmatmul.f32.gmra.mxu2 %v7811_v22  ;;  %v11888_v23 = vld [vmem:[%s12577_s15 + $0x380] sm:$0xff] }
0x1ba1   : > { %8719 = vmatpush.bf16.msra.mxu3 %v11841_v60  ;;  %8734 = vmatpush.bf16.msrb.mxu2 %v11849_v7  ;;  %v11896_v22 = vld [vmem:[%s12577_s15 + $0x3c0] sm:$0xff]  ;;  %v11873_v60 = vld [vmem:[%s12577_s15 + $0x308] sm:$0xff] }
0x1ba2   : > { %v7679_v37 = vpop.f32.mrf.mxu3  ;;  %v7694_v8 = vpop.f32.mrf.mxu2  ;;  %8751 = vmatmul.f32.vlgmr.msrb.gmra.mxu0 %v7800_v2  ;;  %8766 = vmatmul.f32.vlgmr.msrb.gmra.mxu1 %v7801_v6  ;;  %v11881_v7 = vld [vmem:[%s12577_s15 + $0x348] sm:$0xff] }
0x1ba3   : > { %8803 = vmatpush.bf16.msra.mxu0 %v11895_v54  ;;  %8818 = vmatpush.bf16.msra.mxu1 %v11903_v55  ;;  %v7680_v13 = vadd.f32 %v7679_v37, %v7200_v19  ;;  %v7695_v10 = vadd.f32 %v7694_v8, %v7201_v1  ;;  %v11874_v54 = vld [vmem:[%s12577_s15 + $0x310] sm:$0xff]  ;;  %v11872_v37 = vld [vmem:[%s12577_s15 + $0x300] sm:$0xff] }
0x1ba4   : > { %v11882_v55 = vld [vmem:[%s12577_s15 + $0x350] sm:$0xff]  ;;  %v11880_v8 = vld [vmem:[%s12577_s15 + $0x340] sm:$0xff]  ;;  %s14084_s15 = sld [smem:[#allocation48_spill]] }
0x1ba5   : > { %v7798_v17 = vmax.f32 %v7680_v13, 0.0  ;;  %v7799_v46 = vmax.f32 %v7695_v10, 0.0  ;;  %v7712_v20 = vpop.f32.mrf.mxu0  ;;  %v7727_v62 = vpop.f32.mrf.mxu1  ;;  %8720 = vmatpush.bf16.msra.mxu3 %v11840_v9  ;;  %8735 = vmatpush.bf16.msrb.mxu2 %v11848_v11 }
0x1ba6   : > { %v7713_v0 = vadd.f32 %v7712_v20, %v7202_v50  ;;  %v7728_v32 = vadd.f32 %v7727_v62, %v7203_v45 }
0x1ba7   : > { %8804 = vmatpush.bf16.msra.mxu0 %v11894_v5  ;;  %8819 = vmatpush.bf16.msra.mxu1 %v11902_v15 }
0x1ba8   : > { %v7816_v33 = vmax.f32 %v7713_v0, 0.0  ;;  %v7817_v36 = vmax.f32 %v7728_v32, 0.0  ;;  %8721 = vmatmul.f32.vlgmr.msra.gmra.mxu3 %v7798_v17  ;;  %8736 = vmatmul.f32.vlgmr.msrb.gmra.mxu2 %v7799_v46 }
0x1ba9   : > { %8773 = vmatpush.bf16.msrb.mxu3 %v11879_v16  ;;  %8788 = vmatpush.bf16.msra.mxu2 %v11887_v18 }
0x1baa   : > { %v7682_v49 = vpop.f32.mrf.mxu3  ;;  %v7697_v14 = vpop.f32.mrf.mxu2  ;;  %8754 = vmatmul.f32.gmra.mxu0 %v7816_v33  ;;  %8769 = vmatmul.f32.gmra.mxu1 %v7817_v36  ;;  %p11430_p11 = scmp.ne.s32.totalorder %s14084_s15, 7 }
0x1bab   : > { %8805 = vmatpush.bf16.msra.mxu0 %v11893_v25  ;;  %8820 = vmatpush.bf16.msra.mxu1 %v11901_v63  ;;  %v7683_v61 = vadd.f32 %v7682_v49, %v7200_v19  ;;  %v7698_v39 = vadd.f32 %v7697_v14, %v7201_v1  ;;  %v7204_v19 = vperm.slane %v13835_v34, 4  ;;  %v7205_v1 = vperm.slane %v13835_v34, 5  ;;  %v12092_v49 = vld [vmem:[%s2370_s23] ss:$0 sm:$0xff]  ;;  %s14086_s0 = sld [smem:[#allocation45_spill]] (!%p11430_p11) }
0x1bac   : > { %s14087_s18 = sld [smem:[#allocation46_spill]] (!%p11430_p11) }
0x1bad   : > { %8774 = vmatpush.bf16.msrb.mxu3 %v11878_v38  ;;  %8789 = vmatpush.bf16.msra.mxu2 %v11886_v31  ;;  %v7814_v42 = vmax.f32 %v7683_v61, 0.0  ;;  %v7815_v57 = vmax.f32 %v7698_v39, 0.0  ;;  %v7769_v50 = vpop.f32.mrf.mxu0  ;;  %v7784_v45 = vpop.f32.mrf.mxu1 }
0x1bae   : > { %v7770_v56 = vadd.f32 %v7769_v50, %v7206_v52  ;;  %v7785_v58 = vadd.f32 %v7784_v45, %v7207_v53 }
0x1baf   : > { %8806 = vmatpush.bf16.msra.mxu0 %v11892_v48  ;;  %8821 = vmatpush.bf16.msra.mxu1 %v11900_v27 }
0x1bb0   : > { %8724 = vmatmul.f32.gmra.mxu3 %v7814_v42  ;;  %8739 = vmatmul.f32.gmra.mxu2 %v7815_v57  ;;  %v7804_v2 = vmax.f32 %v7770_v56, 0.0  ;;  %v7805_v6 = vmax.f32 %v7785_v58, 0.0 }
0x1bb1   : > { %8775 = vmatpush.bf16.msrb.mxu3 %v11877_v26  ;;  %8790 = vmatpush.bf16.msra.mxu2 %v11885_v40 }
0x1bb2   : > { %v7739_v21 = vpop.f32.mrf.mxu3  ;;  %v7754_v59 = vpop.f32.mrf.mxu2 }
0x1bb3   : > { %8807 = vmatpush.bf16.msra.mxu0 %v11891_v41  ;;  %8822 = vmatpush.bf16.msra.mxu1 %v11899_v28  ;;  %v7740_v9 = vadd.f32 %v7739_v21, %v7204_v19  ;;  %v7755_v11 = vadd.f32 %v7754_v59, %v7205_v1 }
0x1bb5   : > { %8776 = vmatpush.bf16.msrb.mxu3 %v11876_v30  ;;  %8791 = vmatpush.bf16.msra.mxu2 %v11884_v43  ;;  %v7772_v5 = vpop.f32.mrf.mxu0  ;;  %v7787_v15 = vpop.f32.mrf.mxu1  ;;  %v7802_v16 = vmax.f32 %v7740_v9, 0.0  ;;  %v7803_v34 = vmax.f32 %v7755_v11, 0.0 }
0x1bb6   : > { %v7773_v13 = vadd.f32 %v7772_v5, %v7206_v52  ;;  %v7788_v10 = vadd.f32 %v7787_v15, %v7207_v53 }
0x1bb7   : > { %8808 = vmatpush.bf16.msra.mxu0 %v11890_v44  ;;  %8823 = vmatpush.bf16.msra.mxu1 %v11898_v29 }
0x1bb8   : > { %v7820_v63 = vmax.f32 %v7773_v13, 0.0  ;;  %v7821_v17 = vmax.f32 %v7788_v10, 0.0 }
0x1bb9   : > { %8777 = vmatpush.bf16.msrb.mxu3 %v11875_v24  ;;  %8792 = vmatpush.bf16.msra.mxu2 %v11883_v35 }
0x1bba   : > { %v7742_v18 = vpop.f32.mrf.mxu3  ;;  %v7757_v25 = vpop.f32.mrf.mxu2 }
0x1bbb   : > { %8809 = vmatpush.bf16.msra.mxu0 %v11889_v47  ;;  %8824 = vmatpush.bf16.msra.mxu1 %v11897_v51  ;;  %v7743_v46 = vadd.f32 %v7742_v18, %v7204_v19  ;;  %v7758_v20 = vadd.f32 %v7757_v25, %v7205_v1 }
0x1bbd   : > { %8778 = vmatpush.bf16.msrb.mxu3 %v11874_v54  ;;  %8793 = vmatpush.bf16.msra.mxu2 %v11882_v55  ;;  %v7818_v62 = vmax.f32 %v7743_v46, 0.0  ;;  %v7819_v0 = vmax.f32 %v7758_v20, 0.0 }
0x1bbf   : > { %8810 = vmatpush.bf16.msra.mxu0 %v11888_v23  ;;  %8825 = vmatpush.bf16.msra.mxu1 %v11896_v22 }
0x1bc1   : > { %8779 = vmatpush.bf16.msrb.mxu3 %v11873_v60  ;;  %8794 = vmatpush.bf16.msra.mxu2 %v11881_v7 }
0x1bc2   : > { %8811 = vmatmul.f32.vlgmr.msra.gmra.mxu0 %v7804_v2  ;;  %8826 = vmatmul.f32.vlgmr.msra.gmra.mxu1 %v7805_v6 }
0x1bc5   : > { %8780 = vmatpush.bf16.msrb.mxu3 %v11872_v37  ;;  %8795 = vmatpush.bf16.msra.mxu2 %v11880_v8 }
0x1bc8   : > { %8781 = vmatmul.f32.vlgmr.msrb.gmra.mxu3 %v7802_v16  ;;  %8796 = vmatmul.f32.vlgmr.msra.gmra.mxu2 %v7803_v34 }
0x1bca   : > { %8814 = vmatmul.f32.gmra.mxu0 %v7820_v63  ;;  %8829 = vmatmul.f32.gmra.mxu1 %v7821_v17 }
0x1bd0   : > { %8784 = vmatmul.f32.gmra.mxu3 %v7818_v62  ;;  %8799 = vmatmul.f32.gmra.mxu2 %v7819_v0 }
0x1bff   : > { %v8632_v31 = vpop.f32.mrf.mxu0  ;;  %v8647_v33 = vpop.f32.mrf.mxu1 }
0x1c07   : > { %v8635_v27 = vpop.f32.mrf.mxu0  ;;  %v8650_v14 = vpop.f32.mrf.mxu1 }
0x1c0b   : > { %v8602_v32 = vpop.f32.mrf.mxu3  ;;  %v8617_v38 = vpop.f32.mrf.mxu2 }
0x1c0c   : > { %v8603_v61 = vadd.f32 %v12092_v49, %v8602_v32 }
0x1c0e   : > { %v8618_v40 = vadd.f32 %v8617_v38, %v8603_v61 }
0x1c0f   : > { %v8692_v41 = vpop.f32.mrf.mxu0  ;;  %v8707_v28 = vpop.f32.mrf.mxu1 }
0x1c10   : > { %v8633_v42 = vadd.f32 %v8632_v31, %v8618_v40 }
0x1c12   : > { %v8648_v43 = vadd.f32 %v8647_v33, %v8633_v42 }
0x1c13   : > { %v8605_v36 = vpop.f32.mrf.mxu3  ;;  %v8620_v48 = vpop.f32.mrf.mxu2 }
0x1c14   : > { %v8606_v57 = vadd.f32 %v12092_v49, %v8605_v36 }
0x1c16   : > { %v8621_v30 = vadd.f32 %v8620_v48, %v8606_v57 }
0x1c17   : > { %v8695_v35 = vpop.f32.mrf.mxu0  ;;  %v8710_v45 = vpop.f32.mrf.mxu1 }
0x1c18   : > { %v8636_v50 = vadd.f32 %v8635_v27, %v8621_v30 }
0x1c1a   : > { %v8651_v51 = vadd.f32 %v8650_v14, %v8636_v50 }
0x1c1b   : > { %v8662_v39 = vpop.f32.mrf.mxu3  ;;  %v8677_v26 = vpop.f32.mrf.mxu2 }
0x1c1c   : > { %v8663_v24 = vadd.f32 %v8662_v39, %v8648_v43 }
0x1c1e   : > { %v8678_v47 = vadd.f32 %v8677_v26, %v8663_v24 }
0x1c1f   : > { %v8752_v23 = vpop.f32.mrf.mxu0  ;;  %v8767_v58 = vpop.f32.mrf.mxu1 }
0x1c20   : > { %v8693_v52 = vadd.f32 %v8692_v41, %v8678_v47 }
0x1c22   : > { %v8708_v56 = vadd.f32 %v8707_v28, %v8693_v52 }
0x1c23   : > { %v8665_v44 = vpop.f32.mrf.mxu3  ;;  %v8680_v29 = vpop.f32.mrf.mxu2 }
0x1c24   : > { %v8666_v53 = vadd.f32 %v8665_v44, %v8651_v51 }
0x1c26   : > { %v8681_v22 = vadd.f32 %v8680_v29, %v8666_v53 }
0x1c27   : > { %v8755_v2 = vpop.f32.mrf.mxu0  ;;  %v8770_v15 = vpop.f32.mrf.mxu1 }
0x1c28   : > { %v8696_v59 = vadd.f32 %v8695_v35, %v8681_v22 }
0x1c2a   : > { %v8711_v1 = vadd.f32 %v8710_v45, %v8696_v59 }
0x1c2b   : > { %v8722_v54 = vpop.f32.mrf.mxu3  ;;  %v8737_v55 = vpop.f32.mrf.mxu2 }
0x1c2c   : > { %v8723_v21 = vadd.f32 %v8722_v54, %v8708_v56  ;;  %v12094_v56 = vld [vmem:[%s2329_s12] ss:$0 sm:$0xff]  ;;  %s14085_s12 = sld [smem:[#allocation44_spill]] (!%p11430_p11) }
0x1c2e   : > { %v8738_v60 = vadd.f32 %v8737_v55, %v8723_v21  ;;  %v12093_v55 = vld [vmem:[%s2320_s25] ss:$0 sm:$0xff] }
0x1c30   : > { %v8753_v6 = vadd.f32 %v8752_v23, %v8738_v60 }
0x1c32   : > { %v8768_v8 = vadd.f32 %v8767_v58, %v8753_v6 }
0x1c33   : > { %v8725_v7 = vpop.f32.mrf.mxu3  ;;  %v8740_v19 = vpop.f32.mrf.mxu2 }
0x1c34   : > { %v8726_v5 = vadd.f32 %v8725_v7, %v8711_v1 }
0x1c36   : > { %v8741_v37 = vadd.f32 %v8740_v19, %v8726_v5 }
0x1c38   : > { %v8756_v16 = vadd.f32 %v8755_v2, %v8741_v37 }
0x1c3a   : > { %v8771_v63 = vadd.f32 %v8770_v15, %v8756_v16 }
0x1c3f   : > { %v8812_v10 = vpop.f32.mrf.mxu0  ;;  %v8827_v18 = vpop.f32.mrf.mxu1 }
0x1c47   : > { %v8815_v31 = vpop.f32.mrf.mxu0  ;;  %v8830_v36 = vpop.f32.mrf.mxu1 }
0x1c4b   : > { %v8782_v9 = vpop.f32.mrf.mxu3  ;;  %v8797_v11 = vpop.f32.mrf.mxu2 }
0x1c4c   : > { %v8783_v13 = vadd.f32 %v8782_v9, %v8768_v8 }
0x1c4e   : > { %v8798_v34 = vadd.f32 %v8797_v11, %v8783_v13 }
0x1c50   : > { %v8813_v25 = vadd.f32 %v8812_v10, %v8798_v34 }
0x1c52   : > { %v8828_v17 = vadd.f32 %v8827_v18, %v8813_v25 }
0x1c53   : > { %v8785_v46 = vpop.f32.mrf.mxu3  ;;  %v8800_v0 = vpop.f32.mrf.mxu2 }
0x1c54   : > { %v8786_v20 = vadd.f32 %v8785_v46, %v8771_v63  ;;  %v8835_v62 = vadd.f32 %v8828_v17, %v13610_v3 }
0x1c56   : > { %v8801_v32 = vadd.f32 %v8800_v0, %v8786_v20  ;;  %v8837_v38 = vsel %vm5362_vm10, %v8835_v62, 0.0 }
0x1c57   : > { %8838 = vadd.xlane.f32.xlu0 %v8837_v38 }
0x1c58   : > { %v8816_v33 = vadd.f32 %v8815_v31, %v8801_v32 }
0x1c5a   : > { %v8831_v48 = vadd.f32 %v8830_v36, %v8816_v33 }
0x1c5c   : > { %v8836_v27 = vadd.f32 %v8831_v48, %v13637_v12 }
0x1c5e   : > { %v8840_v49 = vsel %vm5362_vm10, %v8836_v27, 0.0 }
0x1c5f   : > { %8841 = vadd.xlane.f32.xlu0 %v8840_v49 }
0x1cca   : > { %v8839_v14 = vpop.xlane.xlu0 %8838 }
0x1ccb   : > { %v8843_v61 = vmul.f32 %v8839_v14, %v13361_v4 }
0x1ccd   : > { %v8845_v39 = vsub.f32 %v8835_v62, %v8843_v61 }
0x1ccf   : > { %v8847_v26 = vmul.f32 %v8845_v39, %v8845_v39 }
0x1cd1   : > { %v8849_v3 = vsel %vm5362_vm10, %v8847_v26, 0.0 }
0x1cd2   : > { %8850 = vadd.xlane.f32.xlu2 %v8849_v3  ;;  %v8842_v40 = vpop.xlane.xlu0 %8841 }
0x1cd3   : > { %v8844_v41 = vmul.f32 %v8842_v40, %v13361_v4 }
0x1cd5   : > { %v8846_v28 = vsub.f32 %v8836_v27, %v8844_v41 }
0x1cd7   : > { %v8848_v42 = vmul.f32 %v8846_v28, %v8846_v28 }
0x1cd9   : > { %v8852_v57 = vsel %vm5362_vm10, %v8848_v42, 0.0 }
0x1cda   : > { %8853 = vadd.xlane.f32.xlu1 %v8852_v57 }
0x1d45   : > { %v8851_v12 = vpop.xlane.xlu2 %8850 }
0x1d46   : > { %v8855_v30 = vmul.f32 %v8851_v12, %v13361_v4 }
0x1d48   : > { %v8857_v43 = vadd.f32 1e-05, %v8855_v30 }
0x1d4a   : > { %12169 = vrsqrt.f32 %v8857_v43  ;;  %vm8865_vm5 = vweird.f32 %v8857_v43 }
0x1d4d   : > { %v8854_v44 = vpop.xlane.xlu1 %8853 }
0x1d4e   : > { %v8856_v29 = vmul.f32 %v8854_v44, %v13361_v4 }
0x1d50   : > { %v12170_v24 = vpop.eup %12169  ;;  %v8858_v35 = vadd.f32 1e-05, %v8856_v29 }
0x1d51   : > { %v8860_v50 = vmul.f32 %v12170_v24, %v8857_v43  ;;  %vm8866_vm4 = vweird.f32 %v12170_v24 }
0x1d52   : > { %12171 = vrsqrt.f32 %v8858_v35  ;;  %vm8867_vm6 = vmor %vm8865_vm5, %vm8866_vm4  ;;  %vm8875_vm7 = vweird.f32 %v8858_v35 }
0x1d53   : > { %v8861_v45 = vmul.f32 %v12170_v24, %v8860_v50 }
0x1d55   : > { %v8862_v47 = vmul.f32 0.5, %v8861_v45 }
0x1d57   : > { %v8863_v51 = vsub.f32 1.5, %v8862_v47 }
0x1d58   : > { %v12172_v52 = vpop.eup %12171 }
0x1d59   : > { %v8864_v53 = vmul.f32 %v12170_v24, %v8863_v51  ;;  %v8870_v54 = vmul.f32 %v12172_v52, %v8858_v35  ;;  %vm8876_vm2 = vweird.f32 %v12172_v52 }
0x1d5a   : > { %vm8877_vm8 = vmor %vm8875_vm7, %vm8876_vm2 }
0x1d5b   : > { %v8868_v23 = vsel %vm8867_vm6, %v12170_v24, %v8864_v53  ;;  %v8871_v22 = vmul.f32 %v12172_v52, %v8870_v54 }
0x1d5c   : > { %v8879_v58 = vmul.f32 %v8868_v23, %v8845_v39 }
0x1d5d   : > { %v8872_v21 = vmul.f32 0.5, %v8871_v22 }
0x1d5e   : > { %v8884_v59 = vmul.f32 %v12093_v55, %v8879_v58 }
0x1d5f   : > { %v8873_v60 = vsub.f32 1.5, %v8872_v21 }
0x1d60   : > { %v8889_v7 = vadd.f32 %v12094_v56, %v8884_v59 }
0x1d61   : > { %v8874_v19 = vmul.f32 %v12172_v52, %v8873_v60 }
0x1d62   : > { %8891 = vst.msk [vmem:[#allocation3] sm:$0xff] %vm5362_vm10, %v8889_v7 }
0x1d63   : > { %v8878_v1 = vsel %vm8877_vm8, %v12172_v52, %v8874_v19 }
0x1d64   : > { %v8880_v2 = vmul.f32 %v8878_v1, %v8846_v28 }
0x1d66   : > { %v8885_v6 = vmul.f32 %v12093_v55, %v8880_v2  ;;  %8896 = sbr.rel (%p11430_p11) target bundleno = 7808 (0x1e80), region = 216 }
0x1d68   : > { %v8890_v5 = vadd.f32 %v12094_v56, %v8885_v6 }
0x1d6a   : > { %8892 = vst.msk [vmem:[#allocation3 + $0x8] sm:$0xff] %vm5362_vm10, %v8890_v5 }
0x1d6b   : > { %v8899_v15 = vsel %vm5362_vm10, %v8889_v7, 0.0  ;;  %v8902_v37 = vsel %vm5362_vm10, %v8890_v5, 0.0  ;;  %v12173_v61 = vld [vmem:[%s14085_s12] ss:$0 sm:$0xff] }
0x1d6c   : > { %8900 = vadd.xlane.f32.xlu0 %v8899_v15  ;;  %v12174_v3 = vld [vmem:[%s14086_s0] ss:$0 sm:$0xff] }
0x1d74   : > { %8903 = vadd.xlane.f32.xlu0 %v8902_v37 }
0x1ddf   : > { %v8901_v8 = vpop.xlane.xlu0 %8900 }
0x1de0   : > { %v8905_v9 = vmul.f32 %v8901_v8, %v13361_v4 }
0x1de2   : > { %v8907_v11 = vsub.f32 %v8889_v7, %v8905_v9 }
0x1de4   : > { %v8909_v13 = vmul.f32 %v8907_v11, %v8907_v11 }
0x1de6   : > { %v8911_v10 = vsel %vm5362_vm10, %v8909_v13, 0.0 }
0x1de7   : > { %8912 = vadd.xlane.f32.xlu1 %v8911_v10  ;;  %v8904_v16 = vpop.xlane.xlu0 %8903 }
0x1de8   : > { %v8906_v34 = vmul.f32 %v8904_v16, %v13361_v4 }
0x1dea   : > { %v8908_v18 = vsub.f32 %v8890_v5, %v8906_v34 }
0x1dec   : > { %v8910_v25 = vmul.f32 %v8908_v18, %v8908_v18 }
0x1dee   : > { %v8914_v63 = vsel %vm5362_vm10, %v8910_v25, 0.0 }
0x1def   : > { %8915 = vadd.xlane.f32.xlu1 %v8914_v63 }
0x1e5a   : > { %v8913_v17 = vpop.xlane.xlu1 %8912 }
0x1e5b   : > { %v8917_v46 = vmul.f32 %v8913_v17, %v13361_v4 }
0x1e5d   : > { %v8919_v20 = vadd.f32 1e-05, %v8917_v46 }
0x1e5f   : > { %12175 = vrsqrt.f32 %v8919_v20  ;;  %vm8927_vm1 = vweird.f32 %v8919_v20 }
0x1e62   : > { %v8916_v62 = vpop.xlane.xlu1 %8915 }
0x1e63   : > { %v8918_v0 = vmul.f32 %v8916_v62, %v13361_v4 }
0x1e65   : > { %v12176_v32 = vpop.eup %12175  ;;  %v8920_v38 = vadd.f32 1e-05, %v8918_v0 }
0x1e66   : > { %v8922_v31 = vmul.f32 %v12176_v32, %v8919_v20  ;;  %vm8928_vm9 = vweird.f32 %v12176_v32 }
0x1e67   : > { %12177 = vrsqrt.f32 %v8920_v38  ;;  %vm8929_vm12 = vmor %vm8927_vm1, %vm8928_vm9  ;;  %vm8937_vm13 = vweird.f32 %v8920_v38 }
0x1e68   : > { %v8923_v33 = vmul.f32 %v12176_v32, %v8922_v31 }
0x1e6a   : > { %v8924_v36 = vmul.f32 0.5, %v8923_v33 }
0x1e6c   : > { %v8925_v48 = vsub.f32 1.5, %v8924_v36 }
0x1e6d   : > { %v12178_v27 = vpop.eup %12177 }
0x1e6e   : > { %v8926_v49 = vmul.f32 %v12176_v32, %v8925_v48  ;;  %v8932_v14 = vmul.f32 %v12178_v27, %v8920_v38  ;;  %vm8938_vm11 = vweird.f32 %v12178_v27 }
0x1e6f   : > { %vm8939_vm14 = vmor %vm8937_vm13, %vm8938_vm11 }
0x1e70   : > { %v8930_v39 = vsel %vm8929_vm12, %v12176_v32, %v8926_v49  ;;  %v8933_v26 = vmul.f32 %v12178_v27, %v8932_v14 }
0x1e71   : > { %v8941_v4 = vmul.f32 %v8930_v39, %v8907_v11 }
0x1e72   : > { %v8934_v40 = vmul.f32 0.5, %v8933_v26 }
0x1e73   : > { %v8946_v41 = vmul.f32 %v12173_v61, %v8941_v4 }
0x1e74   : > { %v8935_v28 = vsub.f32 1.5, %v8934_v40 }
0x1e75   : > { %v8951_v42 = vadd.f32 %v12174_v3, %v8946_v41 }
0x1e76   : > { %v8936_v57 = vmul.f32 %v12178_v27, %v8935_v28 }
0x1e77   : > { %8953 = vst.msk [vmem:[%s14087_s18] sm:$0xff] %vm5362_vm10, %v8951_v42 }
0x1e78   : > { %v8940_v12 = vsel %vm8939_vm14, %v12178_v27, %v8936_v57 }
0x1e79   : > { %v8942_v30 = vmul.f32 %v8940_v12, %v8908_v18 }
0x1e7b   : > { %v8947_v43 = vmul.f32 %v12173_v61, %v8942_v30 }
0x1e7d   : > { %v8952_v44 = vadd.f32 %v12174_v3, %v8947_v43 }
0x1e7f   : > { %8954 = vst.msk [vmem:[%s14087_s18 + $0x8] sm:$0xff] %vm5362_vm10, %v8952_v44 }
0x1e80 PF: > { %s14088_s25 = sld [smem:[#allocation47_spill]] }
0x1e86   : > { %s97_s22 = sadd.s32 1, %s14088_s25  }
0x1e87   : > { %p94_p12 = scmp.ge.s32.totalorder %s97_s22, 10  }
0x1e89   :  { %96 = sbr.rel (!%p94_p12) target bundleno = 92 (0x5c), region = 378 }

</bundles_post_ra>
